<compile_context>
chip_gen: v5e
topology: v5e:2x2
jax: 0.10.0
libtpu: 0.0.40
codegen_flags: <defaults>
</compile_context>

<pallas_src>
import functools

import jax
import jax.numpy as jnp
from jax.experimental import pallas as pl
from jax.experimental.pallas import tpu as pltpu


def _round_up(x, m):
    return ((x + m - 1) // m) * m


# ----------------------------- Pallas kernels ------------------------------

def _stem_kernel(a_ref, b_ref, bias_ref, o_ref, s_ref):
    """im2col matmul (K=27) + bias + ReLU, plus per-tile channel row-sums
    emitted as a side output (feeds the aux heads' global average pool without
    re-reading the 256-wide feature map from HBM)."""
    acc = jnp.dot(a_ref[...], b_ref[...], preferred_element_type=jnp.float32)
    act = jnp.maximum(acc + bias_ref[...], 0.0)
    o_ref[...] = act.astype(o_ref.dtype)
    s_ref[...] = jnp.sum(act, axis=0, keepdims=True).reshape(s_ref.shape)


def _rpn_head_kernel(x_ref, w9_ref, cb_ref, wh_ref, hb_ref, o_ref, *,
                     tap_offsets, rows_grp):
    """3x3 'same' conv (256->256) + ReLU fused with the 1x1 RPN cls/bbox head.

    x_ref : [1, 1, rows_blk, Cin]  one row-group window, padded-row layout,
                                   3*Wp halo rows at the end
    w9_ref: [9, Cin, Cout]         tap-major conv weights
    cb_ref: [1, Cout]              conv bias
    wh_ref: [Cout, 128]            head weights (25 real cols, zero-padded)
    hb_ref: [1, 128]               head bias   (25 real,      zero-padded)
    o_ref : [1, rows_grp, 128]     lane-dense fused head output
    """
    # Local-value accumulation over the 9 taps: no scratch zero-fill and no
    # per-tap VMEM read-modify-write.
    acc = jnp.dot(x_ref[0, 0, pl.ds(tap_offsets[0], rows_grp), :], w9_ref[0],
                  preferred_element_type=jnp.float32)
    for t in range(1, 9):
        # TODO(synk): the +1/+2 horizontal taps are sublane-misaligned slices;
        # an XLU roll of the 8-aligned slab would remove the relayout copies.
        acc = acc + jnp.dot(
            x_ref[0, 0, pl.ds(tap_offsets[t], rows_grp), :], w9_ref[t],
            preferred_element_type=jnp.float32)
    feat = jnp.maximum(acc + cb_ref[...], 0.0).astype(jnp.bfloat16)
    head = jnp.dot(feat, wh_ref[...], preferred_element_type=jnp.float32)
    o_ref[0, :, :] = (head + hb_ref[...]).astype(o_ref.dtype)


# ------------------------------ kernel wrappers -----------------------------

def _pick_tm(rows_per_image, target=1024):
    """Largest multiple-of-8 divisor of rows_per_image (<= target): every
    M-tile of the stem matmul then lies inside a single image, so the fused
    per-tile channel sums reduce cleanly to per-image sums."""
    best = None
    for tm in range(8, min(rows_per_image, target) + 1, 8):
        if rows_per_image % tm == 0:
            best = tm
    return best


def stem_conv_pool(patches, w, bias, *, tm, out_dtype=jnp.bfloat16):
    """feat = relu(patches @ w + bias); also returns per-M-tile channel sums."""
    M, K = patches.shape
    K2, N = w.shape
    assert K == K2 and M % tm == 0, (M, K, K2, tm)
    nt = M // tm
    bias2 = bias.reshape(1, N).astype(jnp.float32)
    return pl.pallas_call(
        _stem_kernel,
        out_shape=(jax.ShapeDtypeStruct((M, N), out_dtype),
                   jax.ShapeDtypeStruct((nt, 1, N), jnp.float32)),
        grid_spec=pltpu.PrefetchScalarGridSpec(
            num_scalar_prefetch=0,
            grid=(nt,),
            in_specs=[
                pl.BlockSpec((tm, K), lambda i: (i, 0)),
                pl.BlockSpec((K, N), lambda i: (0, 0)),      # resident weights
                pl.BlockSpec((1, N), lambda i: (0, 0)),
            ],
            out_specs=(pl.BlockSpec((tm, N), lambda i: (i, 0)),
                       pl.BlockSpec((1, 1, N), lambda i: (i, 0, 0))),
        ),
        compiler_params=pltpu.CompilerParams(
            dimension_semantics=("parallel",)),
    )(patches, w, bias2)


def _pick_row_group(rows_out, wp, cin, n_head, budget=6 << 20, cap=1024):
    """Conv-output rows (padded-row units) per grid step: a multiple-of-8
    divisor of rows_out whose per-step VMEM footprint fits `budget`, preferring
    >= 2 groups so both v7x TensorCores get work even at batch 1."""
    cands = []
    for rg in range(8, min(rows_out, cap) + 1, 8):
        if rows_out % rg:
            continue
        per_step = ((rg + 3 * wp) * cin * 2 * 2   # bf16 input block, dbl-buffered
                    + rg * n_head * 4 * 2         # f32 output block, dbl-buffered
                    + 3 * rg * cin * 4)           # f32 local acc + slice temps
        if per_step <= budget:
            cands.append(rg)
    assert cands, "rows_out must be a multiple of 8"
    multi = [rg for rg in cands if rows_out // rg >= 2]
    return max(multi) if multi else max(cands)


def rpn_conv_head(x_nhwc, conv_w, conv_b, head_w, head_b):
    """Fused RPN head: 3x3 stride-1 'same' conv + ReLU, then the 1x1
    objectness/box-delta convs as a single lane-dense (padded-to-128) matmul,
    all inside one kernel — the 256-wide conv activation never touches HBM.

    Returns [B, H, W, n_head_real] float32.
    """
    B, H, W, Cin = x_nhwc.shape
    Cout, Cin2, kh, kw = conv_w.shape
    assert (kh, kw) == (3, 3) and Cin2 == Cin
    n_real = head_w.shape[1]
    NH = 128                                   # lane-dense head width
    assert n_real <= NH

    # Padded-row layout: pixel (y, x) -> flat row y*Wp + x; Wp rounded up to a
    # multiple of 8 so group bases and vertical tap offsets are sublane-aligned
    # (columns x >= W are junk and cropped at the end).
    Wp = _round_up(W + 2, 8)
    rows_out = H * Wp
    Rg = _pick_row_group(rows_out, Wp, Cin, NH)
    G = rows_out // Rg
    rows_blk = Rg + 3 * Wp                     # row group + halo

    xp = jnp.pad(x_nhwc.astype(jnp.bfloat16),
                 ((0, 0), (1, 2), (1, Wp - W - 1), (0, 0)))
    xp = xp.reshape(B, (H + 3) * Wp, Cin)
    # Overlapping row-group windows (halo duplicated in HBM, ~3*Wp/Rg extra) so
    # each grid step's input is a plain rectangular, non-overlapping block.
    x_groups = jnp.stack(
        [jax.lax.slice_in_dim(xp, g * Rg, g * Rg + rows_blk, axis=1)
         for g in range(G)], axis=1)           # [B, G, rows_blk, Cin]

    w9 = conv_w.transpose(2, 3, 1, 0).reshape(9, Cin, Cout).astype(jnp.bfloat16)
    cb = conv_b.reshape(1, Cout).astype(jnp.float32)
    wh = jnp.zeros((Cout, NH), jnp.bfloat16).at[:, :n_real].set(
        head_w.astype(jnp.bfloat16))
    hb = jnp.zeros((1, NH), jnp.float32).at[0, :n_real].set(
        head_b.astype(jnp.float32))

    tap_offsets = tuple(i * Wp + j for i in range(3) for j in range(3))
    kernel = functools.partial(_rpn_head_kernel, tap_offsets=tap_offsets,
                               rows_grp=Rg)

    # Scoped-VMEM request computed from the actual blocks (v5e default is only
    # 16 MiB; v7x physical is 64 MiB).
    est = (2 * (rows_blk * Cin * 2
                + 9 * Cin * Cout * 2 + Cout * 4 + Cout * NH * 2 + NH * 4
                + Rg * NH * 4)
           + 4 * Rg * Cout * 4)
    vmem_limit = int(min(64 << 20, max(32 << 20, 2 * est)))

    out = pl.pallas_call(
        kernel,
        out_shape=jax.ShapeDtypeStruct((B, rows_out, NH), jnp.float32),
        grid_spec=pltpu.PrefetchScalarGridSpec(
            num_scalar_prefetch=0,
            grid=(B, G),
            in_specs=[
                pl.BlockSpec((1, 1, rows_blk, Cin), lambda b, g: (b, g, 0, 0)),
                pl.BlockSpec((9, Cin, Cout), lambda b, g: (0, 0, 0)),
                pl.BlockSpec((1, Cout), lambda b, g: (0, 0)),
                pl.BlockSpec((Cout, NH), lambda b, g: (0, 0)),
                pl.BlockSpec((1, NH), lambda b, g: (0, 0)),
            ],
            out_specs=pl.BlockSpec((1, Rg, NH), lambda b, g: (b, g, 0)),
        ),
        compiler_params=pltpu.CompilerParams(
            dimension_semantics=("parallel", "parallel"),
            vmem_limit_bytes=vmem_limit),
    )(x_groups, w9, cb, wh, hb)

    return out.reshape(B, H, Wp, NH)[:, :, :W, :n_real]


# ------------------------------- the module ---------------------------------

class CustomFasterRCNNPallas:
    def __init__(self, key,
                 num_birads_classes=5,
                 num_density_classes=4,
                 backbone_out_channels=256,
                 num_anchors=5,  # 1 size x 5 aspect ratios per FPN level
                 image_mean=(0.485, 0.456, 0.406),
                 image_std=(0.229, 0.224, 0.225)):
        self.image_mean = image_mean
        self.image_std = image_std
        C = backbone_out_channels
        A = num_anchors

        keys = jax.random.split(key, 12)

        def conv_init(kw_, cout, cin, k):
            return jax.random.normal(kw_, (cout, cin, k, k), jnp.float32) * 0.05

        def bias_init(kb_, cout):
            return jax.random.normal(kb_, (cout,), jnp.float32) * 0.01

        # backbone proxy: 3x3 conv 3 -> 256 (+ReLU)
        self.stem_w = conv_init(keys[0], C, 3, 3)
        self.stem_b = bias_init(keys[1], C)
        # RPN head: 3x3 conv 256 -> 256 (+ReLU), 1x1 cls (A), 1x1 bbox (4A)
        self.rpn_conv_w = conv_init(keys[2], C, C, 3)
        self.rpn_conv_b = bias_init(keys[3], C)
        self.rpn_cls_w = conv_init(keys[4], A, C, 1)
        self.rpn_cls_b = bias_init(keys[5], A)
        self.rpn_bbox_w = conv_init(keys[6], 4 * A, C, 1)
        self.rpn_bbox_b = bias_init(keys[7], 4 * A)
        # auxiliary classifiers (birads / density)
        self.birads_w = jax.random.normal(keys[8], (num_birads_classes, C),
                                          jnp.float32) * 0.05
        self.birads_b = bias_init(keys[9], num_birads_classes)
        self.density_w = jax.random.normal(keys[10], (num_density_classes, C),
                                           jnp.float32) * 0.05
        self.density_b = bias_init(keys[11], num_density_classes)

    def __call__(self, images):
        B, _, H, W = images.shape
        mean = jnp.asarray(self.image_mean, jnp.float32)
        inv_std = 1.0 / jnp.asarray(self.image_std, jnp.float32)

        # -- transform: per-channel normalization, NCHW -> NHWC (fused XLA
        #    elementwise on the 3-channel input; no standalone Pallas pass).
        x = images.transpose(0, 2, 3, 1)                      # [B, H, W, 3]
        x = (x - mean) * inv_std

        # -- backbone proxy: 3x3 conv 3->256 + ReLU as a tiny-K (27, unpadded)
        #    im2col matmul.  Per-tile channel row-sums for the aux heads'
        #    global average pool are emitted as a fused side output so the
        #    256-wide feature map is never re-read from HBM.
        # TODO(synk): full ResNet-101 + FPN backbone not translated.
        xp = jnp.pad(x, ((0, 0), (1, 1), (1, 1), (0, 0)))
        patches = jnp.concatenate(
            [xp[:, i:i + H, j:j + W, :] for i in range(3) for j in range(3)],
            axis=-1).reshape(B * H * W, 27).astype(jnp.bfloat16)
        w_stem = (self.stem_w.transpose(2, 3, 1, 0)
                  .reshape(27, -1).astype(jnp.bfloat16))
        tm = _pick_tm(H * W)      # multiple-of-8 divisor of H*W, up to 1024
        assert tm is not None, "H*W must be a multiple of 8"  # TODO(synk): generic fallback for odd spatial sizes
        feat0_flat, tile_sums = stem_conv_pool(patches, w_stem, self.stem_b,
                                               tm=tm)         # [B*H*W, 256]
        C = feat0_flat.shape[-1]
        feat0 = feat0_flat.reshape(B, H, W, C)

        # -- RPN: shared 3x3 conv + ReLU fused with the 1x1 objectness + bbox
        #    convs (single kernel, lane-dense 128-wide head output).
        nA = self.rpn_cls_w.shape[0]
        w_head = jnp.concatenate([self.rpn_cls_w.reshape(nA, C),
                                  self.rpn_bbox_w.reshape(4 * nA, C)],
                                 axis=0).T                    # [C, 25]
        b_head = jnp.concatenate([self.rpn_cls_b, self.rpn_bbox_b], axis=0)
        head = rpn_conv_head(feat0, self.rpn_conv_w, self.rpn_conv_b,
                             w_head, b_head)                  # [B, H, W, 25]
        objectness = head[..., :nA].transpose(0, 3, 1, 2)     # [B, A, H, W]
        bbox_deltas = head[..., nA:].transpose(0, 3, 1, 2)    # [B, 4A, H, W]
        detections = (objectness, bbox_deltas)
        # TODO(synk): anchor decoding, proposal NMS, RoIAlign and the box/ROI
        # head have no clean Pallas equivalent; raw RPN outputs returned.

        # -- auxiliary birads / density heads: finish the global average pool
        #    from the fused per-tile sums (tiny [B, tiles, C] reduction), then
        #    Linear + softmax in XLA (O(B*C*9) flops — not worth a launch).
        tiles_per_image = (H * W) // tm
        pooled = tile_sums.reshape(B, tiles_per_image, C).sum(axis=1)
        pooled = pooled * (1.0 / float(H * W))                # [B, C] f32
        birads_probs = jax.nn.softmax(
            pooled @ self.birads_w.T + self.birads_b, axis=-1)
        density_probs = jax.nn.softmax(
            pooled @ self.density_w.T + self.density_b, axis=-1)

        return detections, birads_probs, density_probs


# ---------------------------------- main -------------------------------------

if __name__ == "__main__":
    key = jax.random.PRNGKey(0)
    pkey, ikey = jax.random.split(key)

    model = CustomFasterRCNNPallas(pkey)

    # small eval-mode input: batch=2, RGB, 16x16 spatial (NCHW)
    images = jax.random.uniform(ikey, (2, 3, 16, 16), jnp.float32)

    forward = jax.jit(model.__call__)
    (objectness, bbox_deltas), birads_probs, density_probs = forward(images)
    jax.block_until_ready((objectness, bbox_deltas, birads_probs, density_probs))

    assert objectness.shape == (2, 5, 16, 16)
    assert bbox_deltas.shape == (2, 20, 16, 16)
    assert birads_probs.shape == (2, 5)
    assert density_probs.shape == (2, 4)
    assert jnp.allclose(jnp.sum(birads_probs, axis=-1), 1.0, atol=1e-5)
    assert jnp.allclose(jnp.sum(density_probs, axis=-1), 1.0, atol=1e-5)

    print("KERNEL_OK")
</pallas_src>

<mosaic_0001>
module attributes {stable_mosaic.version = 11 : i64} {
  func.func @_stem_kernel(%arg0: i32, %arg1: memref<256x27xbf16, #tpu.memory_space<vmem>>, %arg2: memref<27x256xbf16, #tpu.memory_space<vmem>>, %arg3: memref<1x256xf32, #tpu.memory_space<vmem>>, %arg4: memref<256x256xbf16, #tpu.memory_space<vmem>>, %arg5: memref<1x1x256xf32, #tpu.memory_space<vmem>>) attributes {dimension_semantics = [#tpu.dimension_semantics<parallel>], iteration_bounds = array<i64: 2>, scalar_prefetch = 0 : i64, scratch_operands = 0 : i64, tpu.core_type = #tpu.core_type<tc>, window_params = [{transform_indices = @transform_0, window_bounds = array<i64: 256, 27>}, {pipeline_mode = #tpu.pipeline_mode<synchronous>, transform_indices = @transform_1, window_bounds = array<i64: 27, 256>}, {pipeline_mode = #tpu.pipeline_mode<synchronous>, transform_indices = @transform_2, window_bounds = array<i64: 1, 256>}, {transform_indices = @transform_3, window_bounds = array<i64: 256, 256>}, {transform_indices = @transform_4, window_bounds = array<i64: 1, 1, 256>}]} {
    %c0 = arith.constant 0 : index
    %c0_0 = arith.constant 0 : index
    %0 = vector.load %arg1[%c0, %c0_0] : memref<256x27xbf16, #tpu.memory_space<vmem>>, vector<256x27xbf16>
    %c0_1 = arith.constant 0 : index
    %c0_2 = arith.constant 0 : index
    %1 = vector.load %arg2[%c0_1, %c0_2] : memref<27x256xbf16, #tpu.memory_space<vmem>>, vector<27x256xbf16>
    %cst = arith.constant dense<0.000000e+00> : vector<256x256xf32>
    %2 = tpu.matmul %0, %1, %cst {dimension_numbers = #tpu.dot_dimension_numbers<[1], [0], [0], [1], [0, 0, 1, 1], [], []>} : vector<256x27xbf16>, vector<27x256xbf16>, vector<256x256xf32> -> vector<256x256xf32>
    %c0_3 = arith.constant 0 : index
    %c0_4 = arith.constant 0 : index
    %3 = vector.load %arg3[%c0_3, %c0_4] : memref<1x256xf32, #tpu.memory_space<vmem>>, vector<1x256xf32>
    %4 = vector.broadcast %3 : vector<1x256xf32> to vector<256x256xf32>
    %5 = arith.addf %2, %4 : vector<256x256xf32>
    %cst_5 = arith.constant 0.000000e+00 : f32
    %6 = vector.broadcast %cst_5 : f32 to vector<256x256xf32>
    %7 = arith.maximumf %5, %6 : vector<256x256xf32>
    %8 = arith.truncf %7 : vector<256x256xf32> to vector<256x256xbf16>
    %c0_6 = arith.constant 0 : index
    %c0_7 = arith.constant 0 : index
    %9 = vector.load %arg4[%c0_6, %c0_7] : memref<256x256xbf16, #tpu.memory_space<vmem>>, vector<256x256xbf16>
    tpu.vector_store %arg4[%c0_6, %c0_7], %8 {strides = array<i32>} : memref<256x256xbf16, #tpu.memory_space<vmem>>, vector<256x256xbf16>,
    %cst_8 = arith.constant dense<0.000000e+00> : vector<256xf32>
    %10 = vector.multi_reduction <add>, %7, %cst_8 [0] : vector<256x256xf32> to vector<256xf32>
    %11 = vector.shape_cast %10 : vector<256xf32> to vector<1x256xf32>
    %12 = vector.shape_cast %11 : vector<1x256xf32> to vector<1x1x256xf32>
    %c0_9 = arith.constant 0 : index
    %c0_10 = arith.constant 0 : index
    %c0_11 = arith.constant 0 : index
    %13 = vector.load %arg5[%c0_9, %c0_10, %c0_11] : memref<1x1x256xf32, #tpu.memory_space<vmem>>, vector<1x1x256xf32>
    tpu.vector_store %arg5[%c0_9, %c0_10, %c0_11], %12 {strides = array<i32>} : memref<1x1x256xf32, #tpu.memory_space<vmem>>, vector<1x1x256xf32>,
    return
  }
  func.func @transform_0(%arg0: i32) -> (i32, i32) {
    %c0_i32 = arith.constant 0 : i32
    %c0_i32_0 = arith.constant 0 : i32
    return %arg0, %c0_i32 : i32, i32
  }
  func.func @transform_1(%arg0: i32) -> (i32, i32) {
    %c0_i32 = arith.constant 0 : i32
    %c0_i32_0 = arith.constant 0 : i32
    %c0_i32_1 = arith.constant 0 : i32
    return %c0_i32, %c0_i32_0 : i32, i32
  }
  func.func @transform_2(%arg0: i32) -> (i32, i32) {
    %c0_i32 = arith.constant 0 : i32
    %c0_i32_0 = arith.constant 0 : i32
    %c0_i32_1 = arith.constant 0 : i32
    return %c0_i32, %c0_i32_0 : i32, i32
  }
  func.func @transform_3(%arg0: i32) -> (i32, i32) {
    %c0_i32 = arith.constant 0 : i32
    %c0_i32_0 = arith.constant 0 : i32
    return %arg0, %c0_i32 : i32, i32
  }
  func.func @transform_4(%arg0: i32) -> (i32, i32, i32) {
    %c0_i32 = arith.constant 0 : i32
    %c0_i32_0 = arith.constant 0 : i32
    %c0_i32_1 = arith.constant 0 : i32
    return %arg0, %c0_i32, %c0_i32_0 : i32, i32, i32
  }
}

module attributes {stable_mosaic.version = 11 : i64} {
  func.func @_rpn_head_kernel(%arg0: i32, %arg1: i32, %arg2: memref<1x1x264x256xbf16, #tpu.memory_space<vmem>>, %arg3: memref<9x256x256xbf16, #tpu.memory_space<vmem>>, %arg4: memref<1x256xf32, #tpu.memory_space<vmem>>, %arg5: memref<256x128xbf16, #tpu.memory_space<vmem>>, %arg6: memref<1x128xf32, #tpu.memory_space<vmem>>, %arg7: memref<1x192x128xf32, #tpu.memory_space<vmem>>) attributes {dimension_semantics = [#tpu.dimension_semantics<parallel>, #tpu.dimension_semantics<parallel>], iteration_bounds = array<i64: 2, 2>, scalar_prefetch = 0 : i64, scratch_operands = 0 : i64, tpu.core_type = #tpu.core_type<tc>, window_params = [{transform_indices = @transform_0, window_bounds = array<i64: 1, 1, 264, 256>}, {pipeline_mode = #tpu.pipeline_mode<synchronous>, transform_indices = @transform_1, window_bounds = array<i64: 9, 256, 256>}, {pipeline_mode = #tpu.pipeline_mode<synchronous>, transform_indices = @transform_2, window_bounds = array<i64: 1, 256>}, {pipeline_mode = #tpu.pipeline_mode<synchronous>, transform_indices = @transform_3, window_bounds = array<i64: 256, 128>}, {pipeline_mode = #tpu.pipeline_mode<synchronous>, transform_indices = @transform_4, window_bounds = array<i64: 1, 128>}, {transform_indices = @transform_5, window_bounds = array<i64: 1, 192, 128>}]} {
    %c0 = arith.constant 0 : index
    %c0_0 = arith.constant 0 : index
    %c0_1 = arith.constant 0 : index
    %c0_2 = arith.constant 0 : index
    %0 = vector.load %arg2[%c0, %c0_0, %c0_1, %c0_2] : memref<1x1x264x256xbf16, #tpu.memory_space<vmem>>, vector<1x1x192x256xbf16>
    %1 = vector.shape_cast %0 : vector<1x1x192x256xbf16> to vector<192x256xbf16>
    %c0_3 = arith.constant 0 : index
    %c0_4 = arith.constant 0 : index
    %c0_5 = arith.constant 0 : index
    %2 = vector.load %arg3[%c0_3, %c0_4, %c0_5] : memref<9x256x256xbf16, #tpu.memory_space<vmem>>, vector<1x256x256xbf16>
    %3 = vector.shape_cast %2 : vector<1x256x256xbf16> to vector<256x256xbf16>
    %cst = arith.constant dense<0.000000e+00> : vector<192x256xf32>
    %4 = tpu.matmul %1, %3, %cst {dimension_numbers = #tpu.dot_dimension_numbers<[1], [0], [0], [1], [0, 0, 1, 1], [], []>} : vector<192x256xbf16>, vector<256x256xbf16>, vector<192x256xf32> -> vector<192x256xf32>
    %c0_6 = arith.constant 0 : index
    %c0_7 = arith.constant 0 : index
    %c1 = arith.constant 1 : index
    %c0_8 = arith.constant 0 : index
    %5 = vector.load %arg2[%c0_6, %c0_7, %c1, %c0_8] : memref<1x1x264x256xbf16, #tpu.memory_space<vmem>>, vector<1x1x192x256xbf16>
    %6 = vector.shape_cast %5 : vector<1x1x192x256xbf16> to vector<192x256xbf16>
    %c1_9 = arith.constant 1 : index
    %c0_10 = arith.constant 0 : index
    %c0_11 = arith.constant 0 : index
    %7 = vector.load %arg3[%c1_9, %c0_10, %c0_11] : memref<9x256x256xbf16, #tpu.memory_space<vmem>>, vector<1x256x256xbf16>
    %8 = vector.shape_cast %7 : vector<1x256x256xbf16> to vector<256x256xbf16>
    %cst_12 = arith.constant dense<0.000000e+00> : vector<192x256xf32>
    %9 = tpu.matmul %6, %8, %cst_12 {dimension_numbers = #tpu.dot_dimension_numbers<[1], [0], [0], [1], [0, 0, 1, 1], [], []>} : vector<192x256xbf16>, vector<256x256xbf16>, vector<192x256xf32> -> vector<192x256xf32>
    %10 = arith.addf %4, %9 : vector<192x256xf32>
    %c0_13 = arith.constant 0 : index
    %c0_14 = arith.constant 0 : index
    %c2 = arith.constant 2 : index
    %c0_15 = arith.constant 0 : index
    %11 = vector.load %arg2[%c0_13, %c0_14, %c2, %c0_15] : memref<1x1x264x256xbf16, #tpu.memory_space<vmem>>, vector<1x1x192x256xbf16>
    %12 = vector.shape_cast %11 : vector<1x1x192x256xbf16> to vector<192x256xbf16>
    %c2_16 = arith.constant 2 : index
    %c0_17 = arith.constant 0 : index
    %c0_18 = arith.constant 0 : index
    %13 = vector.load %arg3[%c2_16, %c0_17, %c0_18] : memref<9x256x256xbf16, #tpu.memory_space<vmem>>, vector<1x256x256xbf16>
    %14 = vector.shape_cast %13 : vector<1x256x256xbf16> to vector<256x256xbf16>
    %cst_19 = arith.constant dense<0.000000e+00> : vector<192x256xf32>
    %15 = tpu.matmul %12, %14, %cst_19 {dimension_numbers = #tpu.dot_dimension_numbers<[1], [0], [0], [1], [0, 0, 1, 1], [], []>} : vector<192x256xbf16>, vector<256x256xbf16>, vector<192x256xf32> -> vector<192x256xf32>
    %16 = arith.addf %10, %15 : vector<192x256xf32>
    %c0_20 = arith.constant 0 : index
    %c0_21 = arith.constant 0 : index
    %c24 = arith.constant 24 : index
    %c0_22 = arith.constant 0 : index
    %17 = vector.load %arg2[%c0_20, %c0_21, %c24, %c0_22] : memref<1x1x264x256xbf16, #tpu.memory_space<vmem>>, vector<1x1x192x256xbf16>
    %18 = vector.shape_cast %17 : vector<1x1x192x256xbf16> to vector<192x256xbf16>
    %c3 = arith.constant 3 : index
    %c0_23 = arith.constant 0 : index
    %c0_24 = arith.constant 0 : index
    %19 = vector.load %arg3[%c3, %c0_23, %c0_24] : memref<9x256x256xbf16, #tpu.memory_space<vmem>>, vector<1x256x256xbf16>
    %20 = vector.shape_cast %19 : vector<1x256x256xbf16> to vector<256x256xbf16>
    %cst_25 = arith.constant dense<0.000000e+00> : vector<192x256xf32>
    %21 = tpu.matmul %18, %20, %cst_25 {dimension_numbers = #tpu.dot_dimension_numbers<[1], [0], [0], [1], [0, 0, 1, 1], [], []>} : vector<192x256xbf16>, vector<256x256xbf16>, vector<192x256xf32> -> vector<192x256xf32>
    %22 = arith.addf %16, %21 : vector<192x256xf32>
    %c0_26 = arith.constant 0 : index
    %c0_27 = arith.constant 0 : index
    %c25 = arith.constant 25 : index
    %c0_28 = arith.constant 0 : index
    %23 = vector.load %arg2[%c0_26, %c0_27, %c25, %c0_28] : memref<1x1x264x256xbf16, #tpu.memory_space<vmem>>, vector<1x1x192x256xbf16>
    %24 = vector.shape_cast %23 : vector<1x1x192x256xbf16> to vector<192x256xbf16>
    %c4 = arith.constant 4 : index
    %c0_29 = arith.constant 0 : index
    %c0_30 = arith.constant 0 : index
    %25 = vector.load %arg3[%c4, %c0_29, %c0_30] : memref<9x256x256xbf16, #tpu.memory_space<vmem>>, vector<1x256x256xbf16>
    %26 = vector.shape_cast %25 : vector<1x256x256xbf16> to vector<256x256xbf16>
    %cst_31 = arith.constant dense<0.000000e+00> : vector<192x256xf32>
    %27 = tpu.matmul %24, %26, %cst_31 {dimension_numbers = #tpu.dot_dimension_numbers<[1], [0], [0], [1], [0, 0, 1, 1], [], []>} : vector<192x256xbf16>, vector<256x256xbf16>, vector<192x256xf32> -> vector<192x256xf32>
    %28 = arith.addf %22, %27 : vector<192x256xf32>
    %c0_32 = arith.constant 0 : index
    %c0_33 = arith.constant 0 : index
    %c26 = arith.constant 26 : index
    %c0_34 = arith.constant 0 : index
    %29 = vector.load %arg2[%c0_32, %c0_33, %c26, %c0_34] : memref<1x1x264x256xbf16, #tpu.memory_space<vmem>>, vector<1x1x192x256xbf16>
    %30 = vector.shape_cast %29 : vector<1x1x192x256xbf16> to vector<192x256xbf16>
    %c5 = arith.constant 5 : index
    %c0_35 = arith.constant 0 : index
    %c0_36 = arith.constant 0 : index
    %31 = vector.load %arg3[%c5, %c0_35, %c0_36] : memref<9x256x256xbf16, #tpu.memory_space<vmem>>, vector<1x256x256xbf16>
    %32 = vector.shape_cast %31 : vector<1x256x256xbf16> to vector<256x256xbf16>
    %cst_37 = arith.constant dense<0.000000e+00> : vector<192x256xf32>
    %33 = tpu.matmul %30, %32, %cst_37 {dimension_numbers = #tpu.dot_dimension_numbers<[1], [0], [0], [1], [0, 0, 1, 1], [], []>} : vector<192x256xbf16>, vector<256x256xbf16>, vector<192x256xf32> -> vector<192x256xf32>
    %34 = arith.addf %28, %33 : vector<192x256xf32>
    %c0_38 = arith.constant 0 : index
    %c0_39 = arith.constant 0 : index
    %c48 = arith.constant 48 : index
    %c0_40 = arith.constant 0 : index
    %35 = vector.load %arg2[%c0_38, %c0_39, %c48, %c0_40] : memref<1x1x264x256xbf16, #tpu.memory_space<vmem>>, vector<1x1x192x256xbf16>
    %36 = vector.shape_cast %35 : vector<1x1x192x256xbf16> to vector<192x256xbf16>
    %c6 = arith.constant 6 : index
    %c0_41 = arith.constant 0 : index
    %c0_42 = arith.constant 0 : index
    %37 = vector.load %arg3[%c6, %c0_41, %c0_42] : memref<9x256x256xbf16, #tpu.memory_space<vmem>>, vector<1x256x256xbf16>
    %38 = vector.shape_cast %37 : vector<1x256x256xbf16> to vector<256x256xbf16>
    %cst_43 = arith.constant dense<0.000000e+00> : vector<192x256xf32>
    %39 = tpu.matmul %36, %38, %cst_43 {dimension_numbers = #tpu.dot_dimension_numbers<[1], [0], [0], [1], [0, 0, 1, 1], [], []>} : vector<192x256xbf16>, vector<256x256xbf16>, vector<192x256xf32> -> vector<192x256xf32>
    %40 = arith.addf %34, %39 : vector<192x256xf32>
    %c0_44 = arith.constant 0 : index
    %c0_45 = arith.constant 0 : index
    %c49 = arith.constant 49 : index
    %c0_46 = arith.constant 0 : index
    %41 = vector.load %arg2[%c0_44, %c0_45, %c49, %c0_46] : memref<1x1x264x256xbf16, #tpu.memory_space<vmem>>, vector<1x1x192x256xbf16>
    %42 = vector.shape_cast %41 : vector<1x1x192x256xbf16> to vector<192x256xbf16>
    %c7 = arith.constant 7 : index
    %c0_47 = arith.constant 0 : index
    %c0_48 = arith.constant 0 : index
    %43 = vector.load %arg3[%c7, %c0_47, %c0_48] : memref<9x256x256xbf16, #tpu.memory_space<vmem>>, vector<1x256x256xbf16>
    %44 = vector.shape_cast %43 : vector<1x256x256xbf16> to vector<256x256xbf16>
    %cst_49 = arith.constant dense<0.000000e+00> : vector<192x256xf32>
    %45 = tpu.matmul %42, %44, %cst_49 {dimension_numbers = #tpu.dot_dimension_numbers<[1], [0], [0], [1], [0, 0, 1, 1], [], []>} : vector<192x256xbf16>, vector<256x256xbf16>, vector<192x256xf32> -> vector<192x256xf32>
    %46 = arith.addf %40, %45 : vector<192x256xf32>
    %c0_50 = arith.constant 0 : index
    %c0_51 = arith.constant 0 : index
    %c50 = arith.constant 50 : index
    %c0_52 = arith.constant 0 : index
    %47 = vector.load %arg2[%c0_50, %c0_51, %c50, %c0_52] : memref<1x1x264x256xbf16, #tpu.memory_space<vmem>>, vector<1x1x192x256xbf16>
    %48 = vector.shape_cast %47 : vector<1x1x192x256xbf16> to vector<192x256xbf16>
    %c8 = arith.constant 8 : index
    %c0_53 = arith.constant 0 : index
    %c0_54 = arith.constant 0 : index
    %49 = vector.load %arg3[%c8, %c0_53, %c0_54] : memref<9x256x256xbf16, #tpu.memory_space<vmem>>, vector<1x256x256xbf16>
    %50 = vector.shape_cast %49 : vector<1x256x256xbf16> to vector<256x256xbf16>
    %cst_55 = arith.constant dense<0.000000e+00> : vector<192x256xf32>
    %51 = tpu.matmul %48, %50, %cst_55 {dimension_numbers = #tpu.dot_dimension_numbers<[1], [0], [0], [1], [0, 0, 1, 1], [], []>} : vector<192x256xbf16>, vector<256x256xbf16>, vector<192x256xf32> -> vector<192x256xf32>
    %52 = arith.addf %46, %51 : vector<192x256xf32>
    %c0_56 = arith.constant 0 : index
    %c0_57 = arith.constant 0 : index
    %53 = vector.load %arg4[%c0_56, %c0_57] : memref<1x256xf32, #tpu.memory_space<vmem>>, vector<1x256xf32>
    %54 = vector.broadcast %53 : vector<1x256xf32> to vector<192x256xf32>
    %55 = arith.addf %52, %54 : vector<192x256xf32>
    %cst_58 = arith.constant 0.000000e+00 : f32
    %56 = vector.broadcast %cst_58 : f32 to vector<192x256xf32>
    %57 = arith.maximumf %55, %56 : vector<192x256xf32>
    %58 = arith.truncf %57 : vector<192x256xf32> to vector<192x256xbf16>
    %c0_59 = arith.constant 0 : index
    %c0_60 = arith.constant 0 : index
    %59 = vector.load %arg5[%c0_59, %c0_60] : memref<256x128xbf16, #tpu.memory_space<vmem>>, vector<256x128xbf16>
    %cst_61 = arith.constant dense<0.000000e+00> : vector<192x128xf32>
    %60 = tpu.matmul %58, %59, %cst_61 {dimension_numbers = #tpu.dot_dimension_numbers<[1], [0], [0], [1], [0, 0, 1, 1], [], []>} : vector<192x256xbf16>, vector<256x128xbf16>, vector<192x128xf32> -> vector<192x128xf32>
    %c0_62 = arith.constant 0 : index
    %c0_63 = arith.constant 0 : index
    %61 = vector.load %arg6[%c0_62, %c0_63] : memref<1x128xf32, #tpu.memory_space<vmem>>, vector<1x128xf32>
    %62 = vector.broadcast %61 : vector<1x128xf32> to vector<192x128xf32>
    %63 = arith.addf %60, %62 : vector<192x128xf32>
    %c0_64 = arith.constant 0 : index
    %c0_65 = arith.constant 0 : index
    %c0_66 = arith.constant 0 : index
    %64 = vector.load %arg7[%c0_64, %c0_65, %c0_66] : memref<1x192x128xf32, #tpu.memory_space<vmem>>, vector<1x192x128xf32>
    %65 = vector.shape_cast %64 : vector<1x192x128xf32> to vector<192x128xf32>
    %66 = vector.shape_cast %63 : vector<192x128xf32> to vector<1x192x128xf32>
    tpu.vector_store %arg7[%c0_64, %c0_65, %c0_66], %66 {strides = array<i32>} : memref<1x192x128xf32, #tpu.memory_space<vmem>>, vector<1x192x128xf32>,
    return
  }
  func.func @transform_0(%arg0: i32, %arg1: i32) -> (i32, i32, i32, i32) {
    %c0_i32 = arith.constant 0 : i32
    %c0_i32_0 = arith.constant 0 : i32
    %c0_i32_1 = arith.constant 0 : i32
    return %arg0, %arg1, %c0_i32, %c0_i32_0 : i32, i32, i32, i32
  }
  func.func @transform_1(%arg0: i32, %arg1: i32) -> (i32, i32, i32) {
    %c0_i32 = arith.constant 0 : i32
    %c0_i32_0 = arith.constant 0 : i32
    %c0_i32_1 = arith.constant 0 : i32
    %c0_i32_2 = arith.constant 0 : i32
    return %c0_i32, %c0_i32_0, %c0_i32_1 : i32, i32, i32
  }
  func.func @transform_2(%arg0: i32, %arg1: i32) -> (i32, i32) {
    %c0_i32 = arith.constant 0 : i32
    %c0_i32_0 = arith.constant 0 : i32
    %c0_i32_1 = arith.constant 0 : i32
    return %c0_i32, %c0_i32_0 : i32, i32
  }
  func.func @transform_3(%arg0: i32, %arg1: i32) -> (i32, i32) {
    %c0_i32 = arith.constant 0 : i32
    %c0_i32_0 = arith.constant 0 : i32
    %c0_i32_1 = arith.constant 0 : i32
    return %c0_i32, %c0_i32_0 : i32, i32
  }
  func.func @transform_4(%arg0: i32, %arg1: i32) -> (i32, i32) {
    %c0_i32 = arith.constant 0 : i32
    %c0_i32_0 = arith.constant 0 : i32
    %c0_i32_1 = arith.constant 0 : i32
    return %c0_i32, %c0_i32_0 : i32, i32
  }
  func.func @transform_5(%arg0: i32, %arg1: i32) -> (i32, i32, i32) {
    %c0_i32 = arith.constant 0 : i32
    %c0_i32_0 = arith.constant 0 : i32
    return %arg0, %arg1, %c0_i32 : i32, i32, i32
  }
}

</mosaic_0001>

<bundles_post_ra>
// kernel: a_call__.2
= control target key start
LH: loop header
LB: loop body
LE: loop exit
PB: predicated region body
PF: predicated region fallthrough
CT: control target
= control target key end

     0   :  { %10 = vsyncpa [#allocation3], 0  ;;  %s1746_s0 = inlined_call_operand.vmem [shape: bf16[512,27], index: 0, kind: input, shape index: {}]   ;;  %s1747_s1 = inlined_call_operand.hbm [shape: bf16[27,256], index: 1, kind: input, shape index: {}]   ;;  %s1748_s2 = inlined_call_operand.hbm [shape: f32[1,256], index: 2, kind: input, shape index: {}]   ;;  %s1749_s3 = inlined_call_operand.vmem [shape: bf16[512,256], index: 3, kind: output, shape index: {0}]   ;;  %s1750_s4 = inlined_call_operand.vmem [shape: f32[2,1,256], index: 4, kind: output, shape index: {1}]  }
   0x1   :  { %11 = vsyncpa [#allocation5], 0  ;;  %s1240_s15 = smov 0  }
   0x2 LB: > { %s153_s18 = sshll.u32 %s1747_s1, 4  ;;  %s1249_s19 = sadd.s32 4294967295, %s1208_s15   ;;  %s1208_s15 = sphi %s1240_s15, %s17_s15   ;;  %s154_s18 = int_to_ptr.hbm [resolvable:$true] %s153_s18 }
   0x3   : > { %p950_p0 = scmp.ge.s32.totalorder %s1208_s15, 1  ;;  %p142_p1 = scmp.lt.s32.totalorder %s1208_s15, 3 }
   0x4   : > { %p1117_p2 = scmp.eq.s32.totalorder %s1249_s19, 0  ;;  %s1210_s21 = smov [#allocation2]  }
   0x5   : > { %p1254_p3 = pnand %p950_p0, %p142_p1  ;;  %s155_s22 = sshll.u32 %s1210_s21, 4  ;;  %s156_s22 = int_to_ptr.vmem [resolvable:$true] %s155_s22 }
   0x6   : > { %s168_s25 = sshll.u32 %s1748_s2, 4  ;;  %s1211_s26 = smov [#allocation4]   ;;  %s169_s25 = int_to_ptr.hbm [resolvable:$true] %s168_s25 }
   0x7   : > { %p1110_p4 = pneg %p1254_p3  ;;  %s170_s27 = sshll.u32 %s1211_s26, 4  ;;  %s171_s27 = int_to_ptr.vmem [resolvable:$true] %s170_s27 }
   0x8   : > { %s1212_s28 = smov 128   ;;  %s1213_s29 = smov 8  }
   0x9   : > { %p1111_p5 = pnand %p1117_p2, %p1110_p4  ;;  %192 = sbr.rel (%p1254_p3) target bundleno = 331 (0x14b), region = 32 }
   0xb   : > { %1113 = dma.hbm_to_vmem [thread:$0]  (!%p1111_p5), %s154_s18, 512, %s156_s22, [#allocation3], %s1212_s28, %s1212_s28, %s1213_s29  }
   0xc   : > { %1116 = dma.hbm_to_vmem [thread:$0]  (!%p1111_p5), %s169_s25, 32, %s171_s27, [#allocation5]  }
   0xe   : > { %1199 = dma.done.wait (%p1117_p2), [#allocation3], 512  }
   0xf   : > { %1201 = vsyncadd (%p1117_p2), [#allocation3], 4294966784 }
  0x10   : > { %1203 = dma.done.wait (%p1117_p2), [#allocation5], 32  }
  0x11   : > { %1205 = vsyncadd (%p1117_p2), [#allocation5], 4294967264  ;;  %vm436_vm0 = vcmask 1044480   ;;  %s957_s30 = sshll.u32 %s1249_s19, 5  ;;  %vm437_vm1 = vcmask 1045504   ;;  %v1214_v0 = vmov 65535  }
  0x12   : > { %p230_p6 = scmp.lt.s32.totalorder %s957_s30, 63  ;;  %v438_v1 = vsel %vm436_vm0, 4294967295, %v1214_v0  ;;  %v1037_v3 = vld [vmem:[#allocation2 + $0x10] sm:$0xf]  ;;  %v1097_v4 = vld [vmem:[#allocation2 + $0x14] sm:$0x30] }
  0x13   : > { %v439_v2 = vsel %vm437_vm1, %v438_v1, 0  ;;  %v1096_v5 = vld [vmem:[#allocation2 + $0x14] sm:$0xf]  ;;  %v1038_v6 = vor.u32 %v1097_v4, %v1037_v3  ;;  %v1039_v7 = vld [vmem:[#allocation2 + $0x18] sm:$0x30]  ;;  %vm387_vm2 = vcmask 220160  }
  0x14   : > { %s1811_s30 = smov (!%p230_p6, %s957_s30), 63  ;;  %v1042_v8 = vor.u32 %v1096_v5, %v1039_v7  ;;  %v1029_v9 = vld [vmem:[#allocation2] sm:$0xf]  ;;  %v1095_v10 = vld [vmem:[#allocation2 + $0x4] sm:$0xf0]  ;;  %p242_p7 = scmp.lt.s32.totalorder %s1249_s19, 1 }
  0x15   : > { %s958_s5 = sshll.u32 %s1811_s30, 2  ;;  %v441_v11 = vand.u32 %v1038_v6, %v439_v2  ;;  %v1094_v12 = vld [vmem:[#allocation2 + $0x4] sm:$0xf]  ;;  %v1031_v13 = vld [vmem:[#allocation2 + $0x8] sm:$0xf0]  ;;  %v1030_v15 = vor.u32 %v1095_v10, %v1029_v9  ;;  %s1077_s9 = sshll.u32 %s1811_s30, 3 }
  0x16   : > { %v444_v14 = vand.u32 %v1042_v8, %v439_v2  ;;  %s1282_s8 = scalar_lea.vmem %s1746_s0, %s958_s5  ;;  %v1034_v16 = vor.u32 %v1094_v12, %v1031_v13  ;;  %v283_v33 = vld [vmem:[#allocation4] sm:$0x3]  ;;  %s1342_s12 = scalar_lea.vmem %s1749_s3, %s1077_s9  ;;  %vm829_vm3 = vcmask 1040384  }
  0x17   : > { %452 = vmatpush.bf16.msra.mxu0 %v441_v11  ;;  %1098 = vmatpush.bf16.msra.mxu2 %v441_v11  ;;  %v1078_v17 = vld [vmem:[%s1282_s8] sm:$0xff]  ;;  %v1079_v19 = vld [vmem:[%s1282_s8 + $0x8] sm:$0xff]  ;;  %v1080_v21 = vld [vmem:[%s1282_s8 + $0x10] sm:$0xff]  ;;  %v1332_v34 = vperm.slane %v283_v33, 0  ;;  %v1334_v35 = vperm.slane %v283_v33, 1  ;;  %s1813_s19 = smov (!%p242_p7, %s1249_s19), 1 }
  0x18   : > { %541 = vmatpush.bf16.msra.mxu1 %v444_v14  ;;  %1100 = vmatpush.bf16.msra.mxu3 %v444_v14  ;;  %v1086_v18 = vld [vmem:[%s1282_s8 + $0x40] sm:$0xff]  ;;  %v1087_v20 = vld [vmem:[%s1282_s8 + $0x48] sm:$0xff]  ;;  %v1088_v22 = vld [vmem:[%s1282_s8 + $0x50] sm:$0xff]  ;;  %s962_s13 = sshll.u32 %s1813_s19, 1 }
  0x19   : > { %v1081_v23 = vld [vmem:[%s1282_s8 + $0x18] sm:$0xff]  ;;  %v1082_v25 = vld [vmem:[%s1282_s8 + $0x20] sm:$0xff]  ;;  %v1083_v27 = vld [vmem:[%s1282_s8 + $0x28] sm:$0xff]  ;;  %s245_s17 = scalar_lea.vmem %s1750_s4, %s962_s13 }
  0x1a   : > { %v1089_v24 = vld [vmem:[%s1282_s8 + $0x58] sm:$0xff]  ;;  %v1090_v26 = vld [vmem:[%s1282_s8 + $0x60] sm:$0xff]  ;;  %v1091_v28 = vld [vmem:[%s1282_s8 + $0x68] sm:$0xff] }
  0x1b   : > { %453 = vmatpush.bf16.msra.mxu0 %v1030_v15  ;;  %1099 = vmatpush.bf16.msra.mxu2 %v1030_v15  ;;  %v1084_v29 = vld [vmem:[%s1282_s8 + $0x30] sm:$0xff]  ;;  %v1085_v31 = vld [vmem:[%s1282_s8 + $0x38] sm:$0xff] }
  0x1c   : > { %542 = vmatpush.bf16.msra.mxu1 %v1034_v16  ;;  %1101 = vmatpush.bf16.msra.mxu3 %v1034_v16  ;;  %v1092_v30 = vld [vmem:[%s1282_s8 + $0x70] sm:$0xff]  ;;  %v1093_v32 = vld [vmem:[%s1282_s8 + $0x78] sm:$0xff] }
  0x1e   : > { %1043 = vmatmul.msk.bf16.vlgmr.msra.gmra.mxu0 %vm387_vm2, %v1078_v17  ;;  %1051 = vmatmul.msk.bf16.vlgmr.msra.gmra.mxu2 %vm387_vm2, %v1086_v18 }
  0x1f   : > { %1059 = vmatmul.msk.bf16.vlgmr.msra.gmra.mxu1 %vm387_vm2, %v1078_v17  ;;  %1067 = vmatmul.msk.bf16.vlgmr.msra.gmra.mxu3 %vm387_vm2, %v1086_v18 }
  0x2e   : > { %1044 = vmatmul.msk.bf16.gmra.mxu0 %vm387_vm2, %v1079_v19  ;;  %1052 = vmatmul.msk.bf16.gmra.mxu2 %vm387_vm2, %v1087_v20 }
  0x2f   : > { %1060 = vmatmul.msk.bf16.gmra.mxu1 %vm387_vm2, %v1079_v19  ;;  %1068 = vmatmul.msk.bf16.gmra.mxu3 %vm387_vm2, %v1087_v20 }
  0x3e   : > { %1045 = vmatmul.msk.bf16.gmra.mxu0 %vm387_vm2, %v1080_v21  ;;  %1053 = vmatmul.msk.bf16.gmra.mxu2 %vm387_vm2, %v1088_v22 }
  0x3f   : > { %1061 = vmatmul.msk.bf16.gmra.mxu1 %vm387_vm2, %v1080_v21  ;;  %1069 = vmatmul.msk.bf16.gmra.mxu3 %vm387_vm2, %v1088_v22 }
  0x4e   : > { %1046 = vmatmul.msk.bf16.gmra.mxu0 %vm387_vm2, %v1081_v23  ;;  %1054 = vmatmul.msk.bf16.gmra.mxu2 %vm387_vm2, %v1089_v24 }
  0x4f   : > { %1062 = vmatmul.msk.bf16.gmra.mxu1 %vm387_vm2, %v1081_v23  ;;  %1070 = vmatmul.msk.bf16.gmra.mxu3 %vm387_vm2, %v1089_v24 }
  0x5e   : > { %1047 = vmatmul.msk.bf16.gmra.mxu0 %vm387_vm2, %v1082_v25  ;;  %1055 = vmatmul.msk.bf16.gmra.mxu2 %vm387_vm2, %v1090_v26 }
  0x5f   : > { %1063 = vmatmul.msk.bf16.gmra.mxu1 %vm387_vm2, %v1082_v25  ;;  %1071 = vmatmul.msk.bf16.gmra.mxu3 %vm387_vm2, %v1090_v26 }
  0x6e   : > { %1048 = vmatmul.msk.bf16.gmra.mxu0 %vm387_vm2, %v1083_v27  ;;  %1056 = vmatmul.msk.bf16.gmra.mxu2 %vm387_vm2, %v1091_v28 }
  0x6f   : > { %1064 = vmatmul.msk.bf16.gmra.mxu1 %vm387_vm2, %v1083_v27  ;;  %1072 = vmatmul.msk.bf16.gmra.mxu3 %vm387_vm2, %v1091_v28 }
  0x7e   : > { %1049 = vmatmul.msk.bf16.gmra.mxu0 %vm387_vm2, %v1084_v29  ;;  %1057 = vmatmul.msk.bf16.gmra.mxu2 %vm387_vm2, %v1092_v30 }
  0x7f   : > { %1065 = vmatmul.msk.bf16.gmra.mxu1 %vm387_vm2, %v1084_v29  ;;  %1073 = vmatmul.msk.bf16.gmra.mxu3 %vm387_vm2, %v1092_v30 }
  0x8e   : > { %1050 = vmatmul.msk.bf16.gmra.mxu0 %vm387_vm2, %v1085_v31  ;;  %1058 = vmatmul.msk.bf16.gmra.mxu2 %vm387_vm2, %v1093_v32 }
  0x8f   : > { %1066 = vmatmul.msk.bf16.gmra.mxu1 %vm387_vm2, %v1085_v31  ;;  %1074 = vmatmul.msk.bf16.gmra.mxu3 %vm387_vm2, %v1093_v32 }
  0x9b   : > { %v455_v36 = vpop.f32.mrf.mxu0 }
  0x9c   : > { %v456_v37 = vadd.f32 %v455_v36, %v1332_v34  ;;  %v544_v38 = vpop.f32.mrf.mxu1 }
  0x9d   : > { %v545_v39 = vadd.f32 %v544_v38, %v1334_v35 }
  0x9e   : > { %v624_v40 = vmax.f32 %v456_v37, 0.0 }
  0x9f   : > { %v625_v41 = vmax.f32 %v545_v39, 0.0 }
  0xa1   : > { %v688_v42 = vpack.c.bf16 %v625_v41, %v624_v40  ;;  %v495_v43 = vpop.f32.mrf.mxu2 }
  0xa2   : > { %v1345_v44 = vadd.f32 %v495_v43, %v1332_v34  ;;  %v584_v45 = vpop.f32.mrf.mxu3 }
  0xa3   : > { %720 = vst [vmem:[%s1342_s12] sm:$0xff] %v688_v42  ;;  %v457_v46 = vpop.f32.mrf.mxu0  ;;  %v1349_v47 = vadd.f32 %v584_v45, %v1334_v35 }
  0xa4   : > { %v458_v48 = vadd.f32 %v457_v46, %v1332_v34  ;;  %v546_v49 = vpop.f32.mrf.mxu1  ;;  %v1772_v50 = vmax.f32 %v1345_v44, 0.0 }
  0xa5   : > { %v547_v51 = vadd.f32 %v546_v49, %v1334_v35  ;;  %v1769_v52 = vmax.f32 %v1349_v47, 0.0 }
  0xa6   : > { %v626_v53 = vmax.f32 %v458_v48, 0.0 }
  0xa7   : > { %v627_v54 = vmax.f32 %v547_v51, 0.0  ;;  %v704_v55 = vpack.c.bf16 %v1769_v52, %v1772_v50 }
  0xa8   : > { %v752_v56 = vadd.f32 %v626_v53, %v624_v40 }
  0xa9   : > { %v689_v57 = vpack.c.bf16 %v627_v54, %v626_v53  ;;  %v789_v58 = vadd.f32 %v627_v54, %v625_v41  ;;  %736 = vst [vmem:[%s1342_s12 + $0x80] sm:$0xff] %v704_v55  ;;  %v497_v59 = vpop.f32.mrf.mxu2 }
  0xaa   : > { %v1361_v60 = vadd.f32 %v497_v59, %v1332_v34  ;;  %v586_v61 = vpop.f32.mrf.mxu3 }
  0xab   : > { %721 = vst [vmem:[%s1342_s12 + $0x8] sm:$0xff] %v689_v57  ;;  %v460_v62 = vpop.f32.mrf.mxu0  ;;  %v1365_v63 = vadd.f32 %v586_v61, %v1334_v35 }
  0xac   : > { %v461_v0 = vadd.f32 %v460_v62, %v1332_v34  ;;  %v549_v1 = vpop.f32.mrf.mxu1  ;;  %v1768_v2 = vmax.f32 %v1361_v60, 0.0 }
  0xad   : > { %v550_v3 = vadd.f32 %v549_v1, %v1334_v35  ;;  %v1767_v4 = vmax.f32 %v1365_v63, 0.0 }
  0xae   : > { %v628_v5 = vmax.f32 %v461_v0, 0.0 }
  0xaf   : > { %v629_v6 = vmax.f32 %v550_v3, 0.0  ;;  %v705_v7 = vpack.c.bf16 %v1767_v4, %v1768_v2 }
  0xb0   : > { %v753_v8 = vadd.f32 %v752_v56, %v628_v5 }
  0xb1   : > { %v690_v9 = vpack.c.bf16 %v629_v6, %v628_v5  ;;  %v790_v10 = vadd.f32 %v789_v58, %v629_v6  ;;  %737 = vst [vmem:[%s1342_s12 + $0x88] sm:$0xff] %v705_v7  ;;  %v500_v11 = vpop.f32.mrf.mxu2 }
  0xb2   : > { %v1377_v12 = vadd.f32 %v500_v11, %v1332_v34  ;;  %v589_v13 = vpop.f32.mrf.mxu3 }
  0xb3   : > { %722 = vst [vmem:[%s1342_s12 + $0x10] sm:$0xff] %v690_v9  ;;  %v462_v14 = vpop.f32.mrf.mxu0  ;;  %v1381_v15 = vadd.f32 %v589_v13, %v1334_v35 }
  0xb4   : > { %v463_v16 = vadd.f32 %v462_v14, %v1332_v34  ;;  %v551_v17 = vpop.f32.mrf.mxu1  ;;  %v1766_v18 = vmax.f32 %v1377_v12, 0.0 }
  0xb5   : > { %v552_v19 = vadd.f32 %v551_v17, %v1334_v35  ;;  %v1765_v20 = vmax.f32 %v1381_v15, 0.0 }
  0xb6   : > { %v630_v21 = vmax.f32 %v463_v16, 0.0 }
  0xb7   : > { %v631_v22 = vmax.f32 %v552_v19, 0.0  ;;  %v706_v23 = vpack.c.bf16 %v1765_v20, %v1766_v18 }
  0xb8   : > { %v754_v24 = vadd.f32 %v753_v8, %v630_v21 }
  0xb9   : > { %v691_v25 = vpack.c.bf16 %v631_v22, %v630_v21  ;;  %v791_v26 = vadd.f32 %v790_v10, %v631_v22  ;;  %738 = vst [vmem:[%s1342_s12 + $0x90] sm:$0xff] %v706_v23  ;;  %v502_v27 = vpop.f32.mrf.mxu2 }
  0xba   : > { %v1393_v28 = vadd.f32 %v502_v27, %v1332_v34  ;;  %v591_v29 = vpop.f32.mrf.mxu3 }
  0xbb   : > { %723 = vst [vmem:[%s1342_s12 + $0x18] sm:$0xff] %v691_v25  ;;  %v465_v30 = vpop.f32.mrf.mxu0  ;;  %v1397_v31 = vadd.f32 %v591_v29, %v1334_v35 }
  0xbc   : > { %v466_v32 = vadd.f32 %v465_v30, %v1332_v34  ;;  %v554_v33 = vpop.f32.mrf.mxu1  ;;  %v1764_v36 = vmax.f32 %v1393_v28, 0.0 }
  0xbd   : > { %v555_v37 = vadd.f32 %v554_v33, %v1334_v35  ;;  %v1761_v38 = vmax.f32 %v1397_v31, 0.0 }
  0xbe   : > { %v632_v39 = vmax.f32 %v466_v32, 0.0 }
  0xbf   : > { %v633_v40 = vmax.f32 %v555_v37, 0.0  ;;  %v707_v41 = vpack.c.bf16 %v1761_v38, %v1764_v36 }
  0xc0   : > { %v1407_v42 = vadd.f32 %v754_v24, %v632_v39 }
  0xc1   : > { %v692_v43 = vpack.c.bf16 %v633_v40, %v632_v39  ;;  %v1409_v45 = vadd.f32 %v791_v26, %v633_v40  ;;  %739 = vst [vmem:[%s1342_s12 + $0x98] sm:$0xff] %v707_v41  ;;  %v505_v46 = vpop.f32.mrf.mxu2 }
  0xc2   : > { %v1413_v48 = vadd.f32 %v505_v46, %v1332_v34  ;;  %v594_v49 = vpop.f32.mrf.mxu3 }
  0xc3   : > { %724 = vst [vmem:[%s1342_s12 + $0x20] sm:$0xff] %v692_v43  ;;  %v467_v51 = vpop.f32.mrf.mxu0  ;;  %v1417_v53 = vadd.f32 %v594_v49, %v1334_v35 }
  0xc4   : > { %v1420_v54 = vadd.f32 %v467_v51, %v1332_v34  ;;  %v556_v55 = vpop.f32.mrf.mxu1  ;;  %v1760_v56 = vmax.f32 %v1413_v48, 0.0 }
  0xc5   : > { %v1424_v57 = vadd.f32 %v556_v55, %v1334_v35  ;;  %v1759_v58 = vmax.f32 %v1417_v53, 0.0 }
  0xc6   : > { %v634_v59 = vmax.f32 %v1420_v54, 0.0 }
  0xc7   : > { %v635_v61 = vmax.f32 %v1424_v57, 0.0  ;;  %v708_v62 = vpack.c.bf16 %v1759_v58, %v1760_v56 }
  0xc9   : > { %v693_v0 = vpack.c.bf16 %v635_v61, %v634_v59  ;;  %740 = vst [vmem:[%s1342_s12 + $0xa0] sm:$0xff] %v708_v62  ;;  %v507_v1 = vpop.f32.mrf.mxu2 }
  0xca   : > { %v1439_v3 = vadd.f32 %v507_v1, %v1332_v34  ;;  %v596_v5 = vpop.f32.mrf.mxu3 }
  0xcb   : > { %725 = vst [vmem:[%s1342_s12 + $0x28] sm:$0xff] %v693_v0  ;;  %v470_v6 = vpop.f32.mrf.mxu0  ;;  %v1443_v7 = vadd.f32 %v596_v5, %v1334_v35 }
  0xcc   : > { %v1446_v8 = vadd.f32 %v470_v6, %v1332_v34  ;;  %v559_v9 = vpop.f32.mrf.mxu1  ;;  %v1758_v10 = vmax.f32 %v1439_v3, 0.0 }
  0xcd   : > { %v1450_v11 = vadd.f32 %v559_v9, %v1334_v35  ;;  %v1757_v13 = vmax.f32 %v1443_v7, 0.0 }
  0xce   : > { %v636_v14 = vmax.f32 %v1446_v8, 0.0 }
  0xcf   : > { %v637_v16 = vmax.f32 %v1450_v11, 0.0  ;;  %v709_v17 = vpack.c.bf16 %v1757_v13, %v1758_v10 }
  0xd1   : > { %v694_v19 = vpack.c.bf16 %v637_v16, %v636_v14  ;;  %741 = vst [vmem:[%s1342_s12 + $0xa8] sm:$0xff] %v709_v17  ;;  %v510_v21 = vpop.f32.mrf.mxu2 }
  0xd2   : > { %v1465_v22 = vadd.f32 %v510_v21, %v1332_v34  ;;  %v599_v23 = vpop.f32.mrf.mxu3 }
  0xd3   : > { %726 = vst [vmem:[%s1342_s12 + $0x30] sm:$0xff] %v694_v19  ;;  %v472_v24 = vpop.f32.mrf.mxu0  ;;  %v1469_v25 = vadd.f32 %v599_v23, %v1334_v35 }
  0xd4   : > { %v1472_v26 = vadd.f32 %v472_v24, %v1332_v34  ;;  %v561_v27 = vpop.f32.mrf.mxu1  ;;  %v1756_v29 = vmax.f32 %v1465_v22, 0.0 }
  0xd5   : > { %v1476_v30 = vadd.f32 %v561_v27, %v1334_v35  ;;  %v1753_v32 = vmax.f32 %v1469_v25, 0.0 }
  0xd6   : > { %v638_v33 = vmax.f32 %v1472_v26, 0.0 }
  0xd7   : > { %v639_v37 = vmax.f32 %v1476_v30, 0.0  ;;  %v710_v39 = vpack.c.bf16 %v1753_v32, %v1756_v29 }
  0xd9   : > { %v695_v40 = vpack.c.bf16 %v639_v37, %v638_v33  ;;  %742 = vst [vmem:[%s1342_s12 + $0xb0] sm:$0xff] %v710_v39  ;;  %v512_v41 = vpop.f32.mrf.mxu2 }
  0xda   : > { %v1491_v43 = vadd.f32 %v512_v41, %v1332_v34  ;;  %v601_v46 = vpop.f32.mrf.mxu3 }
  0xdb   : > { %727 = vst [vmem:[%s1342_s12 + $0x38] sm:$0xff] %v695_v40  ;;  %v475_v49 = vpop.f32.mrf.mxu0  ;;  %v1495_v51 = vadd.f32 %v601_v46, %v1334_v35 }
  0xdc   : > { %v1498_v55 = vadd.f32 %v475_v49, %v1332_v34  ;;  %v564_v62 = vpop.f32.mrf.mxu1  ;;  %v1752_v0 = vmax.f32 %v1491_v43, 0.0 }
  0xdd   : > { %v1502_v1 = vadd.f32 %v564_v62, %v1334_v35  ;;  %v1751_v5 = vmax.f32 %v1495_v51, 0.0 }
  0xde   : > { %v640_v6 = vmax.f32 %v1498_v55, 0.0 }
  0xdf   : > { %v641_v9 = vmax.f32 %v1502_v1, 0.0  ;;  %v711_v17 = vpack.c.bf16 %v1751_v5, %v1752_v0 }
  0xe1   : > { %v696_v19 = vpack.c.bf16 %v641_v9, %v640_v6  ;;  %743 = vst [vmem:[%s1342_s12 + $0xb8] sm:$0xff] %v711_v17  ;;  %v515_v21 = vpop.f32.mrf.mxu2 }
  0xe2   : > { %v1517_v23 = vadd.f32 %v515_v21, %v1332_v34  ;;  %v604_v24 = vpop.f32.mrf.mxu3 }
  0xe3   : > { %728 = vst [vmem:[%s1342_s12 + $0x40] sm:$0xff] %v696_v19  ;;  %v477_v27 = vpop.f32.mrf.mxu0  ;;  %v1521_v39 = vadd.f32 %v604_v24, %v1334_v35 }
  0xe4   : > { %v1524_v40 = vadd.f32 %v477_v27, %v1332_v34  ;;  %v566_v41 = vpop.f32.mrf.mxu1  ;;  %v1755_v46 = vmax.f32 %v1517_v23, 0.0 }
  0xe5   : > { %v1528_v49 = vadd.f32 %v566_v41, %v1334_v35  ;;  %v1754_v62 = vmax.f32 %v1521_v39, 0.0 }
  0xe6   : > { %v642_v17 = vmax.f32 %v1524_v40, 0.0 }
  0xe7   : > { %v1777_v19 = vmax.f32 %v1528_v49, 0.0  ;;  %v712_v21 = vpack.c.bf16 %v1754_v62, %v1755_v46 }
  0xe9   : > { %v697_v24 = vpack.c.bf16 %v1777_v19, %v642_v17  ;;  %744 = vst [vmem:[%s1342_s12 + $0xc0] sm:$0xff] %v712_v21  ;;  %v517_v27 = vpop.f32.mrf.mxu2 }
  0xea   : > { %v1543_v41 = vadd.f32 %v517_v27, %v1332_v34  ;;  %v606_v5 = vpop.f32.mrf.mxu3 }
  0xeb   : > { %729 = vst [vmem:[%s1342_s12 + $0x48] sm:$0xff] %v697_v24  ;;  %v480_v0 = vpop.f32.mrf.mxu0  ;;  %v1547_v32 = vadd.f32 %v606_v5, %v1334_v35 }
  0xec   : > { %v1550_v62 = vadd.f32 %v480_v0, %v1332_v34  ;;  %v569_v46 = vpop.f32.mrf.mxu1  ;;  %v1763_v29 = vmax.f32 %v1543_v41, 0.0 }
  0xed   : > { %v1554_v21 = vadd.f32 %v569_v46, %v1334_v35  ;;  %v1762_v13 = vmax.f32 %v1547_v32, 0.0 }
  0xee   : > { %v1776_v27 = vmax.f32 %v1550_v62, 0.0 }
  0xef   : > { %v1775_v24 = vmax.f32 %v1554_v21, 0.0  ;;  %v713_v5 = vpack.c.bf16 %v1762_v13, %v1763_v29  ;;  %v1783_v40 = vmax.f32 %v1554_v21, 0.0 }
  0xf1   : > { %v698_v0 = vpack.c.bf16 %v1775_v24, %v1776_v27  ;;  %745 = vst [vmem:[%s1342_s12 + $0xc8] sm:$0xff] %v713_v5  ;;  %v520_v46 = vpop.f32.mrf.mxu2 }
  0xf2   : > { %v1569_v10 = vadd.f32 %v520_v46, %v1332_v34  ;;  %v609_v58 = vpop.f32.mrf.mxu3 }
  0xf3   : > { %730 = vst [vmem:[%s1342_s12 + $0x50] sm:$0xff] %v698_v0  ;;  %v482_v56 = vpop.f32.mrf.mxu0  ;;  %v1573_v38 = vadd.f32 %v609_v58, %v1334_v35 }
  0xf4   : > { %v1576_v13 = vadd.f32 %v482_v56, %v1332_v34  ;;  %v571_v29 = vpop.f32.mrf.mxu1  ;;  %v1771_v36 = vmax.f32 %v1569_v10, 0.0 }
  0xf5   : > { %v1580_v5 = vadd.f32 %v571_v29, %v1334_v35  ;;  %v1770_v20 = vmax.f32 %v1573_v38, 0.0 }
  0xf6   : > { %v1774_v46 = vmax.f32 %v1576_v13, 0.0 }
  0xf7   : > { %v1773_v0 = vmax.f32 %v1580_v5, 0.0  ;;  %v714_v58 = vpack.c.bf16 %v1770_v20, %v1771_v36 }
  0xf9   : > { %v699_v56 = vpack.c.bf16 %v1773_v0, %v1774_v46  ;;  %746 = vst [vmem:[%s1342_s12 + $0xd0] sm:$0xff] %v714_v58  ;;  %v522_v29 = vpop.f32.mrf.mxu2 }
  0xfa   : > { %v1595_v18 = vadd.f32 %v522_v29, %v1332_v34  ;;  %v611_v4 = vpop.f32.mrf.mxu3 }
  0xfb   : > { %731 = vst [vmem:[%s1342_s12 + $0x58] sm:$0xff] %v699_v56  ;;  %v485_v2 = vpop.f32.mrf.mxu0  ;;  %v1599_v52 = vadd.f32 %v611_v4, %v1334_v35 }
  0xfc   : > { %v486_v20 = vadd.f32 %v485_v2, %v1332_v34  ;;  %v574_v36 = vpop.f32.mrf.mxu1  ;;  %v1779_v50 = vmax.f32 %v1595_v18, 0.0 }
  0xfd   : > { %v575_v0 = vadd.f32 %v574_v36, %v1334_v35  ;;  %v1778_v58 = vmax.f32 %v1599_v52, 0.0 }
  0xfe   : > { %v648_v46 = vmax.f32 %v486_v20, 0.0  ;;  %v756_v20 = vadd.f32 %v1407_v42, %v634_v59 }
  0xff   : > { %v649_v24 = vmax.f32 %v575_v0, 0.0  ;;  %v715_v56 = vpack.c.bf16 %v1778_v58, %v1779_v50 }
 0x100   : > { %v757_v54 = vadd.f32 %v756_v20, %v636_v14 }
 0x101   : > { %v700_v29 = vpack.c.bf16 %v649_v24, %v648_v46  ;;  %747 = vst [vmem:[%s1342_s12 + $0xd8] sm:$0xff] %v715_v56  ;;  %v525_v4 = vpop.f32.mrf.mxu2 }
 0x102   : > { %v1611_v27 = vadd.f32 %v525_v4, %v1332_v34  ;;  %v614_v2 = vpop.f32.mrf.mxu3  ;;  %v793_v4 = vadd.f32 %v1409_v45, %v635_v61  ;;  %v758_v45 = vadd.f32 %v757_v54, %v638_v33 }
 0x103   : > { %732 = vst [vmem:[%s1342_s12 + $0x60] sm:$0xff] %v700_v29  ;;  %v487_v19 = vpop.f32.mrf.mxu0  ;;  %v1615_v36 = vadd.f32 %v614_v2, %v1334_v35 }
 0x104   : > { %v488_v0 = vadd.f32 %v487_v19, %v1332_v34  ;;  %v576_v58 = vpop.f32.mrf.mxu1  ;;  %v680_v56 = vmax.f32 %v1611_v27, 0.0  ;;  %v794_v42 = vadd.f32 %v793_v4, %v637_v16  ;;  %v759_v14 = vadd.f32 %v758_v45, %v640_v6 }
 0x105   : > { %v577_v29 = vadd.f32 %v576_v58, %v1334_v35  ;;  %v681_v2 = vmax.f32 %v1615_v36, 0.0  ;;  %v1781_v6 = vmax.f32 %v1528_v49, 0.0  ;;  %v1782_v4 = vmax.f32 %v1550_v62, 0.0 }
 0x106   : > { %v650_v50 = vmax.f32 %v488_v0, 0.0  ;;  %v795_v61 = vadd.f32 %v794_v42, %v639_v37  ;;  %v760_v30 = vadd.f32 %v759_v14, %v642_v17  ;;  %v1784_v49 = vmax.f32 %v1576_v13, 0.0 }
 0x107   : > { %v651_v59 = vmax.f32 %v577_v29, 0.0  ;;  %v716_v57 = vpack.c.bf16 %v681_v2, %v680_v56 }
 0x108   : > { %v796_v58 = vadd.f32 %v795_v61, %v641_v9  ;;  %v761_v29 = vadd.f32 %v760_v30, %v1782_v4  ;;  %v1785_v61 = vmax.f32 %v1580_v5, 0.0 }
 0x109   : > { %v701_v19 = vpack.c.bf16 %v651_v59, %v650_v50  ;;  %748 = vst [vmem:[%s1342_s12 + $0xe0] sm:$0xff] %v716_v57  ;;  %v527_v8 = vpop.f32.mrf.mxu2 }
 0x10a   : > { %v1643_v11 = vadd.f32 %v527_v8, %v1332_v34  ;;  %v616_v16 = vpop.f32.mrf.mxu3  ;;  %v797_v0 = vadd.f32 %v796_v58, %v1781_v6  ;;  %v762_v45 = vadd.f32 %v761_v29, %v1784_v49 }
 0x10b   : > { %733 = vst [vmem:[%s1342_s12 + $0x68] sm:$0xff] %v701_v19  ;;  %v490_v20 = vpop.f32.mrf.mxu0  ;;  %v1649_v26 = vadd.f32 %v616_v16, %v1334_v35 }
 0x10c   : > { %v491_v33 = vadd.f32 %v490_v20, %v1332_v34  ;;  %v579_v37 = vpop.f32.mrf.mxu1  ;;  %v682_v55 = vmax.f32 %v1643_v11, 0.0  ;;  %v798_v17 = vadd.f32 %v797_v0, %v1783_v40  ;;  %v763_v14 = vadd.f32 %v762_v45, %v648_v46 }
 0x10d   : > { %v580_v1 = vadd.f32 %v579_v37, %v1334_v35  ;;  %v683_v9 = vmax.f32 %v1649_v26, 0.0 }
 0x10e   : > { %v652_v54 = vmax.f32 %v491_v33, 0.0  ;;  %v799_v19 = vadd.f32 %v798_v17, %v1785_v61  ;;  %v764_v33 = vadd.f32 %v763_v14, %v650_v50  ;;  %v1786_v50 = vmax.f32 %v1345_v44, 0.0 }
 0x10f   : > { %v653_v42 = vmax.f32 %v580_v1, 0.0  ;;  %v717_v57 = vpack.c.bf16 %v683_v9, %v682_v55  ;;  %v1790_v44 = vmax.f32 %v1377_v12, 0.0  ;;  %v1796_v12 = vmax.f32 %v1439_v3, 0.0 }
 0x110   : > { %v800_v58 = vadd.f32 %v799_v19, %v649_v24  ;;  %v765_v46 = vadd.f32 %v764_v33, %v652_v54  ;;  %v1803_v3 = vmax.f32 %v1521_v39, 0.0 }
 0x111   : > { %v702_v8 = vpack.c.bf16 %v653_v42, %v652_v54  ;;  %749 = vst [vmem:[%s1342_s12 + $0xe8] sm:$0xff] %v717_v57  ;;  %v530_v62 = vpop.f32.mrf.mxu2 }
 0x112   : > { %v531_v16 = vadd.f32 %v530_v62, %v1332_v34  ;;  %v619_v21 = vpop.f32.mrf.mxu3  ;;  %v801_v5 = vadd.f32 %v800_v58, %v651_v59  ;;  %v1788_v62 = vmax.f32 %v1361_v60, 0.0  ;;  %v1794_v60 = vmax.f32 %v1413_v48, 0.0 }
 0x113   : > { %734 = vst [vmem:[%s1342_s12 + $0x70] sm:$0xff] %v702_v8  ;;  %v492_v20 = vpop.f32.mrf.mxu0  ;;  %v620_v30 = vadd.f32 %v619_v21, %v1334_v35  ;;  %v1787_v8 = vmax.f32 %v1349_v47, 0.0  ;;  %v1789_v21 = vmax.f32 %v1365_v63, 0.0  ;;  %v1792_v47 = vmax.f32 %v1393_v28, 0.0 }
 0x114   : > { %v493_v13 = vadd.f32 %v492_v20, %v1332_v34  ;;  %v581_v37 = vpop.f32.mrf.mxu1  ;;  %v684_v6 = vmax.f32 %v531_v16, 0.0  ;;  %v802_v29 = vadd.f32 %v801_v5, %v653_v42  ;;  %v1795_v63 = vmax.f32 %v1417_v53, 0.0 }
 0x115   : > { %v582_v0 = vadd.f32 %v581_v37, %v1334_v35  ;;  %v685_v1 = vmax.f32 %v620_v30, 0.0  ;;  %v1801_v48 = vmax.f32 %v1495_v51, 0.0  ;;  %v1802_v53 = vmax.f32 %v1517_v23, 0.0 }
 0x116   : > { %v654_v4 = vmax.f32 %v493_v13, 0.0 }
 0x117   : > { %v655_v40 = vmax.f32 %v582_v0, 0.0  ;;  %v718_v24 = vpack.c.bf16 %v685_v1, %v684_v6 }
 0x118   : > { %v766_v17 = vadd.f32 %v765_v46, %v654_v4 }
 0x119   : > { %v703_v57 = vpack.c.bf16 %v655_v40, %v654_v4  ;;  %v803_v49 = vadd.f32 %v802_v29, %v655_v40  ;;  %750 = vst [vmem:[%s1342_s12 + $0xf0] sm:$0xff] %v718_v24  ;;  %v532_v45 = vpop.f32.mrf.mxu2  ;;  %v1798_v40 = vmax.f32 %v1465_v22, 0.0  ;;  %v1799_v24 = vmax.f32 %v1469_v25, 0.0 }
 0x11a   : > { %v767_v61 = vadd.f32 %v766_v17, %v1786_v50  ;;  %v533_v59 = vadd.f32 %v532_v45, %v1332_v34  ;;  %v621_v19 = vpop.f32.mrf.mxu3  ;;  %v1791_v34 = vmax.f32 %v1381_v15, 0.0  ;;  %v1797_v15 = vmax.f32 %v1443_v7, 0.0 }
 0x11b   : > { %735 = vst [vmem:[%s1342_s12 + $0x78] sm:$0xff] %v703_v57  ;;  %v804_v54 = vadd.f32 %v803_v49, %v1787_v8  ;;  %v622_v42 = vadd.f32 %v621_v19, %v1334_v35  ;;  %v1793_v35 = vmax.f32 %v1397_v31, 0.0  ;;  %v1800_v17 = vmax.f32 %v1491_v43, 0.0 }
 0x11c   : > { %v768_v14 = vadd.f32 %v767_v61, %v1788_v62  ;;  %v686_v16 = vmax.f32 %v533_v59, 0.0  ;;  %v1804_v7 = vmax.f32 %v1543_v41, 0.0  ;;  %v1805_v22 = vmax.f32 %v1547_v32, 0.0 }
 0x11d   : > { %v805_v58 = vadd.f32 %v804_v54, %v1789_v21  ;;  %v687_v20 = vmax.f32 %v622_v42, 0.0  ;;  %v1806_v25 = vmax.f32 %v1569_v10, 0.0  ;;  %v1807_v19 = vmax.f32 %v1573_v38, 0.0 }
 0x11e   : > { %v769_v30 = vadd.f32 %v768_v14, %v1790_v44  ;;  %v1808_v8 = vmax.f32 %v1595_v18, 0.0  ;;  %v1809_v54 = vmax.f32 %v1599_v52, 0.0 }
 0x11f   : > { %v806_v33 = vadd.f32 %v805_v58, %v1791_v34  ;;  %v719_v13 = vpack.c.bf16 %v687_v20, %v686_v16 }
 0x120   : > { %v770_v37 = vadd.f32 %v769_v30, %v1792_v47 }
 0x121   : > { %v807_v5 = vadd.f32 %v806_v33, %v1793_v35  ;;  %751 = vst [vmem:[%s1342_s12 + $0xf8] sm:$0xff] %v719_v13 }
 0x122   : > { %v771_v0 = vadd.f32 %v770_v37, %v1794_v60 }
 0x123   : > { %v808_v46 = vadd.f32 %v807_v5, %v1795_v63 }
 0x124   : > { %v772_v4 = vadd.f32 %v771_v0, %v1796_v12 }
 0x125   : > { %v809_v29 = vadd.f32 %v808_v46, %v1797_v15 }
 0x126   : > { %v773_v28 = vadd.f32 %v772_v4, %v1798_v40 }
 0x127   : > { %v810_v31 = vadd.f32 %v809_v29, %v1799_v24 }
 0x128   : > { %v774_v57 = vadd.f32 %v773_v28, %v1800_v17 }
 0x129   : > { %v811_v49 = vadd.f32 %v810_v31, %v1801_v48 }
 0x12a   : > { %v775_v45 = vadd.f32 %v774_v57, %v1802_v53 }
 0x12b   : > { %v812_v50 = vadd.f32 %v811_v49, %v1803_v3 }
 0x12c   : > { %v776_v61 = vadd.f32 %v775_v45, %v1804_v7 }
 0x12d   : > { %v813_v59 = vadd.f32 %v812_v50, %v1805_v22 }
 0x12e   : > { %v777_v43 = vadd.f32 %v776_v61, %v1806_v25 }
 0x12f   : > { %v814_v51 = vadd.f32 %v813_v59, %v1807_v19 }
 0x130   : > { %v778_v23 = vadd.f32 %v777_v43, %v1808_v8 }
 0x131   : > { %v815_v39 = vadd.f32 %v814_v51, %v1809_v54 }
 0x132   : > { %v779_v41 = vadd.f32 %v778_v23, %v680_v56 }
 0x133   : > { %v816_v32 = vadd.f32 %v815_v39, %v681_v2 }
 0x134   : > { %v780_v10 = vadd.f32 %v779_v41, %v682_v55  ;;  %v832_v55 = vlaneseq }
 0x135   : > { %v817_v38 = vadd.f32 %v816_v32, %v683_v9 }
 0x136   : > { %v781_v42 = vadd.f32 %v780_v10, %v684_v6  ;;  %vm834_vm4 = vcmp.lt.s32.totalorder %v832_v55, 256 }
 0x137   : > { %v818_v62 = vadd.f32 %v817_v38, %v685_v1 }
 0x138   : > { %v782_v18 = vadd.f32 %v781_v42, %v686_v16 }
 0x139   : > { %v819_v14 = vadd.f32 %v818_v62, %v687_v20 }
 0x13a   : > { %v783_v21 = vrot.slane %v782_v18, 4 }
 0x13b   : > { %v820_v52 = vrot.slane %v819_v14, 4 }
 0x13c   : > { %v784_v58 = vadd.f32 %v783_v21, %v782_v18 }
 0x13d   : > { %v821_v27 = vadd.f32 %v820_v52, %v819_v14 }
 0x13e   : > { %v785_v56 = vrot.slane %v784_v58, 2 }
 0x13f   : > { %v822_v44 = vrot.slane %v821_v27, 2 }
 0x140   : > { %v786_v36 = vadd.f32 %v785_v56, %v784_v58 }
 0x141   : > { %v823_v2 = vadd.f32 %v822_v44, %v821_v27 }
 0x142   : > { %v787_v30 = vrot.slane %v786_v36, 1 }
 0x143   : > { %v824_v11 = vrot.slane %v823_v2, 1 }
 0x144   : > { %v788_v9 = vadd.f32 %v787_v30, %v786_v36 }
 0x145   : > { %v825_v26 = vadd.f32 %v824_v11, %v823_v2 }
 0x147   : > { %v828_v6 = vrot.slane %v825_v26, 7 }
 0x149   : > { %v830_v1 = vsel %vm829_vm3, %v788_v9, %v828_v6 }
 0x14a   : > { %836 = vst.msk [vmem:[%s245_s17] sm:$0x3] %vm834_vm4, %v830_v1 }
 0x14b PF: > { %s17_s15 = sadd.s32 1, %s1208_s15  }
 0x14c   : > { %p14_p8 = scmp.ge.s32.totalorder %s17_s15, 4  }
 0x14e   :  { %16 = sbr.rel (!%p14_p8) target bundleno = 2 (0x2), region = 83 }
 0x153   :  { %875 = vsyncpa [#allocation3], 1 }
 0x154   :  { %877 = vsyncpa [#allocation3 + $0x1], 1 }
 0x155   :  { %878 = vsyncpa [#allocation5], 1 }

// kernel: a_call__.3
= control target key start
LH: loop header
LB: loop body
LE: loop exit
PB: predicated region body
PF: predicated region fallthrough
CT: control target
= control target key end

     0   :  { %s9420_s18 = smov 0   ;;  %s9422_s19 = smov 0   ;;  %s14267_s0 = inlined_call_operand.vmem [shape: bf16[2,2,264,256], index: 0, kind: input, shape index: {}]   ;;  %s14268_s1 = inlined_call_operand.vmem [shape: bf16[9,256,256], index: 1, kind: input, shape index: {}]   ;;  %s14269_s2 = inlined_call_operand.vmem [shape: f32[1,256], index: 2, kind: input, shape index: {}]   ;;  %s14270_s3 = inlined_call_operand.vmem [shape: bf16[256,128], index: 3, kind: input, shape index: {}]   ;;  %s14271_s4 = inlined_call_operand.vmem [shape: f32[1,128], index: 4, kind: input, shape index: {}]   ;;  %s14272_s5 = inlined_call_operand.vmem [shape: f32[2,384,128], index: 5, kind: output, shape index: {}]  }
   0x1   :  { %s9424_s20 = smov 0   ;;  %s9426_s21 = smov 0  }
   0x2   :  { %s9428_s22 = smov 0  }
   0x3 LB: > { %s24_s23 = sadd.s32 1, %s9380_s20  ;;  %s27_s24 = sadd.s32 1, %s9384_s21  ;;  %s9388_s22 = sphi %s9428_s22, %s15_s22   ;;  %s9384_s21 = sphi %s9426_s21, %s14975_s21   ;;  %s9380_s20 = sphi %s9424_s20, %s14974_s20   ;;  %s9376_s19 = sphi %s9422_s19, %s14973_s19   ;;  %s9372_s18 = sphi %s9420_s18, %s14972_s18  }
   0x4   : > { %p25_p0 = scmp.ge.s32.totalorder %s24_s23, 2  ;;  %p6939_p1 = scmp.ge.s32.totalorder %s9388_s22, 1 }
   0x5   : > { %p207_p2 = scmp.lt.s32.totalorder %s9388_s22, 5 }
   0x6   : > { %s14977_s23 = smov (%p25_p0, %s24_s23), 0  ;;  %s14979_s24 = smov (!%p25_p0, %s27_s24), %s9384_s21 }
   0x7   : > { %p208_p3 = pnand %p6939_p1, %p207_p2  ;;  %p29_p4 = scmp.ge.s32.totalorder %s14979_s24, 2 }
   0x9   : > { %s14981_s24 = smov (%p29_p4, %s14979_s24), 0  ;;  %211 = sbr.rel (%p208_p3) target bundleno = 2146 (0x862), region = 40 }
   0xe   : > { %v7120_v0 = vld [vmem:[%s14268_s1 + $0x170] sm:$0xf]  ;;  %v8941_v1 = vld [vmem:[%s14268_s1 + $0x174] sm:$0xf0]  ;;  %v7112_v5 = vld [vmem:[%s14268_s1 + $0x160] sm:$0xf] }
   0xf   : > { %v7184_v2 = vld [vmem:[%s14268_s1 + $0x1f0] sm:$0xf]  ;;  %v7121_v3 = vor.u32 %v8941_v1, %v7120_v0  ;;  %v8957_v4 = vld [vmem:[%s14268_s1 + $0x1f4] sm:$0xf0]  ;;  %v8939_v6 = vld [vmem:[%s14268_s1 + $0x164] sm:$0xf0] }
  0x10   : > { %v7185_v7 = vor.u32 %v8957_v4, %v7184_v2  ;;  %v7176_v8 = vld [vmem:[%s14268_s1 + $0x1e0] sm:$0xf]  ;;  %v8955_v9 = vld [vmem:[%s14268_s1 + $0x1e4] sm:$0xf0]  ;;  %v7113_v10 = vor.u32 %v8939_v6, %v7112_v5  ;;  %v7104_v12 = vld [vmem:[%s14268_s1 + $0x150] sm:$0xf] }
  0x11   : > { %838 = vmatpush.bf16.msra.mxu0 %v7121_v3  ;;  %9290 = vmatpush.bf16.msra.mxu2 %v7121_v3  ;;  %v7177_v11 = vor.u32 %v8955_v9, %v7176_v8  ;;  %v8937_v13 = vld [vmem:[%s14268_s1 + $0x154] sm:$0xf0]  ;;  %v7168_v14 = vld [vmem:[%s14268_s1 + $0x1d0] sm:$0xf]  ;;  %v7096_v18 = vld [vmem:[%s14268_s1 + $0x140] sm:$0xf] }
  0x12   : > { %907 = vmatpush.bf16.msra.mxu1 %v7185_v7  ;;  %9298 = vmatpush.bf16.msra.mxu3 %v7185_v7  ;;  %v8953_v15 = vld [vmem:[%s14268_s1 + $0x1d4] sm:$0xf0]  ;;  %v7105_v16 = vor.u32 %v8937_v13, %v7104_v12  ;;  %v8935_v19 = vld [vmem:[%s14268_s1 + $0x144] sm:$0xf0]  ;;  %v7160_v20 = vld [vmem:[%s14268_s1 + $0x1c0] sm:$0xf] }
  0x13   : > { %v7169_v17 = vor.u32 %v8953_v15, %v7168_v14  ;;  %v8951_v21 = vld [vmem:[%s14268_s1 + $0x1c4] sm:$0xf0]  ;;  %p243_p5 = scmp.lt.s32.totalorder %s9376_s19, 1  ;;  %p245_p6 = scmp.lt.s32.totalorder %s9372_s18, 1  ;;  %v7097_v22 = vor.u32 %v8935_v19, %v7096_v18  ;;  %v7088_v24 = vld [vmem:[%s14268_s1 + $0x130] sm:$0xf] }
  0x14   : > { %v7161_v23 = vor.u32 %v8951_v21, %v7160_v20  ;;  %v8933_v25 = vld [vmem:[%s14268_s1 + $0x134] sm:$0xf0]  ;;  %v7152_v26 = vld [vmem:[%s14268_s1 + $0x1b0] sm:$0xf]  ;;  %v7080_v28 = vld [vmem:[%s14268_s1 + $0x120] sm:$0xf] }
  0x15   : > { %839 = vmatpush.bf16.msra.mxu0 %v7113_v10  ;;  %9291 = vmatpush.bf16.msra.mxu2 %v7113_v10  ;;  %s14983_s19 = smov (!%p243_p5, %s9376_s19), 1  ;;  %v8949_v27 = vld [vmem:[%s14268_s1 + $0x1b4] sm:$0xf0]  ;;  %v8931_v29 = vld [vmem:[%s14268_s1 + $0x124] sm:$0xf0]  ;;  %v7089_v31 = vor.u32 %v8933_v25, %v7088_v24  ;;  %vm1613_vm1 = vcmask 1046528  }
  0x16   : > { %908 = vmatpush.bf16.msra.mxu1 %v7177_v11  ;;  %9299 = vmatpush.bf16.msra.mxu3 %v7177_v11  ;;  %s246_s29 = scalar_select %p245_p6, %s9372_s18, 1  ;;  %v7144_v30 = vld [vmem:[%s14268_s1 + $0x1a0] sm:$0xf]  ;;  %v8947_v32 = vld [vmem:[%s14268_s1 + $0x1a4] sm:$0xf0]  ;;  %v7153_v33 = vor.u32 %v8949_v27, %v7152_v26  ;;  %v7081_v41 = vor.u32 %v8931_v29, %v7080_v28 }
  0x17   : > { %s9307_s11 = smul.u32 132, %s14983_s19  ;;  %v7072_v34 = vld [vmem:[%s14268_s1 + $0x110] sm:$0xf]  ;;  %v8929_v35 = vld [vmem:[%s14268_s1 + $0x114] sm:$0xf0]  ;;  %v7145_v42 = vor.u32 %v8947_v32, %v7144_v30 }
  0x18   : > { %s9306_s14 = smul.u32 66, %s246_s29  ;;  %v7136_v36 = vld [vmem:[%s14268_s1 + $0x190] sm:$0xf]  ;;  %v8945_v37 = vld [vmem:[%s14268_s1 + $0x194] sm:$0xf0]  ;;  %v7073_v46 = vor.u32 %v8929_v35, %v7072_v34 }
  0x19   : > { %840 = vmatpush.bf16.msra.mxu0 %v7105_v16  ;;  %9292 = vmatpush.bf16.msra.mxu2 %v7105_v16  ;;  %v7064_v38 = vld [vmem:[%s14268_s1 + $0x100] sm:$0xf]  ;;  %v8927_v39 = vld [vmem:[%s14268_s1 + $0x104] sm:$0xf0]  ;;  %v9565_v44 = vld [vmem:[%s14268_s1 + $0x174] sm:$0xf]  ;;  %v7137_v47 = vor.u32 %v8945_v37, %v7136_v36 }
  0x1a   : > { %909 = vmatpush.bf16.msra.mxu1 %v7169_v17  ;;  %9300 = vmatpush.bf16.msra.mxu3 %v7169_v17  ;;  %s249_s9 = sadd.s32 %s9307_s11, %s9306_s14  ;;  %v7128_v40 = vld [vmem:[%s14268_s1 + $0x180] sm:$0xf]  ;;  %v8943_v43 = vld [vmem:[%s14268_s1 + $0x184] sm:$0xf0]  ;;  %v9570_v45 = vld [vmem:[%s14268_s1 + $0x178] sm:$0xf0]  ;;  %v9572_v48 = vor.u32 %v8927_v39, %v7064_v38 }
  0x1b   : > { %s6940_s13 = sshll.u32 %s249_s9, 2  ;;  %vm453_vm0 = vsmask.f32 7424  ;;  %v9584_v59 = vor.u32 %v8943_v43, %v7128_v40  ;;  %v7125_v1 = vor.u32 %v9565_v44, %v9570_v45  ;;  %v8956_v8 = vld [vmem:[%s14268_s1 + $0x1f4] sm:$0xf] }
  0x1c   : > { %s9560_s26 = scalar_lea.vmem %s14267_s0, %s6940_s13  ;;  %v7186_v9 = vld [vmem:[%s14268_s1 + $0x1f8] sm:$0xf0]  ;;  %v8938_v32 = vld [vmem:[%s14268_s1 + $0x164] sm:$0xf]  ;;  %v7178_v40 = vld [vmem:[%s14268_s1 + $0x1e8] sm:$0xf0] }
  0x1d   : > { %841 = vmatpush.bf16.msra.mxu0 %v7097_v22  ;;  %9293 = vmatpush.bf16.msra.mxu2 %v7097_v22  ;;  %v262_v49 = vld [vmem:[%s9560_s26] sm:$0xff]  ;;  %v9576_v50 = vld [vmem:[%s9560_s26 + $0x8] sm:$0xff]  ;;  %v6976_v51 = vld [vmem:[%s9560_s26 + $0x10] sm:$0xf]  ;;  %s9308_s13 = smul.u32 48, %s14983_s19 }
  0x1e   : > { %910 = vmatpush.bf16.msra.mxu1 %v7161_v23  ;;  %9301 = vmatpush.bf16.msra.mxu3 %v7161_v23  ;;  %14406 = vst [vmem:[#allocation2_spill] sm:$0xff] %v9576_v50  ;;  %v8873_v52 = vld [vmem:[%s9560_s26 + $0x14] sm:$0xf0]  ;;  %v377_v53 = vunpack.c.l.b16 %v262_v49  ;;  %v14274_v54 = vunpack.c.l.b16 %v9576_v50  ;;  %v7016_v55 = vld [vmem:[%s9560_s26 + $0x60] sm:$0xf]  ;;  %v378_v57 = vunpack.c.h.b16 %v262_v49  ;;  %v14273_v58 = vunpack.c.h.b16 %v9576_v50 }
  0x1f   : > { %v8883_v56 = vld [vmem:[%s9560_s26 + $0x64] sm:$0xf0]  ;;  %v9586_v60 = vor.u32 %v8873_v52, %v6976_v51  ;;  %v7024_v61 = vld [vmem:[%s9560_s26 + $0x70] sm:$0xf]  ;;  %v8885_v62 = vld [vmem:[%s9560_s26 + $0x74] sm:$0xf0] }
  0x20   : > { %v9590_v63 = vor.u32 %v8883_v56, %v7016_v55  ;;  %v8872_v0 = vld [vmem:[%s9560_s26 + $0x14] sm:$0xf]  ;;  %v9597_v2 = vpack.c.b16 %v14274_v54, %v377_v53  ;;  %v9599_v3 = vor.u32 %v8885_v62, %v7024_v61  ;;  %v6978_v4 = vld [vmem:[%s9560_s26 + $0x18] sm:$0xf0]  ;;  %v9604_v5 = vpack.c.b16 %v14273_v58, %v378_v57  ;;  %v8882_v6 = vld [vmem:[%s9560_s26 + $0x64] sm:$0xf] }
  0x21   : > { %842 = vmatpush.bf16.msra.mxu0 %v7089_v31  ;;  %9294 = vmatpush.bf16.msra.mxu2 %v7089_v31  ;;  %v7018_v7 = vld [vmem:[%s9560_s26 + $0x68] sm:$0xf0]  ;;  %v462_v10 = vshll.u32 %v9586_v60, 16  ;;  %v9617_v13 = vor.u32 %v8872_v0, %v6978_v4  ;;  %v8884_v14 = vld [vmem:[%s9560_s26 + $0x74] sm:$0xf]  ;;  %v7189_v31 = vor.u32 %v8956_v8, %v7186_v9 }
  0x22   : > { %911 = vmatpush.bf16.msra.mxu1 %v7153_v33  ;;  %9302 = vmatpush.bf16.msra.mxu3 %v7153_v33  ;;  %v546_v11 = vshll.u32 %v9590_v63, 16  ;;  %v558_v12 = vshrl.u32 %v9590_v63, 16  ;;  %v455_v15 = vshrl.u32 %v9597_v2, 16  ;;  %v457_v16 = vshll.u32 %v9597_v2, 16  ;;  %v7026_v19 = vld [vmem:[%s9560_s26 + $0x78] sm:$0xf0] }
  0x23   : > { %v562_v17 = vshll.u32 %v9599_v3, 16  ;;  %v467_v18 = vshrl.u32 %v9604_v5, 16  ;;  %v9625_v20 = vrot.slane %v462_v10, 1  ;;  %v469_v22 = vshll.u32 %v9604_v5, 16  ;;  %v7114_v33 = vld [vmem:[%s14268_s1 + $0x168] sm:$0xf0] }
  0x24   : > { %v9627_v21 = vrot.slane %v546_v11, 1  ;;  %v474_v23 = vshll.u32 %v9617_v13, 16  ;;  %v459_v24 = vrot.slane %v457_v16, 1  ;;  %v9633_v26 = vor.u32 %v8882_v6, %v7018_v7  ;;  %v8954_v38 = vld [vmem:[%s14268_s1 + $0x1e4] sm:$0xf] }
  0x25   : > { %843 = vmatpush.bf16.msra.mxu0 %v7081_v41  ;;  %9295 = vmatpush.bf16.msra.mxu2 %v7081_v41  ;;  %v9631_v25 = vrot.slane %v562_v17, 1  ;;  %v9635_v27 = vor.u32 %v8884_v14, %v7026_v19  ;;  %v471_v29 = vrot.slane %v469_v22, 1  ;;  %v6984_v41 = vld [vmem:[%s9560_s26 + $0x20] sm:$0xf]  ;;  %v8887_v52 = vld [vmem:[%s9560_s26 + $0x84] sm:$0xf0]  ;;  %v7117_v57 = vor.u32 %v8938_v32, %v7114_v33 }
  0x26   : > { %912 = vmatpush.bf16.msra.mxu1 %v7145_v42  ;;  %9303 = vmatpush.bf16.msra.mxu3 %v7145_v42  ;;  %v560_v28 = vor.u32 %v558_v12, %v9627_v21  ;;  %v9638_v30 = vrot.slane %v474_v23, 1  ;;  %v460_v34 = vor.u32 %v459_v24, %v455_v15  ;;  %v554_v35 = vshll.u32 %v9633_v26, 16  ;;  %v8875_v42 = vld [vmem:[%s9560_s26 + $0x24] sm:$0xf0]  ;;  %v7032_v51 = vld [vmem:[%s9560_s26 + $0x80] sm:$0xf] }
  0x27   : > { %v566_v36 = vshrl.u32 %v9633_v26, 16  ;;  %v570_v37 = vshll.u32 %v9635_v27, 16  ;;  %v472_v39 = vor.u32 %v471_v29, %v467_v18  ;;  %v8874_v53 = vld [vmem:[%s9560_s26 + $0x24] sm:$0xf]  ;;  %v6986_v55 = vld [vmem:[%s9560_s26 + $0x28] sm:$0xf0]  ;;  %v7181_v61 = vor.u32 %v8954_v38, %v7178_v40 }
  0x28   : > { %v9661_v43 = vsel %vm453_vm0, %v460_v34, %v9625_v20  ;;  %v8886_v62 = vld [vmem:[%s9560_s26 + $0x84] sm:$0xf]  ;;  %v7034_v0 = vld [vmem:[%s9560_s26 + $0x88] sm:$0xf0]  ;;  %v9690_v4 = vor.u32 %v8875_v42, %v6984_v41  ;;  %v9692_v6 = vor.u32 %v8887_v52, %v7032_v51  ;;  %v7106_v44 = vld [vmem:[%s14268_s1 + $0x158] sm:$0xf0]  ;;  %v9708_v8 = vor.u32 %v8874_v53, %v6986_v55 }
  0x29   : > { %844 = vmatpush.bf16.msra.mxu0 %v7073_v46  ;;  %9296 = vmatpush.bf16.msra.mxu2 %v7073_v46  ;;  %v9665_v46 = vsel %vm453_vm0, %v560_v28, %v9631_v25  ;;  %v572_v49 = vrot.slane %v570_v37, 1  ;;  %v8952_v45 = vld [vmem:[%s14268_s1 + $0x1d4] sm:$0xf]  ;;  %v9710_v9 = vor.u32 %v8886_v62, %v7034_v0  ;;  %v478_v12 = vshrl.u32 %v9586_v60, 16  ;;  %v8934_v17 = vld [vmem:[%s14268_s1 + $0x144] sm:$0xf] }
  0x2a   : > { %913 = vmatpush.bf16.msra.mxu1 %v7137_v47  ;;  %9304 = vmatpush.bf16.msra.mxu3 %v7137_v47  ;;  %v9667_v47 = vrot.slane %v554_v35, 1  ;;  %v482_v14 = vshll.u32 %v9690_v4, 16  ;;  %v574_v15 = vshrl.u32 %v9599_v3, 16  ;;  %v578_v16 = vshll.u32 %v9692_v6, 16  ;;  %v7098_v18 = vld [vmem:[%s14268_s1 + $0x148] sm:$0xf0] }
  0x2b   : > { %14407 = vst [vmem:[#allocation3_spill] sm:$0xff] %v9710_v9  ;;  %v8950_v19 = vld [vmem:[%s14268_s1 + $0x1c4] sm:$0xf]  ;;  %v7162_v22 = vld [vmem:[%s14268_s1 + $0x1c8] sm:$0xf0]  ;;  %v486_v23 = vshrl.u32 %v9617_v13, 16  ;;  %v480_v33 = vor.u32 %v478_v12, %v9625_v20 }
  0x2c   : > { %v568_v56 = vor.u32 %v566_v36, %v9667_v47  ;;  %v490_v24 = vshll.u32 %v9708_v8, 16  ;;  %v582_v28 = vshrl.u32 %v9635_v27, 16  ;;  %v586_v29 = vshll.u32 %v9710_v9, 16  ;;  %v6992_v42 = vld [vmem:[%s9560_s26 + $0x30] sm:$0xf] }
  0x2d   : > { %845 = vmatpush.bf16.msra.mxu0 %v9572_v48  ;;  %9297 = vmatpush.bf16.msra.mxu2 %v9572_v48  ;;  %v9675_v48 = vsel %vm453_vm0, %v472_v39, %v9638_v30  ;;  %v7165_v32 = vor.u32 %v8950_v19, %v7162_v22  ;;  %v484_v34 = vrot.slane %v482_v14, 1  ;;  %v576_v35 = vor.u32 %v574_v15, %v9631_v25  ;;  %v8877_v51 = vld [vmem:[%s9560_s26 + $0x34] sm:$0xf0]  ;;  %v7040_v52 = vld [vmem:[%s9560_s26 + $0x90] sm:$0xf] }
  0x2e   : > { %914 = vmatpush.bf16.msra.mxu1 %v9584_v59  ;;  %9305 = vmatpush.bf16.msra.mxu3 %v9584_v59  ;;  %v8936_v59 = vld [vmem:[%s14268_s1 + $0x154] sm:$0xf]  ;;  %v9705_v7 = vsel %vm453_vm0, %v568_v56, %v572_v49  ;;  %v580_v36 = vrot.slane %v578_v16, 1  ;;  %v488_v37 = vor.u32 %v486_v23, %v9638_v30  ;;  %v492_v38 = vrot.slane %v490_v24, 1  ;;  %v8889_v30 = vld [vmem:[%s9560_s26 + $0x94] sm:$0xf0] }
  0x2f   : > { %v7109_v10 = vor.u32 %v8936_v59, %v7106_v44  ;;  %v584_v39 = vor.u32 %v582_v28, %v572_v49  ;;  %v588_v40 = vrot.slane %v586_v29, 1  ;;  %v9736_v41 = vsel %vm453_vm0, %v480_v33, %v484_v34  ;;  %v8876_v53 = vld [vmem:[%s9560_s26 + $0x34] sm:$0xf]  ;;  %v6994_v55 = vld [vmem:[%s9560_s26 + $0x38] sm:$0xf0] }
  0x30   : > { %846 = vmatmul.bf16.vlgmr.msra.gmra.mxu0 %v9661_v43  ;;  %876 = vmatmul.bf16.vlgmr.msra.gmra.mxu2 %v9665_v46  ;;  %v9739_v20 = vsel %vm453_vm0, %v576_v35, %v580_v36  ;;  %v9743_v25 = vsel %vm453_vm0, %v488_v37, %v492_v38  ;;  %v8888_v56 = vld [vmem:[%s9560_s26 + $0x94] sm:$0xf]  ;;  %v9760_v62 = vor.u32 %v8889_v30, %v7040_v52  ;;  %v494_v0 = vshrl.u32 %v9690_v4, 16  ;;  %v7154_v12 = vld [vmem:[%s14268_s1 + $0x1b8] sm:$0xf0] }
  0x31   : > { %976 = vmatpush.bf16.msrb.mxu2 %v7125_v1  ;;  %v7170_v1 = vld [vmem:[%s14268_s1 + $0x1d8] sm:$0xf0]  ;;  %915 = vmatmul.bf16.vlgmr.msra.gmra.mxu1 %v9675_v48  ;;  %v9749_v49 = vsel %vm453_vm0, %v584_v39, %v588_v40  ;;  %v9764_v59 = vor.u32 %v8876_v53, %v6994_v55  ;;  %v8932_v44 = vld [vmem:[%s14268_s1 + $0x134] sm:$0xf]  ;;  %v8930_v14 = vld [vmem:[%s14268_s1 + $0x124] sm:$0xf] }
  0x32   : > { %1045 = vmatpush.bf16.msrb.mxu3 %v7189_v31  ;;  %v7173_v11 = vor.u32 %v8952_v45, %v7170_v1  ;;  %v7101_v31 = vor.u32 %v8934_v17, %v7098_v18  ;;  %14408 = vst [vmem:[#allocation4_spill] sm:$0xff] %v9760_v62  ;;  %v7090_v45 = vld [vmem:[%s14268_s1 + $0x138] sm:$0xf0]  ;;  %v7082_v16 = vld [vmem:[%s14268_s1 + $0x128] sm:$0xf0]  ;;  %v590_v22 = vshrl.u32 %v9692_v6, 16  ;;  %v496_v39 = vor.u32 %v494_v0, %v484_v34 }
  0x33   : > { %945 = vmatmul.bf16.vlgmr.msra.gmra.mxu3 %v9705_v7  ;;  %v8946_v17 = vld [vmem:[%s14268_s1 + $0x1a4] sm:$0xf]  ;;  %v7146_v18 = vld [vmem:[%s14268_s1 + $0x1a8] sm:$0xf0]  ;;  %v594_v23 = vshll.u32 %v9760_v62, 16  ;;  %v7085_v24 = vor.u32 %v8930_v14, %v7082_v16  ;;  %v502_v28 = vshrl.u32 %v9708_v8, 16 }
  0x34   : > { %v506_v29 = vshll.u32 %v9764_v59, 16  ;;  %v7000_v35 = vld [vmem:[%s9560_s26 + $0x40] sm:$0xf]  ;;  %v8879_v37 = vld [vmem:[%s9560_s26 + $0x44] sm:$0xf0] }
  0x35   : > { %977 = vmatpush.bf16.msrb.mxu2 %v7117_v57  ;;  %v7042_v57 = vld [vmem:[%s9560_s26 + $0x98] sm:$0xf0]  ;;  %v9803_v52 = vrot.slane %v594_v23, 1  ;;  %v504_v30 = vor.u32 %v502_v28, %v492_v38  ;;  %v9807_v55 = vor.u32 %v8879_v37, %v7000_v35  ;;  %v7002_v14 = vld [vmem:[%s9560_s26 + $0x48] sm:$0xf0] }
  0x36   : > { %1046 = vmatpush.bf16.msrb.mxu3 %v7181_v61  ;;  %v9758_v61 = vor.u32 %v8877_v51, %v6992_v42  ;;  %v9772_v1 = vor.u32 %v8888_v56, %v7042_v57  ;;  %v592_v51 = vor.u32 %v590_v22, %v580_v36  ;;  %v9805_v53 = vrot.slane %v506_v29, 1  ;;  %v7048_v56 = vld [vmem:[%s9560_s26 + $0xa0] sm:$0xf]  ;;  %v8891_v57 = vld [vmem:[%s9560_s26 + $0xa4] sm:$0xf0] }
  0x37   : > { %v9819_v38 = vor.u32 %v8891_v57, %v7048_v56  ;;  %v7050_v16 = vld [vmem:[%s9560_s26 + $0xa8] sm:$0xf0]  ;;  %v8925_v28 = vld [vmem:[%s14268_s1 + $0xf4] sm:$0xf0]  ;;  %v7304_v35 = vld [vmem:[%s14268_s1 + $0xe0] sm:$0xf] }
  0x38   : > { %14409 = vst [vmem:[#allocation5_spill] sm:$0xff] %v9772_v1  ;;  %v498_v19 = vshll.u32 %v9758_v61, 16  ;;  %v602_v33 = vshll.u32 %v9772_v1, 16  ;;  %v9817_v0 = vsel %vm453_vm0, %v592_v51, %v9803_v52  ;;  %v8923_v51 = vld [vmem:[%s14268_s1 + $0xe4] sm:$0xf0] }
  0x39   : > { %978 = vmatpush.bf16.msrb.mxu2 %v7109_v10  ;;  %v7093_v10 = vor.u32 %v8932_v44, %v7090_v45  ;;  %14410 = vst [vmem:[#allocation6_spill] sm:$0xff] %v9819_v38  ;;  %v9823_v45 = vsel %vm453_vm0, %v504_v30, %v9805_v53  ;;  %v610_v22 = vshll.u32 %v9819_v38, 16  ;;  %v8928_v30 = vld [vmem:[%s14268_s1 + $0x114] sm:$0xf]  ;;  %v7074_v56 = vld [vmem:[%s14268_s1 + $0x118] sm:$0xf0]  ;;  %v7305_v57 = vor.u32 %v8923_v51, %v7304_v35 }
  0x3a   : > { %1047 = vmatpush.bf16.msrb.mxu3 %v7173_v11  ;;  %v8948_v11 = vld [vmem:[%s14268_s1 + $0x1b4] sm:$0xf]  ;;  %v9801_v42 = vrot.slane %v498_v19, 1  ;;  %v604_v34 = vrot.slane %v602_v33, 1  ;;  %v606_v19 = vshrl.u32 %v9760_v62, 16 }
  0x3b   : > { %v7157_v15 = vor.u32 %v8948_v11, %v7154_v12  ;;  %v514_v11 = vshll.u32 %v9807_v55, 16  ;;  %v8878_v12 = vld [vmem:[%s9560_s26 + $0x44] sm:$0xf]  ;;  %v8907_v33 = vld [vmem:[%s14268_s1 + $0x64] sm:$0xf0] }
  0x3c   : > { %v9813_v36 = vsel %vm453_vm0, %v496_v39, %v9801_v42  ;;  %v9852_v29 = vor.u32 %v8878_v12, %v7002_v14  ;;  %v8944_v12 = vld [vmem:[%s14268_s1 + $0x194] sm:$0xf]  ;;  %v7138_v14 = vld [vmem:[%s14268_s1 + $0x198] sm:$0xf0]  ;;  %v7224_v51 = vld [vmem:[%s14268_s1 + $0x40] sm:$0xf] }
  0x3d   : > { %979 = vmatpush.bf16.msrb.mxu2 %v7101_v31  ;;  %v7149_v31 = vor.u32 %v8946_v17, %v7146_v18  ;;  %v7248_v17 = vld [vmem:[%s14268_s1 + $0x70] sm:$0xf]  ;;  %v8909_v18 = vld [vmem:[%s14268_s1 + $0x74] sm:$0xf0] }
  0x3e   : > { %1048 = vmatpush.bf16.msrb.mxu3 %v7165_v32  ;;  %v598_v32 = vshrl.u32 %v9710_v9, 16  ;;  %v7249_v23 = vor.u32 %v8909_v18, %v7248_v17  ;;  %v8905_v17 = vld [vmem:[%s14268_s1 + $0x54] sm:$0xf0]  ;;  %v7296_v18 = vld [vmem:[%s14268_s1 + $0xd0] sm:$0xf] }
  0x3f   : > { %v7256_v9 = vld [vmem:[%s14268_s1 + $0x80] sm:$0xf] }
  0x40   : > { %851 = vmatmul.bf16.gmra.mxu0 %v9736_v41  ;;  %881 = vmatmul.bf16.gmra.mxu2 %v9739_v20  ;;  %v600_v44 = vor.u32 %v598_v32, %v588_v40  ;;  %v7240_v32 = vld [vmem:[%s14268_s1 + $0x60] sm:$0xf] }
  0x41   : > { %920 = vmatmul.bf16.gmra.mxu1 %v9743_v25  ;;  %980 = vmatpush.bf16.msrb.mxu2 %v7093_v10  ;;  %v510_v10 = vshrl.u32 %v9758_v61, 16  ;;  %v7241_v39 = vor.u32 %v8907_v33, %v7240_v32 }
  0x42   : > { %1049 = vmatpush.bf16.msrb.mxu3 %v7157_v15  ;;  %v9828_v40 = vsel %vm453_vm0, %v600_v44, %v604_v34  ;;  %v8890_v15 = vld [vmem:[%s9560_s26 + $0xa4] sm:$0xf]  ;;  %1298 = vmatpush.bf16.msrb.mxu0 %v7249_v23  ;;  %v7077_v44 = vor.u32 %v8928_v30, %v7074_v56  ;;  %v8921_v23 = vld [vmem:[%s14268_s1 + $0xd4] sm:$0xf0]  ;;  %v8903_v30 = vld [vmem:[%s14268_s1 + $0x44] sm:$0xf0] }
  0x43   : > { %950 = vmatmul.bf16.gmra.mxu3 %v9749_v49  ;;  %14411 = vst [vmem:[#allocation7_spill] sm:$0xff] %v9828_v40  ;;  %v9863_v37 = vor.u32 %v8890_v15, %v7050_v16  ;;  %v7232_v15 = vld [vmem:[%s14268_s1 + $0x50] sm:$0xf]  ;;  %v7141_v16 = vor.u32 %v8944_v12, %v7138_v14  ;;  %v7297_v35 = vor.u32 %v8921_v23, %v7296_v18  ;;  %v9906_v12 = vrot.slane %v610_v22, 1  ;;  %v8881_v22 = vld [vmem:[%s9560_s26 + $0x54] sm:$0xf0] }
  0x44   : > { %v7233_v33 = vor.u32 %v8905_v17, %v7232_v15  ;;  %v512_v56 = vor.u32 %v510_v10, %v9801_v42  ;;  %v7225_v42 = vor.u32 %v8903_v30, %v7224_v51  ;;  %v8919_v10 = vld [vmem:[%s14268_s1 + $0xc4] sm:$0xf0]  ;;  %v7056_v17 = vld [vmem:[%s9560_s26 + $0xb0] sm:$0xf]  ;;  %v8893_v18 = vld [vmem:[%s9560_s26 + $0xb4] sm:$0xf0] }
  0x45   : > { %981 = vmatpush.bf16.msrb.mxu2 %v7085_v24  ;;  %v7312_v24 = vld [vmem:[%s14268_s1 + $0xf0] sm:$0xf]  ;;  %14412 = vst [vmem:[#allocation8_spill] sm:$0xff] %v9863_v37  ;;  %v618_v32 = vshll.u32 %v9863_v37, 16  ;;  %v8901_v51 = vld [vmem:[%s14268_s1 + $0x34] sm:$0xf0] }
  0x46   : > { %1050 = vmatpush.bf16.msrb.mxu3 %v7149_v31  ;;  %v7313_v31 = vor.u32 %v8925_v28, %v7312_v24  ;;  %v518_v24 = vshrl.u32 %v9764_v59, 16  ;;  %v522_v28 = vshll.u32 %v9852_v29, 16  ;;  %1299 = vmatpush.bf16.msrb.mxu0 %v7241_v39  ;;  %v608_v39 = vor.u32 %v606_v19, %v9803_v52  ;;  %v7288_v52 = vld [vmem:[%s14268_s1 + $0xc0] sm:$0xf] }
  0x47   : > { %v7289_v23 = vor.u32 %v8919_v10, %v7288_v52  ;;  %v8926_v10 = vld [vmem:[%s14268_s1 + $0x104] sm:$0xf]  ;;  %v630_v58 = vshrl.u32 %v9863_v37, 16 }
  0x48   : > { %1367 = vmatpush.bf16.msrb.mxu1 %v7313_v31  ;;  %v614_v31 = vshrl.u32 %v9772_v1, 16  ;;  %v9909_v14 = vrot.slane %v522_v28, 1  ;;  %v8880_v28 = vld [vmem:[%s9560_s26 + $0x54] sm:$0xf] }
  0x49   : > { %982 = vmatpush.bf16.msrb.mxu2 %v7077_v44  ;;  %v9903_v44 = vrot.slane %v514_v11, 1  ;;  %v7008_v11 = vld [vmem:[%s9560_s26 + $0x50] sm:$0xf] }
  0x4a   : > { %1051 = vmatpush.bf16.msrb.mxu3 %v7141_v16  ;;  %v616_v15 = vor.u32 %v614_v31, %v604_v34  ;;  %v9911_v16 = vrot.slane %v618_v32, 1  ;;  %1300 = vmatpush.bf16.msrb.mxu0 %v7233_v33  ;;  %v9925_v34 = vsel %vm453_vm0, %v608_v39, %v9906_v12  ;;  %v7010_v31 = vld [vmem:[%s9560_s26 + $0x58] sm:$0xf0]  ;;  %v8892_v32 = vld [vmem:[%s9560_s26 + $0xb4] sm:$0xf]  ;;  %v9952_v30 = vor.u32 %v8881_v22, %v7008_v11 }
  0x4b   : > { %14413 = vst [vmem:[#allocation9_spill] sm:$0xff] %v9925_v34  ;;  %v7058_v33 = vld [vmem:[%s9560_s26 + $0xb8] sm:$0xf0]  ;;  %v7066_v11 = vld [vmem:[%s14268_s1 + $0x108] sm:$0xf0] }
  0x4c   : > { %1368 = vmatpush.bf16.msrb.mxu1 %v7305_v57  ;;  %v520_v57 = vor.u32 %v518_v24, %v9805_v53  ;;  %v9921_v53 = vsel %vm453_vm0, %v512_v56, %v9903_v44  ;;  %v9937_v24 = vsel %vm453_vm0, %v616_v15, %v9911_v16  ;;  %v9954_v56 = vor.u32 %v8893_v18, %v7056_v17  ;;  %v8917_v15 = vld [vmem:[%s14268_s1 + $0xb4] sm:$0xf0]  ;;  %v8942_v22 = vld [vmem:[%s14268_s1 + $0x184] sm:$0xf] }
  0x4d   : > { %14414 = vst [vmem:[#allocation10_spill] sm:$0xff] %v9937_v24  ;;  %v9974_v17 = vor.u32 %v8892_v32, %v7058_v33  ;;  %v7069_v18 = vor.u32 %v8926_v10, %v7066_v11  ;;  %v7272_v32 = vld [vmem:[%s14268_s1 + $0xa0] sm:$0xf]  ;;  %v8915_v33 = vld [vmem:[%s14268_s1 + $0xa4] sm:$0xf0]  ;;  %v622_v10 = vshrl.u32 %v9819_v38, 16  ;;  %v632_v62 = vor.u32 %v630_v58, %v9911_v16 }
  0x4e   : > { %v9930_v19 = vsel %vm453_vm0, %v520_v57, %v9909_v14  ;;  %1301 = vmatpush.bf16.msrb.mxu0 %v7225_v42  ;;  %v7280_v57 = vld [vmem:[%s14268_s1 + $0xb0] sm:$0xf]  ;;  %v9963_v42 = vor.u32 %v8880_v28, %v7010_v31  ;;  %v7208_v28 = vld [vmem:[%s14268_s1 + $0x20] sm:$0xf]  ;;  %v8899_v31 = vld [vmem:[%s14268_s1 + $0x24] sm:$0xf0] }
  0x4f   : > { %v7281_v52 = vor.u32 %v8917_v15, %v7280_v57  ;;  %v526_v57 = vshrl.u32 %v9807_v55, 16  ;;  %v530_v15 = vshll.u32 %v9952_v30, 16  ;;  %v626_v11 = vshll.u32 %v9954_v56, 16  ;;  %983 = vmatpush.bf16.msrb.mxu2 %v7069_v18  ;;  %v7264_v18 = vld [vmem:[%s14268_s1 + $0x90] sm:$0xf] }
  0x50   : > { %856 = vmatmul.bf16.gmra.mxu0 %v9813_v36  ;;  %886 = vmatmul.bf16.gmra.mxu2 %v9817_v0  ;;  %v634_v54 = vshll.u32 %v9974_v17, 16  ;;  %v8913_v38 = vld [vmem:[%s14268_s1 + $0x94] sm:$0xf0] }
  0x51   : > { %925 = vmatmul.bf16.gmra.mxu1 %v9823_v45  ;;  %v7265_v1 = vor.u32 %v8913_v38, %v7264_v18  ;;  %v646_v18 = vshrl.u32 %v9974_v17, 16 }
  0x52   : > { %1369 = vmatpush.bf16.msrb.mxu1 %v7297_v35  ;;  %v7216_v35 = vld [vmem:[%s14268_s1 + $0x30] sm:$0xf] }
  0x53   : > { %955 = vmatmul.bf16.gmra.mxu3 %v9828_v40  ;;  %v7217_v39 = vor.u32 %v8901_v51, %v7216_v35  ;;  %v7209_v51 = vor.u32 %v8899_v31, %v7208_v28  ;;  %v538_v28 = vshll.u32 %v9963_v42, 16  ;;  %v7273_v31 = vor.u32 %v8915_v33, %v7272_v32 }
  0x54   : > { %v528_v32 = vor.u32 %v526_v57, %v9903_v44  ;;  %v624_v33 = vor.u32 %v622_v10, %v9906_v12  ;;  %v8911_v44 = vld [vmem:[%s14268_s1 + $0x84] sm:$0xf0] }
  0x55   : > { %1302 = vmatpush.bf16.msrb.mxu0 %v7217_v39  ;;  %v7200_v39 = vld [vmem:[%s14268_s1 + $0x10] sm:$0xf]  ;;  %v540_v37 = vrot.slane %v538_v28, 1 }
  0x56   : > { %1370 = vmatpush.bf16.msrb.mxu1 %v7289_v23  ;;  %v7130_v23 = vld [vmem:[%s14268_s1 + $0x188] sm:$0xf0] }
  0x57   : > { %v7133_v35 = vor.u32 %v8942_v22, %v7130_v23  ;;  %v8897_v22 = vld [vmem:[%s14268_s1 + $0x14] sm:$0xf0]  ;;  %v534_v23 = vshrl.u32 %v9852_v29, 16 }
  0x58   : > { %v7201_v50 = vor.u32 %v8897_v22, %v7200_v39  ;;  %v628_v39 = vrot.slane %v626_v11, 1  ;;  %v542_v11 = vshrl.u32 %v9952_v30, 16 }
  0x59   : > { %1052 = vmatpush.bf16.msrb.mxu3 %v7133_v35  ;;  %1303 = vmatpush.bf16.msrb.mxu0 %v7209_v51  ;;  %v8895_v35 = vld [vmem:[%s14268_s1 + $0x4] sm:$0xf0]  ;;  %v532_v51 = vrot.slane %v530_v15, 1  ;;  %v536_v22 = vor.u32 %v534_v23, %v9909_v14  ;;  %v7314_v15 = vld [vmem:[%s14268_s1 + $0xf8] sm:$0xf0]  ;;  %v638_v23 = vshrl.u32 %v9954_v56, 16 }
  0x5a   : > { %1371 = vmatpush.bf16.msrb.mxu1 %v7281_v52  ;;  %v7192_v52 = vld [vmem:[%s14268_s1] sm:$0xf]  ;;  %v10032_v14 = vsel %vm453_vm0, %v624_v33, %v628_v39 }
  0x5b   : > { %v7193_v40 = vor.u32 %v8895_v35, %v7192_v52  ;;  %v10029_v12 = vsel %vm453_vm0, %v528_v32, %v532_v51  ;;  %v10035_v58 = vsel %vm453_vm0, %v536_v22, %v540_v37  ;;  %v544_v35 = vor.u32 %v542_v11, %v532_v51  ;;  %v7306_v51 = vld [vmem:[%s14268_s1 + $0xe8] sm:$0xf0] }
  0x5c   : > { %v640_v32 = vor.u32 %v638_v23, %v628_v39 }
  0x5d   : > { %1304 = vmatpush.bf16.msrb.mxu0 %v7201_v50  ;;  %v7257_v50 = vor.u32 %v8911_v44, %v7256_v9  ;;  %v8908_v9 = vld [vmem:[%s14268_s1 + $0x74] sm:$0xf] }
  0x5e   : > { %1372 = vmatpush.bf16.msrb.mxu1 %v7273_v31  ;;  %v550_v31 = vshrl.u32 %v9963_v42, 16 }
  0x60   : > { %861 = vmatmul.bf16.gmra.mxu0 %v9921_v53  ;;  %891 = vmatmul.bf16.gmra.mxu2 %v9925_v34  ;;  %v636_v34 = vrot.slane %v634_v54, 1  ;;  %v552_v22 = vor.u32 %v550_v31, %v540_v37  ;;  %v8922_v37 = vld [vmem:[%s14268_s1 + $0xe4] sm:$0xf] }
  0x61   : > { %930 = vmatmul.bf16.gmra.mxu1 %v9930_v19  ;;  %1305 = vmatpush.bf16.msrb.mxu0 %v7193_v40  ;;  %v7309_v39 = vor.u32 %v8922_v37, %v7306_v51 }
  0x62   : > { %1373 = vmatpush.bf16.msrb.mxu1 %v7265_v1  ;;  %v10038_v54 = vsel %vm453_vm0, %v632_v62, %v636_v34  ;;  %v7250_v62 = vld [vmem:[%s14268_s1 + $0x78] sm:$0xf0]  ;;  %v8924_v1 = vld [vmem:[%s14268_s1 + $0xf4] sm:$0xf]  ;;  %v648_v44 = vor.u32 %v646_v18, %v636_v34 }
  0x63   : > { %960 = vmatmul.bf16.gmra.mxu3 %v9937_v24  ;;  %v318_v24 = vld [vmem:[%s9560_s26 + $0xc0] sm:$0x11]  ;;  %v7317_v10 = vor.u32 %v8924_v1, %v7314_v15  ;;  %v8904_v1 = vld [vmem:[%s14268_s1 + $0x54] sm:$0xf] }
  0x64   : > { %v425_v38 = vunpack.c.l.b16 %v318_v24  ;;  %v426_v16 = vunpack.c.h.b16 %v318_v24  ;;  %v7253_v24 = vor.u32 %v8908_v9, %v7250_v62  ;;  %v10075_v9 = vsel %vm453_vm0, %v552_v22, %v9667_v47  ;;  %v7242_v47 = vld [vmem:[%s14268_s1 + $0x68] sm:$0xf0] }
  0x65   : > { %1505 = vmatpush.bf16.msra.mxu3 %v7317_v10  ;;  %v7290_v22 = vld [vmem:[%s14268_s1 + $0xc8] sm:$0xf0] }
  0x66   : > { %v10043_v57 = vpack.c.b16 %v425_v38, %v425_v38  ;;  %1374 = vmatpush.bf16.msrb.mxu1 %v7257_v50  ;;  %v10055_v40 = vpack.c.b16 %v426_v16, %v426_v16  ;;  %1436 = vmatpush.bf16.msra.mxu2 %v7253_v24  ;;  %v10068_v50 = vsel %vm453_vm0, %v544_v35, %v9627_v21  ;;  %v8906_v21 = vld [vmem:[%s14268_s1 + $0x64] sm:$0xf] }
  0x67   : > { %v7245_v34 = vor.u32 %v8906_v21, %v7242_v47 }
  0x68   : > { %14415 = vst [vmem:[#allocation11_spill] sm:$0xff] %v10043_v57  ;;  %v642_v28 = vshll.u32 %v10043_v57, 16  ;;  %v650_v52 = vshll.u32 %v10055_v40, 16  ;;  %v14423_v57 = vld [vmem:[#allocation9_spill] sm:$0xff] }
  0x69   : > { %14416 = vst [vmem:[#allocation12_spill] sm:$0xff] %v10055_v40  ;;  %1506 = vmatpush.bf16.msra.mxu3 %v7309_v39 }
  0x6a   : > { %v644_v33 = vrot.slane %v642_v28, 1  ;;  %v652_v38 = vrot.slane %v650_v52, 1  ;;  %1437 = vmatpush.bf16.msra.mxu2 %v7245_v34 }
  0x6c   : > { %v10071_v16 = vsel %vm453_vm0, %v640_v32, %v644_v33  ;;  %v10078_v62 = vsel %vm453_vm0, %v648_v44, %v652_v38  ;;  %v8902_v32 = vld [vmem:[%s14268_s1 + $0x44] sm:$0xf] }
  0x70   : > { %866 = vmatmul.bf16.gmra.mxu0 %v10029_v12  ;;  %896 = vmatmul.bf16.gmra.mxu2 %v10032_v14 }
  0x71   : > { %935 = vmatmul.bf16.gmra.mxu1 %v10035_v58 }
  0x73   : > { %965 = vmatmul.bf16.gmra.mxu3 %v10038_v54 }
  0x80   : > { %871 = vmatmul.bf16.gmra.mxu0 %v10068_v50  ;;  %901 = vmatmul.bf16.gmra.mxu2 %v10071_v16 }
  0x81   : > { %940 = vmatmul.bf16.gmra.mxu1 %v10075_v9 }
  0x83   : > { %970 = vmatmul.bf16.gmra.mxu3 %v10078_v62 }
  0x90   : > { %984 = vmatmul.bf16.vlgmr.msrb.gmra.mxu2 %v9661_v43  ;;  %1306 = vmatmul.bf16.vlgmr.msrb.gmra.mxu0 %v9597_v2  ;;  %v7234_v43 = vld [vmem:[%s14268_s1 + $0x58] sm:$0xf0] }
  0x91   : > { %1375 = vmatmul.bf16.vlgmr.msrb.gmra.mxu1 %v9604_v5  ;;  %v7237_v24 = vor.u32 %v8904_v1, %v7234_v43 }
  0x93   : > { %1053 = vmatmul.bf16.vlgmr.msrb.gmra.mxu3 %v9675_v48  ;;  %v8920_v48 = vld [vmem:[%s14268_s1 + $0xd4] sm:$0xf]  ;;  %1438 = vmatpush.bf16.msra.mxu2 %v7237_v24 }
  0xa0   : > { %989 = vmatmul.bf16.gmra.mxu2 %v9736_v41  ;;  %1311 = vmatmul.bf16.gmra.mxu0 %v9586_v60  ;;  %v7298_v41 = vld [vmem:[%s14268_s1 + $0xd8] sm:$0xf0] }
  0xa1   : > { %1380 = vmatmul.bf16.gmra.mxu1 %v9617_v13  ;;  %v7301_v15 = vor.u32 %v8920_v48, %v7298_v41 }
  0xa3   : > { %1058 = vmatmul.bf16.gmra.mxu3 %v9743_v25 }
  0xa4   : > { %1507 = vmatpush.bf16.msra.mxu3 %v7301_v15 }
  0xad   : > { %v847_v25 = vpop.f32.mrf.mxu0 }
  0xae   : > { %v916_v10 = vpop.f32.mrf.mxu1 }
  0xaf   : > { %v10116_v11 = vadd.f32 %v916_v10, %v847_v25 }
  0xb0   : > { %994 = vmatmul.bf16.gmra.mxu2 %v9813_v36  ;;  %1316 = vmatmul.bf16.gmra.mxu0 %v9690_v4  ;;  %v7226_v36 = vld [vmem:[%s14268_s1 + $0x48] sm:$0xf0] }
  0xb1   : > { %1385 = vmatmul.bf16.gmra.mxu1 %v9708_v8  ;;  %v7229_v33 = vor.u32 %v8902_v32, %v7226_v36  ;;  %v7282_v36 = vld [vmem:[%s14268_s1 + $0xb8] sm:$0xf0] }
  0xb3   : > { %1063 = vmatmul.bf16.gmra.mxu3 %v9823_v45  ;;  %v877_v23 = vpop.f32.mrf.mxu2  ;;  %v8918_v45 = vld [vmem:[%s14268_s1 + $0xc4] sm:$0xf]  ;;  %1439 = vmatpush.bf16.msra.mxu2 %v7229_v33 }
  0xb4   : > { %v7293_v44 = vor.u32 %v8918_v45, %v7290_v22 }
  0xb5   : > { %v849_v31 = vpop.f32.mrf.mxu0 }
  0xb6   : > { %v946_v28 = vpop.f32.mrf.mxu3  ;;  %v918_v52 = vpop.f32.mrf.mxu1  ;;  %1508 = vmatpush.bf16.msra.mxu3 %v7293_v44 }
  0xb7   : > { %v10122_v18 = vadd.f32 %v946_v28, %v877_v23  ;;  %v10124_v35 = vadd.f32 %v918_v52, %v849_v31  ;;  %v7218_v31 = vld [vmem:[%s14268_s1 + $0x38] sm:$0xf0]  ;;  %v8916_v52 = vld [vmem:[%s14268_s1 + $0xb4] sm:$0xf] }
  0xb8   : > { %v7285_v45 = vor.u32 %v8916_v52, %v7282_v36 }
  0xba   : > { %1509 = vmatpush.bf16.msra.mxu3 %v7285_v45 }
  0xbb   : > { %v879_v38 = vpop.f32.mrf.mxu2 }
  0xbd   : > { %v852_v47 = vpop.f32.mrf.mxu0 }
  0xbe   : > { %v948_v21 = vpop.f32.mrf.mxu3  ;;  %v921_v34 = vpop.f32.mrf.mxu1 }
  0xbf   : > { %v10138_v37 = vadd.f32 %v948_v21, %v879_v38  ;;  %v10140_v51 = vadd.f32 %v921_v34, %v852_v47 }
  0xc0   : > { %999 = vmatmul.bf16.gmra.mxu2 %v9921_v53  ;;  %1321 = vmatmul.bf16.gmra.mxu0 %v9758_v61 }
  0xc1   : > { %1390 = vmatmul.bf16.gmra.mxu1 %v9764_v59 }
  0xc3   : > { %1068 = vmatmul.bf16.gmra.mxu3 %v9930_v19  ;;  %v882_v39 = vpop.f32.mrf.mxu2  ;;  %v8900_v19 = vld [vmem:[%s14268_s1 + $0x34] sm:$0xf] }
  0xc5   : > { %v854_v43 = vpop.f32.mrf.mxu0 }
  0xc6   : > { %v951_v1 = vpop.f32.mrf.mxu3  ;;  %v923_v24 = vpop.f32.mrf.mxu1 }
  0xc7   : > { %v10146_v48 = vadd.f32 %v951_v1, %v882_v39  ;;  %v10148_v41 = vadd.f32 %v923_v24, %v854_v43 }
  0xcb   : > { %v884_v15 = vpop.f32.mrf.mxu2 }
  0xcd   : > { %v857_v10 = vpop.f32.mrf.mxu0 }
  0xce   : > { %v953_v25 = vpop.f32.mrf.mxu3  ;;  %v926_v53 = vpop.f32.mrf.mxu1 }
  0xcf   : > { %v10150_v23 = vadd.f32 %v953_v25, %v884_v15  ;;  %v10152_v28 = vadd.f32 %v926_v53, %v857_v10 }
  0xd0   : > { %1004 = vmatmul.bf16.gmra.mxu2 %v10029_v12  ;;  %1326 = vmatmul.bf16.gmra.mxu0 %v9807_v55  ;;  %v7221_v12 = vor.u32 %v8900_v19, %v7218_v31  ;;  %v8898_v31 = vld [vmem:[%s14268_s1 + $0x24] sm:$0xf] }
  0xd1   : > { %1395 = vmatmul.bf16.gmra.mxu1 %v9852_v29 }
  0xd2   : > { %1440 = vmatpush.bf16.msra.mxu2 %v7221_v12 }
  0xd3   : > { %1073 = vmatmul.bf16.gmra.mxu3 %v10035_v58  ;;  %v887_v32 = vpop.f32.mrf.mxu2 }
  0xd5   : > { %v859_v33 = vpop.f32.mrf.mxu0 }
  0xd6   : > { %v956_v58 = vpop.f32.mrf.mxu3  ;;  %v928_v44 = vpop.f32.mrf.mxu1 }
  0xd7   : > { %v10170_v22 = vadd.f32 %v956_v58, %v887_v32  ;;  %v10172_v38 = vadd.f32 %v928_v44, %v859_v33  ;;  %v7274_v32 = vld [vmem:[%s14268_s1 + $0xa8] sm:$0xf0] }
  0xdb   : > { %v889_v21 = vpop.f32.mrf.mxu2 }
  0xdd   : > { %v862_v34 = vpop.f32.mrf.mxu0 }
  0xde   : > { %v958_v47 = vpop.f32.mrf.mxu3  ;;  %v931_v1 = vpop.f32.mrf.mxu1 }
  0xdf   : > { %v10174_v39 = vadd.f32 %v958_v47, %v889_v21  ;;  %v10176_v43 = vadd.f32 %v931_v1, %v862_v34 }
  0xe0   : > { %1009 = vmatmul.bf16.gmra.mxu2 %v10068_v50  ;;  %1331 = vmatmul.bf16.gmra.mxu0 %v9952_v30  ;;  %v7210_v50 = vld [vmem:[%s14268_s1 + $0x28] sm:$0xf0] }
  0xe1   : > { %1400 = vmatmul.bf16.gmra.mxu1 %v9963_v42  ;;  %v7213_v52 = vor.u32 %v8898_v31, %v7210_v50 }
  0xe3   : > { %1078 = vmatmul.bf16.gmra.mxu3 %v10075_v9  ;;  %v892_v24 = vpop.f32.mrf.mxu2  ;;  %v8914_v9 = vld [vmem:[%s14268_s1 + $0xa4] sm:$0xf]  ;;  %1441 = vmatpush.bf16.msra.mxu2 %v7213_v52 }
  0xe4   : > { %v7277_v12 = vor.u32 %v8914_v9, %v7274_v32  ;;  %v7202_v32 = vld [vmem:[%s14268_s1 + $0x18] sm:$0xf0] }
  0xe5   : > { %v864_v25 = vpop.f32.mrf.mxu0 }
  0xe6   : > { %v961_v15 = vpop.f32.mrf.mxu3  ;;  %v933_v53 = vpop.f32.mrf.mxu1  ;;  %1510 = vmatpush.bf16.msra.mxu3 %v7277_v12  ;;  %v8912_v12 = vld [vmem:[%s14268_s1 + $0x94] sm:$0xf] }
  0xe7   : > { %v10182_v10 = vadd.f32 %v961_v15, %v892_v24  ;;  %v10184_v19 = vadd.f32 %v933_v53, %v864_v25 }
  0xeb   : > { %v894_v36 = vpop.f32.mrf.mxu2 }
  0xed   : > { %v867_v58 = vpop.f32.mrf.mxu0 }
  0xee   : > { %v963_v45 = vpop.f32.mrf.mxu3  ;;  %v936_v44 = vpop.f32.mrf.mxu1 }
  0xef   : > { %v10198_v33 = vadd.f32 %v963_v45, %v894_v36  ;;  %v10200_v21 = vadd.f32 %v936_v44, %v867_v58  ;;  %v7266_v45 = vld [vmem:[%s14268_s1 + $0x98] sm:$0xf0] }
  0xf0   : > { %1014 = vmatmul.bf16.gmra.mxu2 %v9665_v46  ;;  %1336 = vmatmul.bf16.gmra.mxu0 %v9590_v63  ;;  %v7269_v58 = vor.u32 %v8912_v12, %v7266_v45 }
  0xf1   : > { %1405 = vmatmul.bf16.gmra.mxu1 %v9633_v26 }
  0xf2   : > { %1511 = vmatpush.bf16.msra.mxu3 %v7269_v58 }
  0xf3   : > { %1083 = vmatmul.bf16.gmra.mxu3 %v9705_v7  ;;  %v897_v47 = vpop.f32.mrf.mxu2  ;;  %v8896_v7 = vld [vmem:[%s14268_s1 + $0x14] sm:$0xf] }
  0xf5   : > { %v869_v1 = vpop.f32.mrf.mxu0 }
  0xf6   : > { %v966_v34 = vpop.f32.mrf.mxu3  ;;  %v938_v15 = vpop.f32.mrf.mxu1 }
  0xf7   : > { %v10206_v24 = vadd.f32 %v966_v34, %v897_v47  ;;  %v10208_v25 = vadd.f32 %v938_v15, %v869_v1  ;;  %v7408_v1 = vld [vmem:[%s14268_s1 + $0x270] sm:$0xf]  ;;  %v8973_v15 = vld [vmem:[%s14268_s1 + $0x274] sm:$0xf0] }
  0xfb   : > { %v899_v53 = vpop.f32.mrf.mxu2 }
  0xfd   : > { %v872_v50 = vpop.f32.mrf.mxu0 }
  0xfe   : > { %v968_v31 = vpop.f32.mrf.mxu3  ;;  %v941_v46 = vpop.f32.mrf.mxu1 }
  0xff   : > { %v10210_v9 = vadd.f32 %v968_v31, %v899_v53  ;;  %v10212_v52 = vadd.f32 %v941_v46, %v872_v50  ;;  %v7409_v31 = vor.u32 %v8973_v15, %v7408_v1  ;;  %v7472_v50 = vld [vmem:[%s14268_s1 + $0x2f0] sm:$0xf]  ;;  %v8989_v46 = vld [vmem:[%s14268_s1 + $0x2f4] sm:$0xf0]  ;;  %v7400_v15 = vld [vmem:[%s14268_s1 + $0x260] sm:$0xf] }
 0x100   : > { %1019 = vmatmul.bf16.gmra.mxu2 %v9739_v20  ;;  %1341 = vmatmul.bf16.gmra.mxu0 %v9599_v3  ;;  %v7205_v20 = vor.u32 %v8896_v7, %v7202_v32  ;;  %v7473_v7 = vor.u32 %v8989_v46, %v7472_v50 }
 0x101   : > { %1410 = vmatmul.bf16.gmra.mxu1 %v9635_v27  ;;  %1848 = vmatpush.bf16.msra.mxu0 %v7409_v31  ;;  %v7464_v31 = vld [vmem:[%s14268_s1 + $0x2e0] sm:$0xf] }
 0x102   : > { %1442 = vmatpush.bf16.msra.mxu2 %v7205_v20  ;;  %1917 = vmatpush.bf16.msra.mxu1 %v7473_v7  ;;  %v8987_v7 = vld [vmem:[%s14268_s1 + $0x2e4] sm:$0xf0] }
 0x103   : > { %1088 = vmatmul.bf16.gmra.mxu3 %v9749_v49  ;;  %v902_v36 = vpop.f32.mrf.mxu2 }
 0x105   : > { %v874_v44 = vpop.f32.mrf.mxu0 }
 0x106   : > { %v971_v49 = vpop.f32.mrf.mxu3  ;;  %v943_v34 = vpop.f32.mrf.mxu1 }
 0x107   : > { %v10230_v47 = vadd.f32 %v971_v49, %v902_v36  ;;  %v10238_v53 = vadd.f32 %v943_v34, %v874_v44  ;;  %v14417_v44 = vld [vmem:[#allocation3_spill] sm:$0xff] }
 0x108   : > { %v14418_v34 = vld [vmem:[#allocation7_spill] sm:$0xff] }
 0x10b   : > { %v904_v32 = vpop.f32.mrf.mxu2 }
 0x10d   : > { %v1307_v36 = vpop.f32.mrf.mxu0 }
 0x10e   : > { %v973_v12 = vpop.f32.mrf.mxu3  ;;  %v1308_v45 = vadd.f32 %v1307_v36, %v10116_v11  ;;  %v1376_v58 = vpop.f32.mrf.mxu1  ;;  %v8971_v11 = vld [vmem:[%s14268_s1 + $0x264] sm:$0xf0] }
 0x10f   : > { %v10246_v20 = vadd.f32 %v973_v12, %v904_v32  ;;  %v7401_v46 = vor.u32 %v8971_v11, %v7400_v15  ;;  %v7194_v15 = vld [vmem:[%s14268_s1 + $0x8] sm:$0xf0] }
 0x110   : > { %v10249_v49 = vadd.f32 %v1376_v58, %v1308_v45  ;;  %1024 = vmatmul.bf16.gmra.mxu2 %v9817_v0  ;;  %1346 = vmatmul.bf16.gmra.mxu0 %v9692_v6  ;;  %v7465_v45 = vor.u32 %v8987_v7, %v7464_v31  ;;  %v7392_v31 = vld [vmem:[%s14268_s1 + $0x250] sm:$0xf] }
 0x111   : > { %1415 = vmatmul.bf16.gmra.mxu1 %v14417_v44  ;;  %1849 = vmatpush.bf16.msra.mxu0 %v7401_v46  ;;  %v7456_v7 = vld [vmem:[%s14268_s1 + $0x2d0] sm:$0xf] }
 0x112   : > { %1918 = vmatpush.bf16.msra.mxu1 %v7465_v45 }
 0x113   : > { %1093 = vmatmul.bf16.gmra.mxu3 %v14418_v34  ;;  %v985_v1 = vpop.f32.mrf.mxu2  ;;  %v8894_v34 = vld [vmem:[%s14268_s1 + $0x4] sm:$0xf] }
 0x114   : > { %v7197_v11 = vor.u32 %v8894_v34, %v7194_v15  ;;  %v7384_v34 = vld [vmem:[%s14268_s1 + $0x240] sm:$0xf]  ;;  %v8967_v15 = vld [vmem:[%s14268_s1 + $0x244] sm:$0xf0] }
 0x115   : > { %v1309_v50 = vpop.f32.mrf.mxu0 }
 0x116   : > { %v1054_v0 = vpop.f32.mrf.mxu3  ;;  %v1310_v12 = vadd.f32 %v1309_v50, %v10124_v35  ;;  %v1378_v36 = vpop.f32.mrf.mxu1  ;;  %v7258_v35 = vld [vmem:[%s14268_s1 + $0x88] sm:$0xf0]  ;;  %1443 = vmatpush.bf16.msra.mxu2 %v7197_v11  ;;  %v8983_v11 = vld [vmem:[%s14268_s1 + $0x2c4] sm:$0xf0] }
 0x117   : > { %v10267_v32 = vadd.f32 %v1054_v0, %v985_v1  ;;  %v8910_v1 = vld [vmem:[%s14268_s1 + $0x84] sm:$0xf]  ;;  %v8969_v0 = vld [vmem:[%s14268_s1 + $0x254] sm:$0xf0] }
 0x118   : > { %v10270_v58 = vadd.f32 %v1378_v36, %v1310_v12  ;;  %v7261_v50 = vor.u32 %v8910_v1, %v7258_v35  ;;  %v7393_v46 = vor.u32 %v8969_v0, %v7392_v31  ;;  %v8985_v12 = vld [vmem:[%s14268_s1 + $0x2d4] sm:$0xf0]  ;;  %v7448_v1 = vld [vmem:[%s14268_s1 + $0x2c0] sm:$0xf]  ;;  %v7385_v0 = vor.u32 %v8967_v15, %v7384_v34 }
 0x119   : > { %14419 = vst [vmem:[#allocation3_spill] sm:$0xff] %v10267_v32  ;;  %v7457_v45 = vor.u32 %v8985_v12, %v7456_v7  ;;  %v7449_v12 = vor.u32 %v8983_v11, %v7448_v1  ;;  %v8965_v34 = vld [vmem:[%s14268_s1 + $0x234] sm:$0xf0]  ;;  %v14426_v1 = vld [vmem:[#allocation10_spill] sm:$0xff]  ;;  %v7360_v32 = vld [vmem:[%s14268_s1 + $0x210] sm:$0xf] }
 0x11a   : > { %14420 = vst [vmem:[#allocation7_spill] sm:$0xff] %v10270_v58  ;;  %1512 = vmatpush.bf16.msra.mxu3 %v7261_v50  ;;  %1850 = vmatpush.bf16.msra.mxu0 %v7393_v46  ;;  %v14424_v58 = vld [vmem:[#allocation4_spill] sm:$0xff]  ;;  %v7368_v11 = vld [vmem:[%s14268_s1 + $0x220] sm:$0xf] }
 0x11b   : > { %v987_v36 = vpop.f32.mrf.mxu2  ;;  %1919 = vmatpush.bf16.msra.mxu1 %v7457_v45  ;;  %v7376_v45 = vld [vmem:[%s14268_s1 + $0x230] sm:$0xf] }
 0x11c   : > { %v7377_v15 = vor.u32 %v8965_v34, %v7376_v45 }
 0x11d   : > { %v1312_v31 = vpop.f32.mrf.mxu0 }
 0x11e   : > { %v1056_v35 = vpop.f32.mrf.mxu3  ;;  %v1313_v46 = vadd.f32 %v1312_v31, %v10140_v51  ;;  %v1381_v7 = vpop.f32.mrf.mxu1  ;;  %v7440_v51 = vld [vmem:[%s14268_s1 + $0x2b0] sm:$0xf]  ;;  %1851 = vmatpush.bf16.msra.mxu0 %v7385_v0  ;;  %v7432_v0 = vld [vmem:[%s14268_s1 + $0x2a0] sm:$0xf] }
 0x11f   : > { %v10308_v50 = vadd.f32 %v1056_v35, %v987_v36  ;;  %v14425_v36 = vld [vmem:[#allocation5_spill] sm:$0xff]  ;;  %1920 = vmatpush.bf16.msra.mxu1 %v7449_v12  ;;  %v8979_v12 = vld [vmem:[%s14268_s1 + $0x2a4] sm:$0xf0] }
 0x120   : > { %v10311_v40 = vadd.f32 %v1381_v7, %v1313_v46  ;;  %1029 = vmatmul.bf16.gmra.mxu2 %v14423_v57  ;;  %1351 = vmatmul.bf16.gmra.mxu0 %v14424_v58  ;;  %v8981_v57 = vld [vmem:[%s14268_s1 + $0x2b4] sm:$0xf0]  ;;  %v8963_v46 = vld [vmem:[%s14268_s1 + $0x224] sm:$0xf0] }
 0x121   : > { %14421 = vst [vmem:[#allocation13_spill] sm:$0xff] %v10308_v50  ;;  %1420 = vmatmul.bf16.gmra.mxu1 %v14425_v36  ;;  %v7441_v35 = vor.u32 %v8981_v57, %v7440_v51  ;;  %v7369_v34 = vor.u32 %v8963_v46, %v7368_v11 }
 0x122   : > { %14422 = vst [vmem:[#allocation14_spill] sm:$0xff] %v10311_v40  ;;  %1852 = vmatpush.bf16.msra.mxu0 %v7377_v15  ;;  %v7433_v40 = vor.u32 %v8979_v12, %v7432_v0  ;;  %v8961_v15 = vld [vmem:[%s14268_s1 + $0x214] sm:$0xf0]  ;;  %v7352_v0 = vld [vmem:[%s14268_s1 + $0x200] sm:$0xf] }
 0x123   : > { %1098 = vmatmul.bf16.gmra.mxu3 %v14426_v1  ;;  %v990_v31 = vpop.f32.mrf.mxu2  ;;  %1921 = vmatpush.bf16.msra.mxu1 %v7441_v35  ;;  %v7361_v11 = vor.u32 %v8961_v15, %v7360_v32 }
 0x125   : > { %v1314_v45 = vpop.f32.mrf.mxu0 }
 0x126   : > { %v1059_v7 = vpop.f32.mrf.mxu3  ;;  %v1315_v57 = vadd.f32 %v1314_v45, %v10148_v41  ;;  %v1383_v1 = vpop.f32.mrf.mxu1  ;;  %1853 = vmatpush.bf16.msra.mxu0 %v7369_v34  ;;  %v8977_v41 = vld [vmem:[%s14268_s1 + $0x294] sm:$0xf0]  ;;  %v7416_v45 = vld [vmem:[%s14268_s1 + $0x280] sm:$0xf] }
 0x127   : > { %v10341_v51 = vadd.f32 %v1059_v7, %v990_v31  ;;  %v7424_v31 = vld [vmem:[%s14268_s1 + $0x290] sm:$0xf]  ;;  %1922 = vmatpush.bf16.msra.mxu1 %v7433_v40  ;;  %v8959_v7 = vld [vmem:[%s14268_s1 + $0x204] sm:$0xf0] }
 0x128   : > { %v10344_v50 = vadd.f32 %v1383_v1, %v1315_v57  ;;  %v7425_v35 = vor.u32 %v8977_v41, %v7424_v31  ;;  %v7353_v12 = vor.u32 %v8959_v7, %v7352_v0  ;;  %v8975_v40 = vld [vmem:[%s14268_s1 + $0x284] sm:$0xf0]  ;;  %v7474_v0 = vld [vmem:[%s14268_s1 + $0x2f8] sm:$0xf0] }
 0x129   : > { %14427 = vst [vmem:[#allocation9_spill] sm:$0xff] %v10341_v51  ;;  %v7417_v31 = vor.u32 %v8975_v40, %v7416_v45  ;;  %v14431_v51 = vld [vmem:[#allocation8_spill] sm:$0xff] }
 0x12a   : > { %14428 = vst [vmem:[#allocation4_spill] sm:$0xff] %v10344_v50  ;;  %1854 = vmatpush.bf16.msra.mxu0 %v7361_v11  ;;  %v14430_v50 = vld [vmem:[#allocation6_spill] sm:$0xff]  ;;  %v8972_v11 = vld [vmem:[%s14268_s1 + $0x274] sm:$0xf] }
 0x12b   : > { %v992_v46 = vpop.f32.mrf.mxu2  ;;  %1923 = vmatpush.bf16.msra.mxu1 %v7425_v35 }
 0x12d   : > { %v1317_v34 = vpop.f32.mrf.mxu0 }
 0x12e   : > { %v1061_v32 = vpop.f32.mrf.mxu3  ;;  %v1318_v1 = vadd.f32 %v1317_v34, %v10152_v28  ;;  %v1386_v15 = vpop.f32.mrf.mxu1  ;;  %1855 = vmatpush.bf16.msra.mxu0 %v7353_v12  ;;  %v7410_v28 = vld [vmem:[%s14268_s1 + $0x278] sm:$0xf0] }
 0x12f   : > { %v10370_v57 = vadd.f32 %v1061_v32, %v992_v46  ;;  %1924 = vmatpush.bf16.msra.mxu1 %v7417_v31  ;;  %v7413_v46 = vor.u32 %v8972_v11, %v7410_v28 }
 0x130   : > { %v10373_v41 = vadd.f32 %v1386_v15, %v1318_v1  ;;  %1034 = vmatmul.bf16.gmra.mxu2 %v10032_v14  ;;  %1356 = vmatmul.bf16.gmra.mxu0 %v14430_v50  ;;  %v8988_v14 = vld [vmem:[%s14268_s1 + $0x2f4] sm:$0xf] }
 0x131   : > { %1425 = vmatmul.bf16.gmra.mxu1 %v14431_v51  ;;  %1986 = vmatpush.bf16.msrb.mxu2 %v7413_v46 }
 0x132   : > { %14429 = vst [vmem:[#allocation5_spill] sm:$0xff] %v10373_v41 }
 0x133   : > { %1103 = vmatmul.bf16.gmra.mxu3 %v10038_v54  ;;  %v995_v35 = vpop.f32.mrf.mxu2  ;;  %v7477_v54 = vor.u32 %v8988_v14, %v7474_v0  ;;  %v1574_v14 = vld [vmem:[%s9560_s26] sm:$0xee] }
 0x135   : > { %v1319_v45 = vpop.f32.mrf.mxu0  ;;  %2055 = vmatpush.bf16.msrb.mxu3 %v7477_v54 }
 0x136   : > { %v1064_v7 = vpop.f32.mrf.mxu3  ;;  %v1320_v34 = vadd.f32 %v1319_v45, %v10172_v38  ;;  %v1388_v12 = vpop.f32.mrf.mxu1  ;;  %v1609_v38 = vunpack.c.l.b16 %v1574_v14  ;;  %v14432_v45 = vld [vmem:[#allocation2_spill] sm:$0xff] }
 0x137   : > { %v10391_v32 = vadd.f32 %v1064_v7, %v995_v35  ;;  %v1610_v35 = vunpack.c.h.b16 %v1574_v14  ;;  %v8986_v14 = vld [vmem:[%s14268_s1 + $0x2e4] sm:$0xf] }
 0x138   : > { %v10394_v40 = vadd.f32 %v1388_v12, %v1320_v34  ;;  %v14433_v34 = vunpack.c.l.b16 %v14432_v45 }
 0x13b   : > { %v997_v1 = vpop.f32.mrf.mxu2 }
 0x13d   : > { %v1322_v31 = vpop.f32.mrf.mxu0 }
 0x13e   : > { %v1066_v15 = vpop.f32.mrf.mxu3  ;;  %v1323_v28 = vadd.f32 %v1322_v31, %v10176_v43  ;;  %v1391_v41 = vpop.f32.mrf.mxu1  ;;  %v1611_v43 = vpack.c.b16 %v14433_v34, %v1609_v38 }
 0x13f   : > { %v10396_v11 = vadd.f32 %v1066_v15, %v997_v1 }
 0x140   : > { %v10400_v0 = vadd.f32 %v1391_v41, %v1323_v28  ;;  %1039 = vmatmul.bf16.gmra.mxu2 %v10071_v16  ;;  %1361 = vmatmul.bf16.gmra.mxu0 %v9954_v56  ;;  %v14434_v16 = vunpack.c.h.b16 %v14432_v45  ;;  %v7402_v28 = vld [vmem:[%s14268_s1 + $0x268] sm:$0xf0]  ;;  %v1614_v38 = vrot.slane %v1611_v43, 1 }
 0x141   : > { %1430 = vmatmul.bf16.gmra.mxu1 %v9974_v17 }
 0x142   : > { %v1612_v15 = vpack.c.b16 %v14434_v16, %v1610_v35  ;;  %v7466_v35 = vld [vmem:[%s14268_s1 + $0x2e8] sm:$0xf0] }
 0x143   : > { %1108 = vmatmul.bf16.gmra.mxu3 %v10078_v62  ;;  %v1000_v46 = vpop.f32.mrf.mxu2  ;;  %v8970_v62 = vld [vmem:[%s14268_s1 + $0x264] sm:$0xf]  ;;  %v7469_v45 = vor.u32 %v8986_v14, %v7466_v35 }
 0x145   : > { %v1324_v7 = vpop.f32.mrf.mxu0  ;;  %2056 = vmatpush.bf16.msrb.mxu3 %v7469_v45 }
 0x146   : > { %v1069_v54 = vpop.f32.mrf.mxu3  ;;  %v1325_v41 = vadd.f32 %v1324_v7, %v10184_v19  ;;  %v1393_v1 = vpop.f32.mrf.mxu1  ;;  %v1615_v19 = vrot.slane %v9586_v60, 1  ;;  %v1618_v7 = vrot.slane %v9617_v13, 1 }
 0x147   : > { %v10408_v12 = vadd.f32 %v1069_v54, %v1000_v46  ;;  %v7405_v46 = vor.u32 %v8970_v62, %v7402_v28  ;;  %v1617_v54 = vrot.slane %v1612_v15, 1 }
 0x148   : > { %v10413_v31 = vadd.f32 %v1393_v1, %v1325_v41  ;;  %v10430_v16 = vsel %vm1613_vm1, %v1614_v38, %v1615_v19 }
 0x149   : > { %1987 = vmatpush.bf16.msrb.mxu2 %v7405_v46 }
 0x14a   : > { %14435 = vst [vmem:[#allocation10_spill] sm:$0xff] %v10413_v31  ;;  %v10436_v31 = vsel %vm1613_vm1, %v1617_v54, %v1618_v7 }
 0x14b   : > { %v1002_v34 = vpop.f32.mrf.mxu2 }
 0x14d   : > { %v1327_v1 = vpop.f32.mrf.mxu0 }
 0x14e   : > { %v1071_v41 = vpop.f32.mrf.mxu3  ;;  %v1328_v62 = vadd.f32 %v1327_v1, %v10200_v21  ;;  %v1396_v28 = vpop.f32.mrf.mxu1 }
 0x14f   : > { %v10432_v43 = vadd.f32 %v1071_v41, %v1002_v34  ;;  %v1620_v34 = vrot.slane %v9690_v4, 1 }
 0x150   : > { %v10438_v15 = vadd.f32 %v1396_v28, %v1328_v62  ;;  %1444 = vmatmul.bf16.vlgmr.msra.gmra.mxu2 %v9597_v2  ;;  %1856 = vmatmul.bf16.vlgmr.msra.gmra.mxu0 %v10430_v16  ;;  %v1622_v2 = vrot.slane %v9708_v8, 1 }
 0x151   : > { %1925 = vmatmul.bf16.vlgmr.msra.gmra.mxu1 %v10436_v31  ;;  %v10452_v28 = vsel %vm1613_vm1, %v1615_v19, %v1620_v34  ;;  %v8968_v19 = vld [vmem:[%s14268_s1 + $0x254] sm:$0xf] }
 0x152   : > { %14436 = vst [vmem:[#allocation6_spill] sm:$0xff] %v10452_v28 }
 0x153   : > { %1513 = vmatmul.bf16.vlgmr.msra.gmra.mxu3 %v9604_v5  ;;  %v1005_v14 = vpop.f32.mrf.mxu2 }
 0x155   : > { %v1329_v46 = vpop.f32.mrf.mxu0 }
 0x156   : > { %v1074_v38 = vpop.f32.mrf.mxu3  ;;  %v1330_v21 = vadd.f32 %v1329_v46, %v10208_v25  ;;  %v1398_v45 = vpop.f32.mrf.mxu1  ;;  %v10458_v25 = vsel %vm1613_vm1, %v1618_v7, %v1622_v2  ;;  %v8984_v7 = vld [vmem:[%s14268_s1 + $0x2d4] sm:$0xf] }
 0x157   : > { %v10444_v35 = vadd.f32 %v1074_v38, %v1005_v14  ;;  %14438 = vst [vmem:[#allocation2_spill] sm:$0xff] %v10458_v25 }
 0x158   : > { %v10447_v54 = vadd.f32 %v1398_v45, %v1330_v21  ;;  %v7458_v45 = vld [vmem:[%s14268_s1 + $0x2d8] sm:$0xf0] }
 0x15b   : > { %v1007_v41 = vpop.f32.mrf.mxu2 }
 0x15d   : > { %v1332_v62 = vpop.f32.mrf.mxu0 }
 0x15e   : > { %v1076_v1 = vpop.f32.mrf.mxu3  ;;  %v1333_v14 = vadd.f32 %v1332_v62, %v10212_v52  ;;  %v1401_v38 = vpop.f32.mrf.mxu1  ;;  %v7394_v52 = vld [vmem:[%s14268_s1 + $0x258] sm:$0xf0] }
 0x15f   : > { %v10454_v5 = vadd.f32 %v1076_v1, %v1007_v41  ;;  %v7461_v41 = vor.u32 %v8984_v7, %v7458_v45 }
 0x160   : > { %v10460_v46 = vadd.f32 %v1401_v38, %v1333_v14  ;;  %1449 = vmatmul.bf16.gmra.mxu2 %v9586_v60  ;;  %1861 = vmatmul.bf16.gmra.mxu0 %v10452_v28  ;;  %v7397_v60 = vor.u32 %v8968_v19, %v7394_v52  ;;  %v1626_v19 = vrot.slane %v9764_v59, 1 }
 0x161   : > { %14437 = vst [vmem:[#allocation8_spill] sm:$0xff] %v10454_v5  ;;  %1930 = vmatmul.bf16.gmra.mxu1 %v10458_v25  ;;  %2057 = vmatpush.bf16.msrb.mxu3 %v7461_v41 }
 0x162   : > { %14439 = vst [vmem:[#allocation15_spill] sm:$0xff] %v10460_v46  ;;  %1988 = vmatpush.bf16.msrb.mxu2 %v7397_v60  ;;  %v1624_v46 = vrot.slane %v9758_v61, 1 }
 0x163   : > { %1518 = vmatmul.bf16.gmra.mxu3 %v9617_v13  ;;  %v1010_v21 = vpop.f32.mrf.mxu2 }
 0x164   : > { %v10486_v7 = vsel %vm1613_vm1, %v1620_v34, %v1624_v46 }
 0x165   : > { %v1334_v1 = vpop.f32.mrf.mxu0 }
 0x166   : > { %v1079_v13 = vpop.f32.mrf.mxu3  ;;  %v1335_v14 = vadd.f32 %v1334_v1, %v10238_v53  ;;  %v1403_v38 = vpop.f32.mrf.mxu1  ;;  %v10492_v53 = vsel %vm1613_vm1, %v1622_v2, %v1626_v19 }
 0x167   : > { %v10478_v62 = vadd.f32 %v1079_v13, %v1010_v21 }
 0x168   : > { %v10481_v25 = vadd.f32 %v1403_v38, %v1335_v14  ;;  %v7386_v14 = vld [vmem:[%s14268_s1 + $0x248] sm:$0xf0]  ;;  %v1628_v38 = vrot.slane %v9807_v55, 1 }
 0x16b   : > { %v1012_v52 = vpop.f32.mrf.mxu2 }
 0x16d   : > { %v1337_v5 = vpop.f32.mrf.mxu0 }
 0x16e   : > { %v1081_v28 = vpop.f32.mrf.mxu3  ;;  %v1338_v21 = vadd.f32 %v1337_v5, %v10122_v18  ;;  %v1406_v60 = vpop.f32.mrf.mxu1 }
 0x16f   : > { %v10488_v45 = vadd.f32 %v1081_v28, %v1012_v52 }
 0x170   : > { %v10494_v41 = vadd.f32 %v1406_v60, %v1338_v21  ;;  %1454 = vmatmul.bf16.gmra.mxu2 %v9690_v4  ;;  %1866 = vmatmul.bf16.gmra.mxu0 %v10486_v7  ;;  %v8966_v4 = vld [vmem:[%s14268_s1 + $0x244] sm:$0xf]  ;;  %v1630_v21 = vrot.slane %v9852_v29, 1 }
 0x171   : > { %1935 = vmatmul.bf16.gmra.mxu1 %v10492_v53  ;;  %v7389_v52 = vor.u32 %v8966_v4, %v7386_v14 }
 0x172   : > { %v10526_v14 = vsel %vm1613_vm1, %v1626_v19, %v1630_v21 }
 0x173   : > { %1523 = vmatmul.bf16.gmra.mxu3 %v9708_v8  ;;  %v1015_v34 = vpop.f32.mrf.mxu2  ;;  %v8982_v8 = vld [vmem:[%s14268_s1 + $0x2c4] sm:$0xf]  ;;  %1989 = vmatpush.bf16.msrb.mxu2 %v7389_v52 }
 0x175   : > { %v1339_v28 = vpop.f32.mrf.mxu0 }
 0x176   : > { %v1084_v13 = vpop.f32.mrf.mxu3  ;;  %v1340_v18 = vadd.f32 %v1339_v28, %v10138_v37  ;;  %v1408_v5 = vpop.f32.mrf.mxu1  ;;  %v7450_v37 = vld [vmem:[%s14268_s1 + $0x2c8] sm:$0xf0] }
 0x177   : > { %v10500_v1 = vadd.f32 %v1084_v13, %v1015_v34  ;;  %v7453_v60 = vor.u32 %v8982_v8, %v7450_v37 }
 0x178   : > { %v10503_v2 = vadd.f32 %v1408_v5, %v1340_v18  ;;  %v10520_v18 = vsel %vm1613_vm1, %v1624_v46, %v1628_v38 }
 0x179   : > { %14440 = vst [vmem:[#allocation16_spill] sm:$0xff] %v10500_v1  ;;  %2058 = vmatpush.bf16.msrb.mxu3 %v7453_v60 }
 0x17a   : > { %14441 = vst [vmem:[#allocation17_spill] sm:$0xff] %v10503_v2 }
 0x17b   : > { %v1017_v34 = vpop.f32.mrf.mxu2 }
 0x17d   : > { %v1342_v28 = vpop.f32.mrf.mxu0 }
 0x17e   : > { %v1086_v13 = vpop.f32.mrf.mxu3  ;;  %v1343_v2 = vadd.f32 %v1342_v28, %v10146_v48  ;;  %v1411_v4 = vpop.f32.mrf.mxu1 }
 0x17f   : > { %v10522_v5 = vadd.f32 %v1086_v13, %v1017_v34 }
 0x180   : > { %v10528_v1 = vadd.f32 %v1411_v4, %v1343_v2  ;;  %1459 = vmatmul.bf16.gmra.mxu2 %v9758_v61  ;;  %1871 = vmatmul.bf16.gmra.mxu0 %v10520_v18  ;;  %v1632_v2 = vrot.slane %v9952_v30, 1  ;;  %v1634_v61 = vrot.slane %v9963_v42, 1 }
 0x181   : > { %1940 = vmatmul.bf16.gmra.mxu1 %v10526_v14 }
 0x182   : > { %v10542_v4 = vsel %vm1613_vm1, %v1628_v38, %v1632_v2  ;;  %v8964_v38 = vld [vmem:[%s14268_s1 + $0x234] sm:$0xf] }
 0x183   : > { %1528 = vmatmul.bf16.gmra.mxu3 %v9764_v59  ;;  %v1020_v46 = vpop.f32.mrf.mxu2  ;;  %14442 = vst [vmem:[#allocation18_spill] sm:$0xff] %v10542_v4 }
 0x185   : > { %v1344_v52 = vpop.f32.mrf.mxu0 }
 0x186   : > { %v1089_v8 = vpop.f32.mrf.mxu3  ;;  %v1345_v48 = vadd.f32 %v1344_v52, %v10150_v23  ;;  %v1413_v60 = vpop.f32.mrf.mxu1  ;;  %v10548_v23 = vsel %vm1613_vm1, %v1630_v21, %v1634_v61  ;;  %v8980_v21 = vld [vmem:[%s14268_s1 + $0x2b4] sm:$0xf] }
 0x187   : > { %v10534_v37 = vadd.f32 %v1089_v8, %v1020_v46  ;;  %14444 = vst [vmem:[#allocation20_spill] sm:$0xff] %v10548_v23 }
 0x188   : > { %v10537_v19 = vadd.f32 %v1413_v60, %v1345_v48  ;;  %v7442_v60 = vld [vmem:[%s14268_s1 + $0x2b8] sm:$0xf0] }
 0x18b   : > { %v1022_v34 = vpop.f32.mrf.mxu2 }
 0x18d   : > { %v1347_v28 = vpop.f32.mrf.mxu0 }
 0x18e   : > { %v1091_v13 = vpop.f32.mrf.mxu3  ;;  %v1348_v46 = vadd.f32 %v1347_v28, %v10170_v22  ;;  %v1416_v8 = vpop.f32.mrf.mxu1  ;;  %v7378_v22 = vld [vmem:[%s14268_s1 + $0x238] sm:$0xf0] }
 0x18f   : > { %v10544_v59 = vadd.f32 %v1091_v13, %v1022_v34  ;;  %v7445_v34 = vor.u32 %v8980_v21, %v7442_v60 }
 0x190   : > { %v10550_v52 = vadd.f32 %v1416_v8, %v1348_v46  ;;  %1464 = vmatmul.bf16.gmra.mxu2 %v9807_v55  ;;  %1876 = vmatmul.bf16.gmra.mxu0 %v10542_v4  ;;  %v7381_v55 = vor.u32 %v8964_v38, %v7378_v22  ;;  %v1638_v38 = vrot.slane %v9633_v26, 1 }
 0x191   : > { %14443 = vst [vmem:[#allocation19_spill] sm:$0xff] %v10544_v59  ;;  %1945 = vmatmul.bf16.gmra.mxu1 %v10548_v23  ;;  %2059 = vmatpush.bf16.msrb.mxu3 %v7445_v34 }
 0x192   : > { %14445 = vst [vmem:[#allocation21_spill] sm:$0xff] %v10550_v52  ;;  %1990 = vmatpush.bf16.msrb.mxu2 %v7381_v55  ;;  %v1636_v52 = vrot.slane %v9590_v63, 1 }
 0x193   : > { %1533 = vmatmul.bf16.gmra.mxu3 %v9852_v29  ;;  %v1025_v48 = vpop.f32.mrf.mxu2 }
 0x194   : > { %v10576_v21 = vsel %vm1613_vm1, %v1632_v2, %v1636_v52 }
 0x195   : > { %v1349_v13 = vpop.f32.mrf.mxu0 }
 0x196   : > { %v1094_v29 = vpop.f32.mrf.mxu3  ;;  %v1350_v46 = vadd.f32 %v1349_v13, %v10174_v39  ;;  %v1418_v8 = vpop.f32.mrf.mxu1  ;;  %v10582_v39 = vsel %vm1613_vm1, %v1634_v61, %v1638_v38 }
 0x197   : > { %v10568_v28 = vadd.f32 %v1094_v29, %v1025_v48 }
 0x198   : > { %v10571_v23 = vadd.f32 %v1418_v8, %v1350_v46  ;;  %v7370_v46 = vld [vmem:[%s14268_s1 + $0x228] sm:$0xf0]  ;;  %v1640_v8 = vrot.slane %v9599_v3, 1 }
 0x19b   : > { %v1027_v22 = vpop.f32.mrf.mxu2 }
 0x19d   : > { %v1352_v59 = vpop.f32.mrf.mxu0 }
 0x19e   : > { %v1096_v4 = vpop.f32.mrf.mxu3  ;;  %v1353_v48 = vadd.f32 %v1352_v59, %v10182_v10  ;;  %v1421_v55 = vpop.f32.mrf.mxu1 }
 0x19f   : > { %v10578_v60 = vadd.f32 %v1096_v4, %v1027_v22 }
 0x1a0   : > { %v10584_v34 = vadd.f32 %v1421_v55, %v1353_v48  ;;  %1469 = vmatmul.bf16.gmra.mxu2 %v9952_v30  ;;  %1881 = vmatmul.bf16.gmra.mxu0 %v10576_v21  ;;  %v8962_v30 = vld [vmem:[%s14268_s1 + $0x224] sm:$0xf]  ;;  %v1642_v48 = vrot.slane %v9635_v27, 1 }
 0x1a1   : > { %1950 = vmatmul.bf16.gmra.mxu1 %v10582_v39  ;;  %v7373_v22 = vor.u32 %v8962_v30, %v7370_v46 }
 0x1a2   : > { %v10616_v46 = vsel %vm1613_vm1, %v1638_v38, %v1642_v48 }
 0x1a3   : > { %1538 = vmatmul.bf16.gmra.mxu3 %v9963_v42  ;;  %v1030_v2 = vpop.f32.mrf.mxu2  ;;  %v8978_v42 = vld [vmem:[%s14268_s1 + $0x2a4] sm:$0xf]  ;;  %1991 = vmatpush.bf16.msrb.mxu2 %v7373_v22 }
 0x1a5   : > { %v1354_v4 = vpop.f32.mrf.mxu0 }
 0x1a6   : > { %v1099_v29 = vpop.f32.mrf.mxu3  ;;  %v1355_v10 = vadd.f32 %v1354_v4, %v10198_v33  ;;  %v1423_v59 = vpop.f32.mrf.mxu1  ;;  %v7434_v33 = vld [vmem:[%s14268_s1 + $0x2a8] sm:$0xf0] }
 0x1a7   : > { %v10590_v13 = vadd.f32 %v1099_v29, %v1030_v2  ;;  %v7437_v55 = vor.u32 %v8978_v42, %v7434_v33 }
 0x1a8   : > { %v10593_v61 = vadd.f32 %v1423_v59, %v1355_v10  ;;  %v10610_v10 = vsel %vm1613_vm1, %v1636_v52, %v1640_v8 }
 0x1a9   : > { %14446 = vst [vmem:[#allocation22_spill] sm:$0xff] %v10590_v13  ;;  %2060 = vmatpush.bf16.msrb.mxu3 %v7437_v55 }
 0x1aa   : > { %14447 = vst [vmem:[#allocation23_spill] sm:$0xff] %v10593_v61 }
 0x1ab   : > { %v1032_v2 = vpop.f32.mrf.mxu2 }
 0x1ad   : > { %v1357_v4 = vpop.f32.mrf.mxu0 }
 0x1ae   : > { %v1101_v29 = vpop.f32.mrf.mxu3  ;;  %v1358_v61 = vadd.f32 %v1357_v4, %v10206_v24  ;;  %v1426_v30 = vpop.f32.mrf.mxu1 }
 0x1af   : > { %v10612_v59 = vadd.f32 %v1101_v29, %v1032_v2 }
 0x1b0   : > { %v10618_v13 = vadd.f32 %v1426_v30, %v1358_v61  ;;  %1474 = vmatmul.bf16.gmra.mxu2 %v9590_v63  ;;  %1886 = vmatmul.bf16.gmra.mxu0 %v10610_v10  ;;  %v1644_v61 = vrot.slane %v9692_v6, 1  ;;  %v1646_v63 = vrot.slane %v14417_v44, 1 }
 0x1b1   : > { %1955 = vmatmul.bf16.gmra.mxu1 %v10616_v46 }
 0x1b2   : > { %v10632_v30 = vsel %vm1613_vm1, %v1640_v8, %v1644_v61  ;;  %v8960_v8 = vld [vmem:[%s14268_s1 + $0x214] sm:$0xf] }
 0x1b3   : > { %1543 = vmatmul.bf16.gmra.mxu3 %v9633_v26  ;;  %v1035_v52 = vpop.f32.mrf.mxu2 }
 0x1b5   : > { %v1359_v22 = vpop.f32.mrf.mxu0 }
 0x1b6   : > { %v1104_v42 = vpop.f32.mrf.mxu3  ;;  %v1360_v24 = vadd.f32 %v1359_v22, %v10210_v9  ;;  %v1428_v55 = vpop.f32.mrf.mxu1  ;;  %v10638_v9 = vsel %vm1613_vm1, %v1642_v48, %v1646_v63  ;;  %v8976_v48 = vld [vmem:[%s14268_s1 + $0x294] sm:$0xf] }
 0x1b7   : > { %v10624_v33 = vadd.f32 %v1104_v42, %v1035_v52  ;;  %14448 = vst [vmem:[#allocation24_spill] sm:$0xff] %v10638_v9 }
 0x1b8   : > { %v10627_v38 = vadd.f32 %v1428_v55, %v1360_v24  ;;  %v7426_v55 = vld [vmem:[%s14268_s1 + $0x298] sm:$0xf0] }
 0x1bb   : > { %v1037_v2 = vpop.f32.mrf.mxu2 }
 0x1bd   : > { %v1362_v4 = vpop.f32.mrf.mxu0 }
 0x1be   : > { %v1106_v29 = vpop.f32.mrf.mxu3  ;;  %v1363_v52 = vadd.f32 %v1362_v4, %v10230_v47  ;;  %v1431_v42 = vpop.f32.mrf.mxu1  ;;  %v7362_v47 = vld [vmem:[%s14268_s1 + $0x218] sm:$0xf0] }
 0x1bf   : > { %v10634_v26 = vadd.f32 %v1106_v29, %v1037_v2  ;;  %v7429_v2 = vor.u32 %v8976_v48, %v7426_v55  ;;  %v1648_v48 = vrot.slane %v14424_v58, 1 }
 0x1c0   : > { %v10640_v22 = vadd.f32 %v1431_v42, %v1363_v52  ;;  %1479 = vmatmul.bf16.gmra.mxu2 %v9599_v3  ;;  %1891 = vmatmul.bf16.gmra.mxu0 %v10632_v30  ;;  %v7365_v3 = vor.u32 %v8960_v8, %v7362_v47  ;;  %v9029_v8 = vld [vmem:[%s14268_s1 + $0x374] sm:$0xf0] }
 0x1c1   : > { %1960 = vmatmul.bf16.gmra.mxu1 %v10638_v9  ;;  %2061 = vmatpush.bf16.msrb.mxu3 %v7429_v2  ;;  %v7664_v9 = vld [vmem:[%s14268_s1 + $0x370] sm:$0xf] }
 0x1c2   : > { %14449 = vst [vmem:[#allocation25_spill] sm:$0xff] %v10640_v22  ;;  %1992 = vmatpush.bf16.msrb.mxu2 %v7365_v3  ;;  %v7665_v47 = vor.u32 %v9029_v8, %v7664_v9  ;;  %v14297_v3 = vrot.slane %v14425_v36, 1 }
 0x1c3   : > { %1548 = vmatmul.bf16.gmra.mxu3 %v9635_v27  ;;  %v1040_v24 = vpop.f32.mrf.mxu2 }
 0x1c4   : > { %2509 = vmatpush.bf16.msrb.mxu0 %v7665_v47  ;;  %v10685_v8 = vsel %vm1613_vm1, %v1646_v63, %v14297_v3  ;;  %v7656_v63 = vld [vmem:[%s14268_s1 + $0x360] sm:$0xf] }
 0x1c5   : > { %v1364_v29 = vpop.f32.mrf.mxu0  ;;  %14453 = vst [vmem:[#allocation29_spill] sm:$0xff] %v10685_v8 }
 0x1c6   : > { %v1109_v27 = vpop.f32.mrf.mxu3  ;;  %v1365_v52 = vadd.f32 %v1364_v29, %v10246_v20  ;;  %v1433_v42 = vpop.f32.mrf.mxu1  ;;  %v7728_v20 = vld [vmem:[%s14268_s1 + $0x3f0] sm:$0xf]  ;;  %v10678_v29 = vsel %vm1613_vm1, %v1644_v61, %v1648_v48 }
 0x1c7   : > { %v10658_v4 = vadd.f32 %v1109_v27, %v1040_v24  ;;  %v9045_v24 = vld [vmem:[%s14268_s1 + $0x3f4] sm:$0xf0]  ;;  %14451 = vst [vmem:[#allocation27_spill] sm:$0xff] %v10678_v29 }
 0x1c8   : > { %v10667_v22 = vadd.f32 %v1433_v42, %v1365_v52  ;;  %v7729_v55 = vor.u32 %v9045_v24, %v7728_v20  ;;  %v14455_v24 = vld [vmem:[#allocation3_spill] sm:$0xff] }
 0x1ca   : > { %14450 = vst [vmem:[#allocation26_spill] sm:$0xff] %v10667_v22  ;;  %2578 = vmatpush.bf16.msrb.mxu1 %v7729_v55 }
 0x1cb   : > { %v1042_v2 = vpop.f32.mrf.mxu2 }
 0x1cd   : > { %v1857_v9 = vpop.f32.mrf.mxu0 }
 0x1ce   : > { %v1111_v27 = vpop.f32.mrf.mxu3  ;;  %v1926_v42 = vpop.f32.mrf.mxu1 }
 0x1cf   : > { %v10680_v52 = vadd.f32 %v1111_v27, %v1042_v2  ;;  %v1927_v47 = vadd.f32 %v1926_v42, %v1857_v9 }
 0x1d0   : > { %1484 = vmatmul.bf16.gmra.mxu2 %v9692_v6  ;;  %1896 = vmatmul.bf16.gmra.mxu0 %v10678_v29  ;;  %v9027_v6 = vld [vmem:[%s14268_s1 + $0x364] sm:$0xf0] }
 0x1d1   : > { %14452 = vst [vmem:[#allocation28_spill] sm:$0xff] %v10680_v52  ;;  %v10690_v20 = vadd.f32 %v1927_v47, %v10249_v49  ;;  %1965 = vmatmul.bf16.gmra.mxu1 %v10685_v8  ;;  %v7720_v49 = vld [vmem:[%s14268_s1 + $0x3e0] sm:$0xf]  ;;  %v7657_v9 = vor.u32 %v9027_v6, %v7656_v63  ;;  %v7648_v8 = vld [vmem:[%s14268_s1 + $0x350] sm:$0xf]  ;;  %v14457_v6 = vld [vmem:[#allocation7_spill] sm:$0xff] }
 0x1d2   : > { %v9025_v63 = vld [vmem:[%s14268_s1 + $0x354] sm:$0xf0] }
 0x1d3   : > { %14454 = vst [vmem:[#allocation30_spill] sm:$0xff] %v10690_v20  ;;  %1553 = vmatmul.bf16.gmra.mxu3 %v14417_v44  ;;  %v1445_v61 = vpop.f32.mrf.mxu2  ;;  %v9043_v44 = vld [vmem:[%s14268_s1 + $0x3e4] sm:$0xf0]  ;;  %2510 = vmatpush.bf16.msrb.mxu0 %v7657_v9  ;;  %v8974_v9 = vld [vmem:[%s14268_s1 + $0x284] sm:$0xf]  ;;  %v14459_v20 = vld [vmem:[#allocation13_spill] sm:$0xff] }
 0x1d4   : > { %v1446_v55 = vadd.f32 %v1445_v61, %v14455_v24  ;;  %v7721_v61 = vor.u32 %v9043_v44, %v7720_v49  ;;  %v8958_v49 = vld [vmem:[%s14268_s1 + $0x204] sm:$0xf]  ;;  %v7649_v44 = vor.u32 %v9025_v63, %v7648_v8  ;;  %v7640_v8 = vld [vmem:[%s14268_s1 + $0x340] sm:$0xf]  ;;  %v9023_v63 = vld [vmem:[%s14268_s1 + $0x344] sm:$0xf0] }
 0x1d5   : > { %v1859_v27 = vpop.f32.mrf.mxu0 }
 0x1d6   : > { %v1514_v2 = vpop.f32.mrf.mxu3  ;;  %v1928_v47 = vpop.f32.mrf.mxu1  ;;  %2579 = vmatpush.bf16.msrb.mxu1 %v7721_v61 }
 0x1d7   : > { %v10707_v42 = vadd.f32 %v1514_v2, %v1446_v55  ;;  %v1929_v24 = vadd.f32 %v1928_v47, %v1859_v27  ;;  %v7712_v55 = vld [vmem:[%s14268_s1 + $0x3d0] sm:$0xf]  ;;  %v7354_v27 = vld [vmem:[%s14268_s1 + $0x208] sm:$0xf0]  ;;  %2511 = vmatpush.bf16.msrb.mxu0 %v7649_v44 }
 0x1d8   : > { %v7357_v61 = vor.u32 %v8958_v49, %v7354_v27  ;;  %v7704_v49 = vld [vmem:[%s14268_s1 + $0x3c0] sm:$0xf] }
 0x1d9   : > { %14456 = vst [vmem:[#allocation3_spill] sm:$0xff] %v10707_v42  ;;  %v10720_v2 = vadd.f32 %v1929_v24, %v14457_v6  ;;  %v7418_v24 = vld [vmem:[%s14268_s1 + $0x288] sm:$0xf0]  ;;  %v9041_v6 = vld [vmem:[%s14268_s1 + $0x3d4] sm:$0xf0] }
 0x1da   : > { %v7713_v42 = vor.u32 %v9041_v6, %v7712_v55  ;;  %1993 = vmatpush.bf16.msrb.mxu2 %v7357_v61  ;;  %v14462_v6 = vrot.slane %v14425_v36, 1 }
 0x1db   : > { %14458 = vst [vmem:[#allocation7_spill] sm:$0xff] %v10720_v2  ;;  %v1447_v3 = vpop.f32.mrf.mxu2  ;;  %v7421_v2 = vor.u32 %v8974_v9, %v7418_v24  ;;  %v14460_v9 = vrot.slane %v14430_v50, 1  ;;  %v14461_v24 = vrot.slane %v14431_v51, 1 }
 0x1dc   : > { %v1448_v29 = vadd.f32 %v1447_v3, %v14459_v20  ;;  %2580 = vmatpush.bf16.msrb.mxu1 %v7713_v42  ;;  %v7641_v3 = vor.u32 %v9023_v63, %v7640_v8  ;;  %v9039_v20 = vld [vmem:[%s14268_s1 + $0x3c4] sm:$0xf0]  ;;  %v9021_v42 = vld [vmem:[%s14268_s1 + $0x334] sm:$0xf0]  ;;  %v14464_v8 = vld [vmem:[#allocation14_spill] sm:$0xff] }
 0x1dd   : > { %v1862_v47 = vpop.f32.mrf.mxu0  ;;  %v10751_v55 = vsel %vm1613_vm1, %v1648_v48, %v14460_v9  ;;  %2062 = vmatpush.bf16.msrb.mxu3 %v7421_v2  ;;  %v10763_v52 = vsel %vm1613_vm1, %v14462_v6, %v14461_v24  ;;  %v7705_v22 = vor.u32 %v9039_v20, %v7704_v49  ;;  %v7696_v2 = vld [vmem:[%s14268_s1 + $0x3b0] sm:$0xf]  ;;  %v14465_v9 = vld [vmem:[#allocation9_spill] sm:$0xff]  ;;  %v7624_v20 = vld [vmem:[%s14268_s1 + $0x320] sm:$0xf] }
 0x1de   : > { %v1516_v27 = vpop.f32.mrf.mxu3  ;;  %v1931_v61 = vpop.f32.mrf.mxu1  ;;  %14463 = vst [vmem:[#allocation13_spill] sm:$0xff] %v10763_v52  ;;  %2512 = vmatpush.bf16.msrb.mxu0 %v7641_v3  ;;  %v7688_v24 = vld [vmem:[%s14268_s1 + $0x3a0] sm:$0xf] }
 0x1df   : > { %v10756_v44 = vadd.f32 %v1516_v27, %v1448_v29  ;;  %v1932_v48 = vadd.f32 %v1931_v61, %v1862_v47  ;;  %v7632_v29 = vld [vmem:[%s14268_s1 + $0x330] sm:$0xf]  ;;  %v9037_v47 = vld [vmem:[%s14268_s1 + $0x3b4] sm:$0xf0]  ;;  %v9019_v61 = vld [vmem:[%s14268_s1 + $0x324] sm:$0xf0] }
 0x1e0   : > { %1489 = vmatmul.bf16.gmra.mxu2 %v14424_v58  ;;  %1901 = vmatmul.bf16.gmra.mxu0 %v10751_v55  ;;  %v7633_v58 = vor.u32 %v9021_v42, %v7632_v29  ;;  %v7697_v49 = vor.u32 %v9037_v47, %v7696_v2  ;;  %v9017_v47 = vld [vmem:[%s14268_s1 + $0x314] sm:$0xf0] }
 0x1e1   : > { %v10777_v63 = vadd.f32 %v1932_v48, %v14464_v8  ;;  %1970 = vmatmul.bf16.gmra.mxu1 %v10763_v52  ;;  %v9035_v48 = vld [vmem:[%s14268_s1 + $0x3a4] sm:$0xf0] }
 0x1e2   : > { %2581 = vmatpush.bf16.msrb.mxu1 %v7705_v22  ;;  %2513 = vmatpush.bf16.msrb.mxu0 %v7633_v58  ;;  %v7625_v22 = vor.u32 %v9019_v61, %v7624_v20  ;;  %v7689_v2 = vor.u32 %v9035_v48, %v7688_v24  ;;  %v7616_v58 = vld [vmem:[%s14268_s1 + $0x310] sm:$0xf]  ;;  %v9033_v61 = vld [vmem:[%s14268_s1 + $0x394] sm:$0xf0]  ;;  %v1658_v24 = vrot.slane %v9974_v17, 1 }
 0x1e3   : > { %1558 = vmatmul.bf16.gmra.mxu3 %v14425_v36  ;;  %v1450_v27 = vpop.f32.mrf.mxu2  ;;  %v7617_v20 = vor.u32 %v9017_v47, %v7616_v58  ;;  %v7608_v48 = vld [vmem:[%s14268_s1 + $0x300] sm:$0xf] }
 0x1e4   : > { %v1451_v3 = vadd.f32 %v1450_v27, %v14465_v9  ;;  %v7680_v27 = vld [vmem:[%s14268_s1 + $0x390] sm:$0xf] }
 0x1e5   : > { %v1864_v36 = vpop.f32.mrf.mxu0  ;;  %v14467_v9 = vld [vmem:[#allocation4_spill] sm:$0xff] }
 0x1e6   : > { %v1519_v6 = vpop.f32.mrf.mxu3  ;;  %v1933_v42 = vpop.f32.mrf.mxu1  ;;  %2582 = vmatpush.bf16.msrb.mxu1 %v7697_v49  ;;  %2514 = vmatpush.bf16.msrb.mxu0 %v7625_v22  ;;  %v1656_v49 = vrot.slane %v9954_v56, 1 }
 0x1e7   : > { %v10797_v29 = vadd.f32 %v1519_v6, %v1451_v3  ;;  %v1934_v8 = vadd.f32 %v1933_v42, %v1864_v36  ;;  %v7681_v6 = vor.u32 %v9033_v61, %v7680_v27  ;;  %v9015_v42 = vld [vmem:[%s14268_s1 + $0x304] sm:$0xf0] }
 0x1e9   : > { %14466 = vst [vmem:[#allocation14_spill] sm:$0xff] %v10797_v29  ;;  %v10809_v3 = vadd.f32 %v1934_v8, %v14467_v9  ;;  %v7672_v8 = vld [vmem:[%s14268_s1 + $0x380] sm:$0xf]  ;;  %v9031_v9 = vld [vmem:[%s14268_s1 + $0x384] sm:$0xf0] }
 0x1ea   : > { %2583 = vmatpush.bf16.msrb.mxu1 %v7689_v2  ;;  %2515 = vmatpush.bf16.msrb.mxu0 %v7617_v20  ;;  %v14469_v2 = vrot.slane %v14430_v50, 1  ;;  %v7673_v29 = vor.u32 %v9031_v9, %v7672_v8 }
 0x1eb   : > { %14468 = vst [vmem:[#allocation9_spill] sm:$0xff] %v10809_v3  ;;  %v1452_v36 = vpop.f32.mrf.mxu2 }
 0x1ec   : > { %v1453_v22 = vadd.f32 %v1452_v36, %v10370_v57  ;;  %v10829_v27 = vsel %vm1613_vm1, %v14469_v2, %v1656_v49  ;;  %v7609_v57 = vor.u32 %v9015_v42, %v7608_v48  ;;  %v14471_v36 = vrot.slane %v14431_v51, 1  ;;  %v14473_v48 = vld [vmem:[#allocation5_spill] sm:$0xff] }
 0x1ed   : > { %v1867_v47 = vpop.f32.mrf.mxu0  ;;  %14470 = vst [vmem:[#allocation4_spill] sm:$0xff] %v10829_v27 }
 0x1ee   : > { %v1521_v58 = vpop.f32.mrf.mxu3  ;;  %v1936_v61 = vpop.f32.mrf.mxu1  ;;  %v10839_v3 = vsel %vm1613_vm1, %v14471_v36, %v1658_v24  ;;  %2584 = vmatpush.bf16.msrb.mxu1 %v7681_v6  ;;  %2516 = vmatpush.bf16.msrb.mxu0 %v7609_v57  ;;  %v7666_v6 = vld [vmem:[%s14268_s1 + $0x378] sm:$0xf0] }
 0x1ef   : > { %v10834_v20 = vadd.f32 %v1521_v58, %v1453_v22  ;;  %14472 = vst [vmem:[#allocation31_spill] sm:$0xff] %v10839_v3  ;;  %v1937_v52 = vadd.f32 %v1936_v61, %v1867_v47  ;;  %v9028_v22 = vld [vmem:[%s14268_s1 + $0x374] sm:$0xf]  ;;  %v7730_v58 = vld [vmem:[%s14268_s1 + $0x3f8] sm:$0xf0] }
 0x1f0   : > { %1494 = vmatmul.bf16.gmra.mxu2 %v14430_v50  ;;  %1906 = vmatmul.bf16.gmra.mxu0 %v10829_v27  ;;  %v9044_v50 = vld [vmem:[%s14268_s1 + $0x3f4] sm:$0xf] }
 0x1f1   : > { %v10844_v42 = vadd.f32 %v1937_v52, %v14473_v48  ;;  %1975 = vmatmul.bf16.gmra.mxu1 %v10839_v3  ;;  %v7669_v52 = vor.u32 %v9028_v22, %v7666_v6  ;;  %v14475_v48 = vld [vmem:[#allocation11_spill] sm:$0xff]  ;;  %v14476_v6 = vld [vmem:[#allocation12_spill] sm:$0xff] }
 0x1f2   : > { %2585 = vmatpush.bf16.msrb.mxu1 %v7673_v29  ;;  %v7733_v29 = vor.u32 %v9044_v50, %v7730_v58  ;;  %v1660_v22 = vrot.slane %v14475_v48, 1  ;;  %v1662_v3 = vrot.slane %v14476_v6, 1  ;;  %v8990_v48 = vld [vmem:[%s9560_s26 + $0x1c] sm:$0xf] }
 0x1f3   : > { %14474 = vst [vmem:[#allocation5_spill] sm:$0xff] %v10844_v42  ;;  %1563 = vmatmul.bf16.gmra.mxu3 %v14431_v51  ;;  %v1455_v8 = vpop.f32.mrf.mxu2  ;;  %2647 = vmatpush.bf16.msra.mxu2 %v7669_v52 }
 0x1f4   : > { %v1456_v51 = vadd.f32 %v1455_v8, %v10391_v32  ;;  %2716 = vmatpush.bf16.msra.mxu3 %v7733_v29  ;;  %v10870_v8 = vsel %vm1613_vm1, %v1656_v49, %v1660_v22  ;;  %v7514_v22 = vld [vmem:[%s9560_s26 + $0x20] sm:$0xf0] }
 0x1f5   : > { %v1869_v2 = vpop.f32.mrf.mxu0 }
 0x1f6   : > { %v1524_v47 = vpop.f32.mrf.mxu3  ;;  %v1938_v9 = vpop.f32.mrf.mxu1 }
 0x1f7   : > { %v10861_v57 = vadd.f32 %v1524_v47, %v1456_v51  ;;  %v1939_v61 = vadd.f32 %v1938_v9, %v1869_v2  ;;  %v7512_v47 = vld [vmem:[%s9560_s26 + $0x18] sm:$0xf]  ;;  %v8991_v2 = vld [vmem:[%s9560_s26 + $0x1c] sm:$0xf0] }
 0x1f8   : > { %v14477_v9 = vld [vmem:[#allocation10_spill] sm:$0xff] }
 0x1f9   : > { %v10864_v36 = vadd.f32 %v1939_v61, %v10394_v40  ;;  %v10875_v40 = vsel %vm1613_vm1, %v1658_v24, %v1662_v3  ;;  %v9026_v61 = vld [vmem:[%s14268_s1 + $0x364] sm:$0xf] }
 0x1fb   : > { %v1457_v42 = vpop.f32.mrf.mxu2 }
 0x1fc   : > { %v1458_v27 = vadd.f32 %v1457_v42, %v10396_v11 }
 0x1fd   : > { %v1872_v50 = vpop.f32.mrf.mxu0 }
 0x1fe   : > { %v1526_v32 = vpop.f32.mrf.mxu3  ;;  %v1941_v58 = vpop.f32.mrf.mxu1 }
 0x1ff   : > { %v10872_v52 = vadd.f32 %v1526_v32, %v1458_v27  ;;  %v1942_v51 = vadd.f32 %v1941_v58, %v1872_v50  ;;  %v7722_v32 = vld [vmem:[%s14268_s1 + $0x3e8] sm:$0xf0] }
 0x200   : > { %1499 = vmatmul.bf16.gmra.mxu2 %v9954_v56  ;;  %1911 = vmatmul.bf16.gmra.mxu0 %v10870_v8 }
 0x201   : > { %v10880_v11 = vadd.f32 %v1942_v51, %v10400_v0  ;;  %1980 = vmatmul.bf16.gmra.mxu1 %v10875_v40 }
 0x203   : > { %1568 = vmatmul.bf16.gmra.mxu3 %v9974_v17  ;;  %v1460_v49 = vpop.f32.mrf.mxu2  ;;  %v7658_v17 = vld [vmem:[%s14268_s1 + $0x368] sm:$0xf0] }
 0x204   : > { %v1461_v27 = vadd.f32 %v1460_v49, %v10408_v12  ;;  %v9042_v12 = vld [vmem:[%s14268_s1 + $0x3e4] sm:$0xf]  ;;  %v7661_v6 = vor.u32 %v9026_v61, %v7658_v17  ;;  %v10907_v49 = vor.u32 %v8991_v2, %v7512_v47 }
 0x205   : > { %v1874_v3 = vpop.f32.mrf.mxu0  ;;  %v7725_v58 = vor.u32 %v9042_v12, %v7722_v32  ;;  %v8993_v32 = vld [vmem:[%s9560_s26 + $0x2c] sm:$0xf0] }
 0x206   : > { %v1529_v42 = vpop.f32.mrf.mxu3  ;;  %v1943_v29 = vpop.f32.mrf.mxu1  ;;  %2648 = vmatpush.bf16.msra.mxu2 %v7661_v6  ;;  %v7520_v6 = vld [vmem:[%s9560_s26 + $0x28] sm:$0xf] }
 0x207   : > { %v10885_v24 = vadd.f32 %v1529_v42, %v1461_v27  ;;  %v1944_v56 = vadd.f32 %v1943_v29, %v1874_v3  ;;  %v10909_v3 = vor.u32 %v8990_v48, %v7514_v22  ;;  %2717 = vmatpush.bf16.msra.mxu3 %v7725_v58 }
 0x209   : > { %v10890_v0 = vadd.f32 %v1944_v56, %v14477_v9 }
 0x20b   : > { %v1462_v50 = vpop.f32.mrf.mxu2 }
 0x20c   : > { %v1463_v51 = vadd.f32 %v1462_v50, %v10432_v43  ;;  %v7522_v50 = vld [vmem:[%s9560_s26 + $0x30] sm:$0xf0] }
 0x20d   : > { %v1877_v42 = vpop.f32.mrf.mxu0 }
 0x20e   : > { %v1531_v27 = vpop.f32.mrf.mxu3  ;;  %v1946_v56 = vpop.f32.mrf.mxu1 }
 0x20f   : > { %v10911_v29 = vadd.f32 %v1531_v27, %v1463_v51  ;;  %v1947_v9 = vadd.f32 %v1946_v56, %v1877_v42  ;;  %v14478_v51 = vld [vmem:[#allocation8_spill] sm:$0xff] }
 0x210   : > { %1994 = vmatmul.bf16.vlgmr.msrb.gmra.mxu2 %v10430_v16  ;;  %2517 = vmatmul.bf16.vlgmr.msrb.gmra.mxu0 %v10907_v49 }
 0x211   : > { %v10916_v43 = vadd.f32 %v1947_v9, %v10438_v15  ;;  %2586 = vmatmul.bf16.vlgmr.msrb.gmra.mxu1 %v10909_v3  ;;  %v8992_v15 = vld [vmem:[%s9560_s26 + $0x2c] sm:$0xf] }
 0x212   : > { %v10933_v56 = vor.u32 %v8992_v15, %v7522_v50 }
 0x213   : > { %2063 = vmatmul.bf16.vlgmr.msrb.gmra.mxu3 %v10436_v31  ;;  %v1465_v47 = vpop.f32.mrf.mxu2  ;;  %v10931_v31 = vor.u32 %v8993_v32, %v7520_v6  ;;  %v7650_v6 = vld [vmem:[%s14268_s1 + $0x358] sm:$0xf0]  ;;  %v9040_v32 = vld [vmem:[%s14268_s1 + $0x3d4] sm:$0xf] }
 0x214   : > { %v1466_v2 = vadd.f32 %v1465_v47, %v10444_v35  ;;  %14480 = vst [vmem:[#allocation12_spill] sm:$0xff] %v10933_v56 }
 0x215   : > { %v1879_v17 = vpop.f32.mrf.mxu0  ;;  %14479 = vst [vmem:[#allocation11_spill] sm:$0xff] %v10931_v31 }
 0x216   : > { %v1534_v61 = vpop.f32.mrf.mxu3  ;;  %v1948_v48 = vpop.f32.mrf.mxu1 }
 0x217   : > { %v10921_v12 = vadd.f32 %v1534_v61, %v1466_v2  ;;  %v1949_v22 = vadd.f32 %v1948_v48, %v1879_v17  ;;  %v14481_v61 = vld [vmem:[#allocation6_spill] sm:$0xff] }
 0x218   : > { %v14484_v48 = vld [vmem:[#allocation2_spill] sm:$0xff] }
 0x219   : > { %v10924_v16 = vadd.f32 %v1949_v22, %v10447_v54  ;;  %v14482_v54 = vld [vmem:[#allocation15_spill] sm:$0xff]  ;;  %v9024_v22 = vld [vmem:[%s14268_s1 + $0x354] sm:$0xf] }
 0x21a   : > { %v7653_v50 = vor.u32 %v9024_v22, %v7650_v6  ;;  %v8995_v22 = vld [vmem:[%s9560_s26 + $0x3c] sm:$0xf0]  ;;  %v8994_v6 = vld [vmem:[%s9560_s26 + $0x3c] sm:$0xf] }
 0x21b   : > { %v1467_v58 = vpop.f32.mrf.mxu2 }
 0x21c   : > { %v1468_v27 = vadd.f32 %v1467_v58, %v14478_v51  ;;  %v7714_v58 = vld [vmem:[%s14268_s1 + $0x3d8] sm:$0xf0]  ;;  %2649 = vmatpush.bf16.msra.mxu2 %v7653_v50 }
 0x21d   : > { %v1882_v35 = vpop.f32.mrf.mxu0 }
 0x21e   : > { %v1536_v42 = vpop.f32.mrf.mxu3  ;;  %v1951_v47 = vpop.f32.mrf.mxu1 }
 0x21f   : > { %v10935_v9 = vadd.f32 %v1536_v42, %v1468_v27  ;;  %v1952_v2 = vadd.f32 %v1951_v47, %v1882_v35  ;;  %v7717_v27 = vor.u32 %v9040_v32, %v7714_v58 }
 0x220   : > { %1999 = vmatmul.bf16.gmra.mxu2 %v14481_v61  ;;  %2522 = vmatmul.bf16.gmra.mxu0 %v10931_v31 }
 0x221   : > { %v10940_v17 = vadd.f32 %v1952_v2, %v14482_v54  ;;  %2591 = vmatmul.bf16.gmra.mxu1 %v10933_v56  ;;  %2718 = vmatpush.bf16.msra.mxu3 %v7717_v27  ;;  %v7530_v56 = vld [vmem:[%s9560_s26 + $0x40] sm:$0xf0] }
 0x222   : > { %v10969_v50 = vor.u32 %v8994_v6, %v7530_v56  ;;  %v14485_v56 = vld [vmem:[#allocation16_spill] sm:$0xff]  ;;  %v9022_v6 = vld [vmem:[%s14268_s1 + $0x344] sm:$0xf] }
 0x223   : > { %14483 = vst [vmem:[#allocation10_spill] sm:$0xff] %v10940_v17  ;;  %2068 = vmatmul.bf16.gmra.mxu3 %v14484_v48  ;;  %v1470_v15 = vpop.f32.mrf.mxu2  ;;  %v7528_v48 = vld [vmem:[%s9560_s26 + $0x38] sm:$0xf] }
 0x224   : > { %v1471_v51 = vadd.f32 %v1470_v15, %v10478_v62  ;;  %v10967_v62 = vor.u32 %v8995_v22, %v7528_v48  ;;  %v8997_v48 = vld [vmem:[%s9560_s26 + $0x4c] sm:$0xf0]  ;;  %v14486_v22 = vld [vmem:[#allocation17_spill] sm:$0xff] }
 0x225   : > { %v1884_v35 = vpop.f32.mrf.mxu0 }
 0x226   : > { %v1539_v42 = vpop.f32.mrf.mxu3  ;;  %v1953_v2 = vpop.f32.mrf.mxu1 }
 0x227   : > { %v10957_v47 = vadd.f32 %v1539_v42, %v1471_v51  ;;  %v1954_v61 = vadd.f32 %v1953_v2, %v1884_v35 }
 0x229   : > { %v10960_v54 = vadd.f32 %v1954_v61, %v10481_v25  ;;  %v7536_v61 = vld [vmem:[%s9560_s26 + $0x48] sm:$0xf] }
 0x22b   : > { %v1472_v17 = vpop.f32.mrf.mxu2 }
 0x22c   : > { %v1473_v31 = vadd.f32 %v1472_v17, %v10488_v45 }
 0x22d   : > { %v1887_v15 = vpop.f32.mrf.mxu0 }
 0x22e   : > { %v1541_v32 = vpop.f32.mrf.mxu3  ;;  %v1956_v51 = vpop.f32.mrf.mxu1 }
 0x22f   : > { %v10971_v58 = vadd.f32 %v1541_v32, %v1473_v31  ;;  %v1957_v25 = vadd.f32 %v1956_v51, %v1887_v15  ;;  %v9038_v32 = vld [vmem:[%s14268_s1 + $0x3c4] sm:$0xf]  ;;  %v8996_v15 = vld [vmem:[%s9560_s26 + $0x4c] sm:$0xf]  ;;  %v7538_v51 = vld [vmem:[%s9560_s26 + $0x50] sm:$0xf0] }
 0x230   : > { %2004 = vmatmul.bf16.gmra.mxu2 %v10486_v7  ;;  %2527 = vmatmul.bf16.gmra.mxu0 %v10967_v62 }
 0x231   : > { %v10976_v27 = vadd.f32 %v1957_v25, %v10494_v41  ;;  %2596 = vmatmul.bf16.gmra.mxu1 %v10969_v50 }
 0x233   : > { %2073 = vmatmul.bf16.gmra.mxu3 %v10492_v53  ;;  %v1475_v45 = vpop.f32.mrf.mxu2  ;;  %v7642_v53 = vld [vmem:[%s14268_s1 + $0x348] sm:$0xf0] }
 0x234   : > { %v1476_v31 = vadd.f32 %v1475_v45, %v14485_v56  ;;  %v7645_v25 = vor.u32 %v9022_v6, %v7642_v53  ;;  %v7706_v45 = vld [vmem:[%s14268_s1 + $0x3c8] sm:$0xf0] }
 0x235   : > { %v1889_v42 = vpop.f32.mrf.mxu0 }
 0x236   : > { %v1544_v17 = vpop.f32.mrf.mxu3  ;;  %v1958_v2 = vpop.f32.mrf.mxu1  ;;  %2650 = vmatpush.bf16.msra.mxu2 %v7645_v25 }
 0x237   : > { %v10981_v35 = vadd.f32 %v1544_v17, %v1476_v31  ;;  %v1959_v7 = vadd.f32 %v1958_v2, %v1889_v42  ;;  %v7709_v31 = vor.u32 %v9038_v32, %v7706_v45  ;;  %v11003_v42 = vor.u32 %v8997_v48, %v7536_v61 }
 0x239   : > { %v10986_v41 = vadd.f32 %v1959_v7, %v14486_v22  ;;  %v11005_v22 = vor.u32 %v8996_v15, %v7538_v51  ;;  %2719 = vmatpush.bf16.msra.mxu3 %v7709_v31  ;;  %v8999_v31 = vld [vmem:[%s9560_s26 + $0x5c] sm:$0xf0] }
 0x23b   : > { %14487 = vst [vmem:[#allocation8_spill] sm:$0xff] %v10986_v41  ;;  %v1477_v56 = vpop.f32.mrf.mxu2 }
 0x23c   : > { %v1478_v17 = vadd.f32 %v1477_v56, %v10522_v5  ;;  %v7544_v56 = vld [vmem:[%s9560_s26 + $0x58] sm:$0xf] }
 0x23d   : > { %v1892_v7 = vpop.f32.mrf.mxu0 }
 0x23e   : > { %v1546_v2 = vpop.f32.mrf.mxu3  ;;  %v1961_v6 = vpop.f32.mrf.mxu1 }
 0x23f   : > { %v11007_v41 = vadd.f32 %v1546_v2, %v1478_v17  ;;  %v1962_v53 = vadd.f32 %v1961_v6, %v1892_v7  ;;  %v7546_v17 = vld [vmem:[%s9560_s26 + $0x60] sm:$0xf0]  ;;  %v14489_v7 = vld [vmem:[#allocation19_spill] sm:$0xff] }
 0x240   : > { %2009 = vmatmul.bf16.gmra.mxu2 %v10520_v18  ;;  %2532 = vmatmul.bf16.gmra.mxu0 %v11003_v42 }
 0x241   : > { %v11012_v5 = vadd.f32 %v1962_v53, %v10528_v1  ;;  %2601 = vmatmul.bf16.gmra.mxu1 %v11005_v22  ;;  %v8998_v1 = vld [vmem:[%s9560_s26 + $0x5c] sm:$0xf] }
 0x243   : > { %2078 = vmatmul.bf16.gmra.mxu3 %v10526_v14  ;;  %v1480_v61 = vpop.f32.mrf.mxu2  ;;  %v11027_v14 = vor.u32 %v8999_v31, %v7544_v56  ;;  %v9020_v56 = vld [vmem:[%s14268_s1 + $0x334] sm:$0xf]  ;;  %v7634_v31 = vld [vmem:[%s14268_s1 + $0x338] sm:$0xf0] }
 0x244   : > { %v1481_v48 = vadd.f32 %v1480_v61, %v10534_v37  ;;  %v11029_v61 = vor.u32 %v8998_v1, %v7546_v17  ;;  %v9036_v1 = vld [vmem:[%s14268_s1 + $0x3b4] sm:$0xf] }
 0x245   : > { %v1894_v15 = vpop.f32.mrf.mxu0  ;;  %14490 = vst [vmem:[#allocation15_spill] sm:$0xff] %v11027_v14 }
 0x246   : > { %v1549_v32 = vpop.f32.mrf.mxu3  ;;  %v1963_v25 = vpop.f32.mrf.mxu1  ;;  %14491 = vst [vmem:[#allocation2_spill] sm:$0xff] %v11029_v61 }
 0x247   : > { %v11017_v51 = vadd.f32 %v1549_v32, %v1481_v48  ;;  %v1964_v45 = vadd.f32 %v1963_v25, %v1894_v15  ;;  %v14493_v25 = vld [vmem:[#allocation18_spill] sm:$0xff] }
 0x249   : > { %v11020_v18 = vadd.f32 %v1964_v45, %v10537_v19  ;;  %v14494_v19 = vld [vmem:[#allocation21_spill] sm:$0xff] }
 0x24b   : > { %14488 = vst [vmem:[#allocation6_spill] sm:$0xff] %v11020_v18  ;;  %v1482_v2 = vpop.f32.mrf.mxu2 }
 0x24c   : > { %v1483_v6 = vadd.f32 %v1482_v2, %v14489_v7  ;;  %v14496_v2 = vld [vmem:[#allocation20_spill] sm:$0xff]  ;;  %v7637_v7 = vor.u32 %v9020_v56, %v7634_v31  ;;  %v9000_v31 = vld [vmem:[%s9560_s26 + $0x6c] sm:$0xf] }
 0x24d   : > { %v1897_v37 = vpop.f32.mrf.mxu0  ;;  %v9001_v56 = vld [vmem:[%s9560_s26 + $0x6c] sm:$0xf0] }
 0x24e   : > { %v1551_v53 = vpop.f32.mrf.mxu3  ;;  %v1966_v32 = vpop.f32.mrf.mxu1  ;;  %2651 = vmatpush.bf16.msra.mxu2 %v7637_v7 }
 0x24f   : > { %v11031_v48 = vadd.f32 %v1551_v53, %v1483_v6  ;;  %v1967_v15 = vadd.f32 %v1966_v32, %v1897_v37  ;;  %v7698_v6 = vld [vmem:[%s14268_s1 + $0x3b8] sm:$0xf0] }
 0x250   : > { %2014 = vmatmul.bf16.gmra.mxu2 %v14493_v25  ;;  %2537 = vmatmul.bf16.gmra.mxu0 %v11027_v14  ;;  %v7701_v37 = vor.u32 %v9036_v1, %v7698_v6  ;;  %v7554_v14 = vld [vmem:[%s9560_s26 + $0x70] sm:$0xf0] }
 0x251   : > { %14492 = vst [vmem:[#allocation16_spill] sm:$0xff] %v11031_v48  ;;  %v11036_v45 = vadd.f32 %v1967_v15, %v14494_v19  ;;  %2606 = vmatmul.bf16.gmra.mxu1 %v11029_v61  ;;  %v11065_v7 = vor.u32 %v9000_v31, %v7554_v14  ;;  %v14497_v14 = vld [vmem:[#allocation22_spill] sm:$0xff] }
 0x252   : > { %2720 = vmatpush.bf16.msra.mxu3 %v7701_v37  ;;  %v9018_v31 = vld [vmem:[%s14268_s1 + $0x324] sm:$0xf] }
 0x253   : > { %14495 = vst [vmem:[#allocation17_spill] sm:$0xff] %v11036_v45  ;;  %2083 = vmatmul.bf16.gmra.mxu3 %v14496_v2  ;;  %v1485_v17 = vpop.f32.mrf.mxu2  ;;  %v7552_v45 = vld [vmem:[%s9560_s26 + $0x68] sm:$0xf] }
 0x254   : > { %v1486_v53 = vadd.f32 %v1485_v17, %v10568_v28  ;;  %v11063_v28 = vor.u32 %v9001_v56, %v7552_v45  ;;  %v14498_v56 = vld [vmem:[#allocation23_spill] sm:$0xff] }
 0x255   : > { %v1899_v15 = vpop.f32.mrf.mxu0 }
 0x256   : > { %v1554_v32 = vpop.f32.mrf.mxu3  ;;  %v1968_v19 = vpop.f32.mrf.mxu1 }
 0x257   : > { %v11053_v25 = vadd.f32 %v1554_v32, %v1486_v53  ;;  %v1969_v2 = vadd.f32 %v1968_v19, %v1899_v15  ;;  %v7560_v19 = vld [vmem:[%s9560_s26 + $0x78] sm:$0xf] }
 0x259   : > { %v11056_v61 = vadd.f32 %v1969_v2, %v10571_v23  ;;  %v9003_v2 = vld [vmem:[%s9560_s26 + $0x7c] sm:$0xf0] }
 0x25b   : > { %v1487_v48 = vpop.f32.mrf.mxu2 }
 0x25c   : > { %v1488_v18 = vadd.f32 %v1487_v48, %v10578_v60 }
 0x25d   : > { %v1902_v17 = vpop.f32.mrf.mxu0 }
 0x25e   : > { %v1556_v1 = vpop.f32.mrf.mxu3  ;;  %v1971_v53 = vpop.f32.mrf.mxu1 }
 0x25f   : > { %v11067_v6 = vadd.f32 %v1556_v1, %v1488_v18  ;;  %v1972_v23 = vadd.f32 %v1971_v53, %v1902_v17  ;;  %v9034_v1 = vld [vmem:[%s14268_s1 + $0x3a4] sm:$0xf]  ;;  %v9002_v17 = vld [vmem:[%s9560_s26 + $0x7c] sm:$0xf] }
 0x260   : > { %2019 = vmatmul.bf16.gmra.mxu2 %v10576_v21  ;;  %2542 = vmatmul.bf16.gmra.mxu0 %v11063_v28  ;;  %v7562_v53 = vld [vmem:[%s9560_s26 + $0x80] sm:$0xf0] }
 0x261   : > { %v11072_v37 = vadd.f32 %v1972_v23, %v10584_v34  ;;  %2611 = vmatmul.bf16.gmra.mxu1 %v11065_v7 }
 0x263   : > { %2088 = vmatmul.bf16.gmra.mxu3 %v10582_v39  ;;  %v1490_v60 = vpop.f32.mrf.mxu2  ;;  %v7626_v39 = vld [vmem:[%s14268_s1 + $0x328] sm:$0xf0] }
 0x264   : > { %v1491_v18 = vadd.f32 %v1490_v60, %v14497_v14  ;;  %v7629_v23 = vor.u32 %v9018_v31, %v7626_v39  ;;  %v7690_v60 = vld [vmem:[%s14268_s1 + $0x3a8] sm:$0xf0] }
 0x265   : > { %v1904_v45 = vpop.f32.mrf.mxu0 }
 0x266   : > { %v1559_v48 = vpop.f32.mrf.mxu3  ;;  %v1973_v15 = vpop.f32.mrf.mxu1  ;;  %2652 = vmatpush.bf16.msra.mxu2 %v7629_v23 }
 0x267   : > { %v11077_v32 = vadd.f32 %v1559_v48, %v1491_v18  ;;  %v1974_v21 = vadd.f32 %v1973_v15, %v1904_v45  ;;  %v7693_v18 = vor.u32 %v9034_v1, %v7690_v60  ;;  %v11099_v45 = vor.u32 %v9003_v2, %v7560_v19 }
 0x269   : > { %v11082_v34 = vadd.f32 %v1974_v21, %v14498_v56  ;;  %v11101_v56 = vor.u32 %v9002_v17, %v7562_v53  ;;  %2721 = vmatpush.bf16.msra.mxu3 %v7693_v18  ;;  %v9005_v18 = vld [vmem:[%s9560_s26 + $0x8c] sm:$0xf0] }
 0x26b   : > { %14499 = vst [vmem:[#allocation19_spill] sm:$0xff] %v11082_v34  ;;  %v1492_v14 = vpop.f32.mrf.mxu2 }
 0x26c   : > { %v1493_v48 = vadd.f32 %v1492_v14, %v10612_v59  ;;  %v7568_v14 = vld [vmem:[%s9560_s26 + $0x88] sm:$0xf] }
 0x26d   : > { %v1907_v21 = vpop.f32.mrf.mxu0 }
 0x26e   : > { %v1561_v15 = vpop.f32.mrf.mxu3  ;;  %v1976_v31 = vpop.f32.mrf.mxu1 }
 0x26f   : > { %v11103_v34 = vadd.f32 %v1561_v15, %v1493_v48  ;;  %v1977_v39 = vadd.f32 %v1976_v31, %v1907_v21  ;;  %v7570_v48 = vld [vmem:[%s9560_s26 + $0x90] sm:$0xf0] }
 0x270   : > { %2024 = vmatmul.bf16.gmra.mxu2 %v10610_v10  ;;  %2547 = vmatmul.bf16.gmra.mxu0 %v11099_v45 }
 0x271   : > { %v11108_v59 = vadd.f32 %v1977_v39, %v10618_v13  ;;  %2616 = vmatmul.bf16.gmra.mxu1 %v11101_v56  ;;  %v9004_v13 = vld [vmem:[%s9560_s26 + $0x8c] sm:$0xf] }
 0x272   : > { %v11125_v39 = vor.u32 %v9004_v13, %v7570_v48  ;;  %v7682_v13 = vld [vmem:[%s14268_s1 + $0x398] sm:$0xf0] }
 0x273   : > { %2093 = vmatmul.bf16.gmra.mxu3 %v10616_v46  ;;  %v1495_v19 = vpop.f32.mrf.mxu2  ;;  %v11123_v46 = vor.u32 %v9005_v18, %v7568_v14 }
 0x274   : > { %v1496_v2 = vadd.f32 %v1495_v19, %v10624_v33  ;;  %14501 = vst [vmem:[#allocation21_spill] sm:$0xff] %v11125_v39 }
 0x275   : > { %v1909_v17 = vpop.f32.mrf.mxu0  ;;  %14500 = vst [vmem:[#allocation18_spill] sm:$0xff] %v11123_v46 }
 0x276   : > { %v1564_v1 = vpop.f32.mrf.mxu3  ;;  %v1978_v23 = vpop.f32.mrf.mxu1 }
 0x277   : > { %v11113_v53 = vadd.f32 %v1564_v1, %v1496_v2  ;;  %v1979_v60 = vadd.f32 %v1978_v23, %v1909_v17  ;;  %v9016_v23 = vld [vmem:[%s14268_s1 + $0x314] sm:$0xf] }
 0x279   : > { %v11116_v10 = vadd.f32 %v1979_v60, %v10627_v38  ;;  %v14502_v38 = vld [vmem:[#allocation25_spill] sm:$0xff] }
 0x27a   : > { %v7618_v60 = vld [vmem:[%s14268_s1 + $0x318] sm:$0xf0] }
 0x27b   : > { %v1497_v15 = vpop.f32.mrf.mxu2  ;;  %v7621_v18 = vor.u32 %v9016_v23, %v7618_v60  ;;  %v14506_v23 = vld [vmem:[#allocation26_spill] sm:$0xff] }
 0x27c   : > { %v1498_v21 = vadd.f32 %v1497_v15, %v10634_v26  ;;  %v14504_v26 = vld [vmem:[#allocation24_spill] sm:$0xff] }
 0x27d   : > { %v1912_v33 = vpop.f32.mrf.mxu0  ;;  %2653 = vmatpush.bf16.msra.mxu2 %v7621_v18  ;;  %v7976_v18 = vld [vmem:[%s14268_s1 + $0x4f0] sm:$0xf] }
 0x27e   : > { %v1566_v31 = vpop.f32.mrf.mxu3  ;;  %v1981_v2 = vpop.f32.mrf.mxu1 }
 0x27f   : > { %v11127_v19 = vadd.f32 %v1566_v31, %v1498_v21  ;;  %v1982_v1 = vadd.f32 %v1981_v2, %v1912_v33 }
 0x280   : > { %2029 = vmatmul.bf16.gmra.mxu2 %v10632_v30  ;;  %2552 = vmatmul.bf16.gmra.mxu0 %v11123_v46  ;;  %v9032_v30 = vld [vmem:[%s14268_s1 + $0x394] sm:$0xf]  ;;  %v14512_v46 = vld [vmem:[#allocation27_spill] sm:$0xff] }
 0x281   : > { %v11132_v17 = vadd.f32 %v1982_v1, %v14502_v38  ;;  %2621 = vmatmul.bf16.gmra.mxu1 %v11125_v39  ;;  %v7685_v15 = vor.u32 %v9032_v30, %v7682_v13  ;;  %v7576_v38 = vld [vmem:[%s9560_s26 + $0x98] sm:$0xf]  ;;  %v9007_v30 = vld [vmem:[%s9560_s26 + $0x9c] sm:$0xf0] }
 0x282   : > { %v9099_v13 = vld [vmem:[%s14268_s1 + $0x4f4] sm:$0xf0]  ;;  %v11171_v39 = vor.u32 %v9007_v30, %v7576_v38 }
 0x283   : > { %14503 = vst [vmem:[#allocation20_spill] sm:$0xff] %v11132_v17  ;;  %2098 = vmatmul.bf16.gmra.mxu3 %v14504_v26  ;;  %v1500_v14 = vpop.f32.mrf.mxu2  ;;  %v7912_v26 = vld [vmem:[%s14268_s1 + $0x470] sm:$0xf]  ;;  %v14515_v38 = vld [vmem:[#allocation29_spill] sm:$0xff] }
 0x284   : > { %v1501_v48 = vadd.f32 %v1500_v14, %v10658_v4  ;;  %2722 = vmatpush.bf16.msra.mxu3 %v7685_v15  ;;  %v9083_v4 = vld [vmem:[%s14268_s1 + $0x474] sm:$0xf0]  ;;  %v7578_v15 = vld [vmem:[%s9560_s26 + $0xa0] sm:$0xf0]  ;;  %14509 = vst [vmem:[#allocation25_spill] sm:$0xff] %v11171_v39 }
 0x285   : > { %v1914_v31 = vpop.f32.mrf.mxu0  ;;  %v7913_v14 = vor.u32 %v9083_v4, %v7912_v26 }
 0x286   : > { %v1569_v21 = vpop.f32.mrf.mxu3  ;;  %v1983_v2 = vpop.f32.mrf.mxu1 }
 0x287   : > { %v11149_v33 = vadd.f32 %v1569_v21, %v1501_v48  ;;  %v1984_v1 = vadd.f32 %v1983_v2, %v1914_v31  ;;  %v9006_v48 = vld [vmem:[%s9560_s26 + $0x9c] sm:$0xf]  ;;  %v7977_v21 = vor.u32 %v9099_v13, %v7976_v18  ;;  %3376 = vmatpush.bf16.msra.mxu0 %v7913_v14  ;;  %v14508_v2 = vld [vmem:[#allocation28_spill] sm:$0xff]  ;;  %v14513_v18 = vld [vmem:[#allocation30_spill] sm:$0xff] }
 0x288   : > { %v11173_v4 = vor.u32 %v9006_v48, %v7578_v15  ;;  %v9097_v15 = vld [vmem:[%s14268_s1 + $0x4e4] sm:$0xf0] }
 0x289   : > { %14505 = vst [vmem:[#allocation22_spill] sm:$0xff] %v11149_v33  ;;  %v11159_v60 = vadd.f32 %v1984_v1, %v14506_v23  ;;  %3445 = vmatpush.bf16.msra.mxu1 %v7977_v21 }
 0x28a   : > { %14510 = vst [vmem:[#allocation24_spill] sm:$0xff] %v11173_v4 }
 0x28b   : > { %14507 = vst [vmem:[#allocation23_spill] sm:$0xff] %v11159_v60  ;;  %v1502_v31 = vpop.f32.mrf.mxu2 }
 0x28c   : > { %v1503_v33 = vadd.f32 %v1502_v31, %v14508_v2 }
 0x28d   : > { %v2518_v26 = vpop.f32.mrf.mxu0 }
 0x28e   : > { %v1571_v1 = vpop.f32.mrf.mxu3  ;;  %v2587_v60 = vpop.f32.mrf.mxu1 }
 0x28f   : > { %v11175_v23 = vadd.f32 %v1571_v1, %v1503_v33  ;;  %v2588_v17 = vadd.f32 %v2587_v60, %v2518_v26  ;;  %v7904_v33 = vld [vmem:[%s14268_s1 + $0x460] sm:$0xf]  ;;  %v7584_v26 = vld [vmem:[%s9560_s26 + $0xa8] sm:$0xf] }
 0x290   : > { %2034 = vmatmul.bf16.gmra.mxu2 %v14512_v46  ;;  %2557 = vmatmul.bf16.gmra.mxu0 %v11171_v39  ;;  %v9081_v46 = vld [vmem:[%s14268_s1 + $0x464] sm:$0xf0] }
 0x291   : > { %14511 = vst [vmem:[#allocation26_spill] sm:$0xff] %v11175_v23  ;;  %v11180_v14 = vadd.f32 %v2588_v17, %v14513_v18  ;;  %2626 = vmatmul.bf16.gmra.mxu1 %v11173_v4  ;;  %v7968_v17 = vld [vmem:[%s14268_s1 + $0x4e0] sm:$0xf]  ;;  %v7905_v48 = vor.u32 %v9081_v46, %v7904_v33  ;;  %v9009_v18 = vld [vmem:[%s9560_s26 + $0xac] sm:$0xf0] }
 0x292   : > { %v7969_v2 = vor.u32 %v9097_v15, %v7968_v17  ;;  %v7896_v33 = vld [vmem:[%s14268_s1 + $0x450] sm:$0xf]  ;;  %v14518_v17 = vld [vmem:[#allocation7_spill] sm:$0xff]  ;;  %v9030_v15 = vld [vmem:[%s14268_s1 + $0x384] sm:$0xf]  ;;  %v11230_v39 = vor.u32 %v9009_v18, %v7584_v26 }
 0x293   : > { %14514 = vst [vmem:[#allocation28_spill] sm:$0xff] %v11180_v14  ;;  %2103 = vmatmul.bf16.gmra.mxu3 %v14515_v38  ;;  %v1995_v30 = vpop.f32.mrf.mxu2  ;;  %3377 = vmatpush.bf16.msra.mxu0 %v7905_v48  ;;  %v14516_v38 = vld [vmem:[#allocation3_spill] sm:$0xff]  ;;  %v7960_v46 = vld [vmem:[%s14268_s1 + $0x4d0] sm:$0xf] }
 0x294   : > { %v9008_v14 = vld [vmem:[%s9560_s26 + $0xac] sm:$0xf]  ;;  %3446 = vmatpush.bf16.msra.mxu1 %v7969_v2  ;;  %v9093_v18 = vld [vmem:[%s14268_s1 + $0x4c4] sm:$0xf0] }
 0x295   : > { %v2520_v13 = vpop.f32.mrf.mxu0  ;;  %v7610_v48 = vld [vmem:[%s14268_s1 + $0x308] sm:$0xf0] }
 0x296   : > { %v2064_v60 = vpop.f32.mrf.mxu3  ;;  %v2589_v31 = vpop.f32.mrf.mxu1 }
 0x297   : > { %v2065_v21 = vadd.f32 %v2064_v60, %v1995_v30  ;;  %v2590_v1 = vadd.f32 %v2589_v31, %v2520_v13  ;;  %v9079_v30 = vld [vmem:[%s14268_s1 + $0x454] sm:$0xf0]  ;;  %v9014_v13 = vld [vmem:[%s14268_s1 + $0x304] sm:$0xf]  ;;  %v7586_v31 = vld [vmem:[%s9560_s26 + $0xb0] sm:$0xf0] }
 0x298   : > { %v7613_v2 = vor.u32 %v9014_v13, %v7610_v48  ;;  %v7952_v13 = vld [vmem:[%s14268_s1 + $0x4c0] sm:$0xf] }
 0x299   : > { %v11199_v4 = vadd.f32 %v2065_v21, %v14516_v38  ;;  %v11212_v60 = vadd.f32 %v2590_v1, %v14518_v17  ;;  %v7897_v21 = vor.u32 %v9079_v30, %v7896_v33  ;;  %v7674_v1 = vld [vmem:[%s14268_s1 + $0x388] sm:$0xf0]  ;;  %v9095_v38 = vld [vmem:[%s14268_s1 + $0x4d4] sm:$0xf0]  ;;  %v7888_v33 = vld [vmem:[%s14268_s1 + $0x440] sm:$0xf] }
 0x29a   : > { %2654 = vmatpush.bf16.msra.mxu2 %v7613_v2  ;;  %v9077_v30 = vld [vmem:[%s14268_s1 + $0x444] sm:$0xf0]  ;;  %v7953_v2 = vor.u32 %v9093_v18, %v7952_v13  ;;  %v7936_v13 = vld [vmem:[%s14268_s1 + $0x4a0] sm:$0xf] }
 0x29b   : > { %14517 = vst [vmem:[#allocation27_spill] sm:$0xff] %v11199_v4  ;;  %v1997_v17 = vpop.f32.mrf.mxu2  ;;  %3378 = vmatpush.bf16.msra.mxu0 %v7897_v21  ;;  %v7961_v4 = vor.u32 %v9095_v38, %v7960_v46  ;;  %v7889_v26 = vor.u32 %v9077_v30, %v7888_v33  ;;  %v9073_v30 = vld [vmem:[%s14268_s1 + $0x424] sm:$0xf0] }
 0x29c   : > { %14519 = vst [vmem:[#allocation30_spill] sm:$0xff] %v11212_v60  ;;  %v7677_v60 = vor.u32 %v9030_v15, %v7674_v1  ;;  %v11241_v15 = vor.u32 %v9008_v14, %v7586_v31  ;;  %v9075_v14 = vld [vmem:[%s14268_s1 + $0x434] sm:$0xf0] }
 0x29d   : > { %v2523_v23 = vpop.f32.mrf.mxu0  ;;  %3447 = vmatpush.bf16.msra.mxu1 %v7961_v4  ;;  %v7880_v4 = vld [vmem:[%s14268_s1 + $0x430] sm:$0xf]  ;;  %v14522_v31 = vld [vmem:[#allocation13_spill] sm:$0xff] }
 0x29e   : > { %v2066_v48 = vpop.f32.mrf.mxu3  ;;  %14520 = vst [vmem:[#allocation29_spill] sm:$0xff] %v11241_v15  ;;  %2723 = vmatpush.bf16.msra.mxu3 %v7677_v60  ;;  %v2592_v21 = vpop.f32.mrf.mxu1 }
 0x29f   : > { %v2067_v46 = vadd.f32 %v2066_v48, %v1997_v17  ;;  %v2593_v1 = vadd.f32 %v2592_v21, %v2523_v23  ;;  %3379 = vmatpush.bf16.msra.mxu0 %v7889_v26  ;;  %v7881_v23 = vor.u32 %v9075_v14, %v7880_v4  ;;  %v14523_v14 = vld [vmem:[#allocation14_spill] sm:$0xff] }
 0x2a0   : > { %2039 = vmatmul.bf16.gmra.mxu2 %v10751_v55  ;;  %2562 = vmatmul.bf16.gmra.mxu0 %v11230_v39  ;;  %v7944_v55 = vld [vmem:[%s14268_s1 + $0x4b0] sm:$0xf] }
 0x2a1   : > { %v11247_v38 = vadd.f32 %v2067_v46, %v10756_v44  ;;  %v11258_v60 = vadd.f32 %v2593_v1, %v10777_v63  ;;  %2631 = vmatmul.bf16.gmra.mxu1 %v11241_v15  ;;  %v9091_v44 = vld [vmem:[%s14268_s1 + $0x4b4] sm:$0xf0]  ;;  %v7872_v63 = vld [vmem:[%s14268_s1 + $0x420] sm:$0xf]  ;;  %v9089_v46 = vld [vmem:[%s14268_s1 + $0x4a4] sm:$0xf0] }
 0x2a2   : > { %3448 = vmatpush.bf16.msra.mxu1 %v7953_v2  ;;  %v7945_v17 = vor.u32 %v9091_v44, %v7944_v55  ;;  %v7873_v18 = vor.u32 %v9073_v30, %v7872_v63  ;;  %v7937_v1 = vor.u32 %v9089_v46, %v7936_v13  ;;  %v7864_v55 = vld [vmem:[%s14268_s1 + $0x410] sm:$0xf]  ;;  %v9071_v44 = vld [vmem:[%s14268_s1 + $0x414] sm:$0xf0]  ;;  %v9011_v30 = vld [vmem:[%s9560_s26 + $0xbc] sm:$0xf0] }
 0x2a3   : > { %14521 = vst [vmem:[#allocation3_spill] sm:$0xff] %v11258_v60  ;;  %2108 = vmatmul.bf16.gmra.mxu3 %v14522_v31  ;;  %v2000_v33 = vpop.f32.mrf.mxu2  ;;  %3380 = vmatpush.bf16.msra.mxu0 %v7881_v23  ;;  %v7928_v31 = vld [vmem:[%s14268_s1 + $0x490] sm:$0xf]  ;;  %v7592_v63 = vld [vmem:[%s9560_s26 + $0xb8] sm:$0xf]  ;;  %v7865_v13 = vor.u32 %v9071_v44, %v7864_v55 }
 0x2a4   : > { %v7920_v55 = vld [vmem:[%s14268_s1 + $0x480] sm:$0xf]  ;;  %v14530_v15 = vld [vmem:[#allocation4_spill] sm:$0xff] }
 0x2a5   : > { %v2525_v26 = vpop.f32.mrf.mxu0  ;;  %v7770_v60 = vld [vmem:[%s9560_s26 + $0x30] sm:$0xf0] }
 0x2a6   : > { %v2069_v48 = vpop.f32.mrf.mxu3  ;;  %v2594_v2 = vpop.f32.mrf.mxu1  ;;  %3449 = vmatpush.bf16.msra.mxu1 %v7945_v17 }
 0x2a7   : > { %v2070_v21 = vadd.f32 %v2069_v48, %v2000_v33  ;;  %v2595_v4 = vadd.f32 %v2594_v2, %v2525_v26  ;;  %3381 = vmatpush.bf16.msra.mxu0 %v7873_v18  ;;  %v14525_v33 = vld [vmem:[#allocation9_spill] sm:$0xff]  ;;  %v7594_v18 = vld [vmem:[%s9560_s26 + $0xc0] sm:$0xf0]  ;;  %v11302_v2 = vor.u32 %v9011_v30, %v7592_v63  ;;  %v9085_v63 = vld [vmem:[%s14268_s1 + $0x484] sm:$0xf0] }
 0x2a8   : > { %v9087_v48 = vld [vmem:[%s14268_s1 + $0x494] sm:$0xf0]  ;;  %v9010_v26 = vld [vmem:[%s9560_s26 + $0xbc] sm:$0xf] }
 0x2a9   : > { %v11281_v23 = vadd.f32 %v2070_v21, %v14523_v14  ;;  %v11293_v17 = vadd.f32 %v2595_v4, %v14525_v33  ;;  %v7929_v46 = vor.u32 %v9087_v48, %v7928_v31  ;;  %14527 = vst [vmem:[#allocation14_spill] sm:$0xff] %v11302_v2  ;;  %v7856_v4 = vld [vmem:[%s14268_s1 + $0x400] sm:$0xf]  ;;  %v9069_v14 = vld [vmem:[%s14268_s1 + $0x404] sm:$0xf0]  ;;  %v7921_v48 = vor.u32 %v9085_v63, %v7920_v55 }
 0x2aa   : > { %3450 = vmatpush.bf16.msra.mxu1 %v7937_v1  ;;  %v11313_v1 = vor.u32 %v9010_v26, %v7594_v18  ;;  %v7857_v31 = vor.u32 %v9069_v14, %v7856_v4  ;;  %v14531_v26 = vld [vmem:[#allocation5_spill] sm:$0xff]  ;;  %v14533_v4 = vld [vmem:[#allocation31_spill] sm:$0xff] }
 0x2ab   : > { %14524 = vst [vmem:[#allocation7_spill] sm:$0xff] %v11281_v23  ;;  %v2002_v21 = vpop.f32.mrf.mxu2  ;;  %3382 = vmatpush.bf16.msra.mxu0 %v7865_v13  ;;  %v7978_v14 = vld [vmem:[%s14268_s1 + $0x4f8] sm:$0xf0] }
 0x2ac   : > { %14526 = vst [vmem:[#allocation13_spill] sm:$0xff] %v11293_v17 }
 0x2ad   : > { %v2528_v33 = vpop.f32.mrf.mxu0  ;;  %14528 = vst [vmem:[#allocation9_spill] sm:$0xff] %v11313_v1 }
 0x2ae   : > { %v2071_v44 = vpop.f32.mrf.mxu3  ;;  %v2597_v13 = vpop.f32.mrf.mxu1  ;;  %3451 = vmatpush.bf16.msra.mxu1 %v7929_v46  ;;  %v9082_v46 = vld [vmem:[%s14268_s1 + $0x474] sm:$0xf] }
 0x2af   : > { %v2072_v30 = vadd.f32 %v2071_v44, %v2002_v21  ;;  %v2598_v17 = vadd.f32 %v2597_v13, %v2528_v33  ;;  %3383 = vmatpush.bf16.msra.mxu0 %v7857_v31  ;;  %v11342_v13 = vld [vmem:[%s9560_s26 + $0x20] sm:$0xff] }
 0x2b0   : > { %2044 = vmatmul.bf16.gmra.mxu2 %v14530_v15  ;;  %2567 = vmatmul.bf16.gmra.mxu0 %v11302_v2  ;;  %v9098_v15 = vld [vmem:[%s14268_s1 + $0x4f4] sm:$0xf] }
 0x2b1   : > { %v11319_v23 = vadd.f32 %v2072_v30, %v10834_v20  ;;  %v11324_v18 = vadd.f32 %v2598_v17, %v14531_v26  ;;  %2636 = vmatmul.bf16.gmra.mxu1 %v11313_v1  ;;  %v7914_v20 = vld [vmem:[%s14268_s1 + $0x478] sm:$0xf0]  ;;  %v7981_v55 = vor.u32 %v9098_v15, %v7978_v14  ;;  %v7602_v14 = vld [vmem:[%s9560_s26 + $0xd0] sm:$0xf0] }
 0x2b2   : > { %3452 = vmatpush.bf16.msra.mxu1 %v7921_v48  ;;  %v7917_v21 = vor.u32 %v9082_v46, %v7914_v20  ;;  %v2833_v30 = vld [vmem:[%s9560_s26 + $0x18] sm:$0xff]  ;;  %v7600_v46 = vld [vmem:[%s9560_s26 + $0xc8] sm:$0xf]  ;;  %v9013_v20 = vld [vmem:[%s9560_s26 + $0xcc] sm:$0xf0] }
 0x2b3   : > { %14529 = vst [vmem:[#allocation32_spill] sm:$0xff] %v11319_v23  ;;  %2113 = vmatmul.bf16.gmra.mxu3 %v14533_v4  ;;  %v2005_v17 = vpop.f32.mrf.mxu2  ;;  %v2916_v15 = vunpack.c.l.b16 %v2833_v30  ;;  %v9046_v23 = vld [vmem:[%s9560_s26 + $0x2c] sm:$0xf] }
 0x2b4   : > { %14532 = vst [vmem:[#allocation4_spill] sm:$0xff] %v11324_v18  ;;  %3514 = vmatpush.bf16.msrb.mxu2 %v7917_v21  ;;  %3583 = vmatpush.bf16.msrb.mxu3 %v7981_v55  ;;  %v14315_v21 = vunpack.c.l.b16 %v11342_v13  ;;  %v14314_v55 = vunpack.c.h.b16 %v11342_v13 }
 0x2b5   : > { %v2530_v33 = vpop.f32.mrf.mxu0 }
 0x2b6   : > { %v2074_v44 = vpop.f32.mrf.mxu3  ;;  %v2599_v63 = vpop.f32.mrf.mxu1 }
 0x2b7   : > { %v2075_v31 = vadd.f32 %v2074_v44, %v2005_v17  ;;  %v2600_v48 = vadd.f32 %v2599_v63, %v2530_v33  ;;  %v9012_v17 = vld [vmem:[%s9560_s26 + $0xcc] sm:$0xf]  ;;  %v2917_v44 = vunpack.c.h.b16 %v2833_v30  ;;  %v11356_v63 = vor.u32 %v9013_v20, %v7600_v46 }
 0x2b9   : > { %v11345_v26 = vadd.f32 %v2075_v31, %v10861_v57  ;;  %v11348_v4 = vadd.f32 %v2600_v48, %v10864_v36  ;;  %v7768_v36 = vld [vmem:[%s9560_s26 + $0x28] sm:$0xf]  ;;  %v9047_v48 = vld [vmem:[%s9560_s26 + $0x2c] sm:$0xf0]  ;;  %v2967_v2 = vpack.c.b16 %v14314_v55, %v2917_v44 }
 0x2ba   : > { %v11373_v20 = vor.u32 %v9047_v48, %v7768_v36 }
 0x2bb   : > { %14534 = vst [vmem:[#allocation5_spill] sm:$0xff] %v11345_v26  ;;  %v2007_v33 = vpop.f32.mrf.mxu2  ;;  %v11358_v26 = vor.u32 %v9012_v17, %v7602_v14  ;;  %v3007_v14 = vshll.u32 %v2967_v2, 16  ;;  %v3005_v48 = vshrl.u32 %v2967_v2, 16  ;;  %v7906_v2 = vld [vmem:[%s14268_s1 + $0x468] sm:$0xf0] }
 0x2bc   : > { %14535 = vst [vmem:[#allocation31_spill] sm:$0xff] %v11348_v4  ;;  %v2966_v4 = vpack.c.b16 %v14315_v21, %v2916_v15 }
 0x2bd   : > { %v2533_v31 = vpop.f32.mrf.mxu0 }
 0x2be   : > { %v2076_v57 = vpop.f32.mrf.mxu3  ;;  %v2602_v18 = vpop.f32.mrf.mxu1  ;;  %v2995_v15 = vshll.u32 %v2966_v4, 16 }
 0x2bf   : > { %v2077_v1 = vadd.f32 %v2076_v57, %v2007_v33  ;;  %v2603_v30 = vadd.f32 %v2602_v18, %v2533_v31  ;;  %v11380_v18 = vor.u32 %v9046_v23, %v7770_v60  ;;  %v2993_v33 = vshrl.u32 %v2966_v4, 16  ;;  %v9080_v4 = vld [vmem:[%s14268_s1 + $0x464] sm:$0xf] }
 0x2c0   : > { %2049 = vmatmul.bf16.gmra.mxu2 %v10870_v8  ;;  %2572 = vmatmul.bf16.gmra.mxu0 %v11356_v63  ;;  %v2997_v57 = vrot.slane %v2995_v15, 1  ;;  %v9096_v15 = vld [vmem:[%s14268_s1 + $0x4e4] sm:$0xf] }
 0x2c1   : > { %v11369_v46 = vadd.f32 %v2077_v1, %v10872_v52  ;;  %v11376_v17 = vadd.f32 %v2603_v30, %v10880_v11  ;;  %2641 = vmatmul.bf16.gmra.mxu1 %v11358_v26  ;;  %v3000_v52 = vshll.u32 %v11373_v20, 16  ;;  %v3009_v11 = vrot.slane %v3007_v14, 1 }
 0x2c2   : > { %v3012_v30 = vshll.u32 %v11380_v18, 16  ;;  %v2998_v23 = vor.u32 %v2997_v57, %v2993_v33 }
 0x2c3   : > { %2118 = vmatmul.bf16.gmra.mxu3 %v10875_v40  ;;  %v2010_v44 = vpop.f32.mrf.mxu2  ;;  %v3002_v40 = vrot.slane %v3000_v52, 1 }
 0x2c4   : > { %v3014_v14 = vrot.slane %v3012_v30, 1 }
 0x2c5   : > { %v2535_v8 = vpop.f32.mrf.mxu0  ;;  %v11403_v33 = vsel %vm453_vm0, %v2998_v23, %v3002_v40 }
 0x2c6   : > { %v2079_v1 = vpop.f32.mrf.mxu3  ;;  %v2604_v36 = vpop.f32.mrf.mxu1 }
 0x2c7   : > { %v2080_v31 = vadd.f32 %v2079_v1, %v2010_v44  ;;  %v2605_v55 = vadd.f32 %v2604_v36, %v2535_v8 }
 0x2c9   : > { %v11385_v21 = vadd.f32 %v2080_v31, %v10885_v24  ;;  %v11388_v60 = vadd.f32 %v2605_v55, %v10890_v0  ;;  %v3010_v24 = vor.u32 %v3009_v11, %v3005_v48  ;;  %v7909_v0 = vor.u32 %v9080_v4, %v7906_v2  ;;  %v7970_v55 = vld [vmem:[%s14268_s1 + $0x4e8] sm:$0xf0]  ;;  %v7776_v48 = vld [vmem:[%s9560_s26 + $0x38] sm:$0xf]  ;;  %v9049_v11 = vld [vmem:[%s9560_s26 + $0x3c] sm:$0xf0] }
 0x2ca   : > { %v7973_v52 = vor.u32 %v9096_v15, %v7970_v55  ;;  %v9048_v4 = vld [vmem:[%s9560_s26 + $0x3c] sm:$0xf]  ;;  %v7778_v2 = vld [vmem:[%s9560_s26 + $0x40] sm:$0xf0]  ;;  %v11421_v15 = vor.u32 %v9049_v11, %v7776_v48 }
 0x2cb   : > { %14536 = vst [vmem:[#allocation33_spill] sm:$0xff] %v11388_v60  ;;  %v2012_v44 = vpop.f32.mrf.mxu2  ;;  %3515 = vmatpush.bf16.msrb.mxu2 %v7909_v0  ;;  %v11406_v36 = vsel %vm453_vm0, %v3010_v24, %v3014_v14  ;;  %v11424_v24 = vor.u32 %v9048_v4, %v7778_v2 }
 0x2cc   : > { %3584 = vmatpush.bf16.msrb.mxu3 %v7973_v52  ;;  %14537 = vst [vmem:[#allocation34_spill] sm:$0xff] %v11406_v36 }
 0x2cd   : > { %v2538_v8 = vpop.f32.mrf.mxu0 }
 0x2ce   : > { %v2081_v1 = vpop.f32.mrf.mxu3  ;;  %v2607_v31 = vpop.f32.mrf.mxu1 }
 0x2cf   : > { %v2082_v57 = vadd.f32 %v2081_v1, %v2012_v44  ;;  %v2608_v30 = vadd.f32 %v2607_v31, %v2538_v8  ;;  %v3028_v8 = vshll.u32 %v11424_v24, 16 }
 0x2d0   : > { %2655 = vmatmul.bf16.vlgmr.msra.gmra.mxu2 %v10907_v49  ;;  %3384 = vmatmul.bf16.vlgmr.msra.gmra.mxu0 %v11403_v33  ;;  %v3020_v49 = vshll.u32 %v11421_v15, 16 }
 0x2d1   : > { %v11413_v60 = vadd.f32 %v2082_v57, %v10911_v29  ;;  %v11418_v23 = vadd.f32 %v2608_v30, %v10916_v43  ;;  %3453 = vmatmul.bf16.vlgmr.msra.gmra.mxu1 %v11406_v36  ;;  %v3016_v29 = vshrl.u32 %v11373_v20, 16  ;;  %v3024_v43 = vshrl.u32 %v11380_v18, 16 }
 0x2d2   : > { %v3022_v11 = vrot.slane %v3020_v49, 1  ;;  %v3030_v4 = vrot.slane %v3028_v8, 1  ;;  %v14546_v8 = vld [vmem:[#allocation12_spill] sm:$0xff] }
 0x2d3   : > { %14538 = vst [vmem:[#allocation35_spill] sm:$0xff] %v11418_v23  ;;  %2724 = vmatmul.bf16.vlgmr.msra.gmra.mxu3 %v10909_v3  ;;  %v2015_v0 = vpop.f32.mrf.mxu2  ;;  %v3018_v48 = vor.u32 %v3016_v29, %v3002_v40  ;;  %v3026_v30 = vor.u32 %v3024_v43, %v3014_v14  ;;  %v14543_v14 = vld [vmem:[#allocation11_spill] sm:$0xff]  ;;  %v14544_v29 = vld [vmem:[#allocation10_spill] sm:$0xff] }
 0x2d5   : > { %v2540_v44 = vpop.f32.mrf.mxu0  ;;  %v11437_v36 = vsel %vm453_vm0, %v3018_v48, %v3022_v11 }
 0x2d6   : > { %v2084_v55 = vpop.f32.mrf.mxu3  ;;  %v2609_v1 = vpop.f32.mrf.mxu1  ;;  %14540 = vst [vmem:[#allocation37_spill] sm:$0xff] %v11437_v36 }
 0x2d7   : > { %v2085_v52 = vadd.f32 %v2084_v55, %v2015_v0  ;;  %v2610_v57 = vadd.f32 %v2609_v1, %v2540_v44  ;;  %v9051_v1 = vld [vmem:[%s9560_s26 + $0x4c] sm:$0xf0] }
 0x2d9   : > { %v11431_v3 = vadd.f32 %v2085_v52, %v10921_v12  ;;  %v11434_v31 = vadd.f32 %v2610_v57, %v10924_v16  ;;  %v11440_v12 = vsel %vm453_vm0, %v3026_v30, %v3030_v4  ;;  %v7784_v52 = vld [vmem:[%s9560_s26 + $0x48] sm:$0xf]  ;;  %v9050_v57 = vld [vmem:[%s9560_s26 + $0x4c] sm:$0xf]  ;;  %v9094_v30 = vld [vmem:[%s14268_s1 + $0x4d4] sm:$0xf] }
 0x2da   : > { %14541 = vst [vmem:[#allocation38_spill] sm:$0xff] %v11440_v12  ;;  %v11455_v43 = vor.u32 %v9051_v1, %v7784_v52  ;;  %v3032_v1 = vshrl.u32 %v11421_v15, 16 }
 0x2db   : > { %14539 = vst [vmem:[#allocation36_spill] sm:$0xff] %v11434_v31  ;;  %v2017_v2 = vpop.f32.mrf.mxu2  ;;  %v7786_v31 = vld [vmem:[%s9560_s26 + $0x50] sm:$0xf0] }
 0x2dc   : > { %v11458_v48 = vor.u32 %v9050_v57, %v7786_v31 }
 0x2dd   : > { %v2543_v55 = vpop.f32.mrf.mxu0 }
 0x2de   : > { %v2086_v0 = vpop.f32.mrf.mxu3  ;;  %v2612_v44 = vpop.f32.mrf.mxu1 }
 0x2df   : > { %v2087_v23 = vadd.f32 %v2086_v0, %v2017_v2  ;;  %v2613_v16 = vadd.f32 %v2612_v44, %v2543_v55  ;;  %v7962_v55 = vld [vmem:[%s14268_s1 + $0x4d8] sm:$0xf0] }
 0x2e0   : > { %2660 = vmatmul.bf16.gmra.mxu2 %v14543_v14  ;;  %3389 = vmatmul.bf16.gmra.mxu0 %v11437_v36  ;;  %v7965_v31 = vor.u32 %v9094_v30, %v7962_v55  ;;  %v3034_v55 = vor.u32 %v3032_v1, %v3022_v11 }
 0x2e1   : > { %v11447_v40 = vadd.f32 %v2087_v23, %v10935_v9  ;;  %v11452_v49 = vadd.f32 %v2613_v16, %v14544_v29  ;;  %3458 = vmatmul.bf16.gmra.mxu1 %v11440_v12  ;;  %v9078_v9 = vld [vmem:[%s14268_s1 + $0x454] sm:$0xf]  ;;  %v7898_v23 = vld [vmem:[%s14268_s1 + $0x458] sm:$0xf0]  ;;  %v3036_v16 = vshll.u32 %v11455_v43, 16  ;;  %v3040_v29 = vshrl.u32 %v11424_v24, 16 }
 0x2e2   : > { %v7901_v0 = vor.u32 %v9078_v9, %v7898_v23  ;;  %3585 = vmatpush.bf16.msrb.mxu3 %v7965_v31  ;;  %v7792_v31 = vld [vmem:[%s9560_s26 + $0x58] sm:$0xf] }
 0x2e3   : > { %14542 = vst [vmem:[#allocation39_spill] sm:$0xff] %v11447_v40  ;;  %2729 = vmatmul.bf16.gmra.mxu3 %v14546_v8  ;;  %v2020_v2 = vpop.f32.mrf.mxu2  ;;  %v3044_v8 = vshll.u32 %v11458_v48, 16 }
 0x2e4   : > { %14545 = vst [vmem:[#allocation11_spill] sm:$0xff] %v11452_v49  ;;  %3516 = vmatpush.bf16.msrb.mxu2 %v7901_v0  ;;  %v3038_v0 = vrot.slane %v3036_v16, 1 }
 0x2e5   : > { %v2545_v52 = vpop.f32.mrf.mxu0 }
 0x2e6   : > { %v2089_v44 = vpop.f32.mrf.mxu3  ;;  %v2614_v14 = vpop.f32.mrf.mxu1  ;;  %v11483_v40 = vsel %vm453_vm0, %v3034_v55, %v3038_v0  ;;  %v3056_v55 = vshrl.u32 %v11458_v48, 16 }
 0x2e7   : > { %v2090_v57 = vadd.f32 %v2089_v44, %v2020_v2  ;;  %v2615_v9 = vadd.f32 %v2614_v14, %v2545_v52  ;;  %v3042_v2 = vor.u32 %v3040_v29, %v3030_v4  ;;  %v3046_v44 = vrot.slane %v3044_v8, 1  ;;  %v9053_v52 = vld [vmem:[%s9560_s26 + $0x5c] sm:$0xf0] }
 0x2e8   : > { %v11497_v4 = vor.u32 %v9053_v52, %v7792_v31 }
 0x2e9   : > { %v11477_v23 = vadd.f32 %v2090_v57, %v10957_v47  ;;  %v11480_v30 = vadd.f32 %v2615_v9, %v10960_v54  ;;  %v11488_v57 = vsel %vm453_vm0, %v3042_v2, %v3046_v44  ;;  %v9052_v9 = vld [vmem:[%s9560_s26 + $0x5c] sm:$0xf] }
 0x2eb   : > { %14547 = vst [vmem:[#allocation10_spill] sm:$0xff] %v11480_v30  ;;  %v2022_v12 = vpop.f32.mrf.mxu2  ;;  %v7794_v30 = vld [vmem:[%s9560_s26 + $0x60] sm:$0xf0] }
 0x2ed   : > { %v2548_v36 = vpop.f32.mrf.mxu0 }
 0x2ee   : > { %v2091_v49 = vpop.f32.mrf.mxu3  ;;  %v2617_v47 = vpop.f32.mrf.mxu1 }
 0x2ef   : > { %v2092_v14 = vadd.f32 %v2091_v49, %v2022_v12  ;;  %v2618_v54 = vadd.f32 %v2617_v47, %v2548_v36  ;;  %v11504_v12 = vor.u32 %v9052_v9, %v7794_v30  ;;  %v3052_v49 = vshll.u32 %v11497_v4, 16  ;;  %v14549_v30 = vld [vmem:[#allocation8_spill] sm:$0xff]  ;;  %v9076_v47 = vld [vmem:[%s14268_s1 + $0x444] sm:$0xf] }
 0x2f0   : > { %2665 = vmatmul.bf16.gmra.mxu2 %v10967_v62  ;;  %3394 = vmatmul.bf16.gmra.mxu0 %v11483_v40  ;;  %v3048_v62 = vshrl.u32 %v11455_v43, 16  ;;  %v9092_v9 = vld [vmem:[%s14268_s1 + $0x4c4] sm:$0xf] }
 0x2f1   : > { %v11493_v11 = vadd.f32 %v2092_v14, %v10971_v58  ;;  %v11500_v1 = vadd.f32 %v2618_v54, %v10976_v27  ;;  %3463 = vmatmul.bf16.gmra.mxu1 %v11488_v57  ;;  %v3060_v27 = vshll.u32 %v11504_v12, 16  ;;  %v7890_v54 = vld [vmem:[%s14268_s1 + $0x448] sm:$0xf0] }
 0x2f2   : > { %v3050_v14 = vor.u32 %v3048_v62, %v3038_v0  ;;  %v7954_v0 = vld [vmem:[%s14268_s1 + $0x4c8] sm:$0xf0] }
 0x2f3   : > { %2734 = vmatmul.bf16.gmra.mxu3 %v10969_v50  ;;  %v2025_v36 = vpop.f32.mrf.mxu2  ;;  %v3054_v50 = vrot.slane %v3052_v49, 1  ;;  %v7893_v49 = vor.u32 %v9076_v47, %v7890_v54  ;;  %v9054_v54 = vld [vmem:[%s9560_s26 + $0x6c] sm:$0xf] }
 0x2f5   : > { %v2550_v16 = vpop.f32.mrf.mxu0  ;;  %3517 = vmatpush.bf16.msrb.mxu2 %v7893_v49 }
 0x2f6   : > { %v2094_v58 = vpop.f32.mrf.mxu3  ;;  %v2619_v8 = vpop.f32.mrf.mxu1 }
 0x2f7   : > { %v2095_v29 = vadd.f32 %v2094_v58, %v2025_v36  ;;  %v2620_v2 = vadd.f32 %v2619_v8, %v2550_v16  ;;  %v3062_v36 = vrot.slane %v3060_v27, 1  ;;  %v7957_v16 = vor.u32 %v9092_v9, %v7954_v0  ;;  %v9055_v27 = vld [vmem:[%s9560_s26 + $0x6c] sm:$0xf0] }
 0x2f8   : > { %v11529_v8 = vsel %vm453_vm0, %v3050_v14, %v3054_v50 }
 0x2f9   : > { %v11511_v31 = vadd.f32 %v2095_v29, %v10981_v35  ;;  %v11514_v52 = vadd.f32 %v2620_v2, %v14549_v30  ;;  %v3058_v35 = vor.u32 %v3056_v55, %v3046_v44  ;;  %14551 = vst [vmem:[#allocation40_spill] sm:$0xff] %v11529_v8  ;;  %3586 = vmatpush.bf16.msrb.mxu3 %v7957_v16  ;;  %v7800_v55 = vld [vmem:[%s9560_s26 + $0x68] sm:$0xf] }
 0x2fa   : > { %v11547_v9 = vor.u32 %v9055_v27, %v7800_v55 }
 0x2fb   : > { %14548 = vst [vmem:[#allocation12_spill] sm:$0xff] %v11511_v31  ;;  %v2027_v58 = vpop.f32.mrf.mxu2  ;;  %v11532_v44 = vsel %vm453_vm0, %v3058_v35, %v3062_v36 }
 0x2fc   : > { %14550 = vst [vmem:[#allocation8_spill] sm:$0xff] %v11514_v52  ;;  %v7802_v52 = vld [vmem:[%s9560_s26 + $0x70] sm:$0xf0] }
 0x2fd   : > { %v2553_v29 = vpop.f32.mrf.mxu0  ;;  %14552 = vst [vmem:[#allocation41_spill] sm:$0xff] %v11532_v44  ;;  %v11550_v35 = vor.u32 %v9054_v54, %v7802_v52  ;;  %v14555_v52 = vld [vmem:[#allocation6_spill] sm:$0xff] }
 0x2fe   : > { %v2096_v62 = vpop.f32.mrf.mxu3  ;;  %v2622_v30 = vpop.f32.mrf.mxu1 }
 0x2ff   : > { %v2097_v2 = vadd.f32 %v2096_v62, %v2027_v58  ;;  %v2623_v47 = vadd.f32 %v2622_v30, %v2553_v29  ;;  %14554 = vst [vmem:[#allocation43_spill] sm:$0xff] %v11550_v35  ;;  %v3076_v29 = vshll.u32 %v11550_v35, 16 }
 0x300   : > { %2670 = vmatmul.bf16.gmra.mxu2 %v11003_v42  ;;  %3399 = vmatmul.bf16.gmra.mxu0 %v11529_v8  ;;  %v3068_v42 = vshll.u32 %v11547_v9, 16 }
 0x301   : > { %v11539_v31 = vadd.f32 %v2097_v2, %v11007_v41  ;;  %v11544_v14 = vadd.f32 %v2623_v47, %v11012_v5  ;;  %3468 = vmatmul.bf16.gmra.mxu1 %v11532_v44  ;;  %v3064_v41 = vshrl.u32 %v11497_v4, 16  ;;  %v3072_v5 = vshrl.u32 %v11504_v12, 16 }
 0x302   : > { %v3070_v27 = vrot.slane %v3068_v42, 1  ;;  %v3078_v54 = vrot.slane %v3076_v29, 1  ;;  %v14562_v42 = vld [vmem:[#allocation17_spill] sm:$0xff] }
 0x303   : > { %14553 = vst [vmem:[#allocation42_spill] sm:$0xff] %v11544_v14  ;;  %2739 = vmatmul.bf16.gmra.mxu3 %v11005_v22  ;;  %v2030_v49 = vpop.f32.mrf.mxu2  ;;  %v3066_v55 = vor.u32 %v3064_v41, %v3054_v50  ;;  %v3074_v47 = vor.u32 %v3072_v5, %v3062_v36  ;;  %v14559_v50 = vld [vmem:[#allocation16_spill] sm:$0xff]  ;;  %v14561_v36 = vld [vmem:[#allocation15_spill] sm:$0xff] }
 0x305   : > { %v2555_v58 = vpop.f32.mrf.mxu0  ;;  %v11563_v14 = vsel %vm453_vm0, %v3066_v55, %v3070_v27  ;;  %v14564_v55 = vld [vmem:[#allocation2_spill] sm:$0xff] }
 0x306   : > { %v2099_v0 = vpop.f32.mrf.mxu3  ;;  %v2624_v62 = vpop.f32.mrf.mxu1  ;;  %14557 = vst [vmem:[#allocation44_spill] sm:$0xff] %v11563_v14 }
 0x307   : > { %v2100_v16 = vadd.f32 %v2099_v0, %v2030_v49  ;;  %v2625_v2 = vadd.f32 %v2624_v62, %v2555_v58  ;;  %v9057_v62 = vld [vmem:[%s9560_s26 + $0x7c] sm:$0xf0] }
 0x309   : > { %v11557_v22 = vadd.f32 %v2100_v16, %v11017_v51  ;;  %v11560_v30 = vadd.f32 %v2625_v2, %v14555_v52  ;;  %v11566_v51 = vsel %vm453_vm0, %v3074_v47, %v3078_v54  ;;  %v7808_v16 = vld [vmem:[%s9560_s26 + $0x78] sm:$0xf]  ;;  %v9056_v52 = vld [vmem:[%s9560_s26 + $0x7c] sm:$0xf] }
 0x30a   : > { %14558 = vst [vmem:[#allocation45_spill] sm:$0xff] %v11566_v51  ;;  %v11581_v29 = vor.u32 %v9057_v62, %v7808_v16  ;;  %v7946_v16 = vld [vmem:[%s14268_s1 + $0x4b8] sm:$0xf0] }
 0x30b   : > { %14556 = vst [vmem:[#allocation6_spill] sm:$0xff] %v11560_v30  ;;  %v2032_v49 = vpop.f32.mrf.mxu2  ;;  %v7810_v30 = vld [vmem:[%s9560_s26 + $0x80] sm:$0xf0] }
 0x30c   : > { %v11584_v47 = vor.u32 %v9056_v52, %v7810_v30  ;;  %v3080_v52 = vshrl.u32 %v11547_v9, 16 }
 0x30d   : > { %v2558_v44 = vpop.f32.mrf.mxu0 }
 0x30e   : > { %v2101_v0 = vpop.f32.mrf.mxu3  ;;  %v2627_v58 = vpop.f32.mrf.mxu1 }
 0x30f   : > { %v2102_v8 = vadd.f32 %v2101_v0, %v2032_v49  ;;  %v2628_v2 = vadd.f32 %v2627_v58, %v2558_v44  ;;  %v7882_v44 = vld [vmem:[%s14268_s1 + $0x438] sm:$0xf0]  ;;  %v9090_v49 = vld [vmem:[%s14268_s1 + $0x4b4] sm:$0xf] }
 0x310   : > { %2675 = vmatmul.bf16.gmra.mxu2 %v14561_v36  ;;  %3404 = vmatmul.bf16.gmra.mxu0 %v11563_v14  ;;  %v7949_v30 = vor.u32 %v9090_v49, %v7946_v16  ;;  %v3082_v16 = vor.u32 %v3080_v52, %v3070_v27 }
 0x311   : > { %v11573_v41 = vadd.f32 %v2102_v8, %v14559_v50  ;;  %v11578_v5 = vadd.f32 %v2628_v2, %v14562_v42  ;;  %3473 = vmatmul.bf16.gmra.mxu1 %v11566_v51  ;;  %v9074_v8 = vld [vmem:[%s14268_s1 + $0x434] sm:$0xf]  ;;  %v3084_v50 = vshll.u32 %v11581_v29, 16 }
 0x312   : > { %v7885_v58 = vor.u32 %v9074_v8, %v7882_v44  ;;  %v3092_v8 = vshll.u32 %v11584_v47, 16  ;;  %3587 = vmatpush.bf16.msrb.mxu3 %v7949_v30  ;;  %v7816_v30 = vld [vmem:[%s9560_s26 + $0x88] sm:$0xf] }
 0x313   : > { %14560 = vst [vmem:[#allocation16_spill] sm:$0xff] %v11573_v41  ;;  %2744 = vmatmul.bf16.gmra.mxu3 %v14564_v55  ;;  %v2035_v0 = vpop.f32.mrf.mxu2  ;;  %v3088_v55 = vshrl.u32 %v11550_v35, 16 }
 0x314   : > { %14563 = vst [vmem:[#allocation15_spill] sm:$0xff] %v11578_v5  ;;  %3518 = vmatpush.bf16.msrb.mxu2 %v7885_v58  ;;  %v3086_v58 = vrot.slane %v3084_v50, 1 }
 0x315   : > { %v2560_v2 = vpop.f32.mrf.mxu0 }
 0x316   : > { %v2104_v62 = vpop.f32.mrf.mxu3  ;;  %v2629_v42 = vpop.f32.mrf.mxu1  ;;  %v11609_v35 = vsel %vm453_vm0, %v3082_v16, %v3086_v58  ;;  %v3104_v16 = vshrl.u32 %v11584_v47, 16 }
 0x317   : > { %v2105_v36 = vadd.f32 %v2104_v62, %v2035_v0  ;;  %v2630_v44 = vadd.f32 %v2629_v42, %v2560_v2  ;;  %v3090_v0 = vor.u32 %v3088_v55, %v3078_v54  ;;  %v3094_v62 = vrot.slane %v3092_v8, 1  ;;  %v9059_v2 = vld [vmem:[%s9560_s26 + $0x8c] sm:$0xf0] }
 0x318   : > { %v11623_v54 = vor.u32 %v9059_v2, %v7816_v30 }
 0x319   : > { %v11603_v51 = vadd.f32 %v2105_v36, %v11053_v25  ;;  %v11606_v49 = vadd.f32 %v2630_v44, %v11056_v61  ;;  %v11614_v36 = vsel %vm453_vm0, %v3090_v0, %v3094_v62  ;;  %v9058_v44 = vld [vmem:[%s9560_s26 + $0x8c] sm:$0xf] }
 0x31b   : > { %14565 = vst [vmem:[#allocation17_spill] sm:$0xff] %v11606_v49  ;;  %v2037_v5 = vpop.f32.mrf.mxu2  ;;  %v7818_v49 = vld [vmem:[%s9560_s26 + $0x90] sm:$0xf0] }
 0x31d   : > { %v2563_v41 = vpop.f32.mrf.mxu0 }
 0x31e   : > { %v2106_v14 = vpop.f32.mrf.mxu3  ;;  %v2632_v25 = vpop.f32.mrf.mxu1 }
 0x31f   : > { %v2107_v42 = vadd.f32 %v2106_v14, %v2037_v5  ;;  %v2633_v61 = vadd.f32 %v2632_v25, %v2563_v41  ;;  %v11630_v14 = vor.u32 %v9058_v44, %v7818_v49  ;;  %v3100_v5 = vshll.u32 %v11623_v54, 16  ;;  %v14567_v49 = vld [vmem:[#allocation19_spill] sm:$0xff]  ;;  %v9072_v25 = vld [vmem:[%s14268_s1 + $0x424] sm:$0xf] }
 0x320   : > { %2680 = vmatmul.bf16.gmra.mxu2 %v11063_v28  ;;  %3409 = vmatmul.bf16.gmra.mxu0 %v11609_v35  ;;  %v3096_v28 = vshrl.u32 %v11581_v29, 16  ;;  %v9088_v44 = vld [vmem:[%s14268_s1 + $0x4a4] sm:$0xf] }
 0x321   : > { %v11619_v27 = vadd.f32 %v2107_v42, %v11067_v6  ;;  %v11626_v52 = vadd.f32 %v2633_v61, %v11072_v37  ;;  %3478 = vmatmul.bf16.gmra.mxu1 %v11614_v36  ;;  %v3108_v37 = vshll.u32 %v11630_v14, 16  ;;  %v7874_v61 = vld [vmem:[%s14268_s1 + $0x428] sm:$0xf0] }
 0x322   : > { %v3098_v42 = vor.u32 %v3096_v28, %v3086_v58  ;;  %v7938_v58 = vld [vmem:[%s14268_s1 + $0x4a8] sm:$0xf0] }
 0x323   : > { %2749 = vmatmul.bf16.gmra.mxu3 %v11065_v7  ;;  %v2040_v41 = vpop.f32.mrf.mxu2  ;;  %v3102_v7 = vrot.slane %v3100_v5, 1  ;;  %v7877_v5 = vor.u32 %v9072_v25, %v7874_v61  ;;  %v9060_v61 = vld [vmem:[%s9560_s26 + $0x9c] sm:$0xf] }
 0x325   : > { %v2565_v50 = vpop.f32.mrf.mxu0  ;;  %3519 = vmatpush.bf16.msrb.mxu2 %v7877_v5 }
 0x326   : > { %v2109_v6 = vpop.f32.mrf.mxu3  ;;  %v2634_v8 = vpop.f32.mrf.mxu1 }
 0x327   : > { %v2110_v55 = vadd.f32 %v2109_v6, %v2040_v41  ;;  %v2635_v0 = vadd.f32 %v2634_v8, %v2565_v50  ;;  %v3110_v41 = vrot.slane %v3108_v37, 1  ;;  %v7941_v50 = vor.u32 %v9088_v44, %v7938_v58  ;;  %v9061_v37 = vld [vmem:[%s9560_s26 + $0x9c] sm:$0xf0] }
 0x328   : > { %v11655_v8 = vsel %vm453_vm0, %v3098_v42, %v3102_v7 }
 0x329   : > { %v11637_v30 = vadd.f32 %v2110_v55, %v11077_v32  ;;  %v11640_v2 = vadd.f32 %v2635_v0, %v14567_v49  ;;  %v3106_v32 = vor.u32 %v3104_v16, %v3094_v62  ;;  %3588 = vmatpush.bf16.msrb.mxu3 %v7941_v50  ;;  %v7824_v16 = vld [vmem:[%s9560_s26 + $0x98] sm:$0xf] }
 0x32a   : > { %v11673_v44 = vor.u32 %v9061_v37, %v7824_v16 }
 0x32b   : > { %14566 = vst [vmem:[#allocation2_spill] sm:$0xff] %v11637_v30  ;;  %v2042_v6 = vpop.f32.mrf.mxu2  ;;  %v11658_v62 = vsel %vm453_vm0, %v3106_v32, %v3110_v41 }
 0x32c   : > { %14568 = vst [vmem:[#allocation19_spill] sm:$0xff] %v11640_v2  ;;  %v7826_v2 = vld [vmem:[%s9560_s26 + $0xa0] sm:$0xf0] }
 0x32d   : > { %v2568_v55 = vpop.f32.mrf.mxu0  ;;  %14569 = vst [vmem:[#allocation46_spill] sm:$0xff] %v11658_v62  ;;  %v11676_v32 = vor.u32 %v9060_v61, %v7826_v2 }
 0x32e   : > { %v2111_v28 = vpop.f32.mrf.mxu3  ;;  %v2637_v49 = vpop.f32.mrf.mxu1  ;;  %14571 = vst [vmem:[#allocation48_spill] sm:$0xff] %v11673_v44 }
 0x32f   : > { %v2112_v0 = vadd.f32 %v2111_v28, %v2042_v6  ;;  %v2638_v25 = vadd.f32 %v2637_v49, %v2568_v55  ;;  %14572 = vst [vmem:[#allocation49_spill] sm:$0xff] %v11676_v32  ;;  %v3124_v55 = vshll.u32 %v11676_v32, 16 }
 0x330   : > { %2685 = vmatmul.bf16.gmra.mxu2 %v11099_v45  ;;  %3414 = vmatmul.bf16.gmra.mxu0 %v11655_v8  ;;  %v3116_v45 = vshll.u32 %v11673_v44, 16 }
 0x331   : > { %v11665_v30 = vadd.f32 %v2112_v0, %v11103_v34  ;;  %v11670_v42 = vadd.f32 %v2638_v25, %v11108_v59  ;;  %3483 = vmatmul.bf16.gmra.mxu1 %v11658_v62  ;;  %v3112_v34 = vshrl.u32 %v11623_v54, 16  ;;  %v3120_v59 = vshrl.u32 %v11630_v14, 16 }
 0x332   : > { %v3118_v16 = vrot.slane %v3116_v45, 1  ;;  %v3126_v25 = vrot.slane %v3124_v55, 1  ;;  %v14581_v55 = vld [vmem:[#allocation21_spill] sm:$0xff] }
 0x333   : > { %14570 = vst [vmem:[#allocation47_spill] sm:$0xff] %v11670_v42  ;;  %2754 = vmatmul.bf16.gmra.mxu3 %v11101_v56  ;;  %v2045_v5 = vpop.f32.mrf.mxu2  ;;  %v3114_v49 = vor.u32 %v3112_v34, %v3102_v7  ;;  %v3122_v37 = vor.u32 %v3120_v59, %v3110_v41  ;;  %v14577_v41 = vld [vmem:[#allocation18_spill] sm:$0xff]  ;;  %v14578_v34 = vld [vmem:[#allocation20_spill] sm:$0xff] }
 0x335   : > { %v2570_v6 = vpop.f32.mrf.mxu0  ;;  %v11689_v62 = vsel %vm453_vm0, %v3114_v49, %v3118_v16 }
 0x336   : > { %v2114_v58 = vpop.f32.mrf.mxu3  ;;  %v2639_v28 = vpop.f32.mrf.mxu1  ;;  %14574 = vst [vmem:[#allocation51_spill] sm:$0xff] %v11689_v62 }
 0x337   : > { %v2115_v50 = vadd.f32 %v2114_v58, %v2045_v5  ;;  %v2640_v0 = vadd.f32 %v2639_v28, %v2570_v6  ;;  %v9063_v28 = vld [vmem:[%s9560_s26 + $0xac] sm:$0xf0] }
 0x339   : > { %v11683_v56 = vadd.f32 %v2115_v50, %v11113_v53  ;;  %v11686_v2 = vadd.f32 %v2640_v0, %v11116_v10  ;;  %v11692_v53 = vsel %vm453_vm0, %v3122_v37, %v3126_v25  ;;  %v7832_v50 = vld [vmem:[%s9560_s26 + $0xa8] sm:$0xf]  ;;  %v9062_v0 = vld [vmem:[%s9560_s26 + $0xac] sm:$0xf]  ;;  %v9086_v37 = vld [vmem:[%s14268_s1 + $0x494] sm:$0xf] }
 0x33a   : > { %14575 = vst [vmem:[#allocation52_spill] sm:$0xff] %v11692_v53  ;;  %v11707_v59 = vor.u32 %v9063_v28, %v7832_v50  ;;  %v3128_v28 = vshrl.u32 %v11673_v44, 16 }
 0x33b   : > { %14573 = vst [vmem:[#allocation50_spill] sm:$0xff] %v11686_v2  ;;  %v2047_v61 = vpop.f32.mrf.mxu2  ;;  %v7834_v2 = vld [vmem:[%s9560_s26 + $0xb0] sm:$0xf0] }
 0x33c   : > { %14580 = vst [vmem:[#allocation20_spill] sm:$0xff] %v11707_v59  ;;  %v11710_v49 = vor.u32 %v9062_v0, %v7834_v2 }
 0x33d   : > { %v2573_v58 = vpop.f32.mrf.mxu0 }
 0x33e   : > { %v2116_v5 = vpop.f32.mrf.mxu3  ;;  %v2642_v6 = vpop.f32.mrf.mxu1  ;;  %14582 = vst [vmem:[#allocation21_spill] sm:$0xff] %v11710_v49 }
 0x33f   : > { %v2117_v42 = vadd.f32 %v2116_v5, %v2047_v61  ;;  %v2643_v10 = vadd.f32 %v2642_v6, %v2573_v58  ;;  %v7930_v58 = vld [vmem:[%s14268_s1 + $0x498] sm:$0xf0] }
 0x340   : > { %2690 = vmatmul.bf16.gmra.mxu2 %v14577_v41  ;;  %3419 = vmatmul.bf16.gmra.mxu0 %v11689_v62  ;;  %v7933_v2 = vor.u32 %v9086_v37, %v7930_v58  ;;  %v8072_v37 = vld [vmem:[%s14268_s1 + $0x570] sm:$0xf] }
 0x341   : > { %v11699_v7 = vadd.f32 %v2117_v42, %v11127_v19  ;;  %v11704_v45 = vadd.f32 %v2643_v10, %v14578_v34  ;;  %3488 = vmatmul.bf16.gmra.mxu1 %v11692_v53  ;;  %v9070_v19 = vld [vmem:[%s14268_s1 + $0x414] sm:$0xf]  ;;  %v7866_v42 = vld [vmem:[%s14268_s1 + $0x418] sm:$0xf0]  ;;  %v3132_v10 = vshll.u32 %v11707_v59, 16  ;;  %v3136_v34 = vshrl.u32 %v11676_v32, 16 }
 0x342   : > { %v7869_v5 = vor.u32 %v9070_v19, %v7866_v42  ;;  %3589 = vmatpush.bf16.msrb.mxu3 %v7933_v2  ;;  %v14583_v42 = vld [vmem:[#allocation22_spill] sm:$0xff]  ;;  %v14596_v32 = vld [vmem:[#allocation27_spill] sm:$0xff] }
 0x343   : > { %14576 = vst [vmem:[#allocation53_spill] sm:$0xff] %v11699_v7  ;;  %2759 = vmatmul.bf16.gmra.mxu3 %v14581_v55  ;;  %v2050_v61 = vpop.f32.mrf.mxu2  ;;  %v3140_v55 = vshll.u32 %v11710_v49, 16  ;;  %v14591_v7 = vld [vmem:[#allocation25_spill] sm:$0xff] }
 0x344   : > { %14579 = vst [vmem:[#allocation18_spill] sm:$0xff] %v11704_v45  ;;  %3520 = vmatpush.bf16.msrb.mxu2 %v7869_v5  ;;  %v14585_v5 = vld [vmem:[#allocation23_spill] sm:$0xff]  ;;  %v3134_v45 = vrot.slane %v3132_v10, 1 }
 0x345   : > { %v2575_v50 = vpop.f32.mrf.mxu0 }
 0x346   : > { %v2119_v6 = vpop.f32.mrf.mxu3  ;;  %v2644_v41 = vpop.f32.mrf.mxu1 }
 0x347   : > { %v2120_v0 = vadd.f32 %v2119_v6, %v2050_v61  ;;  %v2645_v19 = vadd.f32 %v2644_v41, %v2575_v50  ;;  %v9115_v61 = vld [vmem:[%s14268_s1 + $0x574] sm:$0xf0]  ;;  %v3130_v6 = vor.u32 %v3128_v28, %v3118_v16  ;;  %v8136_v50 = vld [vmem:[%s14268_s1 + $0x5f0] sm:$0xf]  ;;  %v3138_v41 = vor.u32 %v3136_v34, %v3126_v25 }
 0x348   : > { %v8073_v2 = vor.u32 %v9115_v61, %v8072_v37 }
 0x349   : > { %v11729_v53 = vadd.f32 %v2120_v0, %v14583_v42  ;;  %v11738_v58 = vadd.f32 %v2645_v19, %v14585_v5  ;;  %v9131_v0 = vld [vmem:[%s14268_s1 + $0x5f4] sm:$0xf0]  ;;  %v3142_v42 = vrot.slane %v3140_v55, 1  ;;  %v9065_v5 = vld [vmem:[%s9560_s26 + $0xbc] sm:$0xf0]  ;;  %v11749_v10 = vsel %vm453_vm0, %v3130_v6, %v3134_v45 }
 0x34a   : > { %3973 = vmatpush.bf16.msrb.mxu0 %v8073_v2  ;;  %v7840_v19 = vld [vmem:[%s9560_s26 + $0xb8] sm:$0xf]  ;;  %14587 = vst [vmem:[#allocation54_spill] sm:$0xff] %v11749_v10  ;;  %v9064_v55 = vld [vmem:[%s9560_s26 + $0xbc] sm:$0xf] }
 0x34b   : > { %14584 = vst [vmem:[#allocation22_spill] sm:$0xff] %v11729_v53  ;;  %v8137_v53 = vor.u32 %v9131_v0, %v8136_v50  ;;  %v2052_v62 = vpop.f32.mrf.mxu2  ;;  %v11754_v34 = vor.u32 %v9065_v5, %v7840_v19  ;;  %v7842_v50 = vld [vmem:[%s9560_s26 + $0xc0] sm:$0xf0] }
 0x34c   : > { %14586 = vst [vmem:[#allocation23_spill] sm:$0xff] %v11738_v58  ;;  %v11752_v58 = vsel %vm453_vm0, %v3138_v41, %v3142_v42  ;;  %v14589_v0 = vld [vmem:[#allocation26_spill] sm:$0xff]  ;;  %v11768_v41 = vor.u32 %v9064_v55, %v7842_v50  ;;  %v9129_v50 = vld [vmem:[%s14268_s1 + $0x5e4] sm:$0xf0] }
 0x34d   : > { %4042 = vmatpush.bf16.msrb.mxu1 %v8137_v53  ;;  %v3385_v28 = vpop.f32.mrf.mxu0  ;;  %14588 = vst [vmem:[#allocation55_spill] sm:$0xff] %v11752_v58  ;;  %v14592_v53 = vld [vmem:[#allocation28_spill] sm:$0xff]  ;;  %v3148_v5 = vshll.u32 %v11754_v34, 16 }
 0x34e   : > { %v2121_v16 = vpop.f32.mrf.mxu3  ;;  %v3454_v61 = vpop.f32.mrf.mxu1  ;;  %14595 = vst [vmem:[#allocation28_spill] sm:$0xff] %v11768_v41 }
 0x34f   : > { %v2122_v37 = vadd.f32 %v2121_v16, %v2052_v62  ;;  %v3455_v25 = vadd.f32 %v3454_v61, %v3385_v28  ;;  %v14594_v62 = vld [vmem:[#allocation24_spill] sm:$0xff]  ;;  %v8064_v16 = vld [vmem:[%s14268_s1 + $0x560] sm:$0xf] }
 0x350   : > { %2695 = vmatmul.bf16.gmra.mxu2 %v14591_v7  ;;  %3424 = vmatmul.bf16.gmra.mxu0 %v11749_v10  ;;  %v9113_v7 = vld [vmem:[%s14268_s1 + $0x564] sm:$0xf0]  ;;  %v8128_v28 = vld [vmem:[%s14268_s1 + $0x5e0] sm:$0xf] }
 0x351   : > { %v11759_v2 = vadd.f32 %v2122_v37, %v14589_v0  ;;  %v11764_v6 = vadd.f32 %v3455_v25, %v14592_v53  ;;  %3493 = vmatmul.bf16.gmra.mxu1 %v11752_v58  ;;  %v3144_v25 = vshrl.u32 %v11707_v59, 16  ;;  %v8065_v55 = vor.u32 %v9113_v7, %v8064_v16  ;;  %v8056_v16 = vld [vmem:[%s14268_s1 + $0x550] sm:$0xf]  ;;  %v9066_v59 = vld [vmem:[%s9560_s26 + $0xcc] sm:$0xf] }
 0x352   : > { %v3156_v58 = vshll.u32 %v11768_v41, 16  ;;  %v8120_v7 = vld [vmem:[%s14268_s1 + $0x5d0] sm:$0xf] }
 0x353   : > { %14590 = vst [vmem:[#allocation26_spill] sm:$0xff] %v11759_v2  ;;  %2764 = vmatmul.bf16.gmra.mxu3 %v14594_v62  ;;  %v2656_v19 = vpop.f32.mrf.mxu2  ;;  %v3152_v62 = vshrl.u32 %v11710_v49, 16  ;;  %v11786_v2 = vrot.slane %v3148_v5, 1  ;;  %3974 = vmatpush.bf16.msrb.mxu0 %v8065_v55 }
 0x354   : > { %14593 = vst [vmem:[#allocation25_spill] sm:$0xff] %v11764_v6  ;;  %v8129_v6 = vor.u32 %v9129_v50, %v8128_v28  ;;  %v14598_v28 = vld [vmem:[#allocation30_spill] sm:$0xff] }
 0x355   : > { %v3387_v61 = vpop.f32.mrf.mxu0  ;;  %v3154_v50 = vor.u32 %v3152_v62, %v3142_v42  ;;  %v9109_v42 = vld [vmem:[%s14268_s1 + $0x544] sm:$0xf0]  ;;  %v8112_v62 = vld [vmem:[%s14268_s1 + $0x5c0] sm:$0xf] }
 0x356   : > { %v2725_v37 = vpop.f32.mrf.mxu3  ;;  %v3456_v53 = vpop.f32.mrf.mxu1  ;;  %4043 = vmatpush.bf16.msrb.mxu1 %v8129_v6  ;;  %v7858_v6 = vld [vmem:[%s14268_s1 + $0x408] sm:$0xf0] }
 0x357   : > { %v2726_v0 = vadd.f32 %v2725_v37, %v2656_v19  ;;  %v3457_v10 = vadd.f32 %v3456_v53, %v3387_v61  ;;  %v9111_v19 = vld [vmem:[%s14268_s1 + $0x554] sm:$0xf0]  ;;  %v3146_v37 = vor.u32 %v3144_v25, %v3134_v45  ;;  %v9084_v61 = vld [vmem:[%s14268_s1 + $0x484] sm:$0xf]  ;;  %v7922_v45 = vld [vmem:[%s14268_s1 + $0x488] sm:$0xf0] }
 0x358   : > { %v8057_v55 = vor.u32 %v9111_v19, %v8056_v16 }
 0x359   : > { %v11789_v44 = vadd.f32 %v2726_v0, %v14596_v32  ;;  %v11801_v5 = vadd.f32 %v3457_v10, %v14598_v28  ;;  %v9068_v32 = vld [vmem:[%s14268_s1 + $0x404] sm:$0xf]  ;;  %v11812_v0 = vrot.slane %v3156_v58, 1  ;;  %v9127_v10 = vld [vmem:[%s14268_s1 + $0x5d4] sm:$0xf0]  ;;  %v7925_v28 = vor.u32 %v9084_v61, %v7922_v45 }
 0x35a   : > { %v7861_v53 = vor.u32 %v9068_v32, %v7858_v6  ;;  %3975 = vmatpush.bf16.msrb.mxu0 %v8057_v55  ;;  %v8048_v58 = vld [vmem:[%s14268_s1 + $0x540] sm:$0xf]  ;;  %v9125_v6 = vld [vmem:[%s14268_s1 + $0x5c4] sm:$0xf0] }
 0x35b   : > { %14597 = vst [vmem:[#allocation24_spill] sm:$0xff] %v11789_v44  ;;  %v2658_v25 = vpop.f32.mrf.mxu2  ;;  %3590 = vmatpush.bf16.msrb.mxu3 %v7925_v28  ;;  %v8049_v32 = vor.u32 %v9109_v42, %v8048_v58  ;;  %v7848_v45 = vld [vmem:[%s9560_s26 + $0xc8] sm:$0xf]  ;;  %v8113_v44 = vor.u32 %v9125_v6, %v8112_v62  ;;  %v8104_v28 = vld [vmem:[%s14268_s1 + $0x5b0] sm:$0xf] }
 0x35c   : > { %14599 = vst [vmem:[#allocation27_spill] sm:$0xff] %v11801_v5  ;;  %v8121_v5 = vor.u32 %v9127_v10, %v8120_v7  ;;  %3521 = vmatpush.bf16.msrb.mxu2 %v7861_v53  ;;  %v11831_v7 = vsel %vm453_vm0, %v3146_v37, %v11786_v2  ;;  %v11838_v53 = vsel %vm453_vm0, %v3154_v50, %v11812_v0  ;;  %v9067_v10 = vld [vmem:[%s9560_s26 + $0xcc] sm:$0xf0]  ;;  %v7850_v37 = vld [vmem:[%s9560_s26 + $0xd0] sm:$0xf0]  ;;  %v14603_v58 = vld [vmem:[#allocation3_spill] sm:$0xff] }
 0x35d   : > { %v3390_v19 = vpop.f32.mrf.mxu0  ;;  %14600 = vst [vmem:[#allocation30_spill] sm:$0xff] %v11831_v7  ;;  %v9107_v50 = vld [vmem:[%s14268_s1 + $0x534] sm:$0xf0] }
 0x35e   : > { %v2727_v16 = vpop.f32.mrf.mxu3  ;;  %4044 = vmatpush.bf16.msrb.mxu1 %v8121_v5  ;;  %v3459_v55 = vpop.f32.mrf.mxu1  ;;  %14601 = vst [vmem:[#allocation56_spill] sm:$0xff] %v11838_v53  ;;  %3976 = vmatpush.bf16.msrb.mxu0 %v8049_v32  ;;  %v9123_v62 = vld [vmem:[%s14268_s1 + $0x5b4] sm:$0xf0] }
 0x35f   : > { %v2728_v61 = vadd.f32 %v2727_v16, %v2658_v25  ;;  %v3460_v49 = vadd.f32 %v3459_v55, %v3390_v19  ;;  %v8040_v25 = vld [vmem:[%s14268_s1 + $0x530] sm:$0xf]  ;;  %v14605_v16 = vld [vmem:[#allocation29_spill] sm:$0xff]  ;;  %v11868_v19 = vor.u32 %v9066_v59, %v7850_v37  ;;  %v8105_v32 = vor.u32 %v9123_v62, %v8104_v28  ;;  %v8096_v55 = vld [vmem:[%s14268_s1 + $0x5a0] sm:$0xf] }
 0x360   : > { %2700 = vmatmul.bf16.gmra.mxu2 %v11230_v39  ;;  %3429 = vmatmul.bf16.gmra.mxu0 %v11831_v7  ;;  %v11862_v39 = vor.u32 %v9067_v10, %v7848_v45  ;;  %v3160_v59 = vshrl.u32 %v11754_v34, 16 }
 0x361   : > { %v11845_v5 = vadd.f32 %v2728_v61, %v11247_v38  ;;  %v11859_v42 = vadd.f32 %v3460_v49, %v14603_v58  ;;  %3498 = vmatmul.bf16.gmra.mxu1 %v11838_v53  ;;  %v8041_v38 = vor.u32 %v9107_v50, %v8040_v25  ;;  %14606 = vst [vmem:[#allocation29_spill] sm:$0xff] %v11868_v19  ;;  %v8032_v49 = vld [vmem:[%s14268_s1 + $0x520] sm:$0xf]  ;;  %v9105_v61 = vld [vmem:[%s14268_s1 + $0x524] sm:$0xf0]  ;;  %v3168_v58 = vshrl.u32 %v11768_v41, 16 }
 0x362   : > { %4045 = vmatpush.bf16.msrb.mxu1 %v8113_v44  ;;  %v3164_v44 = vshll.u32 %v11862_v39, 16  ;;  %v8033_v37 = vor.u32 %v9105_v61, %v8032_v49  ;;  %v9121_v25 = vld [vmem:[%s14268_s1 + $0x5a4] sm:$0xf0]  ;;  %v8024_v49 = vld [vmem:[%s14268_s1 + $0x510] sm:$0xf] }
 0x363   : > { %14602 = vst [vmem:[#allocation57_spill] sm:$0xff] %v11845_v5  ;;  %2769 = vmatmul.bf16.gmra.mxu3 %v14605_v16  ;;  %v2661_v6 = vpop.f32.mrf.mxu2  ;;  %3977 = vmatpush.bf16.msrb.mxu0 %v8041_v38  ;;  %v3172_v38 = vshll.u32 %v11868_v19, 16  ;;  %v8097_v62 = vor.u32 %v9121_v25, %v8096_v55  ;;  %v14607_v53 = vld [vmem:[#allocation7_spill] sm:$0xff]  ;;  %v8088_v61 = vld [vmem:[%s14268_s1 + $0x590] sm:$0xf]  ;;  %v3162_v55 = vor.u32 %v3160_v59, %v11786_v2 }
 0x364   : > { %14604 = vst [vmem:[#allocation3_spill] sm:$0xff] %v11859_v42  ;;  %v3170_v25 = vor.u32 %v3168_v58, %v11812_v0  ;;  %v9101_v2 = vld [vmem:[%s14268_s1 + $0x504] sm:$0xf0]  ;;  %v8080_v59 = vld [vmem:[%s14268_s1 + $0x580] sm:$0xf]  ;;  %v14613_v5 = vld [vmem:[#allocation32_spill] sm:$0xff] }
 0x365   : > { %v3392_v10 = vpop.f32.mrf.mxu0 }
 0x366   : > { %v2730_v45 = vpop.f32.mrf.mxu3  ;;  %v3461_v28 = vpop.f32.mrf.mxu1  ;;  %4046 = vmatpush.bf16.msrb.mxu1 %v8105_v32 }
 0x367   : > { %v2731_v50 = vadd.f32 %v2730_v45, %v2661_v6  ;;  %v3462_v16 = vadd.f32 %v3461_v28, %v3392_v10  ;;  %3978 = vmatpush.bf16.msrb.mxu0 %v8033_v37  ;;  %v9103_v6 = vld [vmem:[%s14268_s1 + $0x514] sm:$0xf0]  ;;  %v3166_v10 = vrot.slane %v3164_v44, 1 }
 0x368   : > { %v14609_v45 = vld [vmem:[#allocation13_spill] sm:$0xff] }
 0x369   : > { %v11887_v42 = vadd.f32 %v2731_v50, %v14607_v53  ;;  %v11899_v32 = vadd.f32 %v3462_v16, %v14609_v45  ;;  %v8025_v53 = vor.u32 %v9103_v6, %v8024_v49  ;;  %v9119_v37 = vld [vmem:[%s14268_s1 + $0x594] sm:$0xf0]  ;;  %v3174_v50 = vrot.slane %v3172_v38, 1  ;;  %v8016_v16 = vld [vmem:[%s14268_s1 + $0x500] sm:$0xf] }
 0x36a   : > { %v2857_v28 = vld [vmem:[%s9560_s26 + $0xd8] sm:$0x11]  ;;  %4047 = vmatpush.bf16.msrb.mxu1 %v8097_v62  ;;  %v11917_v58 = vsel %vm453_vm0, %v3162_v55, %v3166_v10  ;;  %v8017_v62 = vor.u32 %v9101_v2, %v8016_v16  ;;  %v9117_v49 = vld [vmem:[%s14268_s1 + $0x584] sm:$0xf0]  ;;  %v14615_v55 = vld [vmem:[#allocation14_spill] sm:$0xff] }
 0x36b   : > { %14608 = vst [vmem:[#allocation7_spill] sm:$0xff] %v11887_v42  ;;  %v8089_v42 = vor.u32 %v9119_v37, %v8088_v61  ;;  %v2663_v7 = vpop.f32.mrf.mxu2  ;;  %3979 = vmatpush.bf16.msrb.mxu0 %v8025_v53  ;;  %v2964_v38 = vunpack.c.l.b16 %v2857_v28  ;;  %v11923_v45 = vsel %vm453_vm0, %v3170_v25, %v3174_v50  ;;  %v2965_v53 = vunpack.c.h.b16 %v2857_v28  ;;  %v14616_v16 = vld [vmem:[#allocation4_spill] sm:$0xff]  ;;  %v14619_v25 = vld [vmem:[#allocation9_spill] sm:$0xff] }
 0x36c   : > { %14610 = vst [vmem:[#allocation13_spill] sm:$0xff] %v11899_v32  ;;  %v8081_v37 = vor.u32 %v9117_v49, %v8080_v59  ;;  %v8074_v28 = vld [vmem:[%s14268_s1 + $0x578] sm:$0xf0] }
 0x36d   : > { %v3395_v0 = vpop.f32.mrf.mxu0  ;;  %14611 = vst [vmem:[#allocation58_spill] sm:$0xff] %v11917_v58 }
 0x36e   : > { %v2732_v44 = vpop.f32.mrf.mxu3  ;;  %v3464_v61 = vpop.f32.mrf.mxu1  ;;  %14612 = vst [vmem:[#allocation59_spill] sm:$0xff] %v11923_v45  ;;  %4048 = vmatpush.bf16.msrb.mxu1 %v8089_v42  ;;  %v11937_v42 = vpack.c.b16 %v2965_v53, %v2965_v53 }
 0x36f   : > { %v2733_v6 = vadd.f32 %v2732_v44, %v2663_v7  ;;  %v3465_v32 = vadd.f32 %v3464_v61, %v3395_v0  ;;  %3980 = vmatpush.bf16.msrb.mxu0 %v8017_v62  ;;  %v11934_v7 = vpack.c.b16 %v2964_v38, %v2964_v38  ;;  %v8138_v0 = vld [vmem:[%s14268_s1 + $0x5f8] sm:$0xf0] }
 0x370   : > { %2705 = vmatmul.bf16.gmra.mxu2 %v14615_v55  ;;  %3434 = vmatmul.bf16.gmra.mxu0 %v11917_v58  ;;  %14620 = vst [vmem:[#allocation9_spill] sm:$0xff] %v11937_v42  ;;  %v3184_v55 = vshrl.u32 %v11868_v19, 16  ;;  %v3700_v19 = vld [vmem:[%s9560_s26 + $0x18] sm:$0xee] }
 0x371   : > { %v11926_v41 = vadd.f32 %v2733_v6, %v14613_v5  ;;  %v11931_v2 = vadd.f32 %v3465_v32, %v14616_v16  ;;  %3503 = vmatmul.bf16.gmra.mxu1 %v11923_v45  ;;  %14618 = vst [vmem:[#allocation4_spill] sm:$0xff] %v11934_v7  ;;  %v9114_v5 = vld [vmem:[%s14268_s1 + $0x574] sm:$0xf]  ;;  %v3176_v6 = vshrl.u32 %v11862_v39, 16  ;;  %v3180_v61 = vshll.u32 %v11934_v7, 16 }
 0x372   : > { %4049 = vmatpush.bf16.msrb.mxu1 %v8081_v37  ;;  %v9130_v32 = vld [vmem:[%s14268_s1 + $0x5f4] sm:$0xf]  ;;  %v8077_v44 = vor.u32 %v9114_v5, %v8074_v28  ;;  %v3188_v16 = vshll.u32 %v11937_v42, 16  ;;  %v14621_v5 = vld [vmem:[#allocation5_spill] sm:$0xff]  ;;  %v3186_v58 = vor.u32 %v3184_v55, %v3174_v50 }
 0x373   : > { %14614 = vst [vmem:[#allocation32_spill] sm:$0xff] %v11926_v41  ;;  %2774 = vmatmul.bf16.gmra.mxu3 %v14619_v25  ;;  %v2666_v59 = vpop.f32.mrf.mxu2  ;;  %v8141_v38 = vor.u32 %v9130_v32, %v8138_v0  ;;  %v14622_v32 = vld [vmem:[#allocation31_spill] sm:$0xff]  ;;  %v3178_v45 = vor.u32 %v3176_v6, %v3166_v10  ;;  %v3735_v10 = vunpack.c.l.b16 %v3700_v19 }
 0x374   : > { %14617 = vst [vmem:[#allocation14_spill] sm:$0xff] %v11931_v2  ;;  %4111 = vmatpush.bf16.msra.mxu2 %v8077_v44  ;;  %v3182_v2 = vrot.slane %v3180_v61, 1  ;;  %v3190_v7 = vrot.slane %v3188_v16, 1 }
 0x375   : > { %v3397_v49 = vpop.f32.mrf.mxu0  ;;  %4180 = vmatpush.bf16.msra.mxu3 %v8141_v38 }
 0x376   : > { %v2735_v62 = vpop.f32.mrf.mxu3  ;;  %v3466_v37 = vpop.f32.mrf.mxu1  ;;  %v11962_v41 = vsel %vm453_vm0, %v3178_v45, %v3182_v2  ;;  %v3736_v45 = vunpack.c.h.b16 %v3700_v19 }
 0x377   : > { %v2736_v53 = vadd.f32 %v2735_v62, %v2666_v59  ;;  %v3467_v25 = vadd.f32 %v3466_v37, %v3397_v49  ;;  %v11966_v49 = vsel %vm453_vm0, %v3186_v58, %v3190_v7  ;;  %v14623_v58 = vunpack.c.l.b16 %v11342_v13 }
 0x379   : > { %v11956_v28 = vadd.f32 %v2736_v53, %v14621_v5  ;;  %v11959_v0 = vadd.f32 %v3467_v25, %v14622_v32  ;;  %v3737_v7 = vpack.c.b16 %v14623_v58, %v3735_v10  ;;  %v3740_v5 = vrot.slane %v11373_v20, 1  ;;  %v9112_v32 = vld [vmem:[%s14268_s1 + $0x564] sm:$0xf]  ;;  %v8130_v20 = vld [vmem:[%s14268_s1 + $0x5e8] sm:$0xf0] }
 0x37b   : > { %v2668_v44 = vpop.f32.mrf.mxu2  ;;  %v3739_v25 = vrot.slane %v3737_v7, 1 }
 0x37d   : > { %v3400_v62 = vpop.f32.mrf.mxu0 }
 0x37e   : > { %v2737_v59 = vpop.f32.mrf.mxu3  ;;  %v3469_v38 = vpop.f32.mrf.mxu1 }
 0x37f   : > { %v2738_v42 = vadd.f32 %v2737_v59, %v2668_v44  ;;  %v3470_v53 = vadd.f32 %v3469_v38, %v3400_v62  ;;  %v8066_v44 = vld [vmem:[%s14268_s1 + $0x568] sm:$0xf0]  ;;  %v3743_v59 = vrot.slane %v11380_v18, 1 }
 0x380   : > { %2710 = vmatmul.bf16.gmra.mxu2 %v11356_v63  ;;  %3439 = vmatmul.bf16.gmra.mxu0 %v11962_v41  ;;  %v14624_v63 = vunpack.c.h.b16 %v11342_v13  ;;  %v9128_v13 = vld [vmem:[%s14268_s1 + $0x5e4] sm:$0xf]  ;;  %v8069_v62 = vor.u32 %v9112_v32, %v8066_v44 }
 0x381   : > { %v11969_v37 = vadd.f32 %v2738_v42, %v11369_v46  ;;  %v11974_v50 = vadd.f32 %v3470_v53, %v11376_v17  ;;  %3508 = vmatmul.bf16.gmra.mxu1 %v11966_v49  ;;  %v8133_v53 = vor.u32 %v9128_v13, %v8130_v20  ;;  %v14628_v13 = vld [vmem:[#allocation36_spill] sm:$0xff] }
 0x382   : > { %v3738_v55 = vpack.c.b16 %v14624_v63, %v3736_v45  ;;  %4112 = vmatpush.bf16.msra.mxu2 %v8069_v62  ;;  %v14627_v63 = vld [vmem:[#allocation34_spill] sm:$0xff]  ;;  %v3747_v62 = vrot.slane %v11424_v24, 1 }
 0x383   : > { %2779 = vmatmul.bf16.gmra.mxu3 %v11358_v26  ;;  %v2671_v2 = vpop.f32.mrf.mxu2  ;;  %v14625_v26 = vld [vmem:[#allocation33_spill] sm:$0xff] }
 0x384   : > { %4181 = vmatpush.bf16.msra.mxu3 %v8133_v53 }
 0x385   : > { %v3402_v46 = vpop.f32.mrf.mxu0 }
 0x386   : > { %v2740_v6 = vpop.f32.mrf.mxu3  ;;  %v3471_v61 = vpop.f32.mrf.mxu1 }
 0x387   : > { %v2741_v42 = vadd.f32 %v2740_v6, %v2671_v2  ;;  %v3472_v16 = vadd.f32 %v3471_v61, %v3402_v46  ;;  %v12003_v2 = vsel %vm1613_vm1, %v3739_v25, %v3740_v5 }
 0x389   : > { %v11983_v17 = vadd.f32 %v2741_v42, %v11385_v21  ;;  %v11987_v19 = vadd.f32 %v3472_v16, %v14625_v26  ;;  %v3742_v21 = vrot.slane %v3738_v55, 1  ;;  %v14626_v42 = vld [vmem:[#allocation35_spill] sm:$0xff] }
 0x38b   : > { %v2673_v38 = vpop.f32.mrf.mxu2  ;;  %v12006_v6 = vsel %vm1613_vm1, %v3742_v21, %v3743_v59  ;;  %v3745_v21 = vrot.slane %v11421_v15, 1  ;;  %v14631_v15 = vld [vmem:[#allocation11_spill] sm:$0xff] }
 0x38d   : > { %v3405_v45 = vpop.f32.mrf.mxu0 }
 0x38e   : > { %v2742_v10 = vpop.f32.mrf.mxu3  ;;  %v3474_v7 = vpop.f32.mrf.mxu1 }
 0x38f   : > { %v2743_v58 = vadd.f32 %v2742_v10, %v2673_v38  ;;  %v3475_v18 = vadd.f32 %v3474_v7, %v3405_v45  ;;  %v12027_v10 = vsel %vm1613_vm1, %v3740_v5, %v3745_v21  ;;  %v12030_v7 = vsel %vm1613_vm1, %v3743_v59, %v3747_v62  ;;  %v14632_v5 = vld [vmem:[#allocation38_spill] sm:$0xff]  ;;  %v9110_v59 = vld [vmem:[%s14268_s1 + $0x554] sm:$0xf] }
 0x390   : > { %3522 = vmatmul.bf16.vlgmr.msrb.gmra.mxu2 %v11403_v33  ;;  %3981 = vmatmul.bf16.vlgmr.msrb.gmra.mxu0 %v12003_v2 }
 0x391   : > { %v12009_v46 = vadd.f32 %v2743_v58, %v11413_v60  ;;  %v12014_v61 = vadd.f32 %v3475_v18, %v14626_v42  ;;  %4050 = vmatmul.bf16.vlgmr.msrb.gmra.mxu1 %v12006_v6  ;;  %v14629_v18 = vld [vmem:[#allocation39_spill] sm:$0xff] }
 0x393   : > { %3591 = vmatmul.bf16.vlgmr.msrb.gmra.mxu3 %v14627_v63  ;;  %v2676_v55 = vpop.f32.mrf.mxu2  ;;  %v14630_v63 = vld [vmem:[#allocation37_spill] sm:$0xff] }
 0x395   : > { %v3407_v25 = vpop.f32.mrf.mxu0 }
 0x396   : > { %v2745_v16 = vpop.f32.mrf.mxu3  ;;  %v3476_v32 = vpop.f32.mrf.mxu1 }
 0x397   : > { %v2746_v26 = vadd.f32 %v2745_v16, %v2676_v55  ;;  %v3477_v44 = vadd.f32 %v3476_v32, %v3407_v25  ;;  %v8058_v55 = vld [vmem:[%s14268_s1 + $0x558] sm:$0xf0]  ;;  %v9126_v16 = vld [vmem:[%s14268_s1 + $0x5d4] sm:$0xf] }
 0x398   : > { %v8122_v32 = vld [vmem:[%s14268_s1 + $0x5d8] sm:$0xf0] }
 0x399   : > { %v12019_v60 = vadd.f32 %v2746_v26, %v11431_v3  ;;  %v12022_v33 = vadd.f32 %v3477_v44, %v14628_v13  ;;  %v8061_v26 = vor.u32 %v9110_v59, %v8058_v55  ;;  %v8125_v44 = vor.u32 %v9126_v16, %v8122_v32 }
 0x39b   : > { %v2678_v20 = vpop.f32.mrf.mxu2  ;;  %4113 = vmatpush.bf16.msra.mxu2 %v8061_v26  ;;  %4182 = vmatpush.bf16.msra.mxu3 %v8125_v44 }
 0x39d   : > { %v3410_v53 = vpop.f32.mrf.mxu0 }
 0x39e   : > { %v2747_v38 = vpop.f32.mrf.mxu3  ;;  %v3479_v58 = vpop.f32.mrf.mxu1 }
 0x39f   : > { %v2748_v45 = vadd.f32 %v2747_v38, %v2678_v20  ;;  %v3480_v3 = vadd.f32 %v3479_v58, %v3410_v53 }
 0x3a0   : > { %3527 = vmatmul.bf16.gmra.mxu2 %v14630_v63  ;;  %3986 = vmatmul.bf16.gmra.mxu0 %v12027_v10  ;;  %v3749_v63 = vrot.slane %v11455_v43, 1 }
 0x3a1   : > { %v12033_v42 = vadd.f32 %v2748_v45, %v14629_v18  ;;  %v12038_v24 = vadd.f32 %v3480_v3, %v14631_v15  ;;  %4055 = vmatmul.bf16.gmra.mxu1 %v12030_v7  ;;  %v14633_v3 = vld [vmem:[#allocation10_spill] sm:$0xff]  ;;  %v3751_v15 = vrot.slane %v11458_v48, 1 }
 0x3a2   : > { %v12063_v16 = vsel %vm1613_vm1, %v3745_v21, %v3749_v63 }
 0x3a3   : > { %3596 = vmatmul.bf16.gmra.mxu3 %v14632_v5  ;;  %v2681_v25 = vpop.f32.mrf.mxu2  ;;  %v12066_v32 = vsel %vm1613_vm1, %v3747_v62, %v3751_v15 }
 0x3a5   : > { %v3412_v20 = vpop.f32.mrf.mxu0 }
 0x3a6   : > { %v2750_v13 = vpop.f32.mrf.mxu3  ;;  %v3481_v53 = vpop.f32.mrf.mxu1 }
 0x3a7   : > { %v2751_v38 = vadd.f32 %v2750_v13, %v2681_v25  ;;  %v3482_v45 = vadd.f32 %v3481_v53, %v3412_v20  ;;  %v14634_v53 = vld [vmem:[#allocation12_spill] sm:$0xff] }
 0x3a9   : > { %v12055_v58 = vadd.f32 %v2751_v38, %v11477_v23  ;;  %v12058_v18 = vadd.f32 %v3482_v45, %v14633_v3  ;;  %v14635_v45 = vld [vmem:[#allocation8_spill] sm:$0xff] }
 0x3ab   : > { %v2683_v5 = vpop.f32.mrf.mxu2 }
 0x3ad   : > { %v3415_v55 = vpop.f32.mrf.mxu0 }
 0x3ae   : > { %v2752_v59 = vpop.f32.mrf.mxu3  ;;  %v3484_v26 = vpop.f32.mrf.mxu1 }
 0x3af   : > { %v2753_v25 = vadd.f32 %v2752_v59, %v2683_v5  ;;  %v3485_v23 = vadd.f32 %v3484_v26, %v3415_v55  ;;  %v9124_v5 = vld [vmem:[%s14268_s1 + $0x5c4] sm:$0xf]  ;;  %v3755_v59 = vrot.slane %v11504_v12, 1 }
 0x3b0   : > { %3532 = vmatmul.bf16.gmra.mxu2 %v11483_v40  ;;  %3991 = vmatmul.bf16.gmra.mxu0 %v12063_v16  ;;  %v3753_v40 = vrot.slane %v11497_v4, 1  ;;  %v8114_v4 = vld [vmem:[%s14268_s1 + $0x5c8] sm:$0xf0] }
 0x3b1   : > { %v12069_v44 = vadd.f32 %v2753_v25, %v11493_v11  ;;  %v12074_v43 = vadd.f32 %v3485_v23, %v11500_v1  ;;  %4060 = vmatmul.bf16.gmra.mxu1 %v12066_v32  ;;  %v9108_v1 = vld [vmem:[%s14268_s1 + $0x544] sm:$0xf]  ;;  %v8117_v26 = vor.u32 %v9124_v5, %v8114_v4 }
 0x3b3   : > { %3601 = vmatmul.bf16.gmra.mxu3 %v11488_v57  ;;  %v2686_v48 = vpop.f32.mrf.mxu2  ;;  %v8050_v57 = vld [vmem:[%s14268_s1 + $0x548] sm:$0xf0] }
 0x3b4   : > { %v8053_v55 = vor.u32 %v9108_v1, %v8050_v57  ;;  %4183 = vmatpush.bf16.msra.mxu3 %v8117_v26  ;;  %v14640_v26 = vld [vmem:[#allocation6_spill] sm:$0xff] }
 0x3b5   : > { %v3417_v13 = vpop.f32.mrf.mxu0 }
 0x3b6   : > { %v2755_v21 = vpop.f32.mrf.mxu3  ;;  %v3486_v20 = vpop.f32.mrf.mxu1  ;;  %4114 = vmatpush.bf16.msra.mxu2 %v8053_v55 }
 0x3b7   : > { %v2756_v62 = vadd.f32 %v2755_v21, %v2686_v48  ;;  %v3487_v38 = vadd.f32 %v3486_v20, %v3417_v13  ;;  %v12099_v21 = vsel %vm1613_vm1, %v3749_v63, %v3753_v40  ;;  %v12102_v20 = vsel %vm1613_vm1, %v3751_v15, %v3755_v59  ;;  %v14639_v63 = vld [vmem:[#allocation41_spill] sm:$0xff] }
 0x3b8   : > { %14636 = vst [vmem:[#allocation5_spill] sm:$0xff] %v12102_v20 }
 0x3b9   : > { %v12079_v11 = vadd.f32 %v2756_v62, %v14634_v53  ;;  %v12083_v3 = vadd.f32 %v3487_v38, %v14635_v45  ;;  %v14637_v53 = vld [vmem:[#allocation40_spill] sm:$0xff]  ;;  %v14638_v45 = vld [vmem:[#allocation42_spill] sm:$0xff] }
 0x3bb   : > { %v2688_v25 = vpop.f32.mrf.mxu2 }
 0x3bd   : > { %v3420_v48 = vpop.f32.mrf.mxu0 }
 0x3be   : > { %v2757_v23 = vpop.f32.mrf.mxu3  ;;  %v3489_v62 = vpop.f32.mrf.mxu1 }
 0x3bf   : > { %v2758_v13 = vadd.f32 %v2757_v23, %v2688_v25  ;;  %v3490_v12 = vadd.f32 %v3489_v62, %v3420_v48  ;;  %v3757_v48 = vrot.slane %v11547_v9, 1  ;;  %v14647_v9 = vld [vmem:[#allocation15_spill] sm:$0xff] }
 0x3c0   : > { %3537 = vmatmul.bf16.gmra.mxu2 %v14637_v53  ;;  %3996 = vmatmul.bf16.gmra.mxu0 %v12099_v21 }
 0x3c1   : > { %v12105_v38 = vadd.f32 %v2758_v13, %v11539_v31  ;;  %v12110_v1 = vadd.f32 %v3490_v12, %v14638_v45  ;;  %4065 = vmatmul.bf16.gmra.mxu1 %v12102_v20  ;;  %v14641_v13 = vld [vmem:[#allocation43_spill] sm:$0xff] }
 0x3c2   : > { %v3759_v62 = vrot.slane %v14641_v13, 1 }
 0x3c3   : > { %3606 = vmatmul.bf16.gmra.mxu3 %v14639_v63  ;;  %v2691_v57 = vpop.f32.mrf.mxu2  ;;  %v12123_v63 = vsel %vm1613_vm1, %v3753_v40, %v3757_v48  ;;  %v14649_v40 = vld [vmem:[#allocation45_spill] sm:$0xff] }
 0x3c4   : > { %14642 = vst [vmem:[#allocation31_spill] sm:$0xff] %v12123_v63 }
 0x3c5   : > { %v3422_v55 = vpop.f32.mrf.mxu0 }
 0x3c6   : > { %v2760_v5 = vpop.f32.mrf.mxu3  ;;  %v3491_v4 = vpop.f32.mrf.mxu1 }
 0x3c7   : > { %v2761_v15 = vadd.f32 %v2760_v5, %v2691_v57  ;;  %v3492_v25 = vadd.f32 %v3491_v4, %v3422_v55  ;;  %v12126_v5 = vsel %vm1613_vm1, %v3755_v59, %v3759_v62  ;;  %v14644_v55 = vld [vmem:[#allocation16_spill] sm:$0xff] }
 0x3c8   : > { %14643 = vst [vmem:[#allocation33_spill] sm:$0xff] %v12126_v5  ;;  %v14646_v4 = vld [vmem:[#allocation44_spill] sm:$0xff] }
 0x3c9   : > { %v12115_v31 = vadd.f32 %v2761_v15, %v11557_v22  ;;  %v12118_v23 = vadd.f32 %v3492_v25, %v14640_v26  ;;  %v9106_v59 = vld [vmem:[%s14268_s1 + $0x534] sm:$0xf] }
 0x3ca   : > { %v9122_v26 = vld [vmem:[%s14268_s1 + $0x5b4] sm:$0xf] }
 0x3cb   : > { %v2693_v12 = vpop.f32.mrf.mxu2 }
 0x3cd   : > { %v3425_v45 = vpop.f32.mrf.mxu0 }
 0x3ce   : > { %v2762_v53 = vpop.f32.mrf.mxu3  ;;  %v3494_v57 = vpop.f32.mrf.mxu1 }
 0x3cf   : > { %v2763_v20 = vadd.f32 %v2762_v53, %v2693_v12  ;;  %v3495_v22 = vadd.f32 %v3494_v57, %v3425_v45  ;;  %v8106_v53 = vld [vmem:[%s14268_s1 + $0x5b8] sm:$0xf0] }
 0x3d0   : > { %3542 = vmatmul.bf16.gmra.mxu2 %v14646_v4  ;;  %4001 = vmatmul.bf16.gmra.mxu0 %v12123_v63  ;;  %v8109_v45 = vor.u32 %v9122_v26, %v8106_v53 }
 0x3d1   : > { %v12129_v15 = vadd.f32 %v2763_v20, %v14644_v55  ;;  %v12134_v25 = vadd.f32 %v3495_v22, %v14647_v9  ;;  %4070 = vmatmul.bf16.gmra.mxu1 %v12126_v5  ;;  %v8042_v20 = vld [vmem:[%s14268_s1 + $0x538] sm:$0xf0] }
 0x3d2   : > { %v8045_v12 = vor.u32 %v9106_v59, %v8042_v20  ;;  %4184 = vmatpush.bf16.msra.mxu3 %v8109_v45  ;;  %v14650_v5 = vld [vmem:[#allocation17_spill] sm:$0xff]  ;;  %v3761_v59 = vrot.slane %v11581_v29, 1  ;;  %v3763_v20 = vrot.slane %v11584_v47, 1 }
 0x3d3   : > { %14645 = vst [vmem:[#allocation35_spill] sm:$0xff] %v12129_v15  ;;  %3611 = vmatmul.bf16.gmra.mxu3 %v14649_v40  ;;  %v2696_v13 = vpop.f32.mrf.mxu2 }
 0x3d4   : > { %14648 = vst [vmem:[#allocation34_spill] sm:$0xff] %v12134_v25  ;;  %4115 = vmatpush.bf16.msra.mxu2 %v8045_v12  ;;  %v12159_v53 = vsel %vm1613_vm1, %v3757_v48, %v3761_v59  ;;  %v12162_v45 = vsel %vm1613_vm1, %v3759_v62, %v3763_v20 }
 0x3d5   : > { %v3427_v22 = vpop.f32.mrf.mxu0 }
 0x3d6   : > { %v2765_v57 = vpop.f32.mrf.mxu3  ;;  %v3496_v4 = vpop.f32.mrf.mxu1 }
 0x3d7   : > { %v2766_v55 = vadd.f32 %v2765_v57, %v2696_v13  ;;  %v3497_v9 = vadd.f32 %v3496_v4, %v3427_v22  ;;  %v14651_v22 = vld [vmem:[#allocation2_spill] sm:$0xff] }
 0x3d9   : > { %v12151_v40 = vadd.f32 %v2766_v55, %v11603_v51  ;;  %v12154_v25 = vadd.f32 %v3497_v9, %v14650_v5  ;;  %v14652_v55 = vld [vmem:[#allocation19_spill] sm:$0xff]  ;;  %v9120_v9 = vld [vmem:[%s14268_s1 + $0x5a4] sm:$0xf] }
 0x3db   : > { %v2698_v63 = vpop.f32.mrf.mxu2 }
 0x3dd   : > { %v3430_v26 = vpop.f32.mrf.mxu0 }
 0x3de   : > { %v2767_v15 = vpop.f32.mrf.mxu3  ;;  %v3499_v12 = vpop.f32.mrf.mxu1 }
 0x3df   : > { %v2768_v13 = vadd.f32 %v2767_v15, %v2698_v63  ;;  %v3500_v51 = vadd.f32 %v3499_v12, %v3430_v26  ;;  %v3767_v26 = vrot.slane %v11630_v14, 1 }
 0x3e0   : > { %3547 = vmatmul.bf16.gmra.mxu2 %v11609_v35  ;;  %4006 = vmatmul.bf16.gmra.mxu0 %v12159_v53  ;;  %v3765_v35 = vrot.slane %v11623_v54, 1  ;;  %v8098_v54 = vld [vmem:[%s14268_s1 + $0x5a8] sm:$0xf0] }
 0x3e1   : > { %v12165_v57 = vadd.f32 %v2768_v13, %v11619_v27  ;;  %v12170_v29 = vadd.f32 %v3500_v51, %v11626_v52  ;;  %4075 = vmatmul.bf16.gmra.mxu1 %v12162_v45  ;;  %v9104_v52 = vld [vmem:[%s14268_s1 + $0x524] sm:$0xf]  ;;  %v8101_v51 = vor.u32 %v9120_v9, %v8098_v54 }
 0x3e3   : > { %3616 = vmatmul.bf16.gmra.mxu3 %v11614_v36  ;;  %v2701_v47 = vpop.f32.mrf.mxu2  ;;  %v8034_v36 = vld [vmem:[%s14268_s1 + $0x528] sm:$0xf0] }
 0x3e4   : > { %v8037_v13 = vor.u32 %v9104_v52, %v8034_v36  ;;  %4185 = vmatpush.bf16.msra.mxu3 %v8101_v51  ;;  %v14659_v51 = vld [vmem:[#allocation50_spill] sm:$0xff] }
 0x3e5   : > { %v3432_v63 = vpop.f32.mrf.mxu0 }
 0x3e6   : > { %v2770_v48 = vpop.f32.mrf.mxu3  ;;  %v3501_v5 = vpop.f32.mrf.mxu1  ;;  %4116 = vmatpush.bf16.msra.mxu2 %v8037_v13 }
 0x3e7   : > { %v2771_v62 = vadd.f32 %v2770_v48, %v2701_v47  ;;  %v3502_v15 = vadd.f32 %v3501_v5, %v3432_v63  ;;  %v12195_v63 = vsel %vm1613_vm1, %v3761_v59, %v3765_v35  ;;  %v14657_v59 = vld [vmem:[#allocation46_spill] sm:$0xff] }
 0x3e8   : > { %14653 = vst [vmem:[#allocation36_spill] sm:$0xff] %v12195_v63 }
 0x3e9   : > { %v12175_v27 = vadd.f32 %v2771_v62, %v14651_v22  ;;  %v12179_v4 = vadd.f32 %v3502_v15, %v14652_v55  ;;  %v12198_v15 = vsel %vm1613_vm1, %v3763_v20, %v3767_v26  ;;  %v14655_v55 = vld [vmem:[#allocation47_spill] sm:$0xff] }
 0x3ea   : > { %14654 = vst [vmem:[#allocation39_spill] sm:$0xff] %v12198_v15 }
 0x3eb   : > { %v2703_v12 = vpop.f32.mrf.mxu2 }
 0x3ed   : > { %v3435_v48 = vpop.f32.mrf.mxu0 }
 0x3ee   : > { %v2772_v47 = vpop.f32.mrf.mxu3  ;;  %v3504_v5 = vpop.f32.mrf.mxu1 }
 0x3ef   : > { %v2773_v62 = vadd.f32 %v2772_v47, %v2703_v12  ;;  %v3505_v14 = vadd.f32 %v3504_v5, %v3435_v48  ;;  %v14661_v47 = vld [vmem:[#allocation48_spill] sm:$0xff] }
 0x3f0   : > { %3552 = vmatmul.bf16.gmra.mxu2 %v11655_v8  ;;  %4011 = vmatmul.bf16.gmra.mxu0 %v12195_v63  ;;  %v3769_v48 = vrot.slane %v14661_v47, 1 }
 0x3f1   : > { %v12201_v22 = vadd.f32 %v2773_v62, %v11665_v30  ;;  %v12206_v52 = vadd.f32 %v3505_v14, %v14655_v55  ;;  %4080 = vmatmul.bf16.gmra.mxu1 %v12198_v15  ;;  %v14662_v62 = vld [vmem:[#allocation49_spill] sm:$0xff] }
 0x3f2   : > { %v3771_v5 = vrot.slane %v14662_v62, 1 }
 0x3f3   : > { %14656 = vst [vmem:[#allocation37_spill] sm:$0xff] %v12206_v52  ;;  %3621 = vmatmul.bf16.gmra.mxu3 %v14657_v59  ;;  %v2706_v36 = vpop.f32.mrf.mxu2  ;;  %v12219_v59 = vsel %vm1613_vm1, %v3765_v35, %v3769_v48  ;;  %v14670_v35 = vld [vmem:[#allocation52_spill] sm:$0xff] }
 0x3f4   : > { %14663 = vst [vmem:[#allocation10_spill] sm:$0xff] %v12219_v59 }
 0x3f5   : > { %v3437_v13 = vpop.f32.mrf.mxu0 }
 0x3f6   : > { %v2775_v9 = vpop.f32.mrf.mxu3  ;;  %v3506_v54 = vpop.f32.mrf.mxu1 }
 0x3f7   : > { %v2776_v20 = vadd.f32 %v2775_v9, %v2706_v36  ;;  %v3507_v12 = vadd.f32 %v3506_v54, %v3437_v13  ;;  %v12222_v9 = vsel %vm1613_vm1, %v3767_v26, %v3771_v5  ;;  %v14665_v13 = vld [vmem:[#allocation53_spill] sm:$0xff]  ;;  %v14667_v54 = vld [vmem:[#allocation51_spill] sm:$0xff]  ;;  %v9102_v26 = vld [vmem:[%s14268_s1 + $0x514] sm:$0xf] }
 0x3f8   : > { %14664 = vst [vmem:[#allocation12_spill] sm:$0xff] %v12222_v9 }
 0x3f9   : > { %v12211_v30 = vadd.f32 %v2776_v20, %v11683_v56  ;;  %v12214_v8 = vadd.f32 %v3507_v12, %v14659_v51  ;;  %v14668_v12 = vld [vmem:[#allocation18_spill] sm:$0xff] }
 0x3fb   : > { %14658 = vst [vmem:[#allocation11_spill] sm:$0xff] %v12211_v30  ;;  %v2708_v14 = vpop.f32.mrf.mxu2 }
 0x3fc   : > { %14660 = vst [vmem:[#allocation38_spill] sm:$0xff] %v12214_v8 }
 0x3fd   : > { %v3440_v15 = vpop.f32.mrf.mxu0 }
 0x3fe   : > { %v2777_v55 = vpop.f32.mrf.mxu3  ;;  %v3509_v36 = vpop.f32.mrf.mxu1 }
 0x3ff   : > { %v2778_v52 = vadd.f32 %v2777_v55, %v2708_v14  ;;  %v3510_v56 = vadd.f32 %v3509_v36, %v3440_v15  ;;  %v8026_v15 = vld [vmem:[%s14268_s1 + $0x518] sm:$0xf0] }
 0x400   : > { %3557 = vmatmul.bf16.gmra.mxu2 %v14667_v54  ;;  %4016 = vmatmul.bf16.gmra.mxu0 %v12219_v59  ;;  %v8029_v62 = vor.u32 %v9102_v26, %v8026_v15  ;;  %v8090_v14 = vld [vmem:[%s14268_s1 + $0x598] sm:$0xf0]  ;;  %v9171_v26 = vld [vmem:[%s14268_s1 + $0x674] sm:$0xf0]  ;;  %v14673_v15 = vld [vmem:[#allocation23_spill] sm:$0xff] }
 0x401   : > { %v12225_v20 = vadd.f32 %v2778_v52, %v14665_v13  ;;  %v12230_v51 = vadd.f32 %v3510_v56, %v14668_v12  ;;  %4085 = vmatmul.bf16.gmra.mxu1 %v12222_v9  ;;  %v9118_v52 = vld [vmem:[%s14268_s1 + $0x594] sm:$0xf]  ;;  %v14679_v59 = vld [vmem:[#allocation26_spill] sm:$0xff] }
 0x402   : > { %v8093_v55 = vor.u32 %v9118_v52, %v8090_v14  ;;  %4117 = vmatpush.bf16.msra.mxu2 %v8029_v62  ;;  %v14675_v14 = vld [vmem:[#allocation20_spill] sm:$0xff] }
 0x403   : > { %14666 = vst [vmem:[#allocation8_spill] sm:$0xff] %v12225_v20  ;;  %3626 = vmatmul.bf16.gmra.mxu3 %v14670_v35  ;;  %v2711_v47 = vpop.f32.mrf.mxu2  ;;  %v14671_v35 = vld [vmem:[#allocation22_spill] sm:$0xff]  ;;  %v3773_v62 = vrot.slane %v14675_v14, 1 }
 0x404   : > { %14669 = vst [vmem:[#allocation40_spill] sm:$0xff] %v12230_v51  ;;  %4186 = vmatpush.bf16.msra.mxu3 %v8093_v55  ;;  %v8328_v51 = vld [vmem:[%s14268_s1 + $0x670] sm:$0xf] }
 0x405   : > { %v3442_v56 = vpop.f32.mrf.mxu0  ;;  %v8392_v55 = vld [vmem:[%s14268_s1 + $0x6f0] sm:$0xf] }
 0x406   : > { %v2780_v36 = vpop.f32.mrf.mxu3  ;;  %v3511_v54 = vpop.f32.mrf.mxu1 }
 0x407   : > { %v2781_v13 = vadd.f32 %v2780_v36, %v2711_v47  ;;  %v3512_v12 = vadd.f32 %v3511_v54, %v3442_v56  ;;  %v8329_v47 = vor.u32 %v9171_v26, %v8328_v51  ;;  %v9187_v36 = vld [vmem:[%s14268_s1 + $0x6f4] sm:$0xf0] }
 0x408   : > { %v14676_v56 = vld [vmem:[#allocation21_spill] sm:$0xff]  ;;  %v8393_v54 = vor.u32 %v9187_v36, %v8392_v55  ;;  %v14681_v55 = vld [vmem:[#allocation54_spill] sm:$0xff] }
 0x409   : > { %v12247_v9 = vadd.f32 %v2781_v13, %v14671_v35  ;;  %v12256_v52 = vadd.f32 %v3512_v12, %v14673_v15  ;;  %v14349_v13 = vrot.slane %v14676_v56, 1  ;;  %4634 = vmatpush.bf16.msra.mxu0 %v8329_v47  ;;  %v12267_v15 = vsel %vm1613_vm1, %v3769_v48, %v3773_v62  ;;  %v14682_v47 = vld [vmem:[#allocation25_spill] sm:$0xff]  ;;  %v14684_v48 = vld [vmem:[#allocation55_spill] sm:$0xff] }
 0x40a   : > { %4703 = vmatpush.bf16.msra.mxu1 %v8393_v54  ;;  %14677 = vst [vmem:[#allocation6_spill] sm:$0xff] %v12267_v15  ;;  %v8384_v54 = vld [vmem:[%s14268_s1 + $0x6e0] sm:$0xf] }
 0x40b   : > { %14672 = vst [vmem:[#allocation42_spill] sm:$0xff] %v12247_v9  ;;  %v2713_v35 = vpop.f32.mrf.mxu2  ;;  %v12272_v14 = vsel %vm1613_vm1, %v3771_v5, %v14349_v13  ;;  %v8320_v5 = vld [vmem:[%s14268_s1 + $0x660] sm:$0xf] }
 0x40c   : > { %14674 = vst [vmem:[#allocation41_spill] sm:$0xff] %v12256_v52 }
 0x40d   : > { %v3982_v12 = vpop.f32.mrf.mxu0  ;;  %14678 = vst [vmem:[#allocation43_spill] sm:$0xff] %v12272_v14 }
 0x40e   : > { %v2782_v9 = vpop.f32.mrf.mxu3  ;;  %v4051_v26 = vpop.f32.mrf.mxu1 }
 0x40f   : > { %v2783_v51 = vadd.f32 %v2782_v9, %v2713_v35  ;;  %v4052_v52 = vadd.f32 %v4051_v26, %v3982_v12 }
 0x410   : > { %3562 = vmatmul.bf16.gmra.mxu2 %v14681_v55  ;;  %4021 = vmatmul.bf16.gmra.mxu0 %v12267_v15  ;;  %v8312_v15 = vld [vmem:[%s14268_s1 + $0x650] sm:$0xf] }
 0x411   : > { %v12275_v20 = vadd.f32 %v2783_v51, %v14679_v59  ;;  %v12280_v36 = vadd.f32 %v4052_v52, %v14682_v47  ;;  %4090 = vmatmul.bf16.gmra.mxu1 %v12272_v14  ;;  %v9169_v59 = vld [vmem:[%s14268_s1 + $0x664] sm:$0xf0]  ;;  %v14685_v14 = vld [vmem:[#allocation24_spill] sm:$0xff] }
 0x412   : > { %v8321_v12 = vor.u32 %v9169_v59, %v8320_v5  ;;  %v9185_v51 = vld [vmem:[%s14268_s1 + $0x6e4] sm:$0xf0]  ;;  %v9167_v5 = vld [vmem:[%s14268_s1 + $0x654] sm:$0xf0] }
 0x413   : > { %14680 = vst [vmem:[#allocation16_spill] sm:$0xff] %v12275_v20  ;;  %3631 = vmatmul.bf16.gmra.mxu3 %v14684_v48  ;;  %v3523_v9 = vpop.f32.mrf.mxu2  ;;  %v8385_v47 = vor.u32 %v9185_v51, %v8384_v54  ;;  %v14687_v59 = vld [vmem:[#allocation27_spill] sm:$0xff]  ;;  %v14689_v51 = vld [vmem:[#allocation28_spill] sm:$0xff]  ;;  %v14692_v20 = vrot.slane %v14676_v56, 1  ;;  %v9163_v56 = vld [vmem:[%s14268_s1 + $0x634] sm:$0xf0] }
 0x414   : > { %14683 = vst [vmem:[#allocation44_spill] sm:$0xff] %v12280_v36  ;;  %4635 = vmatpush.bf16.msra.mxu0 %v8321_v12  ;;  %v8313_v12 = vor.u32 %v9167_v5, %v8312_v15  ;;  %v8304_v15 = vld [vmem:[%s14268_s1 + $0x640] sm:$0xf]  ;;  %v9165_v5 = vld [vmem:[%s14268_s1 + $0x644] sm:$0xf0] }
 0x415   : > { %v3984_v52 = vpop.f32.mrf.mxu0  ;;  %4704 = vmatpush.bf16.msra.mxu1 %v8385_v47  ;;  %v8082_v47 = vld [vmem:[%s14268_s1 + $0x588] sm:$0xf0] }
 0x416   : > { %v3592_v35 = vpop.f32.mrf.mxu3  ;;  %v4053_v55 = vpop.f32.mrf.mxu1 }
 0x417   : > { %v3593_v26 = vadd.f32 %v3592_v35, %v3523_v9  ;;  %v4054_v48 = vadd.f32 %v4053_v55, %v3984_v52  ;;  %v8376_v9 = vld [vmem:[%s14268_s1 + $0x6d0] sm:$0xf]  ;;  %v8018_v35 = vld [vmem:[%s14268_s1 + $0x508] sm:$0xf0]  ;;  %v9116_v52 = vld [vmem:[%s14268_s1 + $0x584] sm:$0xf] }
 0x418   : > { %v8085_v13 = vor.u32 %v9116_v52, %v8082_v47  ;;  %4636 = vmatpush.bf16.msra.mxu0 %v8313_v12  ;;  %v9181_v12 = vld [vmem:[%s14268_s1 + $0x6c4] sm:$0xf0] }
 0x419   : > { %v12298_v36 = vadd.f32 %v3593_v26, %v14685_v14  ;;  %v12310_v54 = vadd.f32 %v4054_v48, %v14687_v59  ;;  %v9100_v14 = vld [vmem:[%s14268_s1 + $0x504] sm:$0xf]  ;;  %v9183_v48 = vld [vmem:[%s14268_s1 + $0x6d4] sm:$0xf0] }
 0x41a   : > { %v8021_v55 = vor.u32 %v9100_v14, %v8018_v35  ;;  %v8368_v14 = vld [vmem:[%s14268_s1 + $0x6c0] sm:$0xf]  ;;  %4187 = vmatpush.bf16.msra.mxu3 %v8085_v13 }
 0x41b   : > { %14686 = vst [vmem:[#allocation15_spill] sm:$0xff] %v12298_v36  ;;  %v3525_v59 = vpop.f32.mrf.mxu2  ;;  %v14690_v36 = vrot.slane %v11754_v34, 1  ;;  %v8369_v30 = vor.u32 %v9181_v12, %v8368_v14  ;;  %v14698_v14 = vld [vmem:[#allocation56_spill] sm:$0xff]  ;;  %v8288_v12 = vld [vmem:[%s14268_s1 + $0x620] sm:$0xf] }
 0x41c   : > { %14688 = vst [vmem:[#allocation45_spill] sm:$0xff] %v12310_v54  ;;  %v8377_v54 = vor.u32 %v9183_v48, %v8376_v9  ;;  %4118 = vmatpush.bf16.msra.mxu2 %v8021_v55  ;;  %v8305_v9 = vor.u32 %v9165_v5, %v8304_v15  ;;  %v14691_v48 = vrot.slane %v14689_v51, 1  ;;  %v9179_v5 = vld [vmem:[%s14268_s1 + $0x6b4] sm:$0xf0] }
 0x41d   : > { %v3987_v26 = vpop.f32.mrf.mxu0  ;;  %v12340_v52 = vsel %vm1613_vm1, %v3773_v62, %v14690_v36  ;;  %v14694_v62 = vld [vmem:[#allocation57_spill] sm:$0xff]  ;;  %v14695_v36 = vld [vmem:[#allocation30_spill] sm:$0xff] }
 0x41e   : > { %v3594_v35 = vpop.f32.mrf.mxu3  ;;  %4705 = vmatpush.bf16.msra.mxu1 %v8377_v54  ;;  %v4056_v47 = vpop.f32.mrf.mxu1  ;;  %v12350_v8 = vsel %vm1613_vm1, %v14692_v20, %v14691_v48  ;;  %4637 = vmatpush.bf16.msra.mxu0 %v8305_v9  ;;  %v8296_v54 = vld [vmem:[%s14268_s1 + $0x630] sm:$0xf] }
 0x41f   : > { %v3595_v55 = vadd.f32 %v3594_v35, %v3525_v59  ;;  %14693 = vst [vmem:[#allocation17_spill] sm:$0xff] %v12350_v8  ;;  %v4057_v63 = vadd.f32 %v4056_v47, %v3987_v26  ;;  %v8360_v20 = vld [vmem:[%s14268_s1 + $0x6b0] sm:$0xf]  ;;  %v14696_v26 = vld [vmem:[#allocation3_spill] sm:$0xff]  ;;  %v8297_v15 = vor.u32 %v9163_v56, %v8296_v54 }
 0x420   : > { %3567 = vmatmul.bf16.gmra.mxu2 %v14695_v36  ;;  %4026 = vmatmul.bf16.gmra.mxu0 %v12340_v52  ;;  %v8361_v35 = vor.u32 %v9179_v5, %v8360_v20  ;;  %v8280_v5 = vld [vmem:[%s14268_s1 + $0x610] sm:$0xf] }
 0x421   : > { %v12353_v13 = vadd.f32 %v3595_v55, %v14694_v62  ;;  %v12367_v59 = vadd.f32 %v4057_v63, %v14696_v26  ;;  %4095 = vmatmul.bf16.gmra.mxu1 %v12350_v8  ;;  %v9161_v63 = vld [vmem:[%s14268_s1 + $0x624] sm:$0xf0]  ;;  %v8352_v55 = vld [vmem:[%s14268_s1 + $0x6a0] sm:$0xf] }
 0x422   : > { %4706 = vmatpush.bf16.msra.mxu1 %v8369_v30  ;;  %4638 = vmatpush.bf16.msra.mxu0 %v8297_v15  ;;  %v8289_v62 = vor.u32 %v9161_v63, %v8288_v12  ;;  %v9177_v30 = vld [vmem:[%s14268_s1 + $0x6a4] sm:$0xf0]  ;;  %v14701_v12 = vld [vmem:[#allocation13_spill] sm:$0xff]  ;;  %v3781_v63 = vrot.slane %v11862_v39, 1  ;;  %v8336_v39 = vld [vmem:[%s14268_s1 + $0x680] sm:$0xf] }
 0x423   : > { %14697 = vst [vmem:[#allocation2_spill] sm:$0xff] %v12367_v59  ;;  %3636 = vmatmul.bf16.gmra.mxu3 %v14698_v14  ;;  %v3528_v9 = vpop.f32.mrf.mxu2  ;;  %v8353_v56 = vor.u32 %v9177_v30, %v8352_v55  ;;  %v14699_v26 = vld [vmem:[#allocation7_spill] sm:$0xff]  ;;  %v9159_v14 = vld [vmem:[%s14268_s1 + $0x614] sm:$0xf0] }
 0x424   : > { %v8281_v55 = vor.u32 %v9159_v14, %v8280_v5  ;;  %v14704_v14 = vrot.slane %v11754_v34, 1  ;;  %v14707_v34 = vld [vmem:[#allocation32_spill] sm:$0xff] }
 0x425   : > { %v3989_v48 = vpop.f32.mrf.mxu0 }
 0x426   : > { %v3597_v47 = vpop.f32.mrf.mxu3  ;;  %v4058_v54 = vpop.f32.mrf.mxu1  ;;  %4707 = vmatpush.bf16.msra.mxu1 %v8361_v35  ;;  %4639 = vmatpush.bf16.msra.mxu0 %v8289_v62 }
 0x427   : > { %v3598_v36 = vadd.f32 %v3597_v47, %v3528_v9  ;;  %v4059_v20 = vadd.f32 %v4058_v54, %v3989_v48  ;;  %v8344_v9 = vld [vmem:[%s14268_s1 + $0x690] sm:$0xf]  ;;  %v9175_v47 = vld [vmem:[%s14268_s1 + $0x694] sm:$0xf0]  ;;  %v8272_v54 = vld [vmem:[%s14268_s1 + $0x600] sm:$0xf] }
 0x428   : > { %v14703_v48 = vld [vmem:[#allocation29_spill] sm:$0xff]  ;;  %v8345_v30 = vor.u32 %v9175_v47, %v8344_v9 }
 0x429   : > { %v12387_v15 = vadd.f32 %v3598_v36, %v14699_v26  ;;  %v12399_v35 = vadd.f32 %v4059_v20, %v14701_v12  ;;  %v3783_v62 = vrot.slane %v14703_v48, 1  ;;  %v9157_v20 = vld [vmem:[%s14268_s1 + $0x604] sm:$0xf0]  ;;  %v14705_v48 = vrot.slane %v14689_v51, 1 }
 0x42a   : > { %4708 = vmatpush.bf16.msra.mxu1 %v8353_v56  ;;  %4640 = vmatpush.bf16.msra.mxu0 %v8281_v55  ;;  %v12418_v56 = vsel %vm1613_vm1, %v14704_v14, %v3781_v63  ;;  %v8273_v9 = vor.u32 %v9157_v20, %v8272_v54  ;;  %v9173_v12 = vld [vmem:[%s14268_s1 + $0x684] sm:$0xf0]  ;;  %v14708_v14 = vld [vmem:[#allocation58_spill] sm:$0xff] }
 0x42b   : > { %14700 = vst [vmem:[#allocation19_spill] sm:$0xff] %v12387_v15  ;;  %v3530_v36 = vpop.f32.mrf.mxu2  ;;  %v8337_v15 = vor.u32 %v9173_v12, %v8336_v39  ;;  %v14709_v54 = vld [vmem:[#allocation14_spill] sm:$0xff]  ;;  %v14711_v51 = vld [vmem:[#allocation59_spill] sm:$0xff]  ;;  %v9186_v39 = vld [vmem:[%s14268_s1 + $0x6f4] sm:$0xf] }
 0x42c   : > { %14702 = vst [vmem:[#allocation47_spill] sm:$0xff] %v12399_v35  ;;  %v12426_v35 = vsel %vm1613_vm1, %v14705_v48, %v3783_v62 }
 0x42d   : > { %v3992_v5 = vpop.f32.mrf.mxu0  ;;  %14706 = vst [vmem:[#allocation46_spill] sm:$0xff] %v12426_v35 }
 0x42e   : > { %v3599_v26 = vpop.f32.mrf.mxu3  ;;  %v4061_v47 = vpop.f32.mrf.mxu1  ;;  %4709 = vmatpush.bf16.msra.mxu1 %v8345_v30  ;;  %4641 = vmatpush.bf16.msra.mxu0 %v8273_v9  ;;  %v9170_v30 = vld [vmem:[%s14268_s1 + $0x674] sm:$0xf] }
 0x42f   : > { %v3600_v55 = vadd.f32 %v3599_v26, %v3530_v36  ;;  %v4062_v8 = vadd.f32 %v4061_v47, %v3992_v5  ;;  %v8330_v36 = vld [vmem:[%s14268_s1 + $0x678] sm:$0xf0] }
 0x430   : > { %3572 = vmatmul.bf16.gmra.mxu2 %v14708_v14  ;;  %4031 = vmatmul.bf16.gmra.mxu0 %v12418_v56  ;;  %v8394_v5 = vld [vmem:[%s14268_s1 + $0x6f8] sm:$0xf0] }
 0x431   : > { %v12429_v59 = vadd.f32 %v3600_v55, %v14707_v34  ;;  %v12434_v20 = vadd.f32 %v4062_v8, %v14709_v54  ;;  %4100 = vmatmul.bf16.gmra.mxu1 %v12426_v35  ;;  %v8333_v8 = vor.u32 %v9170_v30, %v8330_v36  ;;  %v8397_v9 = vor.u32 %v9186_v39, %v8394_v5  ;;  %v14712_v54 = vld [vmem:[#allocation4_spill] sm:$0xff]  ;;  %v14713_v30 = vld [vmem:[#allocation9_spill] sm:$0xff] }
 0x432   : > { %4710 = vmatpush.bf16.msra.mxu1 %v8337_v15  ;;  %v3787_v36 = vrot.slane %v14713_v30, 1 }
 0x433   : > { %14710 = vst [vmem:[#allocation50_spill] sm:$0xff] %v12434_v20  ;;  %3641 = vmatmul.bf16.gmra.mxu3 %v14711_v51  ;;  %v3533_v26 = vpop.f32.mrf.mxu2  ;;  %4772 = vmatpush.bf16.msrb.mxu2 %v8333_v8  ;;  %v3785_v51 = vrot.slane %v14712_v54, 1  ;;  %v9184_v54 = vld [vmem:[%s14268_s1 + $0x6e4] sm:$0xf] }
 0x434   : > { %4841 = vmatpush.bf16.msrb.mxu3 %v8397_v9  ;;  %v12462_v9 = vsel %vm1613_vm1, %v3783_v62, %v3787_v36 }
 0x435   : > { %v3994_v12 = vpop.f32.mrf.mxu0  ;;  %v12459_v5 = vsel %vm1613_vm1, %v3781_v63, %v3785_v51  ;;  %v9132_v51 = vld [vmem:[%s9560_s26 + $0x34] sm:$0xf] }
 0x436   : > { %v3602_v15 = vpop.f32.mrf.mxu3  ;;  %v4063_v47 = vpop.f32.mrf.mxu1 }
 0x437   : > { %v3603_v55 = vadd.f32 %v3602_v15, %v3533_v26  ;;  %v4064_v48 = vadd.f32 %v4063_v47, %v3994_v12  ;;  %v9133_v47 = vld [vmem:[%s9560_s26 + $0x34] sm:$0xf0] }
 0x439   : > { %v12451_v34 = vadd.f32 %v3603_v55, %v11956_v28  ;;  %v12454_v14 = vadd.f32 %v4064_v48, %v11959_v0  ;;  %v9168_v48 = vld [vmem:[%s14268_s1 + $0x664] sm:$0xf] }
 0x43b   : > { %v3535_v35 = vpop.f32.mrf.mxu2 }
 0x43d   : > { %v3997_v39 = vpop.f32.mrf.mxu0 }
 0x43e   : > { %v3604_v20 = vpop.f32.mrf.mxu3  ;;  %v4066_v8 = vpop.f32.mrf.mxu1 }
 0x43f   : > { %v3605_v26 = vadd.f32 %v3604_v20, %v3535_v35  ;;  %v4067_v28 = vadd.f32 %v4066_v8, %v3997_v39 }
 0x440   : > { %3577 = vmatmul.bf16.gmra.mxu2 %v11962_v41  ;;  %4036 = vmatmul.bf16.gmra.mxu0 %v12459_v5  ;;  %v8176_v41 = vld [vmem:[%s9560_s26 + $0x30] sm:$0xf] }
 0x441   : > { %v12465_v0 = vadd.f32 %v3605_v26, %v11969_v37  ;;  %v12470_v15 = vadd.f32 %v4067_v28, %v11974_v50  ;;  %4105 = vmatmul.bf16.gmra.mxu1 %v12462_v9  ;;  %v12496_v26 = vor.u32 %v9133_v47, %v8176_v41 }
 0x443   : > { %3646 = vmatmul.bf16.gmra.mxu3 %v11966_v49  ;;  %v3538_v35 = vpop.f32.mrf.mxu2  ;;  %v8322_v49 = vld [vmem:[%s14268_s1 + $0x668] sm:$0xf0] }
 0x444   : > { %v8325_v30 = vor.u32 %v9168_v48, %v8322_v49 }
 0x445   : > { %v3999_v62 = vpop.f32.mrf.mxu0 }
 0x446   : > { %v3607_v63 = vpop.f32.mrf.mxu3  ;;  %v4068_v12 = vpop.f32.mrf.mxu1  ;;  %4773 = vmatpush.bf16.msrb.mxu2 %v8325_v30  ;;  %v9135_v30 = vld [vmem:[%s9560_s26 + $0x44] sm:$0xf0] }
 0x447   : > { %v3608_v20 = vadd.f32 %v3607_v63, %v3538_v35  ;;  %v4069_v37 = vadd.f32 %v4068_v12, %v3999_v62 }
 0x449   : > { %v12475_v55 = vadd.f32 %v3608_v20, %v11983_v17  ;;  %v12480_v50 = vadd.f32 %v4069_v37, %v11987_v19  ;;  %v8178_v17 = vld [vmem:[%s9560_s26 + $0x38] sm:$0xf0]  ;;  %v8386_v19 = vld [vmem:[%s14268_s1 + $0x6e8] sm:$0xf0] }
 0x44a   : > { %v8389_v39 = vor.u32 %v9184_v54, %v8386_v19  ;;  %v12498_v35 = vor.u32 %v9132_v51, %v8178_v17  ;;  %v8184_v17 = vld [vmem:[%s9560_s26 + $0x40] sm:$0xf]  ;;  %v8186_v19 = vld [vmem:[%s9560_s26 + $0x48] sm:$0xf0] }
 0x44b   : > { %v3540_v36 = vpop.f32.mrf.mxu2 }
 0x44c   : > { %4842 = vmatpush.bf16.msrb.mxu3 %v8389_v39  ;;  %v12520_v39 = vor.u32 %v9135_v30, %v8184_v17 }
 0x44d   : > { %v4002_v28 = vpop.f32.mrf.mxu0 }
 0x44e   : > { %v3609_v8 = vpop.f32.mrf.mxu3  ;;  %v4071_v62 = vpop.f32.mrf.mxu1 }
 0x44f   : > { %v3610_v63 = vadd.f32 %v3609_v8, %v3540_v36  ;;  %v4072_v20 = vadd.f32 %v4071_v62, %v4002_v28 }
 0x450   : > { %4119 = vmatmul.bf16.vlgmr.msra.gmra.mxu2 %v12003_v2  ;;  %4642 = vmatmul.bf16.vlgmr.msra.gmra.mxu0 %v12496_v26 }
 0x451   : > { %v12501_v12 = vadd.f32 %v3610_v63, %v12009_v46  ;;  %v12506_v37 = vadd.f32 %v4072_v20, %v12014_v61  ;;  %4711 = vmatmul.bf16.vlgmr.msra.gmra.mxu1 %v12498_v35  ;;  %v9134_v61 = vld [vmem:[%s9560_s26 + $0x44] sm:$0xf] }
 0x452   : > { %v12522_v28 = vor.u32 %v9134_v61, %v8186_v19 }
 0x453   : > { %4188 = vmatmul.bf16.vlgmr.msra.gmra.mxu3 %v12006_v6  ;;  %v3543_v41 = vpop.f32.mrf.mxu2 }
 0x455   : > { %v4004_v48 = vpop.f32.mrf.mxu0 }
 0x456   : > { %v3612_v47 = vpop.f32.mrf.mxu3  ;;  %v4073_v54 = vpop.f32.mrf.mxu1 }
 0x457   : > { %v3613_v49 = vadd.f32 %v3612_v47, %v3543_v41  ;;  %v4074_v46 = vadd.f32 %v4073_v54, %v4004_v48  ;;  %v9166_v41 = vld [vmem:[%s14268_s1 + $0x654] sm:$0xf] }
 0x459   : > { %v12511_v51 = vadd.f32 %v3613_v49, %v12019_v60  ;;  %v12514_v2 = vadd.f32 %v4074_v46, %v12022_v33 }
 0x45b   : > { %v3545_v36 = vpop.f32.mrf.mxu2 }
 0x45d   : > { %v4007_v8 = vpop.f32.mrf.mxu0 }
 0x45e   : > { %v3614_v6 = vpop.f32.mrf.mxu3  ;;  %v4076_v62 = vpop.f32.mrf.mxu1 }
 0x45f   : > { %v3615_v63 = vadd.f32 %v3614_v6, %v3545_v36  ;;  %v4077_v20 = vadd.f32 %v4076_v62, %v4007_v8  ;;  %v8192_v36 = vld [vmem:[%s9560_s26 + $0x50] sm:$0xf]  ;;  %v9137_v6 = vld [vmem:[%s9560_s26 + $0x54] sm:$0xf0]  ;;  %v9136_v8 = vld [vmem:[%s9560_s26 + $0x54] sm:$0xf] }
 0x460   : > { %4124 = vmatmul.bf16.gmra.mxu2 %v12027_v10  ;;  %4647 = vmatmul.bf16.gmra.mxu0 %v12520_v39  ;;  %v9182_v10 = vld [vmem:[%s14268_s1 + $0x6d4] sm:$0xf] }
 0x461   : > { %v12525_v60 = vadd.f32 %v3615_v63, %v12033_v42  ;;  %v12530_v33 = vadd.f32 %v4077_v20, %v12038_v24  ;;  %4716 = vmatmul.bf16.gmra.mxu1 %v12522_v28  ;;  %v8314_v42 = vld [vmem:[%s14268_s1 + $0x658] sm:$0xf0]  ;;  %v12556_v20 = vor.u32 %v9137_v6, %v8192_v36  ;;  %v9139_v36 = vld [vmem:[%s9560_s26 + $0x64] sm:$0xf0]  ;;  %v9164_v6 = vld [vmem:[%s14268_s1 + $0x644] sm:$0xf] }
 0x462   : > { %v8317_v47 = vor.u32 %v9166_v41, %v8314_v42  ;;  %v8194_v63 = vld [vmem:[%s9560_s26 + $0x58] sm:$0xf0] }
 0x463   : > { %4193 = vmatmul.bf16.gmra.mxu3 %v12030_v7  ;;  %v3548_v24 = vpop.f32.mrf.mxu2  ;;  %v8378_v7 = vld [vmem:[%s14268_s1 + $0x6d8] sm:$0xf0] }
 0x464   : > { %v8381_v48 = vor.u32 %v9182_v10, %v8378_v7  ;;  %4774 = vmatpush.bf16.msrb.mxu2 %v8317_v47  ;;  %v12558_v10 = vor.u32 %v9136_v8, %v8194_v63  ;;  %v9180_v8 = vld [vmem:[%s14268_s1 + $0x6c4] sm:$0xf] }
 0x465   : > { %v4009_v54 = vpop.f32.mrf.mxu0  ;;  %v9138_v63 = vld [vmem:[%s9560_s26 + $0x64] sm:$0xf] }
 0x466   : > { %v3617_v49 = vpop.f32.mrf.mxu3  ;;  %v4078_v17 = vpop.f32.mrf.mxu1  ;;  %4843 = vmatpush.bf16.msrb.mxu3 %v8381_v48 }
 0x467   : > { %v3618_v46 = vadd.f32 %v3617_v49, %v3548_v24  ;;  %v4079_v30 = vadd.f32 %v4078_v17, %v4009_v54 }
 0x469   : > { %v12547_v61 = vadd.f32 %v3618_v46, %v12055_v58  ;;  %v12550_v19 = vadd.f32 %v4079_v30, %v12058_v18 }
 0x46b   : > { %v3550_v62 = vpop.f32.mrf.mxu2 }
 0x46d   : > { %v4012_v42 = vpop.f32.mrf.mxu0 }
 0x46e   : > { %v3619_v41 = vpop.f32.mrf.mxu3  ;;  %v4081_v47 = vpop.f32.mrf.mxu1 }
 0x46f   : > { %v3620_v24 = vadd.f32 %v3619_v41, %v3550_v62  ;;  %v4082_v58 = vadd.f32 %v4081_v47, %v4012_v42 }
 0x470   : > { %4129 = vmatmul.bf16.gmra.mxu2 %v12063_v16  ;;  %4652 = vmatmul.bf16.gmra.mxu0 %v12556_v20  ;;  %v8200_v16 = vld [vmem:[%s9560_s26 + $0x60] sm:$0xf] }
 0x471   : > { %v12561_v7 = vadd.f32 %v3620_v24, %v12069_v44  ;;  %v12566_v18 = vadd.f32 %v4082_v58, %v12074_v43  ;;  %4721 = vmatmul.bf16.gmra.mxu1 %v12558_v10  ;;  %v12592_v24 = vor.u32 %v9139_v36, %v8200_v16  ;;  %v14714_v16 = vld [vmem:[#allocation5_spill] sm:$0xff] }
 0x473   : > { %4198 = vmatmul.bf16.gmra.mxu3 %v12066_v32  ;;  %v3553_v48 = vpop.f32.mrf.mxu2  ;;  %v8306_v32 = vld [vmem:[%s14268_s1 + $0x648] sm:$0xf0] }
 0x474   : > { %v8309_v62 = vor.u32 %v9164_v6, %v8306_v32 }
 0x475   : > { %v4014_v54 = vpop.f32.mrf.mxu0 }
 0x476   : > { %v3622_v49 = vpop.f32.mrf.mxu3  ;;  %v4083_v17 = vpop.f32.mrf.mxu1  ;;  %4775 = vmatpush.bf16.msrb.mxu2 %v8309_v62  ;;  %v8208_v62 = vld [vmem:[%s9560_s26 + $0x70] sm:$0xf] }
 0x477   : > { %v3623_v46 = vadd.f32 %v3622_v49, %v3553_v48  ;;  %v4084_v44 = vadd.f32 %v4083_v17, %v4014_v54 }
 0x479   : > { %v12571_v30 = vadd.f32 %v3623_v46, %v12079_v11  ;;  %v12576_v43 = vadd.f32 %v4084_v44, %v12083_v3  ;;  %v8202_v11 = vld [vmem:[%s9560_s26 + $0x68] sm:$0xf0] }
 0x47a   : > { %v8370_v3 = vld [vmem:[%s14268_s1 + $0x6c8] sm:$0xf0]  ;;  %v12594_v48 = vor.u32 %v9138_v63, %v8202_v11 }
 0x47b   : > { %v3555_v41 = vpop.f32.mrf.mxu2  ;;  %v8373_v42 = vor.u32 %v9180_v8, %v8370_v3  ;;  %v9141_v3 = vld [vmem:[%s9560_s26 + $0x74] sm:$0xf0] }
 0x47d   : > { %v4017_v58 = vpop.f32.mrf.mxu0  ;;  %4844 = vmatpush.bf16.msrb.mxu3 %v8373_v42 }
 0x47e   : > { %v3624_v47 = vpop.f32.mrf.mxu3  ;;  %v4086_v54 = vpop.f32.mrf.mxu1 }
 0x47f   : > { %v3625_v49 = vadd.f32 %v3624_v47, %v3555_v41  ;;  %v4087_v46 = vadd.f32 %v4086_v54, %v4017_v58  ;;  %v8210_v41 = vld [vmem:[%s9560_s26 + $0x78] sm:$0xf0]  ;;  %v12616_v47 = vor.u32 %v9141_v3, %v8208_v62  ;;  %v9178_v3 = vld [vmem:[%s14268_s1 + $0x6b4] sm:$0xf] }
 0x480   : > { %4134 = vmatmul.bf16.gmra.mxu2 %v12099_v21  ;;  %4657 = vmatmul.bf16.gmra.mxu0 %v12592_v24  ;;  %v8298_v62 = vld [vmem:[%s14268_s1 + $0x638] sm:$0xf0] }
 0x481   : > { %v12597_v17 = vadd.f32 %v3625_v49, %v12105_v38  ;;  %v12602_v44 = vadd.f32 %v4087_v46, %v12110_v1  ;;  %4726 = vmatmul.bf16.gmra.mxu1 %v12594_v48  ;;  %v9140_v1 = vld [vmem:[%s9560_s26 + $0x74] sm:$0xf]  ;;  %14715 = vst [vmem:[#allocation48_spill] sm:$0xff] %v12616_v47 }
 0x482   : > { %v12618_v54 = vor.u32 %v9140_v1, %v8210_v41 }
 0x483   : > { %4203 = vmatmul.bf16.gmra.mxu3 %v14714_v16  ;;  %v3558_v36 = vpop.f32.mrf.mxu2 }
 0x484   : > { %14716 = vst [vmem:[#allocation49_spill] sm:$0xff] %v12618_v54 }
 0x485   : > { %v4019_v32 = vpop.f32.mrf.mxu0 }
 0x486   : > { %v3627_v6 = vpop.f32.mrf.mxu3  ;;  %v4088_v63 = vpop.f32.mrf.mxu1 }
 0x487   : > { %v3628_v8 = vadd.f32 %v3627_v6, %v3558_v36  ;;  %v4089_v38 = vadd.f32 %v4088_v63, %v4019_v32  ;;  %v14717_v6 = vld [vmem:[#allocation35_spill] sm:$0xff]  ;;  %v14721_v63 = vld [vmem:[#allocation33_spill] sm:$0xff] }
 0x488   : > { %v14718_v32 = vld [vmem:[#allocation31_spill] sm:$0xff] }
 0x489   : > { %v12607_v11 = vadd.f32 %v3628_v8, %v12115_v31  ;;  %v12610_v21 = vadd.f32 %v4089_v38, %v12118_v23  ;;  %v14719_v23 = vld [vmem:[#allocation34_spill] sm:$0xff]  ;;  %v9162_v38 = vld [vmem:[%s14268_s1 + $0x634] sm:$0xf] }
 0x48a   : > { %v8301_v41 = vor.u32 %v9162_v38, %v8298_v62  ;;  %v9143_v38 = vld [vmem:[%s9560_s26 + $0x84] sm:$0xf0]  ;;  %v9142_v62 = vld [vmem:[%s9560_s26 + $0x84] sm:$0xf] }
 0x48b   : > { %v3560_v42 = vpop.f32.mrf.mxu2 }
 0x48c   : > { %4776 = vmatpush.bf16.msrb.mxu2 %v8301_v41 }
 0x48d   : > { %v4022_v49 = vpop.f32.mrf.mxu0 }
 0x48e   : > { %v3629_v58 = vpop.f32.mrf.mxu3  ;;  %v4091_v16 = vpop.f32.mrf.mxu1 }
 0x48f   : > { %v3630_v46 = vadd.f32 %v3629_v58, %v3560_v42  ;;  %v4092_v36 = vadd.f32 %v4091_v16, %v4022_v49  ;;  %v8362_v42 = vld [vmem:[%s14268_s1 + $0x6b8] sm:$0xf0] }
 0x490   : > { %4139 = vmatmul.bf16.gmra.mxu2 %v14718_v32  ;;  %4662 = vmatmul.bf16.gmra.mxu0 %v12616_v47  ;;  %v8365_v58 = vor.u32 %v9178_v3, %v8362_v42 }
 0x491   : > { %v12621_v31 = vadd.f32 %v3630_v46, %v14717_v6  ;;  %v12626_v8 = vadd.f32 %v4092_v36, %v14719_v23  ;;  %4731 = vmatmul.bf16.gmra.mxu1 %v12618_v54  ;;  %v8218_v54 = vld [vmem:[%s9560_s26 + $0x88] sm:$0xf0] }
 0x492   : > { %4845 = vmatpush.bf16.msrb.mxu3 %v8365_v58  ;;  %v12654_v41 = vor.u32 %v9142_v62, %v8218_v54  ;;  %v9176_v62 = vld [vmem:[%s14268_s1 + $0x6a4] sm:$0xf] }
 0x493   : > { %14720 = vst [vmem:[#allocation53_spill] sm:$0xff] %v12626_v8  ;;  %4208 = vmatmul.bf16.gmra.mxu3 %v14721_v63  ;;  %v3563_v1 = vpop.f32.mrf.mxu2  ;;  %v8216_v63 = vld [vmem:[%s9560_s26 + $0x80] sm:$0xf] }
 0x494   : > { %v12652_v47 = vor.u32 %v9143_v38, %v8216_v63  ;;  %v9145_v63 = vld [vmem:[%s9560_s26 + $0x94] sm:$0xf0]  ;;  %v9160_v38 = vld [vmem:[%s14268_s1 + $0x624] sm:$0xf] }
 0x495   : > { %v4024_v46 = vpop.f32.mrf.mxu0 }
 0x496   : > { %v3632_v49 = vpop.f32.mrf.mxu3  ;;  %v4093_v36 = vpop.f32.mrf.mxu1 }
 0x497   : > { %v3633_v16 = vadd.f32 %v3632_v49, %v3563_v1  ;;  %v4094_v6 = vadd.f32 %v4093_v36, %v4024_v46 }
 0x499   : > { %v12643_v32 = vadd.f32 %v3633_v16, %v12151_v40  ;;  %v12646_v23 = vadd.f32 %v4094_v6, %v12154_v25 }
 0x49b   : > { %v3565_v8 = vpop.f32.mrf.mxu2 }
 0x49d   : > { %v4027_v42 = vpop.f32.mrf.mxu0 }
 0x49e   : > { %v3634_v3 = vpop.f32.mrf.mxu3  ;;  %v4096_v58 = vpop.f32.mrf.mxu1 }
 0x49f   : > { %v3635_v1 = vadd.f32 %v3634_v3, %v3565_v8  ;;  %v4097_v40 = vadd.f32 %v4096_v58, %v4027_v42  ;;  %v9144_v3 = vld [vmem:[%s9560_s26 + $0x94] sm:$0xf] }
 0x4a0   : > { %4144 = vmatmul.bf16.gmra.mxu2 %v12159_v53  ;;  %4667 = vmatmul.bf16.gmra.mxu0 %v12652_v47  ;;  %v8224_v53 = vld [vmem:[%s9560_s26 + $0x90] sm:$0xf] }
 0x4a1   : > { %v12657_v49 = vadd.f32 %v3635_v1, %v12165_v57  ;;  %v12662_v25 = vadd.f32 %v4097_v40, %v12170_v29  ;;  %4736 = vmatmul.bf16.gmra.mxu1 %v12654_v41  ;;  %v12688_v40 = vor.u32 %v9145_v63, %v8224_v53  ;;  %v14726_v53 = vld [vmem:[#allocation37_spill] sm:$0xff] }
 0x4a3   : > { %4213 = vmatmul.bf16.gmra.mxu3 %v12162_v45  ;;  %v3568_v54 = vpop.f32.mrf.mxu2  ;;  %v8290_v45 = vld [vmem:[%s14268_s1 + $0x628] sm:$0xf0]  ;;  %14722 = vst [vmem:[#allocation51_spill] sm:$0xff] %v12688_v40 }
 0x4a4   : > { %v8293_v42 = vor.u32 %v9160_v38, %v8290_v45  ;;  %v14725_v45 = vld [vmem:[#allocation36_spill] sm:$0xff] }
 0x4a5   : > { %v4029_v46 = vpop.f32.mrf.mxu0 }
 0x4a6   : > { %v3637_v8 = vpop.f32.mrf.mxu3  ;;  %v4098_v36 = vpop.f32.mrf.mxu1  ;;  %4777 = vmatpush.bf16.msrb.mxu2 %v8293_v42 }
 0x4a7   : > { %v3638_v16 = vadd.f32 %v3637_v8, %v3568_v54  ;;  %v4099_v57 = vadd.f32 %v4098_v36, %v4029_v46 }
 0x4a9   : > { %v12667_v6 = vadd.f32 %v3638_v16, %v12175_v27  ;;  %v12672_v29 = vadd.f32 %v4099_v57, %v12179_v4  ;;  %v8226_v27 = vld [vmem:[%s9560_s26 + $0x98] sm:$0xf0]  ;;  %v8354_v4 = vld [vmem:[%s14268_s1 + $0x6a8] sm:$0xf0] }
 0x4aa   : > { %v8357_v58 = vor.u32 %v9176_v62, %v8354_v4  ;;  %v12690_v46 = vor.u32 %v9144_v3, %v8226_v27  ;;  %v14728_v62 = vld [vmem:[#allocation39_spill] sm:$0xff] }
 0x4ab   : > { %v3570_v1 = vpop.f32.mrf.mxu2 }
 0x4ac   : > { %14723 = vst [vmem:[#allocation18_spill] sm:$0xff] %v12690_v46  ;;  %4846 = vmatpush.bf16.msrb.mxu3 %v8357_v58  ;;  %v14729_v58 = vld [vmem:[#allocation11_spill] sm:$0xff] }
 0x4ad   : > { %v4032_v8 = vpop.f32.mrf.mxu0 }
 0x4ae   : > { %v3639_v54 = vpop.f32.mrf.mxu3  ;;  %v4101_v36 = vpop.f32.mrf.mxu1 }
 0x4af   : > { %v3640_v16 = vadd.f32 %v3639_v54, %v3570_v1  ;;  %v4102_v57 = vadd.f32 %v4101_v36, %v4032_v8  ;;  %v14731_v8 = vld [vmem:[#allocation38_spill] sm:$0xff] }
 0x4b0   : > { %4149 = vmatmul.bf16.gmra.mxu2 %v14725_v45  ;;  %4672 = vmatmul.bf16.gmra.mxu0 %v12688_v40  ;;  %v8232_v36 = vld [vmem:[%s9560_s26 + $0xa0] sm:$0xf]  ;;  %v9147_v45 = vld [vmem:[%s9560_s26 + $0xa4] sm:$0xf0] }
 0x4b1   : > { %v12693_v38 = vadd.f32 %v3640_v16, %v12201_v22  ;;  %v12698_v63 = vadd.f32 %v4102_v57, %v14726_v53  ;;  %4741 = vmatmul.bf16.gmra.mxu1 %v12690_v46  ;;  %v9146_v57 = vld [vmem:[%s9560_s26 + $0xa4] sm:$0xf]  ;;  %v8234_v53 = vld [vmem:[%s9560_s26 + $0xa8] sm:$0xf0]  ;;  %v12712_v46 = vor.u32 %v9147_v45, %v8232_v36  ;;  %v14740_v36 = vld [vmem:[#allocation12_spill] sm:$0xff] }
 0x4b2   : > { %v9174_v45 = vld [vmem:[%s14268_s1 + $0x694] sm:$0xf] }
 0x4b3   : > { %14724 = vst [vmem:[#allocation52_spill] sm:$0xff] %v12693_v38  ;;  %4218 = vmatmul.bf16.gmra.mxu3 %v14728_v62  ;;  %v3573_v3 = vpop.f32.mrf.mxu2  ;;  %v12714_v38 = vor.u32 %v9146_v57, %v8234_v53 }
 0x4b4   : > { %14727 = vst [vmem:[#allocation22_spill] sm:$0xff] %v12698_v63 }
 0x4b5   : > { %v4034_v42 = vpop.f32.mrf.mxu0  ;;  %14733 = vst [vmem:[#allocation21_spill] sm:$0xff] %v12712_v46 }
 0x4b6   : > { %v3642_v27 = vpop.f32.mrf.mxu3  ;;  %v4103_v1 = vpop.f32.mrf.mxu1  ;;  %14734 = vst [vmem:[#allocation26_spill] sm:$0xff] %v12714_v38 }
 0x4b7   : > { %v3643_v4 = vadd.f32 %v3642_v27, %v3573_v3  ;;  %v4104_v22 = vadd.f32 %v4103_v1, %v4034_v42  ;;  %v14735_v1 = vld [vmem:[#allocation8_spill] sm:$0xff] }
 0x4b9   : > { %v12703_v54 = vadd.f32 %v3643_v4, %v14729_v58  ;;  %v12706_v16 = vadd.f32 %v4104_v22, %v14731_v8  ;;  %v14737_v58 = vld [vmem:[#allocation10_spill] sm:$0xff]  ;;  %v14738_v22 = vld [vmem:[#allocation40_spill] sm:$0xff] }
 0x4bb   : > { %14730 = vst [vmem:[#allocation23_spill] sm:$0xff] %v12703_v54  ;;  %v3575_v63 = vpop.f32.mrf.mxu2  ;;  %v14749_v54 = vld [vmem:[#allocation6_spill] sm:$0xff] }
 0x4bc   : > { %14732 = vst [vmem:[#allocation20_spill] sm:$0xff] %v12706_v16 }
 0x4bd   : > { %v4037_v40 = vpop.f32.mrf.mxu0 }
 0x4be   : > { %v3644_v62 = vpop.f32.mrf.mxu3  ;;  %v4106_v27 = vpop.f32.mrf.mxu1 }
 0x4bf   : > { %v3645_v3 = vadd.f32 %v3644_v62, %v3575_v63  ;;  %v4107_v42 = vadd.f32 %v4106_v27, %v4037_v40  ;;  %v9158_v63 = vld [vmem:[%s14268_s1 + $0x614] sm:$0xf]  ;;  %v8282_v40 = vld [vmem:[%s14268_s1 + $0x618] sm:$0xf0] }
 0x4c0   : > { %4154 = vmatmul.bf16.gmra.mxu2 %v14737_v58  ;;  %4677 = vmatmul.bf16.gmra.mxu0 %v12712_v46  ;;  %v8285_v53 = vor.u32 %v9158_v63, %v8282_v40  ;;  %v8346_v62 = vld [vmem:[%s14268_s1 + $0x698] sm:$0xf0]  ;;  %v8576_v63 = vld [vmem:[%s14268_s1 + $0x770] sm:$0xf]  ;;  %v9225_v40 = vld [vmem:[%s14268_s1 + $0x774] sm:$0xf0] }
 0x4c1   : > { %v12717_v4 = vadd.f32 %v3645_v3, %v14735_v1  ;;  %v12722_v8 = vadd.f32 %v4107_v42, %v14738_v22  ;;  %4746 = vmatmul.bf16.gmra.mxu1 %v12714_v38  ;;  %v8349_v3 = vor.u32 %v9174_v45, %v8346_v62  ;;  %v14743_v45 = vld [vmem:[#allocation41_spill] sm:$0xff] }
 0x4c2   : > { %4778 = vmatpush.bf16.msrb.mxu2 %v8285_v53  ;;  %v9149_v53 = vld [vmem:[%s9560_s26 + $0xb4] sm:$0xf0] }
 0x4c3   : > { %14736 = vst [vmem:[#allocation54_spill] sm:$0xff] %v12717_v4  ;;  %4223 = vmatmul.bf16.gmra.mxu3 %v14740_v36  ;;  %v3578_v57 = vpop.f32.mrf.mxu2  ;;  %v14741_v36 = vld [vmem:[#allocation42_spill] sm:$0xff]  ;;  %v14747_v4 = vld [vmem:[#allocation16_spill] sm:$0xff] }
 0x4c4   : > { %14739 = vst [vmem:[#allocation25_spill] sm:$0xff] %v12722_v8  ;;  %4847 = vmatpush.bf16.msrb.mxu3 %v8349_v3  ;;  %v8240_v8 = vld [vmem:[%s9560_s26 + $0xb0] sm:$0xf] }
 0x4c5   : > { %v4039_v42 = vpop.f32.mrf.mxu0  ;;  %v8640_v3 = vld [vmem:[%s14268_s1 + $0x7f0] sm:$0xf] }
 0x4c6   : > { %v3647_v27 = vpop.f32.mrf.mxu3  ;;  %v4108_v58 = vpop.f32.mrf.mxu1 }
 0x4c7   : > { %v3648_v1 = vadd.f32 %v3647_v27, %v3578_v57  ;;  %v4109_v22 = vadd.f32 %v4108_v58, %v4039_v42  ;;  %v8577_v57 = vor.u32 %v9225_v40, %v8576_v63  ;;  %v9241_v27 = vld [vmem:[%s14268_s1 + $0x7f4] sm:$0xf0]  ;;  %v9148_v42 = vld [vmem:[%s9560_s26 + $0xb4] sm:$0xf] }
 0x4c8   : > { %v8641_v58 = vor.u32 %v9241_v27, %v8640_v3  ;;  %v14750_v3 = vld [vmem:[#allocation44_spill] sm:$0xff] }
 0x4c9   : > { %v12739_v38 = vadd.f32 %v3648_v1, %v14741_v36  ;;  %v12749_v62 = vadd.f32 %v4109_v22, %v14743_v45  ;;  %v8242_v1 = vld [vmem:[%s9560_s26 + $0xb8] sm:$0xf0]  ;;  %5501 = vmatpush.bf16.msrb.mxu0 %v8577_v57 }
 0x4ca   : > { %5570 = vmatpush.bf16.msrb.mxu1 %v8641_v58  ;;  %v9239_v58 = vld [vmem:[%s14268_s1 + $0x7e4] sm:$0xf0] }
 0x4cb   : > { %14742 = vst [vmem:[#allocation55_spill] sm:$0xff] %v12739_v38  ;;  %v3580_v36 = vpop.f32.mrf.mxu2  ;;  %v12760_v38 = vor.u32 %v9149_v53, %v8240_v8  ;;  %v14752_v8 = vld [vmem:[#allocation43_spill] sm:$0xff] }
 0x4cc   : > { %14744 = vst [vmem:[#allocation24_spill] sm:$0xff] %v12749_v62  ;;  %v12762_v62 = vor.u32 %v9148_v42, %v8242_v1 }
 0x4cd   : > { %14745 = vst [vmem:[#allocation27_spill] sm:$0xff] %v12760_v38  ;;  %v4643_v45 = vpop.f32.mrf.mxu0 }
 0x4ce   : > { %v3649_v22 = vpop.f32.mrf.mxu3  ;;  %14746 = vst [vmem:[#allocation28_spill] sm:$0xff] %v12762_v62  ;;  %v4712_v40 = vpop.f32.mrf.mxu1 }
 0x4cf   : > { %v3650_v63 = vadd.f32 %v3649_v22, %v3580_v36  ;;  %v4713_v46 = vadd.f32 %v4712_v40, %v4643_v45  ;;  %v8248_v40 = vld [vmem:[%s9560_s26 + $0xc0] sm:$0xf] }
 0x4d0   : > { %4159 = vmatmul.bf16.gmra.mxu2 %v14749_v54  ;;  %4682 = vmatmul.bf16.gmra.mxu0 %v12760_v38  ;;  %v9223_v54 = vld [vmem:[%s14268_s1 + $0x764] sm:$0xf0] }
 0x4d1   : > { %v12765_v16 = vadd.f32 %v3650_v63, %v14747_v4  ;;  %v12770_v57 = vadd.f32 %v4713_v46, %v14750_v3  ;;  %4751 = vmatmul.bf16.gmra.mxu1 %v12762_v62  ;;  %v8568_v4 = vld [vmem:[%s14268_s1 + $0x760] sm:$0xf]  ;;  %v9151_v3 = vld [vmem:[%s9560_s26 + $0xc4] sm:$0xf0] }
 0x4d2   : > { %v8632_v46 = vld [vmem:[%s14268_s1 + $0x7e0] sm:$0xf]  ;;  %v8569_v1 = vor.u32 %v9223_v54, %v8568_v4  ;;  %v8560_v4 = vld [vmem:[%s14268_s1 + $0x750] sm:$0xf]  ;;  %v12820_v38 = vor.u32 %v9151_v3, %v8248_v40  ;;  %v9235_v3 = vld [vmem:[%s14268_s1 + $0x7c4] sm:$0xf0] }
 0x4d3   : > { %14748 = vst [vmem:[#allocation57_spill] sm:$0xff] %v12765_v16  ;;  %4228 = vmatmul.bf16.gmra.mxu3 %v14752_v8  ;;  %v4120_v53 = vpop.f32.mrf.mxu2  ;;  %v8633_v45 = vor.u32 %v9239_v58, %v8632_v46  ;;  %v14753_v8 = vld [vmem:[#allocation15_spill] sm:$0xff]  ;;  %v8624_v54 = vld [vmem:[%s14268_s1 + $0x7d0] sm:$0xf]  ;;  %v14755_v46 = vld [vmem:[#allocation45_spill] sm:$0xff] }
 0x4d4   : > { %14751 = vst [vmem:[#allocation30_spill] sm:$0xff] %v12770_v57  ;;  %5502 = vmatpush.bf16.msrb.mxu0 %v8569_v1  ;;  %v9150_v57 = vld [vmem:[%s9560_s26 + $0xc4] sm:$0xf]  ;;  %v8274_v1 = vld [vmem:[%s14268_s1 + $0x608] sm:$0xf0] }
 0x4d5   : > { %v4645_v42 = vpop.f32.mrf.mxu0  ;;  %5571 = vmatpush.bf16.msrb.mxu1 %v8633_v45  ;;  %v9172_v58 = vld [vmem:[%s14268_s1 + $0x684] sm:$0xf] }
 0x4d6   : > { %v4189_v27 = vpop.f32.mrf.mxu3  ;;  %v4714_v22 = vpop.f32.mrf.mxu1 }
 0x4d7   : > { %v4190_v36 = vadd.f32 %v4189_v27, %v4120_v53  ;;  %v4715_v63 = vadd.f32 %v4714_v22, %v4645_v42  ;;  %v9221_v53 = vld [vmem:[%s14268_s1 + $0x754] sm:$0xf0]  ;;  %v9156_v42 = vld [vmem:[%s14268_s1 + $0x604] sm:$0xf]  ;;  %v8250_v22 = vld [vmem:[%s9560_s26 + $0xc8] sm:$0xf0] }
 0x4d8   : > { %v8277_v45 = vor.u32 %v9156_v42, %v8274_v1  ;;  %v8616_v42 = vld [vmem:[%s14268_s1 + $0x7c0] sm:$0xf] }
 0x4d9   : > { %v12789_v62 = vadd.f32 %v4190_v36, %v14753_v8  ;;  %v12802_v27 = vadd.f32 %v4715_v63, %v14755_v46  ;;  %v8561_v36 = vor.u32 %v9221_v53, %v8560_v4  ;;  %v8338_v63 = vld [vmem:[%s14268_s1 + $0x688] sm:$0xf0]  ;;  %v9237_v8 = vld [vmem:[%s14268_s1 + $0x7d4] sm:$0xf0]  ;;  %v8552_v4 = vld [vmem:[%s14268_s1 + $0x740] sm:$0xf] }
 0x4da   : > { %4779 = vmatpush.bf16.msrb.mxu2 %v8277_v45  ;;  %v9219_v53 = vld [vmem:[%s14268_s1 + $0x744] sm:$0xf0]  ;;  %v8617_v45 = vor.u32 %v9235_v3, %v8616_v42  ;;  %v8536_v42 = vld [vmem:[%s14268_s1 + $0x720] sm:$0xf] }
 0x4db   : > { %14754 = vst [vmem:[#allocation3_spill] sm:$0xff] %v12789_v62  ;;  %v4122_v46 = vpop.f32.mrf.mxu2  ;;  %5503 = vmatpush.bf16.msrb.mxu0 %v8561_v36  ;;  %v8625_v62 = vor.u32 %v9237_v8, %v8624_v54  ;;  %v8553_v40 = vor.u32 %v9219_v53, %v8552_v4 }
 0x4dc   : > { %14756 = vst [vmem:[#allocation56_spill] sm:$0xff] %v12802_v27  ;;  %v8341_v27 = vor.u32 %v9172_v58, %v8338_v63  ;;  %v12831_v58 = vor.u32 %v9150_v57, %v8250_v22  ;;  %v9217_v57 = vld [vmem:[%s14268_s1 + $0x734] sm:$0xf0] }
 0x4dd   : > { %v4648_v16 = vpop.f32.mrf.mxu0  ;;  %5572 = vmatpush.bf16.msrb.mxu1 %v8625_v62  ;;  %v8544_v62 = vld [vmem:[%s14268_s1 + $0x730] sm:$0xf] }
 0x4de   : > { %v4191_v1 = vpop.f32.mrf.mxu3  ;;  %14757 = vst [vmem:[#allocation7_spill] sm:$0xff] %v12831_v58  ;;  %4848 = vmatpush.bf16.msrb.mxu3 %v8341_v27  ;;  %v4717_v36 = vpop.f32.mrf.mxu1  ;;  %v14758_v27 = vld [vmem:[#allocation2_spill] sm:$0xff] }
 0x4df   : > { %v4192_v54 = vadd.f32 %v4191_v1, %v4122_v46  ;;  %v4718_v63 = vadd.f32 %v4717_v36, %v4648_v16  ;;  %5504 = vmatpush.bf16.msrb.mxu0 %v8553_v40  ;;  %v8545_v16 = vor.u32 %v9217_v57, %v8544_v62  ;;  %v14760_v46 = vld [vmem:[#allocation17_spill] sm:$0xff]  ;;  %v9215_v1 = vld [vmem:[%s14268_s1 + $0x724] sm:$0xf0]  ;;  %v8600_v40 = vld [vmem:[%s14268_s1 + $0x7a0] sm:$0xf] }
 0x4e0   : > { %4164 = vmatmul.bf16.gmra.mxu2 %v12340_v52  ;;  %4687 = vmatmul.bf16.gmra.mxu0 %v12820_v38  ;;  %v8608_v52 = vld [vmem:[%s14268_s1 + $0x7b0] sm:$0xf]  ;;  %v8537_v36 = vor.u32 %v9215_v1, %v8536_v42  ;;  %v14763_v42 = vld [vmem:[#allocation47_spill] sm:$0xff] }
 0x4e1   : > { %v12837_v8 = vadd.f32 %v4192_v54, %v12353_v13  ;;  %v12848_v22 = vadd.f32 %v4718_v63, %v14758_v27  ;;  %4756 = vmatmul.bf16.gmra.mxu1 %v12831_v58  ;;  %v9233_v13 = vld [vmem:[%s14268_s1 + $0x7b4] sm:$0xf0]  ;;  %v8256_v1 = vld [vmem:[%s9560_s26 + $0xd0] sm:$0xf] }
 0x4e2   : > { %5573 = vmatpush.bf16.msrb.mxu1 %v8617_v45  ;;  %v8609_v4 = vor.u32 %v9233_v13, %v8608_v52  ;;  %v9231_v45 = vld [vmem:[%s14268_s1 + $0x7a4] sm:$0xf0]  ;;  %v8528_v13 = vld [vmem:[%s14268_s1 + $0x710] sm:$0xf] }
 0x4e3   : > { %14759 = vst [vmem:[#allocation13_spill] sm:$0xff] %v12848_v22  ;;  %4233 = vmatmul.bf16.gmra.mxu3 %v14760_v46  ;;  %v4125_v53 = vpop.f32.mrf.mxu2  ;;  %5505 = vmatpush.bf16.msrb.mxu0 %v8545_v16  ;;  %v8601_v57 = vor.u32 %v9231_v45, %v8600_v40  ;;  %v14761_v16 = vld [vmem:[#allocation19_spill] sm:$0xff]  ;;  %v9213_v46 = vld [vmem:[%s14268_s1 + $0x714] sm:$0xf0]  ;;  %v8258_v45 = vld [vmem:[%s9560_s26 + $0xd8] sm:$0xf0] }
 0x4e4   : > { %v9153_v40 = vld [vmem:[%s9560_s26 + $0xd4] sm:$0xf0]  ;;  %v8434_v22 = vld [vmem:[%s9560_s26 + $0x48] sm:$0xf0] }
 0x4e5   : > { %v4650_v54 = vpop.f32.mrf.mxu0 }
 0x4e6   : > { %v4194_v3 = vpop.f32.mrf.mxu3  ;;  %v4719_v62 = vpop.f32.mrf.mxu1  ;;  %5574 = vmatpush.bf16.msrb.mxu1 %v8609_v4 }
 0x4e7   : > { %v4195_v63 = vadd.f32 %v4194_v3, %v4125_v53  ;;  %v4720_v27 = vadd.f32 %v4719_v62, %v4650_v54  ;;  %5506 = vmatpush.bf16.msrb.mxu0 %v8537_v36  ;;  %v8592_v53 = vld [vmem:[%s14268_s1 + $0x790] sm:$0xf]  ;;  %v8529_v3 = vor.u32 %v9213_v46, %v8528_v13  ;;  %v9229_v54 = vld [vmem:[%s14268_s1 + $0x794] sm:$0xf0]  ;;  %v9152_v36 = vld [vmem:[%s9560_s26 + $0xd4] sm:$0xf] }
 0x4e8   : > { %v9211_v13 = vld [vmem:[%s14268_s1 + $0x704] sm:$0xf0]  ;;  %v8584_v46 = vld [vmem:[%s14268_s1 + $0x780] sm:$0xf] }
 0x4e9   : > { %v12871_v52 = vadd.f32 %v4195_v63, %v14761_v16  ;;  %v12883_v4 = vadd.f32 %v4720_v27, %v14763_v42  ;;  %v8593_v63 = vor.u32 %v9229_v54, %v8592_v53  ;;  %v12892_v16 = vor.u32 %v9153_v40, %v8256_v1  ;;  %v8520_v27 = vld [vmem:[%s14268_s1 + $0x700] sm:$0xf]  ;;  %v9227_v1 = vld [vmem:[%s14268_s1 + $0x784] sm:$0xf0] }
 0x4ea   : > { %5575 = vmatpush.bf16.msrb.mxu1 %v8601_v57  ;;  %v12903_v57 = vor.u32 %v9152_v36, %v8258_v45  ;;  %v8521_v53 = vor.u32 %v9211_v13, %v8520_v27  ;;  %v8585_v54 = vor.u32 %v9227_v1, %v8584_v46  ;;  %v14768_v36 = vld [vmem:[#allocation50_spill] sm:$0xff] }
 0x4eb   : > { %14762 = vst [vmem:[#allocation29_spill] sm:$0xff] %v12871_v52  ;;  %v4127_v62 = vpop.f32.mrf.mxu2  ;;  %5507 = vmatpush.bf16.msrb.mxu0 %v8529_v3  ;;  %v14770_v27 = vld [vmem:[#allocation46_spill] sm:$0xff] }
 0x4ec   : > { %14764 = vst [vmem:[#allocation32_spill] sm:$0xff] %v12883_v4 }
 0x4ed   : > { %14765 = vst [vmem:[#allocation58_spill] sm:$0xff] %v12892_v16  ;;  %v4653_v4 = vpop.f32.mrf.mxu0 }
 0x4ee   : > { %v4196_v42 = vpop.f32.mrf.mxu3  ;;  %14766 = vst [vmem:[#allocation14_spill] sm:$0xff] %v12903_v57  ;;  %v4722_v3 = vpop.f32.mrf.mxu1  ;;  %5576 = vmatpush.bf16.msrb.mxu1 %v8593_v63 }
 0x4ef   : > { %v4197_v40 = vadd.f32 %v4196_v42, %v4127_v62  ;;  %v4723_v52 = vadd.f32 %v4722_v3, %v4653_v4  ;;  %5508 = vmatpush.bf16.msrb.mxu0 %v8521_v53  ;;  %v9224_v4 = vld [vmem:[%s14268_s1 + $0x774] sm:$0xf]  ;;  %v8642_v62 = vld [vmem:[%s14268_s1 + $0x7f8] sm:$0xf0] }
 0x4f0   : > { %4169 = vmatmul.bf16.gmra.mxu2 %v12418_v56  ;;  %4692 = vmatmul.bf16.gmra.mxu0 %v12892_v16  ;;  %v9240_v56 = vld [vmem:[%s14268_s1 + $0x7f4] sm:$0xf]  ;;  %v12932_v3 = vld [vmem:[%s9560_s26 + $0x38] sm:$0xff] }
 0x4f1   : > { %v12909_v58 = vadd.f32 %v4197_v40, %v12429_v59  ;;  %v12914_v45 = vadd.f32 %v4723_v52, %v14768_v36  ;;  %4761 = vmatmul.bf16.gmra.mxu1 %v12903_v57  ;;  %v8578_v59 = vld [vmem:[%s14268_s1 + $0x778] sm:$0xf0]  ;;  %v8645_v13 = vor.u32 %v9240_v56, %v8642_v62  ;;  %v4958_v40 = vld [vmem:[%s9560_s26 + $0x30] sm:$0xff]  ;;  %v8266_v62 = vld [vmem:[%s9560_s26 + $0xe8] sm:$0xf0] }
 0x4f2   : > { %5577 = vmatpush.bf16.msrb.mxu1 %v8585_v54  ;;  %v8581_v63 = vor.u32 %v9224_v4, %v8578_v59  ;;  %v8264_v4 = vld [vmem:[%s9560_s26 + $0xe0] sm:$0xf]  ;;  %v9155_v59 = vld [vmem:[%s9560_s26 + $0xe4] sm:$0xf0]  ;;  %v5041_v56 = vunpack.c.l.b16 %v4958_v40 }
 0x4f3   : > { %14767 = vst [vmem:[#allocation59_spill] sm:$0xff] %v12909_v58  ;;  %4238 = vmatmul.bf16.gmra.mxu3 %v14770_v27  ;;  %v4130_v52 = vpop.f32.mrf.mxu2  ;;  %v9188_v58 = vld [vmem:[%s9560_s26 + $0x44] sm:$0xf] }
 0x4f4   : > { %14769 = vst [vmem:[#allocation4_spill] sm:$0xff] %v12914_v45  ;;  %5639 = vmatpush.bf16.msra.mxu2 %v8581_v63  ;;  %5708 = vmatpush.bf16.msra.mxu3 %v8645_v13  ;;  %v14367_v63 = vunpack.c.l.b16 %v12932_v3  ;;  %v14366_v13 = vunpack.c.h.b16 %v12932_v3 }
 0x4f5   : > { %v4655_v42 = vpop.f32.mrf.mxu0 }
 0x4f6   : > { %v4199_v46 = vpop.f32.mrf.mxu3  ;;  %v4724_v1 = vpop.f32.mrf.mxu1 }
 0x4f7   : > { %v4200_v53 = vadd.f32 %v4199_v46, %v4130_v52  ;;  %v4725_v54 = vadd.f32 %v4724_v1, %v4655_v42  ;;  %v9154_v52 = vld [vmem:[%s9560_s26 + $0xe4] sm:$0xf]  ;;  %v5042_v46 = vunpack.c.h.b16 %v4958_v40  ;;  %v12946_v1 = vor.u32 %v9155_v59, %v8264_v4 }
 0x4f9   : > { %v12935_v36 = vadd.f32 %v4200_v53, %v12451_v34  ;;  %v12938_v27 = vadd.f32 %v4725_v54, %v12454_v14  ;;  %v8432_v14 = vld [vmem:[%s9560_s26 + $0x40] sm:$0xf]  ;;  %v9189_v54 = vld [vmem:[%s9560_s26 + $0x44] sm:$0xf0]  ;;  %v5092_v16 = vpack.c.b16 %v14366_v13, %v5042_v46 }
 0x4fa   : > { %v12963_v59 = vor.u32 %v9189_v54, %v8432_v14 }
 0x4fb   : > { %14771 = vst [vmem:[#allocation9_spill] sm:$0xff] %v12935_v36  ;;  %v4132_v42 = vpop.f32.mrf.mxu2  ;;  %v12948_v36 = vor.u32 %v9154_v52, %v8266_v62  ;;  %v5132_v62 = vshll.u32 %v5092_v16, 16  ;;  %v5130_v54 = vshrl.u32 %v5092_v16, 16  ;;  %v8570_v16 = vld [vmem:[%s14268_s1 + $0x768] sm:$0xf0] }
 0x4fc   : > { %14772 = vst [vmem:[#allocation5_spill] sm:$0xff] %v12938_v27  ;;  %v5091_v27 = vpack.c.b16 %v14367_v63, %v5041_v56 }
 0x4fd   : > { %v4658_v53 = vpop.f32.mrf.mxu0 }
 0x4fe   : > { %v4201_v34 = vpop.f32.mrf.mxu3  ;;  %v4727_v45 = vpop.f32.mrf.mxu1  ;;  %v5120_v56 = vshll.u32 %v5091_v27, 16 }
 0x4ff   : > { %v4202_v57 = vadd.f32 %v4201_v34, %v4132_v42  ;;  %v4728_v40 = vadd.f32 %v4727_v45, %v4658_v53  ;;  %v12970_v45 = vor.u32 %v9188_v58, %v8434_v22  ;;  %v5118_v42 = vshrl.u32 %v5091_v27, 16  ;;  %v9222_v27 = vld [vmem:[%s14268_s1 + $0x764] sm:$0xf] }
 0x500   : > { %4174 = vmatmul.bf16.gmra.mxu2 %v12459_v5  ;;  %4697 = vmatmul.bf16.gmra.mxu0 %v12946_v1  ;;  %v5122_v34 = vrot.slane %v5120_v56, 1  ;;  %v9238_v56 = vld [vmem:[%s14268_s1 + $0x7e4] sm:$0xf] }
 0x501   : > { %v12959_v4 = vadd.f32 %v4202_v57, %v12465_v0  ;;  %v12966_v52 = vadd.f32 %v4728_v40, %v12470_v15  ;;  %4766 = vmatmul.bf16.gmra.mxu1 %v12948_v36  ;;  %v5125_v0 = vshll.u32 %v12963_v59, 16  ;;  %v5134_v15 = vrot.slane %v5132_v62, 1 }
 0x502   : > { %v5137_v40 = vshll.u32 %v12970_v45, 16  ;;  %v5123_v22 = vor.u32 %v5122_v34, %v5118_v42 }
 0x503   : > { %4243 = vmatmul.bf16.gmra.mxu3 %v12462_v9  ;;  %v4135_v46 = vpop.f32.mrf.mxu2  ;;  %v5127_v9 = vrot.slane %v5125_v0, 1 }
 0x504   : > { %v5139_v62 = vrot.slane %v5137_v40, 1 }
 0x505   : > { %v4660_v5 = vpop.f32.mrf.mxu0  ;;  %v12993_v42 = vsel %vm453_vm0, %v5123_v22, %v5127_v9 }
 0x506   : > { %v4204_v57 = vpop.f32.mrf.mxu3  ;;  %v4729_v14 = vpop.f32.mrf.mxu1 }
 0x507   : > { %v4205_v53 = vadd.f32 %v4204_v57, %v4135_v46  ;;  %v4730_v13 = vadd.f32 %v4729_v14, %v4660_v5 }
 0x509   : > { %v12975_v63 = vadd.f32 %v4205_v53, %v12475_v55  ;;  %v12978_v58 = vadd.f32 %v4730_v13, %v12480_v50  ;;  %v5135_v55 = vor.u32 %v5134_v15, %v5130_v54  ;;  %v8573_v50 = vor.u32 %v9222_v27, %v8570_v16  ;;  %v8634_v13 = vld [vmem:[%s14268_s1 + $0x7e8] sm:$0xf0]  ;;  %v8440_v54 = vld [vmem:[%s9560_s26 + $0x50] sm:$0xf]  ;;  %v9191_v15 = vld [vmem:[%s9560_s26 + $0x54] sm:$0xf0] }
 0x50a   : > { %v8637_v0 = vor.u32 %v9238_v56, %v8634_v13  ;;  %v9190_v27 = vld [vmem:[%s9560_s26 + $0x54] sm:$0xf]  ;;  %v8442_v16 = vld [vmem:[%s9560_s26 + $0x58] sm:$0xf0]  ;;  %v13011_v56 = vor.u32 %v9191_v15, %v8440_v54 }
 0x50b   : > { %14773 = vst [vmem:[#allocation35_spill] sm:$0xff] %v12978_v58  ;;  %v4137_v46 = vpop.f32.mrf.mxu2  ;;  %5640 = vmatpush.bf16.msra.mxu2 %v8573_v50  ;;  %v12996_v14 = vsel %vm453_vm0, %v5135_v55, %v5139_v62  ;;  %v13014_v55 = vor.u32 %v9190_v27, %v8442_v16 }
 0x50c   : > { %5709 = vmatpush.bf16.msra.mxu3 %v8637_v0  ;;  %14774 = vst [vmem:[#allocation31_spill] sm:$0xff] %v12996_v14 }
 0x50d   : > { %v4663_v5 = vpop.f32.mrf.mxu0 }
 0x50e   : > { %v4206_v57 = vpop.f32.mrf.mxu3  ;;  %v4732_v53 = vpop.f32.mrf.mxu1 }
 0x50f   : > { %v4207_v34 = vadd.f32 %v4206_v57, %v4137_v46  ;;  %v4733_v40 = vadd.f32 %v4732_v53, %v4663_v5  ;;  %v5153_v5 = vshll.u32 %v13014_v55, 16 }
 0x510   : > { %4780 = vmatmul.bf16.vlgmr.msrb.gmra.mxu2 %v12496_v26  ;;  %5509 = vmatmul.bf16.vlgmr.msrb.gmra.mxu0 %v12993_v42  ;;  %v5145_v26 = vshll.u32 %v13011_v56, 16 }
 0x511   : > { %v13003_v58 = vadd.f32 %v4207_v34, %v12501_v12  ;;  %v13008_v22 = vadd.f32 %v4733_v40, %v12506_v37  ;;  %5578 = vmatmul.bf16.vlgmr.msrb.gmra.mxu1 %v12996_v14  ;;  %v5141_v12 = vshrl.u32 %v12963_v59, 16  ;;  %v5149_v37 = vshrl.u32 %v12970_v45, 16 }
 0x512   : > { %v5147_v15 = vrot.slane %v5145_v26, 1  ;;  %v5155_v27 = vrot.slane %v5153_v5, 1 }
 0x513   : > { %14775 = vst [vmem:[#allocation34_spill] sm:$0xff] %v13008_v22  ;;  %4849 = vmatmul.bf16.vlgmr.msrb.gmra.mxu3 %v12498_v35  ;;  %v4140_v50 = vpop.f32.mrf.mxu2  ;;  %v5143_v54 = vor.u32 %v5141_v12, %v5127_v9  ;;  %v5151_v40 = vor.u32 %v5149_v37, %v5139_v62 }
 0x515   : > { %v4665_v46 = vpop.f32.mrf.mxu0  ;;  %v13027_v14 = vsel %vm453_vm0, %v5143_v54, %v5147_v15 }
 0x516   : > { %v4209_v13 = vpop.f32.mrf.mxu3  ;;  %v4734_v57 = vpop.f32.mrf.mxu1 }
 0x517   : > { %v4210_v0 = vadd.f32 %v4209_v13, %v4140_v50  ;;  %v4735_v34 = vadd.f32 %v4734_v57, %v4665_v46  ;;  %v9193_v57 = vld [vmem:[%s9560_s26 + $0x64] sm:$0xf0] }
 0x519   : > { %v13021_v35 = vadd.f32 %v4210_v0, %v12511_v51  ;;  %v13024_v53 = vadd.f32 %v4735_v34, %v12514_v2  ;;  %v13030_v51 = vsel %vm453_vm0, %v5151_v40, %v5155_v27  ;;  %v8448_v0 = vld [vmem:[%s9560_s26 + $0x60] sm:$0xf]  ;;  %v9192_v34 = vld [vmem:[%s9560_s26 + $0x64] sm:$0xf]  ;;  %v5157_v40 = vshrl.u32 %v13011_v56, 16 }
 0x51a   : > { %14777 = vst [vmem:[#allocation36_spill] sm:$0xff] %v13030_v51  ;;  %v13045_v12 = vor.u32 %v9193_v57, %v8448_v0 }
 0x51b   : > { %14776 = vst [vmem:[#allocation33_spill] sm:$0xff] %v13024_v53  ;;  %v4142_v16 = vpop.f32.mrf.mxu2  ;;  %v8450_v53 = vld [vmem:[%s9560_s26 + $0x68] sm:$0xf0] }
 0x51c   : > { %v13048_v26 = vor.u32 %v9192_v34, %v8450_v53 }
 0x51d   : > { %v4668_v13 = vpop.f32.mrf.mxu0 }
 0x51e   : > { %v4211_v50 = vpop.f32.mrf.mxu3  ;;  %v4737_v46 = vpop.f32.mrf.mxu1  ;;  %v5169_v0 = vshll.u32 %v13048_v26, 16 }
 0x51f   : > { %v4212_v22 = vadd.f32 %v4211_v50, %v4142_v16  ;;  %v4738_v2 = vadd.f32 %v4737_v46, %v4668_v13  ;;  %v5161_v16 = vshll.u32 %v13045_v12, 16  ;;  %v5165_v46 = vshrl.u32 %v13014_v55, 16 }
 0x520   : > { %4785 = vmatmul.bf16.gmra.mxu2 %v12520_v39  ;;  %5514 = vmatmul.bf16.gmra.mxu0 %v13027_v14  ;;  %v8562_v39 = vld [vmem:[%s14268_s1 + $0x758] sm:$0xf0] }
 0x521   : > { %v13037_v9 = vadd.f32 %v4212_v22, %v12525_v60  ;;  %v13042_v62 = vadd.f32 %v4738_v2, %v12530_v33  ;;  %5583 = vmatmul.bf16.gmra.mxu1 %v13030_v51  ;;  %v9220_v60 = vld [vmem:[%s14268_s1 + $0x754] sm:$0xf] }
 0x522   : > { %v9236_v33 = vld [vmem:[%s14268_s1 + $0x7d4] sm:$0xf]  ;;  %v8565_v37 = vor.u32 %v9220_v60, %v8562_v39  ;;  %v5159_v60 = vor.u32 %v5157_v40, %v5147_v15  ;;  %v5163_v39 = vrot.slane %v5161_v16, 1 }
 0x523   : > { %4854 = vmatmul.bf16.gmra.mxu3 %v12522_v28  ;;  %v4145_v22 = vpop.f32.mrf.mxu2  ;;  %v8626_v28 = vld [vmem:[%s14268_s1 + $0x7d8] sm:$0xf0] }
 0x524   : > { %v8629_v5 = vor.u32 %v9236_v33, %v8626_v28  ;;  %5641 = vmatpush.bf16.msra.mxu2 %v8565_v37  ;;  %v5167_v33 = vor.u32 %v5165_v46, %v5155_v27  ;;  %v13073_v51 = vsel %vm453_vm0, %v5159_v60, %v5163_v39 }
 0x525   : > { %v4670_v54 = vpop.f32.mrf.mxu0 }
 0x526   : > { %v4214_v53 = vpop.f32.mrf.mxu3  ;;  %v4739_v13 = vpop.f32.mrf.mxu1  ;;  %5710 = vmatpush.bf16.msra.mxu3 %v8629_v5  ;;  %v8456_v5 = vld [vmem:[%s9560_s26 + $0x70] sm:$0xf] }
 0x527   : > { %v4215_v50 = vadd.f32 %v4214_v53, %v4145_v22  ;;  %v4740_v57 = vadd.f32 %v4739_v13, %v4670_v54  ;;  %v5171_v22 = vrot.slane %v5169_v0, 1  ;;  %v9195_v54 = vld [vmem:[%s9560_s26 + $0x74] sm:$0xf0] }
 0x528   : > { %v13087_v27 = vor.u32 %v9195_v54, %v8456_v5 }
 0x529   : > { %v13067_v2 = vadd.f32 %v4215_v50, %v12547_v61  ;;  %v13070_v34 = vadd.f32 %v4740_v57, %v12550_v19  ;;  %v13078_v50 = vsel %vm453_vm0, %v5167_v33, %v5171_v22  ;;  %v9194_v57 = vld [vmem:[%s9560_s26 + $0x74] sm:$0xf] }
 0x52a   : > { %v5177_v0 = vshll.u32 %v13087_v27, 16 }
 0x52b   : > { %14778 = vst [vmem:[#allocation37_spill] sm:$0xff] %v13070_v34  ;;  %v4147_v37 = vpop.f32.mrf.mxu2  ;;  %v8458_v34 = vld [vmem:[%s9560_s26 + $0x78] sm:$0xf0] }
 0x52c   : > { %v13094_v16 = vor.u32 %v9194_v57, %v8458_v34 }
 0x52d   : > { %v4673_v53 = vpop.f32.mrf.mxu0 }
 0x52e   : > { %v4216_v28 = vpop.f32.mrf.mxu3  ;;  %v4742_v61 = vpop.f32.mrf.mxu1 }
 0x52f   : > { %v4217_v13 = vadd.f32 %v4216_v28, %v4147_v37  ;;  %v4743_v19 = vadd.f32 %v4742_v61, %v4673_v53  ;;  %v5181_v28 = vshrl.u32 %v13048_v26, 16  ;;  %v8554_v61 = vld [vmem:[%s14268_s1 + $0x748] sm:$0xf0] }
 0x530   : > { %4790 = vmatmul.bf16.gmra.mxu2 %v12556_v20  ;;  %5519 = vmatmul.bf16.gmra.mxu0 %v13073_v51  ;;  %v5173_v20 = vshrl.u32 %v13045_v12, 16 }
 0x531   : > { %v13083_v15 = vadd.f32 %v4217_v13, %v12561_v7  ;;  %v13090_v40 = vadd.f32 %v4743_v19, %v12566_v18  ;;  %5588 = vmatmul.bf16.gmra.mxu1 %v13078_v50  ;;  %v5185_v18 = vshll.u32 %v13094_v16, 16  ;;  %v9218_v13 = vld [vmem:[%s14268_s1 + $0x744] sm:$0xf] }
 0x532   : > { %v5175_v54 = vor.u32 %v5173_v20, %v5163_v39  ;;  %v9234_v19 = vld [vmem:[%s14268_s1 + $0x7c4] sm:$0xf]  ;;  %v8618_v39 = vld [vmem:[%s14268_s1 + $0x7c8] sm:$0xf0] }
 0x533   : > { %4859 = vmatmul.bf16.gmra.mxu3 %v12558_v10  ;;  %v4150_v46 = vpop.f32.mrf.mxu2  ;;  %v5179_v10 = vrot.slane %v5177_v0, 1  ;;  %v5187_v57 = vrot.slane %v5185_v18, 1  ;;  %v8621_v0 = vor.u32 %v9234_v19, %v8618_v39  ;;  %v9197_v18 = vld [vmem:[%s9560_s26 + $0x84] sm:$0xf0] }
 0x535   : > { %v4675_v60 = vpop.f32.mrf.mxu0  ;;  %v13119_v20 = vsel %vm453_vm0, %v5175_v54, %v5179_v10  ;;  %5711 = vmatpush.bf16.msra.mxu3 %v8621_v0 }
 0x536   : > { %v4219_v7 = vpop.f32.mrf.mxu3  ;;  %v4744_v37 = vpop.f32.mrf.mxu1 }
 0x537   : > { %v4220_v33 = vadd.f32 %v4219_v7, %v4150_v46  ;;  %v4745_v53 = vadd.f32 %v4744_v37, %v4675_v60 }
 0x539   : > { %v13101_v5 = vadd.f32 %v4220_v33, %v12571_v30  ;;  %v13104_v34 = vadd.f32 %v4745_v53, %v12576_v43  ;;  %v5183_v30 = vor.u32 %v5181_v28, %v5171_v22  ;;  %v8557_v43 = vor.u32 %v9218_v13, %v8554_v61  ;;  %v8464_v28 = vld [vmem:[%s9560_s26 + $0x80] sm:$0xf]  ;;  %v9196_v13 = vld [vmem:[%s9560_s26 + $0x84] sm:$0xf]  ;;  %v8466_v61 = vld [vmem:[%s9560_s26 + $0x88] sm:$0xf0] }
 0x53a   : > { %v13137_v19 = vor.u32 %v9197_v18, %v8464_v28 }
 0x53b   : > { %14779 = vst [vmem:[#allocation39_spill] sm:$0xff] %v13104_v34  ;;  %v4152_v46 = vpop.f32.mrf.mxu2  ;;  %5642 = vmatpush.bf16.msra.mxu2 %v8557_v43  ;;  %v13122_v22 = vsel %vm453_vm0, %v5183_v30, %v5187_v57  ;;  %v13140_v30 = vor.u32 %v9196_v13, %v8466_v61 }
 0x53c   : > { %14780 = vst [vmem:[#allocation11_spill] sm:$0xff] %v13122_v22 }
 0x53d   : > { %v4678_v60 = vpop.f32.mrf.mxu0 }
 0x53e   : > { %v4221_v7 = vpop.f32.mrf.mxu3  ;;  %v4747_v37 = vpop.f32.mrf.mxu1 }
 0x53f   : > { %v4222_v33 = vadd.f32 %v4221_v7, %v4152_v46  ;;  %v4748_v53 = vadd.f32 %v4747_v37, %v4678_v60  ;;  %v5201_v60 = vshll.u32 %v13140_v30, 16 }
 0x540   : > { %4795 = vmatmul.bf16.gmra.mxu2 %v12592_v24  ;;  %5524 = vmatmul.bf16.gmra.mxu0 %v13119_v20  ;;  %v5193_v24 = vshll.u32 %v13137_v19, 16 }
 0x541   : > { %v13129_v34 = vadd.f32 %v4222_v33, %v12597_v17  ;;  %v13134_v54 = vadd.f32 %v4748_v53, %v12602_v44  ;;  %5593 = vmatmul.bf16.gmra.mxu1 %v13122_v22  ;;  %v5189_v17 = vshrl.u32 %v13087_v27, 16  ;;  %v5197_v44 = vshrl.u32 %v13094_v16, 16 }
 0x542   : > { %v5195_v18 = vrot.slane %v5193_v24, 1  ;;  %v5203_v13 = vrot.slane %v5201_v60, 1  ;;  %v14789_v60 = vld [vmem:[#allocation49_spill] sm:$0xff] }
 0x543   : > { %14781 = vst [vmem:[#allocation38_spill] sm:$0xff] %v13134_v54  ;;  %4864 = vmatmul.bf16.gmra.mxu3 %v12594_v48  ;;  %v4155_v43 = vpop.f32.mrf.mxu2  ;;  %v5191_v28 = vor.u32 %v5189_v17, %v5179_v10  ;;  %v5199_v53 = vor.u32 %v5197_v44, %v5187_v57  ;;  %v14786_v57 = vld [vmem:[#allocation48_spill] sm:$0xff]  ;;  %v14787_v17 = vld [vmem:[#allocation53_spill] sm:$0xff] }
 0x545   : > { %v4680_v46 = vpop.f32.mrf.mxu0  ;;  %v13153_v22 = vsel %vm453_vm0, %v5191_v28, %v5195_v18 }
 0x546   : > { %v4224_v39 = vpop.f32.mrf.mxu3  ;;  %v4749_v7 = vpop.f32.mrf.mxu1  ;;  %14783 = vst [vmem:[#allocation10_spill] sm:$0xff] %v13153_v22 }
 0x547   : > { %v4225_v0 = vadd.f32 %v4224_v39, %v4155_v43  ;;  %v4750_v33 = vadd.f32 %v4749_v7, %v4680_v46  ;;  %v9199_v7 = vld [vmem:[%s9560_s26 + $0x94] sm:$0xf0] }
 0x549   : > { %v13147_v48 = vadd.f32 %v4225_v0, %v12607_v11  ;;  %v13150_v37 = vadd.f32 %v4750_v33, %v12610_v21  ;;  %v13156_v11 = vsel %vm453_vm0, %v5199_v53, %v5203_v13  ;;  %v8472_v0 = vld [vmem:[%s9560_s26 + $0x90] sm:$0xf]  ;;  %v9198_v33 = vld [vmem:[%s9560_s26 + $0x94] sm:$0xf] }
 0x54a   : > { %14784 = vst [vmem:[#allocation40_spill] sm:$0xff] %v13156_v11  ;;  %v13171_v44 = vor.u32 %v9199_v7, %v8472_v0  ;;  %v9232_v53 = vld [vmem:[%s14268_s1 + $0x7b4] sm:$0xf]  ;;  %v5205_v7 = vshrl.u32 %v13137_v19, 16 }
 0x54b   : > { %14782 = vst [vmem:[#allocation8_spill] sm:$0xff] %v13150_v37  ;;  %v4157_v61 = vpop.f32.mrf.mxu2  ;;  %v8474_v37 = vld [vmem:[%s9560_s26 + $0x98] sm:$0xf0] }
 0x54c   : > { %v13174_v28 = vor.u32 %v9198_v33, %v8474_v37 }
 0x54d   : > { %v4683_v39 = vpop.f32.mrf.mxu0 }
 0x54e   : > { %v4226_v43 = vpop.f32.mrf.mxu3  ;;  %v4752_v46 = vpop.f32.mrf.mxu1 }
 0x54f   : > { %v4227_v54 = vadd.f32 %v4226_v43, %v4157_v61  ;;  %v4753_v21 = vadd.f32 %v4752_v46, %v4683_v39  ;;  %v8610_v39 = vld [vmem:[%s14268_s1 + $0x7b8] sm:$0xf0] }
 0x550   : > { %4800 = vmatmul.bf16.gmra.mxu2 %v14786_v57  ;;  %5529 = vmatmul.bf16.gmra.mxu0 %v13153_v22  ;;  %v8613_v37 = vor.u32 %v9232_v53, %v8610_v39  ;;  %v5207_v39 = vor.u32 %v5205_v7, %v5195_v18 }
 0x551   : > { %v13163_v10 = vadd.f32 %v4227_v54, %v12621_v31  ;;  %v13168_v24 = vadd.f32 %v4753_v21, %v14787_v17  ;;  %5598 = vmatmul.bf16.gmra.mxu1 %v13156_v11  ;;  %v9216_v31 = vld [vmem:[%s14268_s1 + $0x734] sm:$0xf]  ;;  %v8546_v54 = vld [vmem:[%s14268_s1 + $0x738] sm:$0xf0]  ;;  %v5209_v21 = vshll.u32 %v13171_v44, 16  ;;  %v5213_v17 = vshrl.u32 %v13140_v30, 16 }
 0x552   : > { %v8549_v43 = vor.u32 %v9216_v31, %v8546_v54  ;;  %5712 = vmatpush.bf16.msra.mxu3 %v8613_v37  ;;  %v8480_v37 = vld [vmem:[%s9560_s26 + $0xa0] sm:$0xf] }
 0x553   : > { %14785 = vst [vmem:[#allocation12_spill] sm:$0xff] %v13163_v10  ;;  %4869 = vmatmul.bf16.gmra.mxu3 %v14789_v60  ;;  %v4160_v61 = vpop.f32.mrf.mxu2  ;;  %v5217_v60 = vshll.u32 %v13174_v28, 16 }
 0x554   : > { %14788 = vst [vmem:[#allocation42_spill] sm:$0xff] %v13168_v24  ;;  %5643 = vmatpush.bf16.msra.mxu2 %v8549_v43  ;;  %v5211_v43 = vrot.slane %v5209_v21, 1 }
 0x555   : > { %v4685_v0 = vpop.f32.mrf.mxu0 }
 0x556   : > { %v4229_v46 = vpop.f32.mrf.mxu3  ;;  %v4754_v57 = vpop.f32.mrf.mxu1  ;;  %v13199_v10 = vsel %vm453_vm0, %v5207_v39, %v5211_v43  ;;  %v5229_v39 = vshrl.u32 %v13174_v28, 16 }
 0x557   : > { %v4230_v33 = vadd.f32 %v4229_v46, %v4160_v61  ;;  %v4755_v31 = vadd.f32 %v4754_v57, %v4685_v0  ;;  %v5215_v61 = vor.u32 %v5213_v17, %v5203_v13  ;;  %v5219_v46 = vrot.slane %v5217_v60, 1  ;;  %v9201_v0 = vld [vmem:[%s9560_s26 + $0xa4] sm:$0xf0] }
 0x558   : > { %v13213_v13 = vor.u32 %v9201_v0, %v8480_v37 }
 0x559   : > { %v13193_v54 = vadd.f32 %v4230_v33, %v12643_v32  ;;  %v13196_v53 = vadd.f32 %v4755_v31, %v12646_v23  ;;  %v13204_v33 = vsel %vm453_vm0, %v5215_v61, %v5219_v46  ;;  %v9200_v31 = vld [vmem:[%s9560_s26 + $0xa4] sm:$0xf] }
 0x55a   : > { %14791 = vst [vmem:[#allocation16_spill] sm:$0xff] %v13204_v33 }
 0x55b   : > { %14790 = vst [vmem:[#allocation41_spill] sm:$0xff] %v13196_v53  ;;  %v4162_v11 = vpop.f32.mrf.mxu2  ;;  %v8482_v53 = vld [vmem:[%s9560_s26 + $0xa8] sm:$0xf0] }
 0x55c   : > { %14792 = vst [vmem:[#allocation6_spill] sm:$0xff] %v13213_v13 }
 0x55d   : > { %v4688_v22 = vpop.f32.mrf.mxu0 }
 0x55e   : > { %v4231_v24 = vpop.f32.mrf.mxu3  ;;  %v4757_v32 = vpop.f32.mrf.mxu1 }
 0x55f   : > { %v4232_v57 = vadd.f32 %v4231_v24, %v4162_v11  ;;  %v4758_v23 = vadd.f32 %v4757_v32, %v4688_v22  ;;  %v13220_v11 = vor.u32 %v9200_v31, %v8482_v53  ;;  %v5225_v24 = vshll.u32 %v13213_v13, 16  ;;  %v8538_v32 = vld [vmem:[%s14268_s1 + $0x728] sm:$0xf0] }
 0x560   : > { %4805 = vmatmul.bf16.gmra.mxu2 %v12652_v47  ;;  %5534 = vmatmul.bf16.gmra.mxu0 %v13199_v10  ;;  %v5221_v47 = vshrl.u32 %v13171_v44, 16 }
 0x561   : > { %v13209_v18 = vadd.f32 %v4232_v57, %v12657_v49  ;;  %v13216_v7 = vadd.f32 %v4758_v23, %v12662_v25  ;;  %5603 = vmatmul.bf16.gmra.mxu1 %v13204_v33  ;;  %14793 = vst [vmem:[#allocation44_spill] sm:$0xff] %v13220_v11  ;;  %v5233_v25 = vshll.u32 %v13220_v11, 16  ;;  %v9214_v57 = vld [vmem:[%s14268_s1 + $0x724] sm:$0xf] }
 0x562   : > { %v5223_v0 = vor.u32 %v5221_v47, %v5211_v43  ;;  %v9230_v23 = vld [vmem:[%s14268_s1 + $0x7a4] sm:$0xf]  ;;  %v8602_v43 = vld [vmem:[%s14268_s1 + $0x7a8] sm:$0xf0] }
 0x563   : > { %4874 = vmatmul.bf16.gmra.mxu3 %v12654_v41  ;;  %v4165_v22 = vpop.f32.mrf.mxu2  ;;  %v5227_v41 = vrot.slane %v5225_v24, 1  ;;  %v5235_v31 = vrot.slane %v5233_v25, 1  ;;  %v8605_v24 = vor.u32 %v9230_v23, %v8602_v43  ;;  %v9203_v25 = vld [vmem:[%s9560_s26 + $0xb4] sm:$0xf0]  ;;  %v14800_v23 = vld [vmem:[#allocation51_spill] sm:$0xff] }
 0x565   : > { %v4690_v21 = vpop.f32.mrf.mxu0  ;;  %v13245_v47 = vsel %vm453_vm0, %v5223_v0, %v5227_v41  ;;  %5713 = vmatpush.bf16.msra.mxu3 %v8605_v24  ;;  %v14801_v0 = vld [vmem:[#allocation22_spill] sm:$0xff] }
 0x566   : > { %v4234_v49 = vpop.f32.mrf.mxu3  ;;  %v4759_v60 = vpop.f32.mrf.mxu1  ;;  %14796 = vst [vmem:[#allocation45_spill] sm:$0xff] %v13245_v47 }
 0x567   : > { %v4235_v17 = vadd.f32 %v4234_v49, %v4165_v22  ;;  %v4760_v61 = vadd.f32 %v4759_v60, %v4690_v21 }
 0x569   : > { %v13227_v37 = vadd.f32 %v4235_v17, %v12667_v6  ;;  %v13230_v53 = vadd.f32 %v4760_v61, %v12672_v29  ;;  %v5231_v6 = vor.u32 %v5229_v39, %v5219_v46  ;;  %v8541_v29 = vor.u32 %v9214_v57, %v8538_v32  ;;  %v8488_v39 = vld [vmem:[%s9560_s26 + $0xb0] sm:$0xf]  ;;  %v9202_v57 = vld [vmem:[%s9560_s26 + $0xb4] sm:$0xf]  ;;  %v8490_v32 = vld [vmem:[%s9560_s26 + $0xb8] sm:$0xf0] }
 0x56a   : > { %v13263_v43 = vor.u32 %v9203_v25, %v8488_v39  ;;  %v14806_v25 = vld [vmem:[#allocation23_spill] sm:$0xff] }
 0x56b   : > { %14794 = vst [vmem:[#allocation43_spill] sm:$0xff] %v13227_v37  ;;  %v4167_v22 = vpop.f32.mrf.mxu2  ;;  %5644 = vmatpush.bf16.msra.mxu2 %v8541_v29  ;;  %v13248_v46 = vsel %vm453_vm0, %v5231_v6, %v5235_v31  ;;  %v14804_v6 = vld [vmem:[#allocation18_spill] sm:$0xff] }
 0x56c   : > { %14795 = vst [vmem:[#allocation15_spill] sm:$0xff] %v13230_v53  ;;  %v14798_v53 = vld [vmem:[#allocation52_spill] sm:$0xff] }
 0x56d   : > { %v4693_v21 = vpop.f32.mrf.mxu0  ;;  %14797 = vst [vmem:[#allocation2_spill] sm:$0xff] %v13248_v46 }
 0x56e   : > { %v4236_v49 = vpop.f32.mrf.mxu3  ;;  %v4762_v60 = vpop.f32.mrf.mxu1  ;;  %14803 = vst [vmem:[#allocation47_spill] sm:$0xff] %v13263_v43 }
 0x56f   : > { %v4237_v17 = vadd.f32 %v4236_v49, %v4167_v22  ;;  %v4763_v61 = vadd.f32 %v4762_v60, %v4693_v21  ;;  %v13266_v22 = vor.u32 %v9202_v57, %v8490_v32  ;;  %v14808_v57 = vld [vmem:[#allocation20_spill] sm:$0xff] }
 0x570   : > { %4810 = vmatmul.bf16.gmra.mxu2 %v14800_v23  ;;  %5539 = vmatmul.bf16.gmra.mxu0 %v13245_v47 }
 0x571   : > { %v13255_v37 = vadd.f32 %v4237_v17, %v14798_v53  ;;  %v13260_v29 = vadd.f32 %v4763_v61, %v14801_v0  ;;  %5608 = vmatmul.bf16.gmra.mxu1 %v13248_v46  ;;  %14805 = vst [vmem:[#allocation50_spill] sm:$0xff] %v13266_v22  ;;  %v5237_v53 = vshrl.u32 %v13213_v13, 16  ;;  %v5241_v17 = vshll.u32 %v13263_v43, 16 }
 0x572   : > { %v5245_v61 = vshrl.u32 %v13220_v11, 16  ;;  %v5249_v0 = vshll.u32 %v13266_v22, 16 }
 0x573   : > { %14799 = vst [vmem:[#allocation17_spill] sm:$0xff] %v13255_v37  ;;  %4879 = vmatmul.bf16.gmra.mxu3 %v14804_v6  ;;  %v4170_v24 = vpop.f32.mrf.mxu2  ;;  %v5239_v46 = vor.u32 %v5237_v53, %v5227_v41  ;;  %v14812_v41 = vld [vmem:[#allocation54_spill] sm:$0xff] }
 0x574   : > { %14802 = vst [vmem:[#allocation19_spill] sm:$0xff] %v13260_v29  ;;  %v5243_v29 = vrot.slane %v5241_v17, 1  ;;  %v5247_v47 = vor.u32 %v5245_v61, %v5235_v31  ;;  %v14814_v31 = vld [vmem:[#allocation21_spill] sm:$0xff] }
 0x575   : > { %v4695_v21 = vpop.f32.mrf.mxu0  ;;  %v14815_v17 = vld [vmem:[#allocation25_spill] sm:$0xff] }
 0x576   : > { %v4239_v49 = vpop.f32.mrf.mxu3  ;;  %v4764_v23 = vpop.f32.mrf.mxu1  ;;  %v13279_v13 = vsel %vm453_vm0, %v5239_v46, %v5243_v29 }
 0x577   : > { %v4240_v60 = vadd.f32 %v4239_v49, %v4170_v24  ;;  %v4765_v39 = vadd.f32 %v4764_v23, %v4695_v21  ;;  %v5251_v24 = vrot.slane %v5249_v0, 1  ;;  %14810 = vst [vmem:[#allocation53_spill] sm:$0xff] %v13279_v13  ;;  %v8496_v23 = vld [vmem:[%s9560_s26 + $0xc0] sm:$0xf]  ;;  %v9228_v0 = vld [vmem:[%s14268_s1 + $0x794] sm:$0xf] }
 0x579   : > { %v13273_v6 = vadd.f32 %v4240_v60, %v14806_v25  ;;  %v13276_v32 = vadd.f32 %v4765_v39, %v14808_v57  ;;  %v13282_v60 = vsel %vm453_vm0, %v5247_v47, %v5251_v24  ;;  %v9205_v25 = vld [vmem:[%s9560_s26 + $0xc4] sm:$0xf0]  ;;  %v9204_v57 = vld [vmem:[%s9560_s26 + $0xc4] sm:$0xf] }
 0x57a   : > { %14811 = vst [vmem:[#allocation49_spill] sm:$0xff] %v13282_v60  ;;  %v14818_v47 = vld [vmem:[#allocation26_spill] sm:$0xff] }
 0x57b   : > { %14807 = vst [vmem:[#allocation46_spill] sm:$0xff] %v13273_v6  ;;  %v4172_v49 = vpop.f32.mrf.mxu2 }
 0x57c   : > { %14809 = vst [vmem:[#allocation48_spill] sm:$0xff] %v13276_v32  ;;  %v8498_v32 = vld [vmem:[%s9560_s26 + $0xc8] sm:$0xf0] }
 0x57d   : > { %v4698_v11 = vpop.f32.mrf.mxu0  ;;  %v13300_v61 = vor.u32 %v9204_v57, %v8498_v32  ;;  %v5253_v57 = vshrl.u32 %v13263_v43, 16  ;;  %v14833_v43 = vld [vmem:[#allocation3_spill] sm:$0xff] }
 0x57e   : > { %v4241_v37 = vpop.f32.mrf.mxu3  ;;  %v4767_v21 = vpop.f32.mrf.mxu1 }
 0x57f   : > { %v4242_v33 = vadd.f32 %v4241_v37, %v4172_v49  ;;  %v4768_v39 = vadd.f32 %v4767_v21, %v4698_v11  ;;  %v13297_v37 = vor.u32 %v9205_v25, %v8496_v23  ;;  %14819 = vst [vmem:[#allocation18_spill] sm:$0xff] %v13300_v61  ;;  %v8530_v11 = vld [vmem:[%s14268_s1 + $0x718] sm:$0xf0] }
 0x580   : > { %4815 = vmatmul.bf16.gmra.mxu2 %v14814_v31  ;;  %5544 = vmatmul.bf16.gmra.mxu0 %v13279_v13  ;;  %v8594_v23 = vld [vmem:[%s14268_s1 + $0x798] sm:$0xf0] }
 0x581   : > { %v13289_v53 = vadd.f32 %v4242_v33, %v14812_v41  ;;  %v13294_v46 = vadd.f32 %v4768_v39, %v14815_v17  ;;  %5613 = vmatmul.bf16.gmra.mxu1 %v13282_v60  ;;  %14817 = vst [vmem:[#allocation22_spill] sm:$0xff] %v13297_v37  ;;  %v9212_v33 = vld [vmem:[%s14268_s1 + $0x714] sm:$0xf]  ;;  %v8597_v32 = vor.u32 %v9228_v0, %v8594_v23  ;;  %v5257_v41 = vshll.u32 %v13297_v37, 16  ;;  %v8736_v0 = vld [vmem:[%s14268_s1 + $0x870] sm:$0xf] }
 0x582   : > { %v8533_v21 = vor.u32 %v9212_v33, %v8530_v11  ;;  %v5265_v60 = vshll.u32 %v13300_v61, 16  ;;  %v14820_v11 = vld [vmem:[#allocation55_spill] sm:$0xff] }
 0x583   : > { %14813 = vst [vmem:[#allocation52_spill] sm:$0xff] %v13289_v53  ;;  %4884 = vmatmul.bf16.gmra.mxu3 %v14818_v47  ;;  %v4175_v49 = vpop.f32.mrf.mxu2  ;;  %v5261_v47 = vshrl.u32 %v13266_v22, 16  ;;  %v5259_v13 = vrot.slane %v5257_v41, 1  ;;  %v14828_v22 = vld [vmem:[#allocation27_spill] sm:$0xff] }
 0x584   : > { %14816 = vst [vmem:[#allocation51_spill] sm:$0xff] %v13294_v46  ;;  %5645 = vmatpush.bf16.msra.mxu2 %v8533_v21  ;;  %5714 = vmatpush.bf16.msra.mxu3 %v8597_v32  ;;  %v14822_v21 = vld [vmem:[#allocation24_spill] sm:$0xff] }
 0x585   : > { %v4700_v39 = vpop.f32.mrf.mxu0 }
 0x586   : > { %v4244_v25 = vpop.f32.mrf.mxu3  ;;  %v4769_v17 = vpop.f32.mrf.mxu1 }
 0x587   : > { %v4245_v31 = vadd.f32 %v4244_v25, %v4175_v49  ;;  %v4770_v33 = vadd.f32 %v4769_v17, %v4700_v39  ;;  %v9257_v49 = vld [vmem:[%s14268_s1 + $0x874] sm:$0xf0]  ;;  %v5255_v25 = vor.u32 %v5253_v57, %v5243_v29  ;;  %v8800_v39 = vld [vmem:[%s14268_s1 + $0x8f0] sm:$0xf]  ;;  %v5263_v17 = vor.u32 %v5261_v47, %v5251_v24 }
 0x588   : > { %v8737_v32 = vor.u32 %v9257_v49, %v8736_v0 }
 0x589   : > { %v13319_v46 = vadd.f32 %v4245_v31, %v14820_v11  ;;  %v13328_v23 = vadd.f32 %v4770_v33, %v14822_v21  ;;  %v9273_v31 = vld [vmem:[%s14268_s1 + $0x8f4] sm:$0xf0]  ;;  %v5267_v11 = vrot.slane %v5265_v60, 1  ;;  %v8504_v33 = vld [vmem:[%s9560_s26 + $0xd0] sm:$0xf]  ;;  %v13339_v41 = vsel %vm453_vm0, %v5255_v25, %v5259_v13 }
 0x58a   : > { %6098 = vmatpush.bf16.msra.mxu0 %v8737_v32  ;;  %v9207_v21 = vld [vmem:[%s9560_s26 + $0xd4] sm:$0xf0]  ;;  %14824 = vst [vmem:[#allocation54_spill] sm:$0xff] %v13339_v41  ;;  %v9206_v60 = vld [vmem:[%s9560_s26 + $0xd4] sm:$0xf] }
 0x58b   : > { %14821 = vst [vmem:[#allocation23_spill] sm:$0xff] %v13319_v46  ;;  %v8801_v46 = vor.u32 %v9273_v31, %v8800_v39  ;;  %v4177_v53 = vpop.f32.mrf.mxu2  ;;  %v13344_v47 = vor.u32 %v9207_v21, %v8504_v33  ;;  %v8506_v39 = vld [vmem:[%s9560_s26 + $0xd8] sm:$0xf0] }
 0x58c   : > { %14823 = vst [vmem:[#allocation20_spill] sm:$0xff] %v13328_v23  ;;  %v13342_v23 = vsel %vm453_vm0, %v5263_v17, %v5267_v11  ;;  %v14826_v31 = vld [vmem:[#allocation57_spill] sm:$0xff]  ;;  %v13358_v17 = vor.u32 %v9206_v60, %v8506_v39  ;;  %v9271_v39 = vld [vmem:[%s14268_s1 + $0x8e4] sm:$0xf0] }
 0x58d   : > { %6167 = vmatpush.bf16.msra.mxu1 %v8801_v46  ;;  %v5510_v57 = vpop.f32.mrf.mxu0  ;;  %14825 = vst [vmem:[#allocation21_spill] sm:$0xff] %v13342_v23  ;;  %v14829_v46 = vld [vmem:[#allocation30_spill] sm:$0xff]  ;;  %v5273_v21 = vshll.u32 %v13344_v47, 16 }
 0x58e   : > { %v4246_v29 = vpop.f32.mrf.mxu3  ;;  %v5579_v49 = vpop.f32.mrf.mxu1  ;;  %14832 = vst [vmem:[#allocation55_spill] sm:$0xff] %v13358_v17 }
 0x58f   : > { %v4247_v0 = vadd.f32 %v4246_v29, %v4177_v53  ;;  %v5580_v24 = vadd.f32 %v5579_v49, %v5510_v57  ;;  %v14831_v53 = vld [vmem:[#allocation28_spill] sm:$0xff]  ;;  %v8728_v29 = vld [vmem:[%s14268_s1 + $0x860] sm:$0xf] }
 0x590   : > { %4820 = vmatmul.bf16.gmra.mxu2 %v14828_v22  ;;  %5549 = vmatmul.bf16.gmra.mxu0 %v13339_v41  ;;  %v9255_v22 = vld [vmem:[%s14268_s1 + $0x864] sm:$0xf0]  ;;  %v8792_v57 = vld [vmem:[%s14268_s1 + $0x8e0] sm:$0xf] }
 0x591   : > { %v13349_v32 = vadd.f32 %v4247_v0, %v14826_v31  ;;  %v13354_v25 = vadd.f32 %v5580_v24, %v14829_v46  ;;  %5618 = vmatmul.bf16.gmra.mxu1 %v13342_v23  ;;  %v5269_v24 = vshrl.u32 %v13297_v37, 16  ;;  %v8729_v60 = vor.u32 %v9255_v22, %v8728_v29  ;;  %v8720_v29 = vld [vmem:[%s14268_s1 + $0x850] sm:$0xf]  ;;  %v9208_v37 = vld [vmem:[%s9560_s26 + $0xe4] sm:$0xf] }
 0x592   : > { %v8793_v23 = vor.u32 %v9271_v39, %v8792_v57  ;;  %v8784_v22 = vld [vmem:[%s14268_s1 + $0x8d0] sm:$0xf] }
 0x593   : > { %14827 = vst [vmem:[#allocation25_spill] sm:$0xff] %v13349_v32  ;;  %4889 = vmatmul.bf16.gmra.mxu3 %v14831_v53  ;;  %v4781_v33 = vpop.f32.mrf.mxu2  ;;  %v5277_v53 = vshrl.u32 %v13300_v61, 16  ;;  %v13376_v32 = vrot.slane %v5273_v21, 1  ;;  %6099 = vmatpush.bf16.msra.mxu0 %v8729_v60  ;;  %v14835_v57 = vld [vmem:[#allocation56_spill] sm:$0xff] }
 0x594   : > { %14830 = vst [vmem:[#allocation26_spill] sm:$0xff] %v13354_v25  ;;  %v5281_v25 = vshll.u32 %v13358_v17, 16  ;;  %6168 = vmatpush.bf16.msra.mxu1 %v8793_v23  ;;  %v8522_v23 = vld [vmem:[%s14268_s1 + $0x708] sm:$0xf0] }
 0x595   : > { %v5512_v49 = vpop.f32.mrf.mxu0  ;;  %v5279_v39 = vor.u32 %v5277_v53, %v5267_v11  ;;  %v8712_v11 = vld [vmem:[%s14268_s1 + $0x840] sm:$0xf] }
 0x596   : > { %v4850_v0 = vpop.f32.mrf.mxu3  ;;  %v5581_v46 = vpop.f32.mrf.mxu1  ;;  %v8776_v53 = vld [vmem:[%s14268_s1 + $0x8c0] sm:$0xf] }
 0x597   : > { %v4851_v31 = vadd.f32 %v4850_v0, %v4781_v33  ;;  %v5582_v41 = vadd.f32 %v5581_v46, %v5512_v49  ;;  %v9253_v33 = vld [vmem:[%s14268_s1 + $0x854] sm:$0xf0]  ;;  %v5271_v0 = vor.u32 %v5269_v24, %v5259_v13  ;;  %v9226_v49 = vld [vmem:[%s14268_s1 + $0x784] sm:$0xf]  ;;  %v8586_v13 = vld [vmem:[%s14268_s1 + $0x788] sm:$0xf0] }
 0x598   : > { %v8721_v60 = vor.u32 %v9253_v33, %v8720_v29 }
 0x599   : > { %v13379_v6 = vadd.f32 %v4851_v31, %v14833_v43  ;;  %v13391_v21 = vadd.f32 %v5582_v41, %v14835_v57  ;;  %v9210_v43 = vld [vmem:[%s14268_s1 + $0x704] sm:$0xf]  ;;  %v13402_v31 = vrot.slane %v5281_v25, 1  ;;  %v9269_v41 = vld [vmem:[%s14268_s1 + $0x8d4] sm:$0xf0]  ;;  %v8589_v57 = vor.u32 %v9226_v49, %v8586_v13 }
 0x59a   : > { %v8525_v46 = vor.u32 %v9210_v43, %v8522_v23  ;;  %6100 = vmatpush.bf16.msra.mxu0 %v8721_v60  ;;  %v9251_v25 = vld [vmem:[%s14268_s1 + $0x844] sm:$0xf0]  ;;  %v8512_v13 = vld [vmem:[%s9560_s26 + $0xe0] sm:$0xf] }
 0x59b   : > { %14834 = vst [vmem:[#allocation24_spill] sm:$0xff] %v13379_v6  ;;  %v4783_v24 = vpop.f32.mrf.mxu2  ;;  %5715 = vmatpush.bf16.msra.mxu3 %v8589_v57  ;;  %v8713_v43 = vor.u32 %v9251_v25, %v8712_v11  ;;  %v9267_v23 = vld [vmem:[%s14268_s1 + $0x8c4] sm:$0xf0]  ;;  %v8768_v57 = vld [vmem:[%s14268_s1 + $0x8b0] sm:$0xf]  ;;  %v14840_v11 = vld [vmem:[#allocation13_spill] sm:$0xff] }
 0x59c   : > { %14836 = vst [vmem:[#allocation57_spill] sm:$0xff] %v13391_v21  ;;  %v8785_v21 = vor.u32 %v9269_v41, %v8784_v22  ;;  %5646 = vmatpush.bf16.msra.mxu2 %v8525_v46  ;;  %v13421_v22 = vsel %vm453_vm0, %v5271_v0, %v13376_v32  ;;  %v13428_v46 = vsel %vm453_vm0, %v5279_v39, %v13402_v31  ;;  %v9209_v41 = vld [vmem:[%s9560_s26 + $0xe4] sm:$0xf0]  ;;  %v8514_v0 = vld [vmem:[%s9560_s26 + $0xe8] sm:$0xf0] }
 0x59d   : > { %v5515_v33 = vpop.f32.mrf.mxu0  ;;  %14837 = vst [vmem:[#allocation27_spill] sm:$0xff] %v13421_v22  ;;  %v8777_v6 = vor.u32 %v9267_v23, %v8776_v53  ;;  %v9249_v39 = vld [vmem:[%s14268_s1 + $0x834] sm:$0xf0] }
 0x59e   : > { %v4852_v29 = vpop.f32.mrf.mxu3  ;;  %6169 = vmatpush.bf16.msra.mxu1 %v8785_v21  ;;  %v5584_v60 = vpop.f32.mrf.mxu1  ;;  %14838 = vst [vmem:[#allocation30_spill] sm:$0xff] %v13428_v46  ;;  %6101 = vmatpush.bf16.msra.mxu0 %v8713_v43  ;;  %v9265_v53 = vld [vmem:[%s14268_s1 + $0x8b4] sm:$0xf0] }
 0x59f   : > { %v4853_v49 = vadd.f32 %v4852_v29, %v4783_v24  ;;  %v5585_v61 = vadd.f32 %v5584_v60, %v5515_v33  ;;  %v8704_v24 = vld [vmem:[%s14268_s1 + $0x830] sm:$0xf]  ;;  %v14842_v29 = vld [vmem:[#allocation7_spill] sm:$0xff]  ;;  %v13458_v33 = vor.u32 %v9208_v37, %v8514_v0  ;;  %v8769_v43 = vor.u32 %v9265_v53, %v8768_v57  ;;  %v8760_v60 = vld [vmem:[%s14268_s1 + $0x8a0] sm:$0xf] }
 0x5a0   : > { %4825 = vmatmul.bf16.gmra.mxu2 %v12820_v38  ;;  %5554 = vmatmul.bf16.gmra.mxu0 %v13421_v22  ;;  %v13452_v38 = vor.u32 %v9209_v41, %v8512_v13  ;;  %v5285_v37 = vshrl.u32 %v13344_v47, 16 }
 0x5a1   : > { %v13435_v21 = vadd.f32 %v4853_v49, %v12837_v8  ;;  %v13449_v25 = vadd.f32 %v5585_v61, %v14840_v11  ;;  %5623 = vmatmul.bf16.gmra.mxu1 %v13428_v46  ;;  %v8705_v8 = vor.u32 %v9249_v39, %v8704_v24  ;;  %14843 = vst [vmem:[#allocation56_spill] sm:$0xff] %v13458_v33  ;;  %v8696_v61 = vld [vmem:[%s14268_s1 + $0x820] sm:$0xf]  ;;  %v9247_v49 = vld [vmem:[%s14268_s1 + $0x824] sm:$0xf0]  ;;  %v5293_v11 = vshrl.u32 %v13358_v17, 16 }
 0x5a2   : > { %6170 = vmatpush.bf16.msra.mxu1 %v8777_v6  ;;  %v5289_v6 = vshll.u32 %v13452_v38, 16  ;;  %v8697_v0 = vor.u32 %v9247_v49, %v8696_v61  ;;  %v9263_v24 = vld [vmem:[%s14268_s1 + $0x8a4] sm:$0xf0]  ;;  %v8688_v61 = vld [vmem:[%s14268_s1 + $0x810] sm:$0xf] }
 0x5a3   : > { %14839 = vst [vmem:[#allocation28_spill] sm:$0xff] %v13435_v21  ;;  %4894 = vmatmul.bf16.gmra.mxu3 %v14842_v29  ;;  %v4786_v23 = vpop.f32.mrf.mxu2  ;;  %6102 = vmatpush.bf16.msra.mxu0 %v8705_v8  ;;  %v5297_v8 = vshll.u32 %v13458_v33, 16  ;;  %v8761_v53 = vor.u32 %v9263_v24, %v8760_v60  ;;  %v8752_v49 = vld [vmem:[%s14268_s1 + $0x890] sm:$0xf]  ;;  %v5287_v60 = vor.u32 %v5285_v37, %v13376_v32  ;;  %v9243_v32 = vld [vmem:[%s14268_s1 + $0x804] sm:$0xf0] }
 0x5a4   : > { %14841 = vst [vmem:[#allocation3_spill] sm:$0xff] %v13449_v25  ;;  %v14844_v25 = vld [vmem:[#allocation29_spill] sm:$0xff]  ;;  %v5295_v24 = vor.u32 %v5293_v11, %v13402_v31  ;;  %v8744_v37 = vld [vmem:[%s14268_s1 + $0x880] sm:$0xf]  ;;  %v14850_v21 = vld [vmem:[#allocation59_spill] sm:$0xff] }
 0x5a5   : > { %v5517_v41 = vpop.f32.mrf.mxu0 }
 0x5a6   : > { %v4855_v13 = vpop.f32.mrf.mxu3  ;;  %v5586_v57 = vpop.f32.mrf.mxu1  ;;  %6171 = vmatpush.bf16.msra.mxu1 %v8769_v43 }
 0x5a7   : > { %v4856_v39 = vadd.f32 %v4855_v13, %v4786_v23  ;;  %v5587_v29 = vadd.f32 %v5586_v57, %v5517_v41  ;;  %6103 = vmatpush.bf16.msra.mxu0 %v8697_v0  ;;  %v9245_v23 = vld [vmem:[%s14268_s1 + $0x814] sm:$0xf0]  ;;  %v14846_v13 = vld [vmem:[#allocation32_spill] sm:$0xff]  ;;  %v5291_v41 = vrot.slane %v5289_v6, 1 }
 0x5a8   : > { %v9261_v0 = vld [vmem:[%s14268_s1 + $0x894] sm:$0xf0]  ;;  %v4982_v57 = vld [vmem:[%s9560_s26 + $0xf0] sm:$0x11] }
 0x5a9   : > { %v13477_v46 = vadd.f32 %v4856_v39, %v14844_v25  ;;  %v13489_v43 = vadd.f32 %v5587_v29, %v14846_v13  ;;  %v8689_v25 = vor.u32 %v9245_v23, %v8688_v61  ;;  %v5299_v39 = vrot.slane %v5297_v8, 1  ;;  %v8680_v29 = vld [vmem:[%s14268_s1 + $0x800] sm:$0xf]  ;;  %v9259_v61 = vld [vmem:[%s14268_s1 + $0x884] sm:$0xf0] }
 0x5aa   : > { %6172 = vmatpush.bf16.msra.mxu1 %v8761_v53  ;;  %v13507_v11 = vsel %vm453_vm0, %v5287_v60, %v5291_v41  ;;  %v5089_v8 = vunpack.c.l.b16 %v4982_v57  ;;  %v8681_v53 = vor.u32 %v9243_v32, %v8680_v29  ;;  %v14852_v60 = vld [vmem:[#allocation58_spill] sm:$0xff]  ;;  %v14853_v29 = vld [vmem:[#allocation4_spill] sm:$0xff] }
 0x5ab   : > { %14845 = vst [vmem:[#allocation13_spill] sm:$0xff] %v13477_v46  ;;  %v8753_v46 = vor.u32 %v9261_v0, %v8752_v49  ;;  %v4788_v22 = vpop.f32.mrf.mxu2  ;;  %6104 = vmatpush.bf16.msra.mxu0 %v8689_v25  ;;  %v13513_v13 = vsel %vm453_vm0, %v5295_v24, %v5299_v39  ;;  %v5090_v25 = vunpack.c.h.b16 %v4982_v57  ;;  %v8745_v0 = vor.u32 %v9259_v61, %v8744_v37  ;;  %v14856_v24 = vld [vmem:[#allocation14_spill] sm:$0xff]  ;;  %v8738_v57 = vld [vmem:[%s14268_s1 + $0x878] sm:$0xf0] }
 0x5ac   : > { %14847 = vst [vmem:[#allocation7_spill] sm:$0xff] %v13489_v43 }
 0x5ad   : > { %v5520_v31 = vpop.f32.mrf.mxu0  ;;  %14848 = vst [vmem:[#allocation29_spill] sm:$0xff] %v13507_v11 }
 0x5ae   : > { %v4857_v6 = vpop.f32.mrf.mxu3  ;;  %v5589_v49 = vpop.f32.mrf.mxu1  ;;  %14849 = vst [vmem:[#allocation32_spill] sm:$0xff] %v13513_v13  ;;  %6173 = vmatpush.bf16.msra.mxu1 %v8753_v46  ;;  %v13527_v46 = vpack.c.b16 %v5090_v25, %v5090_v25 }
 0x5af   : > { %v4858_v23 = vadd.f32 %v4857_v6, %v4788_v22  ;;  %v5590_v43 = vadd.f32 %v5589_v49, %v5520_v31  ;;  %6105 = vmatpush.bf16.msra.mxu0 %v8681_v53  ;;  %v13524_v22 = vpack.c.b16 %v5089_v8, %v5089_v8  ;;  %v8802_v31 = vld [vmem:[%s14268_s1 + $0x8f8] sm:$0xf0] }
 0x5b0   : > { %4830 = vmatmul.bf16.gmra.mxu2 %v14852_v60  ;;  %5559 = vmatmul.bf16.gmra.mxu0 %v13507_v11  ;;  %14857 = vst [vmem:[#allocation14_spill] sm:$0xff] %v13527_v46  ;;  %v5309_v60 = vshrl.u32 %v13458_v33, 16  ;;  %v5825_v33 = vld [vmem:[%s9560_s26 + $0x30] sm:$0xee]  ;;  %s252_s26 = smul.u32 24, %s9372_s18 }
 0x5b1   : > { %v13516_v17 = vadd.f32 %v4858_v23, %v14850_v21  ;;  %v13521_v32 = vadd.f32 %v5590_v43, %v14853_v29  ;;  %5628 = vmatmul.bf16.gmra.mxu1 %v13513_v13  ;;  %14855 = vst [vmem:[#allocation4_spill] sm:$0xff] %v13524_v22  ;;  %v9256_v21 = vld [vmem:[%s14268_s1 + $0x874] sm:$0xf]  ;;  %v5301_v23 = vshrl.u32 %v13452_v38, 16  ;;  %v5305_v49 = vshll.u32 %v13524_v22, 16 }
 0x5b2   : > { %6174 = vmatpush.bf16.msra.mxu1 %v8745_v0  ;;  %v9272_v43 = vld [vmem:[%s14268_s1 + $0x8f4] sm:$0xf]  ;;  %v8741_v6 = vor.u32 %v9256_v21, %v8738_v57  ;;  %v5313_v29 = vshll.u32 %v13527_v46, 16  ;;  %v14858_v21 = vld [vmem:[#allocation9_spill] sm:$0xff]  ;;  %v5311_v11 = vor.u32 %v5309_v60, %v5299_v39  ;;  %p255_p7 = scmp.lt.s32.totalorder %s252_s26, 47 }
 0x5b3   : > { %14851 = vst [vmem:[#allocation59_spill] sm:$0xff] %v13516_v17  ;;  %4899 = vmatmul.bf16.gmra.mxu3 %v14856_v24  ;;  %v4791_v37 = vpop.f32.mrf.mxu2  ;;  %v8805_v8 = vor.u32 %v9272_v43, %v8802_v31  ;;  %v14859_v43 = vld [vmem:[#allocation5_spill] sm:$0xff]  ;;  %v5307_v13 = vrot.slane %v5305_v49, 1 }
 0x5b4   : > { %14854 = vst [vmem:[#allocation58_spill] sm:$0xff] %v13521_v32  ;;  %6236 = vmatpush.bf16.msrb.mxu2 %v8741_v6  ;;  %v5303_v32 = vor.u32 %v5301_v23, %v5291_v41  ;;  %v5315_v22 = vrot.slane %v5313_v29, 1  ;;  %v5860_v41 = vunpack.c.l.b16 %v5825_v33  ;;  %s14985_s26 = smov (!%p255_p7, %s252_s26), 47 }
 0x5b5   : > { %v5522_v61 = vpop.f32.mrf.mxu0  ;;  %6305 = vmatpush.bf16.msrb.mxu3 %v8805_v8  ;;  %s258_s15 = sadd.s32 %s9308_s13, %s14985_s26 }
 0x5b6   : > { %v4860_v53 = vpop.f32.mrf.mxu3  ;;  %v5591_v0 = vpop.f32.mrf.mxu1  ;;  %v13552_v17 = vsel %vm453_vm0, %v5303_v32, %v5307_v13  ;;  %v5861_v13 = vunpack.c.h.b16 %v5825_v33  ;;  %s6941_s17 = sshll.u32 %s258_s15, 3 }
 0x5b7   : > { %v4861_v25 = vadd.f32 %v4860_v53, %v4791_v37  ;;  %v5592_v24 = vadd.f32 %v5591_v0, %v5522_v61  ;;  %v13556_v61 = vsel %vm453_vm0, %v5311_v11, %v5315_v22  ;;  %v14860_v11 = vunpack.c.l.b16 %v12932_v3  ;;  %s14189_s27 = scalar_lea.vmem %s14272_s5, %s6941_s17 }
 0x5b9   : > { %v13546_v57 = vadd.f32 %v4861_v25, %v14858_v21  ;;  %v13549_v31 = vadd.f32 %v5592_v24, %v14859_v43  ;;  %v5862_v22 = vpack.c.b16 %v14860_v11, %v5860_v41  ;;  %v5865_v21 = vrot.slane %v12963_v59, 1  ;;  %v9254_v43 = vld [vmem:[%s14268_s1 + $0x864] sm:$0xf]  ;;  %v8794_v59 = vld [vmem:[%s14268_s1 + $0x8e8] sm:$0xf0] }
 0x5bb   : > { %v4793_v6 = vpop.f32.mrf.mxu2  ;;  %v5864_v24 = vrot.slane %v5862_v22, 1 }
 0x5bd   : > { %v5525_v53 = vpop.f32.mrf.mxu0 }
 0x5be   : > { %v4862_v37 = vpop.f32.mrf.mxu3  ;;  %v5594_v8 = vpop.f32.mrf.mxu1 }
 0x5bf   : > { %v4863_v46 = vadd.f32 %v4862_v37, %v4793_v6  ;;  %v5595_v25 = vadd.f32 %v5594_v8, %v5525_v53  ;;  %v8730_v6 = vld [vmem:[%s14268_s1 + $0x868] sm:$0xf0]  ;;  %v5868_v37 = vrot.slane %v12970_v45, 1 }
 0x5c0   : > { %4835 = vmatmul.bf16.gmra.mxu2 %v12946_v1  ;;  %5564 = vmatmul.bf16.gmra.mxu0 %v13552_v17  ;;  %v14861_v1 = vunpack.c.h.b16 %v12932_v3  ;;  %v9270_v3 = vld [vmem:[%s14268_s1 + $0x8e4] sm:$0xf]  ;;  %v8733_v53 = vor.u32 %v9254_v43, %v8730_v6 }
 0x5c1   : > { %v13559_v0 = vadd.f32 %v4863_v46, %v12959_v4  ;;  %v13564_v39 = vadd.f32 %v5595_v25, %v12966_v52  ;;  %5633 = vmatmul.bf16.gmra.mxu1 %v13556_v61  ;;  %v8797_v25 = vor.u32 %v9270_v3, %v8794_v59  ;;  %v14865_v3 = vld [vmem:[#allocation33_spill] sm:$0xff] }
 0x5c2   : > { %v5863_v60 = vpack.c.b16 %v14861_v1, %v5861_v13  ;;  %6237 = vmatpush.bf16.msrb.mxu2 %v8733_v53  ;;  %v14864_v1 = vld [vmem:[#allocation31_spill] sm:$0xff]  ;;  %v5872_v53 = vrot.slane %v13014_v55, 1  ;;  %v14866_v55 = vld [vmem:[#allocation36_spill] sm:$0xff] }
 0x5c3   : > { %4904 = vmatmul.bf16.gmra.mxu3 %v12948_v36  ;;  %v4796_v32 = vpop.f32.mrf.mxu2  ;;  %v14862_v36 = vld [vmem:[#allocation35_spill] sm:$0xff] }
 0x5c4   : > { %6306 = vmatpush.bf16.msrb.mxu3 %v8797_v25 }
 0x5c5   : > { %v5527_v4 = vpop.f32.mrf.mxu0 }
 0x5c6   : > { %v4865_v23 = vpop.f32.mrf.mxu3  ;;  %v5596_v49 = vpop.f32.mrf.mxu1 }
 0x5c7   : > { %v4866_v46 = vadd.f32 %v4865_v23, %v4796_v32  ;;  %v5597_v29 = vadd.f32 %v5596_v49, %v5527_v4  ;;  %v13593_v32 = vsel %vm1613_vm1, %v5864_v24, %v5865_v21 }
 0x5c9   : > { %v13573_v52 = vadd.f32 %v4866_v46, %v12975_v63  ;;  %v13577_v33 = vadd.f32 %v5597_v29, %v14862_v36  ;;  %v5867_v63 = vrot.slane %v5863_v60, 1  ;;  %v14863_v46 = vld [vmem:[#allocation34_spill] sm:$0xff] }
 0x5cb   : > { %v4798_v8 = vpop.f32.mrf.mxu2  ;;  %v13596_v23 = vsel %vm1613_vm1, %v5867_v63, %v5868_v37  ;;  %v5870_v63 = vrot.slane %v13011_v56, 1 }
 0x5cd   : > { %v5530_v13 = vpop.f32.mrf.mxu0 }
 0x5ce   : > { %v4867_v41 = vpop.f32.mrf.mxu3  ;;  %v5599_v22 = vpop.f32.mrf.mxu1 }
 0x5cf   : > { %v4868_v11 = vadd.f32 %v4867_v41, %v4798_v8  ;;  %v5600_v45 = vadd.f32 %v5599_v22, %v5530_v13  ;;  %v13617_v41 = vsel %vm1613_vm1, %v5865_v21, %v5870_v63  ;;  %v13620_v22 = vsel %vm1613_vm1, %v5868_v37, %v5872_v53  ;;  %v9252_v21 = vld [vmem:[%s14268_s1 + $0x854] sm:$0xf] }
 0x5d0   : > { %5647 = vmatmul.bf16.vlgmr.msra.gmra.mxu2 %v12993_v42  ;;  %6106 = vmatmul.bf16.vlgmr.msra.gmra.mxu0 %v13593_v32 }
 0x5d1   : > { %v13599_v4 = vadd.f32 %v4868_v11, %v13003_v58  ;;  %v13604_v49 = vadd.f32 %v5600_v45, %v14863_v46  ;;  %6175 = vmatmul.bf16.vlgmr.msra.gmra.mxu1 %v13596_v23 }
 0x5d3   : > { %5716 = vmatmul.bf16.vlgmr.msra.gmra.mxu3 %v14864_v1  ;;  %v4801_v60 = vpop.f32.mrf.mxu2 }
 0x5d5   : > { %v5532_v24 = vpop.f32.mrf.mxu0 }
 0x5d6   : > { %v4870_v29 = vpop.f32.mrf.mxu3  ;;  %v5601_v43 = vpop.f32.mrf.mxu1 }
 0x5d7   : > { %v4871_v36 = vadd.f32 %v4870_v29, %v4801_v60  ;;  %v5602_v6 = vadd.f32 %v5601_v43, %v5532_v24 }
 0x5d9   : > { %v13609_v58 = vadd.f32 %v4871_v36, %v13021_v35  ;;  %v13612_v42 = vadd.f32 %v5602_v6, %v14865_v3  ;;  %v14867_v3 = vld [vmem:[#allocation37_spill] sm:$0xff] }
 0x5db   : > { %v4803_v59 = vpop.f32.mrf.mxu2 }
 0x5dd   : > { %v5535_v25 = vpop.f32.mrf.mxu0 }
 0x5de   : > { %v4872_v8 = vpop.f32.mrf.mxu3  ;;  %v5604_v11 = vpop.f32.mrf.mxu1 }
 0x5df   : > { %v4873_v13 = vadd.f32 %v4872_v8, %v4803_v59  ;;  %v5605_v35 = vadd.f32 %v5604_v11, %v5535_v25  ;;  %v5874_v8 = vrot.slane %v13045_v12, 1  ;;  %v5876_v25 = vrot.slane %v13048_v26, 1 }
 0x5e0   : > { %5652 = vmatmul.bf16.gmra.mxu2 %v13027_v14  ;;  %6111 = vmatmul.bf16.gmra.mxu0 %v13617_v41  ;;  %v9268_v14 = vld [vmem:[%s14268_s1 + $0x8d4] sm:$0xf] }
 0x5e1   : > { %v13623_v45 = vadd.f32 %v4873_v13, %v13037_v9  ;;  %v13628_v56 = vadd.f32 %v5605_v35, %v13042_v62  ;;  %6180 = vmatmul.bf16.gmra.mxu1 %v13620_v22  ;;  %v8722_v9 = vld [vmem:[%s14268_s1 + $0x858] sm:$0xf0] }
 0x5e2   : > { %v8725_v46 = vor.u32 %v9252_v21, %v8722_v9  ;;  %v8786_v62 = vld [vmem:[%s14268_s1 + $0x8d8] sm:$0xf0] }
 0x5e3   : > { %5721 = vmatmul.bf16.gmra.mxu3 %v14866_v55  ;;  %v4806_v37 = vpop.f32.mrf.mxu2  ;;  %v8789_v1 = vor.u32 %v9268_v14, %v8786_v62  ;;  %v13653_v55 = vsel %vm1613_vm1, %v5870_v63, %v5874_v8  ;;  %v13656_v14 = vsel %vm1613_vm1, %v5872_v53, %v5876_v25 }
 0x5e4   : > { %6238 = vmatpush.bf16.msrb.mxu2 %v8725_v46 }
 0x5e5   : > { %v5537_v29 = vpop.f32.mrf.mxu0  ;;  %6307 = vmatpush.bf16.msrb.mxu3 %v8789_v1 }
 0x5e6   : > { %v4875_v60 = vpop.f32.mrf.mxu3  ;;  %v5606_v36 = vpop.f32.mrf.mxu1 }
 0x5e7   : > { %v4876_v24 = vadd.f32 %v4875_v60, %v4806_v37  ;;  %v5607_v43 = vadd.f32 %v5606_v36, %v5537_v29  ;;  %v14868_v60 = vld [vmem:[#allocation39_spill] sm:$0xff] }
 0x5e9   : > { %v13645_v6 = vadd.f32 %v4876_v24, %v13067_v2  ;;  %v13648_v59 = vadd.f32 %v5607_v43, %v14867_v3  ;;  %v9266_v24 = vld [vmem:[%s14268_s1 + $0x8c4] sm:$0xf] }
 0x5eb   : > { %v4808_v13 = vpop.f32.mrf.mxu2 }
 0x5ed   : > { %v5540_v35 = vpop.f32.mrf.mxu0 }
 0x5ee   : > { %v4877_v11 = vpop.f32.mrf.mxu3  ;;  %v5609_v9 = vpop.f32.mrf.mxu1 }
 0x5ef   : > { %v4878_v21 = vadd.f32 %v4877_v11, %v4808_v13  ;;  %v5610_v2 = vadd.f32 %v5609_v9, %v5540_v35 }
 0x5f0   : > { %5657 = vmatmul.bf16.gmra.mxu2 %v13073_v51  ;;  %6116 = vmatmul.bf16.gmra.mxu0 %v13653_v55  ;;  %v5878_v51 = vrot.slane %v13087_v27, 1  ;;  %v8778_v27 = vld [vmem:[%s14268_s1 + $0x8c8] sm:$0xf0] }
 0x5f1   : > { %v13659_v37 = vadd.f32 %v4878_v21, %v13083_v15  ;;  %v13664_v12 = vadd.f32 %v5610_v2, %v13090_v40  ;;  %6185 = vmatmul.bf16.gmra.mxu1 %v13656_v14  ;;  %v9250_v40 = vld [vmem:[%s14268_s1 + $0x844] sm:$0xf]  ;;  %v8781_v3 = vor.u32 %v9266_v24, %v8778_v27  ;;  %v5882_v24 = vrot.slane %v13137_v19, 1 }
 0x5f2   : > { %v13689_v35 = vsel %vm1613_vm1, %v5874_v8, %v5878_v51  ;;  %v14870_v8 = vld [vmem:[#allocation11_spill] sm:$0xff]  ;;  %v14874_v19 = vld [vmem:[#allocation42_spill] sm:$0xff] }
 0x5f3   : > { %5726 = vmatmul.bf16.gmra.mxu3 %v13078_v50  ;;  %v4811_v26 = vpop.f32.mrf.mxu2  ;;  %v8714_v50 = vld [vmem:[%s14268_s1 + $0x848] sm:$0xf0] }
 0x5f4   : > { %v8717_v36 = vor.u32 %v9250_v40, %v8714_v50  ;;  %6308 = vmatpush.bf16.msrb.mxu3 %v8781_v3  ;;  %v14871_v50 = vld [vmem:[#allocation8_spill] sm:$0xff] }
 0x5f5   : > { %v5542_v46 = vpop.f32.mrf.mxu0 }
 0x5f6   : > { %v4880_v63 = vpop.f32.mrf.mxu3  ;;  %v5611_v62 = vpop.f32.mrf.mxu1  ;;  %6239 = vmatpush.bf16.msrb.mxu2 %v8717_v36  ;;  %v5884_v36 = vrot.slane %v13140_v30, 1 }
 0x5f7   : > { %v4881_v53 = vadd.f32 %v4880_v63, %v4811_v26  ;;  %v5612_v1 = vadd.f32 %v5611_v62, %v5542_v46  ;;  %v14869_v63 = vld [vmem:[#allocation38_spill] sm:$0xff] }
 0x5f9   : > { %v13669_v15 = vadd.f32 %v4881_v53, %v13101_v5  ;;  %v13673_v29 = vadd.f32 %v5612_v1, %v14868_v60  ;;  %v5880_v5 = vrot.slane %v13094_v16, 1 }
 0x5fb   : > { %v4813_v43 = vpop.f32.mrf.mxu2  ;;  %v13692_v2 = vsel %vm1613_vm1, %v5876_v25, %v5880_v5 }
 0x5fd   : > { %v5545_v11 = vpop.f32.mrf.mxu0 }
 0x5fe   : > { %v4882_v13 = vpop.f32.mrf.mxu3  ;;  %v5614_v9 = vpop.f32.mrf.mxu1 }
 0x5ff   : > { %v4883_v21 = vadd.f32 %v4882_v13, %v4813_v43  ;;  %v5615_v16 = vadd.f32 %v5614_v9, %v5545_v11  ;;  %v13713_v13 = vsel %vm1613_vm1, %v5878_v51, %v5882_v24  ;;  %v13716_v9 = vsel %vm1613_vm1, %v5880_v5, %v5884_v36  ;;  %v14875_v51 = vld [vmem:[#allocation40_spill] sm:$0xff] }
 0x600   : > { %5662 = vmatmul.bf16.gmra.mxu2 %v13119_v20  ;;  %6121 = vmatmul.bf16.gmra.mxu0 %v13689_v35  ;;  %v9248_v5 = vld [vmem:[%s14268_s1 + $0x834] sm:$0xf] }
 0x601   : > { %v13695_v26 = vadd.f32 %v4883_v21, %v13129_v34  ;;  %v13700_v46 = vadd.f32 %v5615_v16, %v14869_v63  ;;  %6190 = vmatmul.bf16.gmra.mxu1 %v13692_v2  ;;  %v14872_v16 = vld [vmem:[#allocation12_spill] sm:$0xff] }
 0x603   : > { %5731 = vmatmul.bf16.gmra.mxu3 %v14870_v8  ;;  %v4816_v53 = vpop.f32.mrf.mxu2  ;;  %v14873_v8 = vld [vmem:[#allocation10_spill] sm:$0xff] }
 0x605   : > { %v5547_v1 = vpop.f32.mrf.mxu0 }
 0x606   : > { %v4885_v62 = vpop.f32.mrf.mxu3  ;;  %v5616_v60 = vpop.f32.mrf.mxu1 }
 0x607   : > { %v4886_v25 = vadd.f32 %v4885_v62, %v4816_v53  ;;  %v5617_v40 = vadd.f32 %v5616_v60, %v5547_v1  ;;  %v8706_v53 = vld [vmem:[%s14268_s1 + $0x838] sm:$0xf0]  ;;  %v9264_v62 = vld [vmem:[%s14268_s1 + $0x8b4] sm:$0xf] }
 0x608   : > { %v8770_v60 = vld [vmem:[%s14268_s1 + $0x8b8] sm:$0xf0] }
 0x609   : > { %v13705_v34 = vadd.f32 %v4886_v25, %v13147_v48  ;;  %v13708_v20 = vadd.f32 %v5617_v40, %v14871_v50  ;;  %v8709_v25 = vor.u32 %v9248_v5, %v8706_v53  ;;  %v8773_v40 = vor.u32 %v9264_v62, %v8770_v60 }
 0x60b   : > { %v4818_v27 = vpop.f32.mrf.mxu2  ;;  %6240 = vmatpush.bf16.msrb.mxu2 %v8709_v25  ;;  %6309 = vmatpush.bf16.msrb.mxu3 %v8773_v40 }
 0x60d   : > { %v5550_v3 = vpop.f32.mrf.mxu0 }
 0x60e   : > { %v4887_v43 = vpop.f32.mrf.mxu3  ;;  %v5619_v21 = vpop.f32.mrf.mxu1 }
 0x60f   : > { %v4888_v11 = vadd.f32 %v4887_v43, %v4818_v27  ;;  %v5620_v48 = vadd.f32 %v5619_v21, %v5550_v3 }
 0x610   : > { %5667 = vmatmul.bf16.gmra.mxu2 %v14873_v8  ;;  %6126 = vmatmul.bf16.gmra.mxu0 %v13713_v13  ;;  %v5886_v8 = vrot.slane %v13171_v44, 1 }
 0x611   : > { %v13719_v63 = vadd.f32 %v4888_v11, %v14872_v16  ;;  %v13724_v30 = vadd.f32 %v5620_v48, %v14874_v19  ;;  %6195 = vmatmul.bf16.gmra.mxu1 %v13716_v9  ;;  %v14876_v48 = vld [vmem:[#allocation41_spill] sm:$0xff]  ;;  %v5888_v19 = vrot.slane %v13174_v28, 1  ;;  %v14879_v28 = vld [vmem:[#allocation16_spill] sm:$0xff] }
 0x612   : > { %v13749_v62 = vsel %vm1613_vm1, %v5882_v24, %v5886_v8 }
 0x613   : > { %5736 = vmatmul.bf16.gmra.mxu3 %v14875_v51  ;;  %v4821_v1 = vpop.f32.mrf.mxu2  ;;  %v13752_v60 = vsel %vm1613_vm1, %v5884_v36, %v5888_v19 }
 0x614   : > { %14877 = vst [vmem:[#allocation9_spill] sm:$0xff] %v13752_v60 }
 0x615   : > { %v5552_v27 = vpop.f32.mrf.mxu0 }
 0x616   : > { %v4890_v50 = vpop.f32.mrf.mxu3  ;;  %v5621_v3 = vpop.f32.mrf.mxu1 }
 0x617   : > { %v4891_v43 = vadd.f32 %v4890_v50, %v4821_v1  ;;  %v5622_v11 = vadd.f32 %v5621_v3, %v5552_v27 }
 0x619   : > { %v13741_v21 = vadd.f32 %v4891_v43, %v13193_v54  ;;  %v13744_v16 = vadd.f32 %v5622_v11, %v14876_v48  ;;  %v14880_v11 = vld [vmem:[#allocation43_spill] sm:$0xff]  ;;  %v14882_v48 = vld [vmem:[#allocation6_spill] sm:$0xff] }
 0x61b   : > { %v4823_v51 = vpop.f32.mrf.mxu2 }
 0x61d   : > { %v5555_v53 = vpop.f32.mrf.mxu0 }
 0x61e   : > { %v4892_v5 = vpop.f32.mrf.mxu3  ;;  %v5624_v25 = vpop.f32.mrf.mxu1 }
 0x61f   : > { %v4893_v1 = vadd.f32 %v4892_v5, %v4823_v51  ;;  %v5625_v54 = vadd.f32 %v5624_v25, %v5555_v53  ;;  %v14883_v51 = vld [vmem:[#allocation15_spill] sm:$0xff]  ;;  %v14885_v25 = vld [vmem:[#allocation44_spill] sm:$0xff] }
 0x620   : > { %5672 = vmatmul.bf16.gmra.mxu2 %v13199_v10  ;;  %6131 = vmatmul.bf16.gmra.mxu0 %v13749_v62  ;;  %v5890_v10 = vrot.slane %v14882_v48, 1  ;;  %v8698_v53 = vld [vmem:[%s14268_s1 + $0x828] sm:$0xf0] }
 0x621   : > { %v13755_v40 = vadd.f32 %v4893_v1, %v13209_v18  ;;  %v13760_v44 = vadd.f32 %v5625_v54, %v13216_v7  ;;  %6200 = vmatmul.bf16.gmra.mxu1 %v13752_v60  ;;  %v9246_v7 = vld [vmem:[%s14268_s1 + $0x824] sm:$0xf]  ;;  %v5892_v54 = vrot.slane %v14885_v25, 1 }
 0x622   : > { %v9262_v1 = vld [vmem:[%s14268_s1 + $0x8a4] sm:$0xf] }
 0x623   : > { %14878 = vst [vmem:[#allocation5_spill] sm:$0xff] %v13760_v44  ;;  %5741 = vmatmul.bf16.gmra.mxu3 %v14879_v28  ;;  %v4826_v24 = vpop.f32.mrf.mxu2  ;;  %v8701_v28 = vor.u32 %v9246_v7, %v8698_v53  ;;  %v14888_v7 = vld [vmem:[#allocation17_spill] sm:$0xff] }
 0x625   : > { %v5557_v27 = vpop.f32.mrf.mxu0  ;;  %6241 = vmatpush.bf16.msrb.mxu2 %v8701_v28 }
 0x626   : > { %v4895_v50 = vpop.f32.mrf.mxu3  ;;  %v5626_v43 = vpop.f32.mrf.mxu1 }
 0x627   : > { %v4896_v36 = vadd.f32 %v4895_v50, %v4826_v24  ;;  %v5627_v3 = vadd.f32 %v5626_v43, %v5557_v27  ;;  %v8762_v24 = vld [vmem:[%s14268_s1 + $0x8a8] sm:$0xf0] }
 0x628   : > { %v8765_v27 = vor.u32 %v9262_v1, %v8762_v24  ;;  %v14891_v1 = vld [vmem:[#allocation19_spill] sm:$0xff] }
 0x629   : > { %v13765_v18 = vadd.f32 %v4896_v36, %v14880_v11  ;;  %v13769_v5 = vadd.f32 %v5627_v3, %v14883_v51  ;;  %v13785_v3 = vsel %vm1613_vm1, %v5886_v8, %v5890_v10  ;;  %v13788_v51 = vsel %vm1613_vm1, %v5888_v19, %v5892_v54  ;;  %v14893_v8 = vld [vmem:[#allocation2_spill] sm:$0xff] }
 0x62a   : > { %14886 = vst [vmem:[#allocation31_spill] sm:$0xff] %v13785_v3  ;;  %6310 = vmatpush.bf16.msrb.mxu3 %v8765_v27 }
 0x62b   : > { %14881 = vst [vmem:[#allocation35_spill] sm:$0xff] %v13765_v18  ;;  %v4828_v50 = vpop.f32.mrf.mxu2 }
 0x62c   : > { %14884 = vst [vmem:[#allocation34_spill] sm:$0xff] %v13769_v5  ;;  %v14890_v5 = vld [vmem:[#allocation45_spill] sm:$0xff] }
 0x62d   : > { %v5560_v43 = vpop.f32.mrf.mxu0  ;;  %14887 = vst [vmem:[#allocation33_spill] sm:$0xff] %v13788_v51 }
 0x62e   : > { %v4897_v36 = vpop.f32.mrf.mxu3  ;;  %v5629_v48 = vpop.f32.mrf.mxu1 }
 0x62f   : > { %v4898_v11 = vadd.f32 %v4897_v36, %v4828_v50  ;;  %v5630_v25 = vadd.f32 %v5629_v48, %v5560_v43  ;;  %v14894_v48 = vld [vmem:[#allocation46_spill] sm:$0xff] }
 0x630   : > { %5677 = vmatmul.bf16.gmra.mxu2 %v14890_v5  ;;  %6136 = vmatmul.bf16.gmra.mxu0 %v13785_v3  ;;  %v14898_v3 = vld [vmem:[#allocation47_spill] sm:$0xff] }
 0x631   : > { %v13791_v53 = vadd.f32 %v4898_v11, %v14888_v7  ;;  %v13796_v28 = vadd.f32 %v5630_v25, %v14891_v1  ;;  %6205 = vmatmul.bf16.gmra.mxu1 %v13788_v51  ;;  %v14896_v7 = vld [vmem:[#allocation48_spill] sm:$0xff]  ;;  %v14899_v25 = vld [vmem:[#allocation50_spill] sm:$0xff] }
 0x632   : > { %v5896_v1 = vrot.slane %v14899_v25, 1 }
 0x633   : > { %14889 = vst [vmem:[#allocation36_spill] sm:$0xff] %v13791_v53  ;;  %5746 = vmatmul.bf16.gmra.mxu3 %v14893_v8  ;;  %v4831_v24 = vpop.f32.mrf.mxu2  ;;  %v5894_v53 = vrot.slane %v14898_v3, 1  ;;  %v14905_v3 = vld [vmem:[#allocation51_spill] sm:$0xff] }
 0x634   : > { %14892 = vst [vmem:[#allocation37_spill] sm:$0xff] %v13796_v28 }
 0x635   : > { %v5562_v27 = vpop.f32.mrf.mxu0  ;;  %v13809_v8 = vsel %vm1613_vm1, %v5890_v10, %v5894_v53  ;;  %v14907_v10 = vld [vmem:[#allocation49_spill] sm:$0xff] }
 0x636   : > { %v4900_v50 = vpop.f32.mrf.mxu3  ;;  %v5631_v36 = vpop.f32.mrf.mxu1  ;;  %14900 = vst [vmem:[#allocation11_spill] sm:$0xff] %v13809_v8 }
 0x637   : > { %v4901_v19 = vadd.f32 %v4900_v50, %v4831_v24  ;;  %v5632_v43 = vadd.f32 %v5631_v36, %v5562_v27  ;;  %v13812_v50 = vsel %vm1613_vm1, %v5892_v54, %v5896_v1  ;;  %v9260_v54 = vld [vmem:[%s14268_s1 + $0x894] sm:$0xf] }
 0x638   : > { %14901 = vst [vmem:[#allocation8_spill] sm:$0xff] %v13812_v50 }
 0x639   : > { %v13801_v11 = vadd.f32 %v4901_v19, %v14894_v48  ;;  %v13804_v5 = vadd.f32 %v5632_v43, %v14896_v7  ;;  %v14902_v19 = vld [vmem:[#allocation52_spill] sm:$0xff]  ;;  %v14904_v43 = vld [vmem:[#allocation53_spill] sm:$0xff] }
 0x63b   : > { %14895 = vst [vmem:[#allocation39_spill] sm:$0xff] %v13801_v11  ;;  %v4833_v28 = vpop.f32.mrf.mxu2 }
 0x63c   : > { %14897 = vst [vmem:[#allocation38_spill] sm:$0xff] %v13804_v5 }
 0x63d   : > { %v5565_v18 = vpop.f32.mrf.mxu0 }
 0x63e   : > { %v4902_v51 = vpop.f32.mrf.mxu3  ;;  %v5634_v24 = vpop.f32.mrf.mxu1 }
 0x63f   : > { %v4903_v44 = vadd.f32 %v4902_v51, %v4833_v28  ;;  %v5635_v27 = vadd.f32 %v5634_v24, %v5565_v18  ;;  %v9244_v18 = vld [vmem:[%s14268_s1 + $0x814] sm:$0xf] }
 0x640   : > { %5682 = vmatmul.bf16.gmra.mxu2 %v14904_v43  ;;  %6141 = vmatmul.bf16.gmra.mxu0 %v13809_v8  ;;  %v14910_v8 = vld [vmem:[#allocation20_spill] sm:$0xff] }
 0x641   : > { %v13815_v36 = vadd.f32 %v4903_v44, %v14902_v19  ;;  %v13820_v48 = vadd.f32 %v5635_v27, %v14905_v3  ;;  %6210 = vmatmul.bf16.gmra.mxu1 %v13812_v50  ;;  %v8690_v44 = vld [vmem:[%s14268_s1 + $0x818] sm:$0xf0] }
 0x642   : > { %v8693_v27 = vor.u32 %v9244_v18, %v8690_v44  ;;  %v8754_v19 = vld [vmem:[%s14268_s1 + $0x898] sm:$0xf0]  ;;  %v14913_v18 = vld [vmem:[#allocation18_spill] sm:$0xff] }
 0x643   : > { %14903 = vst [vmem:[#allocation12_spill] sm:$0xff] %v13815_v36  ;;  %5751 = vmatmul.bf16.gmra.mxu3 %v14907_v10  ;;  %v4836_v51 = vpop.f32.mrf.mxu2  ;;  %v8757_v3 = vor.u32 %v9260_v54, %v8754_v19  ;;  %v14908_v10 = vld [vmem:[#allocation23_spill] sm:$0xff]  ;;  %v9281_v50 = vld [vmem:[%s14270_s3 + $0x38] sm:$0xff]  ;;  %v5900_v44 = vrot.slane %v14913_v18, 1 }
 0x644   : > { %14906 = vst [vmem:[#allocation10_spill] sm:$0xff] %v13820_v48  ;;  %6242 = vmatpush.bf16.msrb.mxu2 %v8693_v27  ;;  %6680 = vmatpush.bf16.msrb.mxu0 %v9281_v50  ;;  %v14918_v50 = vld [vmem:[#allocation54_spill] sm:$0xff] }
 0x645   : > { %v5567_v7 = vpop.f32.mrf.mxu0  ;;  %6311 = vmatpush.bf16.msrb.mxu3 %v8757_v3  ;;  %v13854_v19 = vsel %vm1613_vm1, %v5896_v1, %v5900_v44  ;;  %v14921_v1 = vld [vmem:[#allocation26_spill] sm:$0xff] }
 0x646   : > { %v4905_v28 = vpop.f32.mrf.mxu3  ;;  %v5636_v24 = vpop.f32.mrf.mxu1  ;;  %14915 = vst [vmem:[#allocation16_spill] sm:$0xff] %v13854_v19 }
 0x647   : > { %v4906_v25 = vadd.f32 %v4905_v28, %v4836_v51  ;;  %v5637_v43 = vadd.f32 %v5636_v24, %v5567_v7  ;;  %v14912_v51 = vld [vmem:[#allocation22_spill] sm:$0xff]  ;;  %v9289_v7 = vld [vmem:[%s14270_s3 + $0x78] sm:$0xff] }
 0x648   : > { %v5898_v28 = vrot.slane %v14912_v51, 1  ;;  %6749 = vmatpush.bf16.msrb.mxu1 %v9289_v7 }
 0x649   : > { %v13837_v48 = vadd.f32 %v4906_v25, %v14908_v10  ;;  %v13843_v36 = vadd.f32 %v5637_v43, %v14910_v8  ;;  %v14916_v43 = vld [vmem:[#allocation25_spill] sm:$0xff] }
 0x64a   : > { %v13851_v24 = vsel %vm1613_vm1, %v5894_v53, %v5898_v28  ;;  %v13865_v53 = vld [vmem:[%s14269_s2] sm:$0x3] }
 0x64b   : > { %14909 = vst [vmem:[#allocation42_spill] sm:$0xff] %v13837_v48  ;;  %v4838_v5 = vpop.f32.mrf.mxu2  ;;  %v13870_v7 = vperm.slane %v13865_v53, 0 }
 0x64c   : > { %14911 = vst [vmem:[#allocation40_spill] sm:$0xff] %v13843_v36  ;;  %v14925_v36 = vld [vmem:[#allocation55_spill] sm:$0xff] }
 0x64d   : > { %v6107_v25 = vpop.f32.mrf.mxu0  ;;  %14914 = vst [vmem:[#allocation41_spill] sm:$0xff] %v13851_v24  ;;  %v5904_v48 = vrot.slane %v14925_v36, 1  ;;  %v8746_v36 = vld [vmem:[%s14268_s1 + $0x888] sm:$0xf0] }
 0x64e   : > { %v4907_v54 = vpop.f32.mrf.mxu3  ;;  %v6176_v8 = vpop.f32.mrf.mxu1  ;;  %14919 = vst [vmem:[#allocation6_spill] sm:$0xff] %v13865_v53  ;;  %v9279_v53 = vld [vmem:[%s14270_s3 + $0x28] sm:$0xff] }
 0x64f   : > { %v4908_v27 = vadd.f32 %v4907_v54, %v4838_v5  ;;  %v6177_v10 = vadd.f32 %v6176_v8, %v6107_v25  ;;  %v14920_v5 = vld [vmem:[#allocation21_spill] sm:$0xff]  ;;  %v9280_v25 = vld [vmem:[%s14270_s3 + $0x30] sm:$0xff] }
 0x650   : > { %5687 = vmatmul.bf16.gmra.mxu2 %v14918_v50  ;;  %6146 = vmatmul.bf16.gmra.mxu0 %v13851_v24 }
 0x651   : > { %v13857_v3 = vadd.f32 %v4908_v27, %v14916_v43  ;;  %6215 = vmatmul.bf16.gmra.mxu1 %v13854_v19  ;;  %v6374_v18 = vadd.f32 %v6177_v10, %v14921_v1  ;;  %6681 = vmatpush.bf16.msrb.mxu0 %v9280_v25  ;;  %v14922_v19 = vld [vmem:[#allocation24_spill] sm:$0xff]  ;;  %v5902_v1 = vrot.slane %v13344_v47, 1  ;;  %v9258_v47 = vld [vmem:[%s14268_s1 + $0x884] sm:$0xf] }
 0x653   : > { %14917 = vst [vmem:[#allocation43_spill] sm:$0xff] %v13857_v3  ;;  %5756 = vmatmul.bf16.gmra.mxu3 %v14920_v5  ;;  %v5648_v51 = vpop.f32.mrf.mxu2  ;;  %v6428_v5 = vadd.f32 %v13870_v7, %v6374_v18  ;;  %v14924_v3 = vld [vmem:[#allocation57_spill] sm:$0xff]  ;;  %v8682_v18 = vld [vmem:[%s14268_s1 + $0x808] sm:$0xf0] }
 0x655   : > { %v6109_v27 = vpop.f32.mrf.mxu0  ;;  %6682 = vmatpush.bf16.msrb.mxu0 %v9279_v53  ;;  %v13905_v53 = vsel %vm1613_vm1, %v5900_v44, %v5904_v48  ;;  %v9277_v44 = vld [vmem:[%s14270_s3 + $0x18] sm:$0xff] }
 0x656   : > { %v5717_v54 = vpop.f32.mrf.mxu3  ;;  %v6178_v43 = vpop.f32.mrf.mxu1  ;;  %14927 = vst [vmem:[#allocation17_spill] sm:$0xff] %v13905_v53 }
 0x657   : > { %v5718_v8 = vadd.f32 %v5717_v54, %v5648_v51  ;;  %v6179_v50 = vadd.f32 %v6178_v43, %v6109_v27  ;;  %v6476_v27 = vmax.f32 %v6428_v5, 0.0  ;;  %v14928_v5 = vld [vmem:[#allocation28_spill] sm:$0xff] }
 0x659   : > { %v13876_v24 = vadd.f32 %v5718_v8, %v14922_v19  ;;  %v6376_v10 = vadd.f32 %v6179_v50, %v14924_v3  ;;  %v9242_v19 = vld [vmem:[%s14268_s1 + $0x804] sm:$0xf]  ;;  %v13899_v50 = vsel %vm1613_vm1, %v5898_v28, %v5902_v1  ;;  %v14929_v28 = vld [vmem:[#allocation27_spill] sm:$0xff] }
 0x65a   : > { %v8685_v3 = vor.u32 %v9242_v19, %v8682_v18  ;;  %14926 = vst [vmem:[#allocation44_spill] sm:$0xff] %v13899_v50 }
 0x65b   : > { %14923 = vst [vmem:[#allocation15_spill] sm:$0xff] %v13876_v24  ;;  %v6430_v51 = vadd.f32 %v13870_v7, %v6376_v10  ;;  %v5650_v54 = vpop.f32.mrf.mxu2  ;;  %v8749_v10 = vor.u32 %v9258_v47, %v8746_v36  ;;  %v9278_v24 = vld [vmem:[%s14270_s3 + $0x20] sm:$0xff] }
 0x65c   : > { %6243 = vmatpush.bf16.msrb.mxu2 %v8685_v3  ;;  %6683 = vmatpush.bf16.msrb.mxu0 %v9278_v24  ;;  %v14931_v3 = vld [vmem:[#allocation3_spill] sm:$0xff] }
 0x65d   : > { %v6478_v25 = vmax.f32 %v6430_v51, 0.0  ;;  %v6112_v43 = vpop.f32.mrf.mxu0  ;;  %6312 = vmatpush.bf16.msrb.mxu3 %v8749_v10  ;;  %v14932_v10 = vld [vmem:[#allocation13_spill] sm:$0xff] }
 0x65e   : > { %v5719_v8 = vpop.f32.mrf.mxu3  ;;  %v6181_v60 = vpop.f32.mrf.mxu1 }
 0x65f   : > { %v5720_v11 = vadd.f32 %v5719_v8, %v5650_v54  ;;  %v13907_v19 = vpack.c.bf16 %v6478_v25, %v6476_v27  ;;  %v6182_v18 = vadd.f32 %v6181_v60, %v6112_v43  ;;  %v14930_v54 = vld [vmem:[#allocation30_spill] sm:$0xff]  ;;  %v9288_v27 = vld [vmem:[%s14270_s3 + $0x70] sm:$0xff] }
 0x660   : > { %5692 = vmatmul.bf16.gmra.mxu2 %v14929_v28  ;;  %6151 = vmatmul.bf16.gmra.mxu0 %v13899_v50  ;;  %v9276_v60 = vld [vmem:[%s14270_s3 + $0x10] sm:$0xff] }
 0x661   : > { %v13910_v51 = vadd.f32 %v5720_v11, %v14928_v5  ;;  %6220 = vmatmul.bf16.gmra.mxu1 %v13905_v53  ;;  %6684 = vmatpush.bf16.msrb.mxu0 %v9277_v44  ;;  %v6378_v24 = vadd.f32 %v6182_v18, %v14931_v3  ;;  %v14934_v18 = vld [vmem:[#allocation7_spill] sm:$0xff]  ;;  %v14935_v53 = vld [vmem:[#allocation56_spill] sm:$0xff] }
 0x662   : > { %6750 = vmatpush.bf16.msrb.mxu1 %v9288_v27  ;;  %v9275_v3 = vld [vmem:[%s14270_s3 + $0x8] sm:$0xff]  ;;  %v5908_v50 = vrot.slane %v14935_v53, 1 }
 0x663   : > { %5761 = vmatmul.bf16.gmra.mxu3 %v14930_v54  ;;  %v5653_v47 = vpop.f32.mrf.mxu2  ;;  %v6432_v28 = vadd.f32 %v13870_v7, %v6378_v24  ;;  %v5906_v54 = vrot.slane %v13452_v38, 1  ;;  %v9274_v38 = vld [vmem:[%s14270_s3] sm:$0xff] }
 0x665   : > { %v6114_v11 = vpop.f32.mrf.mxu0  ;;  %6685 = vmatpush.bf16.msrb.mxu0 %v9276_v60 }
 0x666   : > { %v5722_v36 = vpop.f32.mrf.mxu3  ;;  %v6183_v8 = vpop.f32.mrf.mxu1 }
 0x667   : > { %v5723_v25 = vadd.f32 %v5722_v36, %v5653_v47  ;;  %v6184_v43 = vadd.f32 %v6183_v8, %v6114_v11  ;;  %v6480_v11 = vmax.f32 %v6432_v28, 0.0 }
 0x669   : > { %v13927_v5 = vadd.f32 %v5723_v25, %v14932_v10  ;;  %v6380_v44 = vadd.f32 %v6184_v43, %v14934_v18  ;;  %6686 = vmatpush.bf16.msrb.mxu0 %v9275_v3  ;;  %v13938_v25 = vsel %vm1613_vm1, %v5902_v1, %v5906_v54  ;;  %v13944_v10 = vsel %vm1613_vm1, %v5904_v48, %v5908_v50  ;;  %v14938_v18 = vld [vmem:[#allocation59_spill] sm:$0xff]  ;;  %v14941_v3 = vld [vmem:[#allocation32_spill] sm:$0xff] }
 0x66a   : > { %14936 = vst [vmem:[#allocation19_spill] sm:$0xff] %v13938_v25 }
 0x66b   : > { %14933 = vst [vmem:[#allocation45_spill] sm:$0xff] %v13927_v5  ;;  %v6434_v47 = vadd.f32 %v13870_v7, %v6380_v44  ;;  %v5655_v36 = vpop.f32.mrf.mxu2  ;;  %v14940_v44 = vld [vmem:[#allocation29_spill] sm:$0xff] }
 0x66c   : > { %14937 = vst [vmem:[#allocation2_spill] sm:$0xff] %v13944_v10 }
 0x66d   : > { %v6117_v60 = vpop.f32.mrf.mxu0  ;;  %v6482_v24 = vmax.f32 %v6434_v47, 0.0  ;;  %6687 = vmatpush.bf16.msrb.mxu0 %v9274_v38 }
 0x66e   : > { %v5724_v27 = vpop.f32.mrf.mxu3  ;;  %v6186_v43 = vpop.f32.mrf.mxu1 }
 0x66f   : > { %v5725_v8 = vadd.f32 %v5724_v27, %v5655_v36  ;;  %v13946_v53 = vpack.c.bf16 %v6482_v24, %v6480_v11  ;;  %v6187_v1 = vadd.f32 %v6186_v43, %v6117_v60  ;;  %v14942_v36 = vld [vmem:[#allocation58_spill] sm:$0xff]  ;;  %v14943_v60 = vld [vmem:[#allocation4_spill] sm:$0xff] }
 0x670   : > { %5697 = vmatmul.bf16.gmra.mxu2 %v14940_v44  ;;  %6156 = vmatmul.bf16.gmra.mxu0 %v13938_v25  ;;  %v5910_v43 = vrot.slane %v14943_v60, 1 }
 0x671   : > { %v13949_v28 = vadd.f32 %v5725_v8, %v14938_v18  ;;  %6225 = vmatmul.bf16.gmra.mxu1 %v13944_v10  ;;  %v6382_v27 = vadd.f32 %v6187_v1, %v14942_v36  ;;  %v14944_v10 = vld [vmem:[#allocation14_spill] sm:$0xff]  ;;  %v9287_v1 = vld [vmem:[%s14270_s3 + $0x68] sm:$0xff] }
 0x672   : > { %v5912_v25 = vrot.slane %v14944_v10, 1  ;;  %6751 = vmatpush.bf16.msrb.mxu1 %v9287_v1 }
 0x673   : > { %14939 = vst [vmem:[#allocation46_spill] sm:$0xff] %v13949_v28  ;;  %5766 = vmatmul.bf16.gmra.mxu3 %v14941_v3  ;;  %v5658_v47 = vpop.f32.mrf.mxu2  ;;  %v6436_v18 = vadd.f32 %v13870_v7, %v6382_v27 }
 0x675   : > { %v6119_v5 = vpop.f32.mrf.mxu0 }
 0x676   : > { %v5727_v48 = vpop.f32.mrf.mxu3  ;;  %v6188_v11 = vpop.f32.mrf.mxu1 }
 0x677   : > { %v5728_v38 = vadd.f32 %v5727_v48, %v5658_v47  ;;  %v6189_v24 = vadd.f32 %v6188_v11, %v6119_v5  ;;  %v6484_v47 = vmax.f32 %v6436_v18, 0.0 }
 0x679   : > { %v13957_v8 = vadd.f32 %v5728_v38, %v13546_v57  ;;  %v6384_v44 = vadd.f32 %v6189_v24, %v13549_v31  ;;  %v13968_v57 = vsel %vm1613_vm1, %v5906_v54, %v5910_v43  ;;  %v13971_v38 = vsel %vm1613_vm1, %v5908_v50, %v5912_v25 }
 0x67b   : > { %v6438_v3 = vadd.f32 %v13870_v7, %v6384_v44  ;;  %v5660_v28 = vpop.f32.mrf.mxu2 }
 0x67d   : > { %v6122_v36 = vpop.f32.mrf.mxu0  ;;  %v6486_v27 = vmax.f32 %v6438_v3, 0.0 }
 0x67e   : > { %v5729_v5 = vpop.f32.mrf.mxu3  ;;  %v6191_v48 = vpop.f32.mrf.mxu1 }
 0x67f   : > { %v5730_v31 = vadd.f32 %v5729_v5, %v5660_v28  ;;  %v13973_v10 = vpack.c.bf16 %v6486_v27, %v6484_v47  ;;  %v6192_v24 = vadd.f32 %v6191_v48, %v6122_v36 }
 0x680   : > { %5702 = vmatmul.bf16.gmra.mxu2 %v13552_v17  ;;  %6161 = vmatmul.bf16.gmra.mxu0 %v13968_v57 }
 0x681   : > { %v13976_v11 = vadd.f32 %v5730_v31, %v13559_v0  ;;  %6230 = vmatmul.bf16.gmra.mxu1 %v13971_v38  ;;  %v6386_v28 = vadd.f32 %v6192_v24, %v13564_v39 }
 0x683   : > { %5771 = vmatmul.bf16.gmra.mxu3 %v13556_v61  ;;  %v5663_v54 = vpop.f32.mrf.mxu2  ;;  %v6440_v17 = vadd.f32 %v13870_v7, %v6386_v28 }
 0x685   : > { %v6124_v50 = vpop.f32.mrf.mxu0  ;;  %v6488_v47 = vmax.f32 %v6440_v17, 0.0 }
 0x686   : > { %v5732_v18 = vpop.f32.mrf.mxu3  ;;  %v6193_v44 = vpop.f32.mrf.mxu1 }
 0x687   : > { %v5733_v25 = vadd.f32 %v5732_v18, %v5663_v54  ;;  %v6194_v60 = vadd.f32 %v6193_v44, %v6124_v50  ;;  %v9286_v18 = vld [vmem:[%s14270_s3 + $0x60] sm:$0xff] }
 0x688   : > { %6752 = vmatpush.bf16.msrb.mxu1 %v9286_v18 }
 0x689   : > { %v13984_v0 = vadd.f32 %v5733_v25, %v13573_v52  ;;  %v6388_v43 = vadd.f32 %v6194_v60, %v13577_v33 }
 0x68b   : > { %v6442_v3 = vadd.f32 %v13870_v7, %v6388_v43  ;;  %v5665_v1 = vpop.f32.mrf.mxu2 }
 0x68d   : > { %v6127_v5 = vpop.f32.mrf.mxu0  ;;  %v6490_v36 = vmax.f32 %v6442_v3, 0.0 }
 0x68e   : > { %v5734_v61 = vpop.f32.mrf.mxu3  ;;  %v6196_v27 = vpop.f32.mrf.mxu1 }
 0x68f   : > { %v5735_v39 = vadd.f32 %v5734_v61, %v5665_v1  ;;  %v13989_v31 = vpack.c.bf16 %v6490_v36, %v6488_v47  ;;  %v6197_v52 = vadd.f32 %v6196_v27, %v6127_v5 }
 0x690   : > { %6244 = vmatmul.bf16.vlgmr.msrb.gmra.mxu2 %v13593_v32  ;;  %6688 = vmatmul.bf16.vlgmr.msrb.gmra.mxu0 %v13907_v19 }
 0x691   : > { %v13992_v48 = vadd.f32 %v5735_v39, %v13599_v4  ;;  %v6390_v24 = vadd.f32 %v6197_v52, %v13604_v49 }
 0x693   : > { %6313 = vmatmul.bf16.vlgmr.msrb.gmra.mxu3 %v13596_v23  ;;  %v5668_v33 = vpop.f32.mrf.mxu2  ;;  %v6444_v19 = vadd.f32 %v13870_v7, %v6390_v24 }
 0x695   : > { %v6129_v28 = vpop.f32.mrf.mxu0  ;;  %v6492_v60 = vmax.f32 %v6444_v19, 0.0 }
 0x696   : > { %v5737_v54 = vpop.f32.mrf.mxu3  ;;  %v6198_v25 = vpop.f32.mrf.mxu1 }
 0x697   : > { %v5738_v50 = vadd.f32 %v5737_v54, %v5668_v33  ;;  %v6199_v4 = vadd.f32 %v6198_v25, %v6129_v28 }
 0x699   : > { %v14002_v32 = vadd.f32 %v5738_v50, %v13609_v58  ;;  %v6392_v23 = vadd.f32 %v6199_v4, %v13612_v42 }
 0x69b   : > { %v6446_v44 = vadd.f32 %v13870_v7, %v6392_v23  ;;  %v5670_v49 = vpop.f32.mrf.mxu2 }
 0x69d   : > { %v6132_v43 = vpop.f32.mrf.mxu0  ;;  %v6494_v3 = vmax.f32 %v6446_v44, 0.0 }
 0x69e   : > { %v5739_v17 = vpop.f32.mrf.mxu3  ;;  %v6201_v47 = vpop.f32.mrf.mxu1 }
 0x69f   : > { %v5740_v1 = vadd.f32 %v5739_v17, %v5670_v49  ;;  %v14007_v61 = vpack.c.bf16 %v6494_v3, %v6492_v60  ;;  %v6202_v58 = vadd.f32 %v6201_v47, %v6132_v43 }
 0x6a0   : > { %6249 = vmatmul.bf16.gmra.mxu2 %v13617_v41  ;;  %6693 = vmatmul.bf16.gmra.mxu0 %v13946_v53 }
 0x6a1   : > { %v14010_v5 = vadd.f32 %v5740_v1, %v13623_v45  ;;  %v6394_v36 = vadd.f32 %v6202_v58, %v13628_v56 }
 0x6a3   : > { %6318 = vmatmul.bf16.gmra.mxu3 %v13620_v22  ;;  %v5673_v42 = vpop.f32.mrf.mxu2  ;;  %v6448_v45 = vadd.f32 %v13870_v7, %v6394_v36  ;;  %v9285_v22 = vld [vmem:[%s14270_s3 + $0x58] sm:$0xff] }
 0x6a4   : > { %6753 = vmatpush.bf16.msrb.mxu1 %v9285_v22 }
 0x6a5   : > { %v6134_v27 = vpop.f32.mrf.mxu0  ;;  %v6496_v56 = vmax.f32 %v6448_v45, 0.0 }
 0x6a6   : > { %v5742_v39 = vpop.f32.mrf.mxu3  ;;  %v6203_v33 = vpop.f32.mrf.mxu1 }
 0x6a7   : > { %v5743_v52 = vadd.f32 %v5742_v39, %v5673_v42  ;;  %v6204_v24 = vadd.f32 %v6203_v33, %v6134_v27 }
 0x6a9   : > { %v14017_v54 = vadd.f32 %v5743_v52, %v13645_v6  ;;  %v6396_v41 = vadd.f32 %v6204_v24, %v13648_v59 }
 0x6ab   : > { %v6450_v53 = vadd.f32 %v13870_v7, %v6396_v41  ;;  %v5675_v28 = vpop.f32.mrf.mxu2 }
 0x6ad   : > { %v6137_v50 = vpop.f32.mrf.mxu0  ;;  %v6498_v25 = vmax.f32 %v6450_v53, 0.0  ;;  %v9284_v53 = vld [vmem:[%s14270_s3 + $0x50] sm:$0xff] }
 0x6ae   : > { %v5744_v18 = vpop.f32.mrf.mxu3  ;;  %v6206_v19 = vpop.f32.mrf.mxu1  ;;  %6754 = vmatpush.bf16.msrb.mxu1 %v9284_v53 }
 0x6af   : > { %v5745_v4 = vadd.f32 %v5744_v18, %v5675_v28  ;;  %v14025_v6 = vpack.c.bf16 %v6498_v25, %v6496_v56  ;;  %v6207_v59 = vadd.f32 %v6206_v19, %v6137_v50 }
 0x6b0   : > { %6254 = vmatmul.bf16.gmra.mxu2 %v13653_v55  ;;  %6698 = vmatmul.bf16.gmra.mxu0 %v13973_v10 }
 0x6b1   : > { %v14028_v23 = vadd.f32 %v5745_v4, %v13659_v37  ;;  %v6398_v49 = vadd.f32 %v6207_v59, %v13664_v12 }
 0x6b3   : > { %6323 = vmatmul.bf16.gmra.mxu3 %v13656_v14  ;;  %v5678_v44 = vpop.f32.mrf.mxu2  ;;  %v6452_v37 = vadd.f32 %v13870_v7, %v6398_v49 }
 0x6b5   : > { %v6139_v17 = vpop.f32.mrf.mxu0  ;;  %v6500_v42 = vmax.f32 %v6452_v37, 0.0 }
 0x6b6   : > { %v5747_v60 = vpop.f32.mrf.mxu3  ;;  %v6208_v3 = vpop.f32.mrf.mxu1 }
 0x6b7   : > { %v5748_v43 = vadd.f32 %v5747_v60, %v5678_v44  ;;  %v6209_v1 = vadd.f32 %v6208_v3, %v6139_v17 }
 0x6b9   : > { %v14035_v47 = vadd.f32 %v5748_v43, %v13669_v15  ;;  %v6400_v55 = vadd.f32 %v6209_v1, %v13673_v29 }
 0x6bb   : > { %v6454_v10 = vadd.f32 %v13870_v7, %v6400_v55  ;;  %v5680_v58 = vpop.f32.mrf.mxu2 }
 0x6bd   : > { %v6142_v36 = vpop.f32.mrf.mxu0  ;;  %v6502_v39 = vmax.f32 %v6454_v10, 0.0 }
 0x6be   : > { %v5749_v14 = vpop.f32.mrf.mxu3  ;;  %v6211_v27 = vpop.f32.mrf.mxu1 }
 0x6bf   : > { %v5750_v12 = vadd.f32 %v5749_v14, %v5680_v58  ;;  %v14040_v52 = vpack.c.bf16 %v6502_v39, %v6500_v42  ;;  %v6212_v15 = vadd.f32 %v6211_v27, %v6142_v36  ;;  %v14945_v27 = vld [vmem:[#allocation9_spill] sm:$0xff] }
 0x6c0   : > { %6259 = vmatmul.bf16.gmra.mxu2 %v13689_v35  ;;  %6703 = vmatmul.bf16.gmra.mxu0 %v13989_v31 }
 0x6c1   : > { %v14043_v33 = vadd.f32 %v5750_v12, %v13695_v26  ;;  %v6402_v24 = vadd.f32 %v6212_v15, %v13700_v46 }
 0x6c3   : > { %6328 = vmatmul.bf16.gmra.mxu3 %v13692_v2  ;;  %v5683_v29 = vpop.f32.mrf.mxu2  ;;  %v6456_v31 = vadd.f32 %v13870_v7, %v6402_v24 }
 0x6c5   : > { %v6144_v41 = vpop.f32.mrf.mxu0  ;;  %v6504_v18 = vmax.f32 %v6456_v31, 0.0 }
 0x6c6   : > { %v5752_v45 = vpop.f32.mrf.mxu3  ;;  %v6213_v22 = vpop.f32.mrf.mxu1 }
 0x6c7   : > { %v5753_v28 = vadd.f32 %v5752_v45, %v5683_v29  ;;  %v6214_v26 = vadd.f32 %v6213_v22, %v6144_v41  ;;  %v14946_v29 = vld [vmem:[#allocation5_spill] sm:$0xff] }
 0x6c9   : > { %v14053_v35 = vadd.f32 %v5753_v28, %v13705_v34  ;;  %v6404_v2 = vadd.f32 %v6214_v26, %v13708_v20  ;;  %v14947_v26 = vld [vmem:[#allocation35_spill] sm:$0xff] }
 0x6cb   : > { %v6458_v56 = vadd.f32 %v13870_v7, %v6404_v2  ;;  %v5685_v46 = vpop.f32.mrf.mxu2  ;;  %v14948_v2 = vld [vmem:[#allocation34_spill] sm:$0xff] }
 0x6cd   : > { %v6147_v25 = vpop.f32.mrf.mxu0  ;;  %v6506_v4 = vmax.f32 %v6458_v56, 0.0 }
 0x6ce   : > { %v5754_v50 = vpop.f32.mrf.mxu3  ;;  %v6216_v59 = vpop.f32.mrf.mxu1 }
 0x6cf   : > { %v5755_v19 = vadd.f32 %v5754_v50, %v5685_v46  ;;  %v14058_v44 = vpack.c.bf16 %v6506_v4, %v6504_v18  ;;  %v6217_v34 = vadd.f32 %v6216_v59, %v6147_v25 }
 0x6d0   : > { %6264 = vmatmul.bf16.gmra.mxu2 %v13713_v13  ;;  %6708 = vmatmul.bf16.gmra.mxu0 %v14007_v61 }
 0x6d1   : > { %v14061_v49 = vadd.f32 %v5755_v19, %v13719_v63  ;;  %v6406_v60 = vadd.f32 %v6217_v34, %v13724_v30  ;;  %v14949_v34 = vld [vmem:[#allocation36_spill] sm:$0xff] }
 0x6d3   : > { %6333 = vmatmul.bf16.gmra.mxu3 %v13716_v9  ;;  %v5688_v20 = vpop.f32.mrf.mxu2  ;;  %v6460_v63 = vadd.f32 %v13870_v7, %v6406_v60  ;;  %v9283_v9 = vld [vmem:[%s14270_s3 + $0x48] sm:$0xff] }
 0x6d4   : > { %6755 = vmatpush.bf16.msrb.mxu1 %v9283_v9  ;;  %v14950_v60 = vld [vmem:[#allocation31_spill] sm:$0xff] }
 0x6d5   : > { %v6149_v43 = vpop.f32.mrf.mxu0  ;;  %v6508_v30 = vmax.f32 %v6460_v63, 0.0 }
 0x6d6   : > { %v5757_v17 = vpop.f32.mrf.mxu3  ;;  %v6218_v1 = vpop.f32.mrf.mxu1 }
 0x6d7   : > { %v5758_v3 = vadd.f32 %v5757_v17, %v5688_v20  ;;  %v6219_v37 = vadd.f32 %v6218_v1, %v6149_v43  ;;  %v9282_v17 = vld [vmem:[%s14270_s3 + $0x40] sm:$0xff] }
 0x6d8   : > { %6756 = vmatpush.bf16.msrb.mxu1 %v9282_v17  ;;  %v14960_v17 = vld [vmem:[#allocation40_spill] sm:$0xff] }
 0x6d9   : > { %v14068_v55 = vadd.f32 %v5758_v3, %v13741_v21  ;;  %v6408_v13 = vadd.f32 %v6219_v37, %v13744_v16  ;;  %v14951_v3 = vld [vmem:[#allocation33_spill] sm:$0xff] }
 0x6da   : > { %v14952_v37 = vld [vmem:[#allocation37_spill] sm:$0xff] }
 0x6db   : > { %v6462_v61 = vadd.f32 %v13870_v7, %v6408_v13  ;;  %v5690_v10 = vpop.f32.mrf.mxu2 }
 0x6dd   : > { %v6152_v42 = vpop.f32.mrf.mxu0  ;;  %v6510_v14 = vmax.f32 %v6462_v61, 0.0 }
 0x6de   : > { %v5759_v58 = vpop.f32.mrf.mxu3  ;;  %v6221_v39 = vpop.f32.mrf.mxu1 }
 0x6df   : > { %v5760_v36 = vadd.f32 %v5759_v58, %v5690_v10  ;;  %v14076_v21 = vpack.c.bf16 %v6510_v14, %v6508_v30  ;;  %v6222_v16 = vadd.f32 %v6221_v39, %v6152_v42  ;;  %v14953_v58 = vld [vmem:[#allocation39_spill] sm:$0xff]  ;;  %v14954_v14 = vld [vmem:[#allocation38_spill] sm:$0xff] }
 0x6e0   : > { %6269 = vmatmul.bf16.gmra.mxu2 %v13749_v62  ;;  %6713 = vmatmul.bf16.gmra.mxu0 %v14025_v6 }
 0x6e1   : > { %v14079_v12 = vadd.f32 %v5760_v36, %v13755_v40  ;;  %v6410_v24 = vadd.f32 %v6222_v16, %v14946_v29 }
 0x6e3   : > { %6338 = vmatmul.bf16.gmra.mxu3 %v14945_v27  ;;  %v5693_v15 = vpop.f32.mrf.mxu2  ;;  %v6464_v40 = vadd.f32 %v13870_v7, %v6410_v24 }
 0x6e5   : > { %v6154_v41 = vpop.f32.mrf.mxu0  ;;  %v6512_v46 = vmax.f32 %v6464_v40, 0.0 }
 0x6e6   : > { %v5762_v45 = vpop.f32.mrf.mxu3  ;;  %v6223_v28 = vpop.f32.mrf.mxu1 }
 0x6e7   : > { %v5763_v53 = vadd.f32 %v5762_v45, %v5693_v15  ;;  %v6224_v22 = vadd.f32 %v6223_v28, %v6154_v41  ;;  %v14955_v28 = vld [vmem:[#allocation12_spill] sm:$0xff] }
 0x6e9   : > { %v14086_v31 = vadd.f32 %v5763_v53, %v14947_v26  ;;  %v6412_v62 = vadd.f32 %v6224_v22, %v14948_v2  ;;  %v14956_v26 = vld [vmem:[#allocation11_spill] sm:$0xff]  ;;  %v14957_v2 = vld [vmem:[#allocation8_spill] sm:$0xff] }
 0x6eb   : > { %v6466_v6 = vadd.f32 %v13870_v7, %v6412_v62  ;;  %v5695_v56 = vpop.f32.mrf.mxu2 }
 0x6ed   : > { %v6157_v50 = vpop.f32.mrf.mxu0  ;;  %v6514_v25 = vmax.f32 %v6466_v6, 0.0  ;;  %v14958_v6 = vld [vmem:[#allocation10_spill] sm:$0xff] }
 0x6ee   : > { %v5764_v18 = vpop.f32.mrf.mxu3  ;;  %v6226_v19 = vpop.f32.mrf.mxu1 }
 0x6ef   : > { %v5765_v4 = vadd.f32 %v5764_v18, %v5695_v56  ;;  %v14091_v59 = vpack.c.bf16 %v6514_v25, %v6512_v46  ;;  %v6227_v43 = vadd.f32 %v6226_v19, %v6157_v50  ;;  %v14959_v19 = vld [vmem:[#allocation42_spill] sm:$0xff] }
 0x6f0   : > { %6274 = vmatmul.bf16.gmra.mxu2 %v14950_v60  ;;  %6718 = vmatmul.bf16.gmra.mxu0 %v14040_v52 }
 0x6f1   : > { %v14094_v20 = vadd.f32 %v5765_v4, %v14949_v34  ;;  %v6414_v63 = vadd.f32 %v6227_v43, %v14952_v37 }
 0x6f3   : > { %6343 = vmatmul.bf16.gmra.mxu3 %v14951_v3  ;;  %v5698_v1 = vpop.f32.mrf.mxu2  ;;  %v6468_v52 = vadd.f32 %v13870_v7, %v6414_v63 }
 0x6f5   : > { %v6159_v61 = vpop.f32.mrf.mxu0  ;;  %v6516_v27 = vmax.f32 %v6468_v52, 0.0 }
 0x6f6   : > { %v5767_v13 = vpop.f32.mrf.mxu3  ;;  %v6228_v9 = vpop.f32.mrf.mxu1 }
 0x6f7   : > { %v5768_v10 = vadd.f32 %v5767_v13, %v5698_v1  ;;  %v6229_v30 = vadd.f32 %v6228_v9, %v6159_v61 }
 0x6f9   : > { %v14104_v42 = vadd.f32 %v5768_v10, %v14953_v58  ;;  %v6416_v36 = vadd.f32 %v6229_v30, %v14954_v14  ;;  %v14961_v10 = vld [vmem:[#allocation43_spill] sm:$0xff]  ;;  %v14962_v30 = vld [vmem:[#allocation41_spill] sm:$0xff]  ;;  %v14963_v58 = vld [vmem:[#allocation16_spill] sm:$0xff] }
 0x6fb   : > { %v6470_v39 = vadd.f32 %v13870_v7, %v6416_v36  ;;  %v5700_v16 = vpop.f32.mrf.mxu2 }
 0x6fd   : > { %v6162_v29 = vpop.f32.mrf.mxu0  ;;  %v6518_v24 = vmax.f32 %v6470_v39, 0.0 }
 0x6fe   : > { %v5769_v15 = vpop.f32.mrf.mxu3  ;;  %v6231_v41 = vpop.f32.mrf.mxu1 }
 0x6ff   : > { %v5770_v45 = vadd.f32 %v5769_v15, %v5700_v16  ;;  %v6544_v53 = vpack.c.bf16 %v6518_v24, %v6516_v27  ;;  %v6232_v40 = vadd.f32 %v6231_v41, %v6162_v29  ;;  %v14965_v27 = vld [vmem:[#allocation6_spill] sm:$0xff] }
 0x700   : > { %6279 = vmatmul.bf16.gmra.mxu2 %v14956_v26  ;;  %6723 = vmatmul.bf16.gmra.mxu0 %v14058_v44  ;;  %v14130_v15 = vperm.slane %v14965_v27, 1  ;;  %v14967_v26 = vld [vmem:[#allocation17_spill] sm:$0xff] }
 0x701   : > { %v14110_v22 = vadd.f32 %v5770_v45, %v14955_v28  ;;  %v6418_v56 = vadd.f32 %v6232_v40, %v14958_v6  ;;  %v14966_v28 = vld [vmem:[#allocation44_spill] sm:$0xff] }
 0x703   : > { %6348 = vmatmul.bf16.gmra.mxu3 %v14957_v2  ;;  %v5703_v62 = vpop.f32.mrf.mxu2  ;;  %v6472_v60 = vadd.f32 %v13870_v7, %v6418_v56 }
 0x705   : > { %v6164_v18 = vpop.f32.mrf.mxu0  ;;  %v6520_v1 = vmax.f32 %v6472_v60, 0.0  ;;  %v14969_v60 = vld [vmem:[#allocation46_spill] sm:$0xff] }
 0x706   : > { %v5772_v46 = vpop.f32.mrf.mxu3  ;;  %v6233_v25 = vpop.f32.mrf.mxu1 }
 0x707   : > { %v5773_v50 = vadd.f32 %v5772_v46, %v5703_v62  ;;  %v6234_v4 = vadd.f32 %v6233_v25, %v6164_v18 }
 0x709   : > { %v14117_v34 = vadd.f32 %v5773_v50, %v14959_v19  ;;  %v6420_v43 = vadd.f32 %v6234_v4, %v14960_v17  ;;  %v14968_v50 = vld [vmem:[#allocation45_spill] sm:$0xff]  ;;  %v14970_v17 = vld [vmem:[#allocation19_spill] sm:$0xff] }
 0x70b   : > { %v6474_v44 = vadd.f32 %v13870_v7, %v6420_v43  ;;  %v5705_v3 = vpop.f32.mrf.mxu2  ;;  %v14964_v7 = vld [vmem:[#allocation15_spill] sm:$0xff] }
 0x70d   : > { %v6522_v63 = vmax.f32 %v6474_v44, 0.0  ;;  %v14971_v44 = vld [vmem:[#allocation2_spill] sm:$0xff] }
 0x70e   : > { %v5774_v37 = vpop.f32.mrf.mxu3 }
 0x70f   : > { %v5775_v13 = vadd.f32 %v5774_v37, %v5705_v3  ;;  %v6546_v61 = vpack.c.bf16 %v6522_v63, %v6520_v1 }
 0x710   : > { %6284 = vmatmul.bf16.gmra.mxu2 %v14962_v30  ;;  %6728 = vmatmul.bf16.gmra.mxu0 %v14076_v21 }
 0x711   : > { %v14123_v9 = vadd.f32 %v5775_v13, %v14961_v10 }
 0x713   : > { %6353 = vmatmul.bf16.gmra.mxu3 %v14963_v58  ;;  %v6245_v52 = vpop.f32.mrf.mxu2 }
 0x716   : > { %v6314_v14 = vpop.f32.mrf.mxu3 }
 0x717   : > { %v6315_v36 = vadd.f32 %v6314_v14, %v6245_v52 }
 0x719   : > { %v6375_v16 = vadd.f32 %v6315_v36, %v14964_v7 }
 0x71b   : > { %v6247_v39 = vpop.f32.mrf.mxu2  ;;  %v6429_v45 = vadd.f32 %v14130_v15, %v6375_v16 }
 0x71d   : > { %v6477_v2 = vmax.f32 %v6429_v45, 0.0 }
 0x71e   : > { %v6316_v29 = vpop.f32.mrf.mxu3 }
 0x71f   : > { %v6317_v24 = vadd.f32 %v6316_v29, %v6247_v39 }
 0x720   : > { %6289 = vmatmul.bf16.gmra.mxu2 %v14966_v28  ;;  %6733 = vmatmul.bf16.gmra.mxu0 %v14091_v59 }
 0x721   : > { %v6377_v41 = vadd.f32 %v6317_v24, %v13910_v51 }
 0x723   : > { %v6431_v21 = vadd.f32 %v14130_v15, %v6377_v41  ;;  %6358 = vmatmul.bf16.gmra.mxu3 %v14967_v26  ;;  %v6250_v40 = vpop.f32.mrf.mxu2 }
 0x725   : > { %v6479_v62 = vmax.f32 %v6431_v21, 0.0 }
 0x726   : > { %v6319_v6 = vpop.f32.mrf.mxu3 }
 0x727   : > { %v6525_v56 = vpack.c.bf16 %v6479_v62, %v6477_v2  ;;  %v6320_v46 = vadd.f32 %v6319_v6, %v6250_v40 }
 0x729   : > { %6757 = vmatmul.bf16.vlgmr.msrb.gmra.mxu1 %v6525_v56  ;;  %v6379_v25 = vadd.f32 %v6320_v46, %v14968_v50 }
 0x72b   : > { %v6252_v18 = vpop.f32.mrf.mxu2  ;;  %v6433_v19 = vadd.f32 %v14130_v15, %v6379_v25 }
 0x72d   : > { %v6481_v1 = vmax.f32 %v6433_v19, 0.0 }
 0x72e   : > { %v6321_v4 = vpop.f32.mrf.mxu3 }
 0x72f   : > { %v6322_v51 = vadd.f32 %v6321_v4, %v6252_v18 }
 0x730   : > { %6294 = vmatmul.bf16.gmra.mxu2 %v14970_v17  ;;  %6738 = vmatmul.bf16.gmra.mxu0 %v6544_v53 }
 0x731   : > { %v6381_v59 = vadd.f32 %v6322_v51, %v14969_v60 }
 0x733   : > { %v6435_v43 = vadd.f32 %v14130_v15, %v6381_v59  ;;  %6363 = vmatmul.bf16.gmra.mxu3 %v14971_v44  ;;  %v6255_v3 = vpop.f32.mrf.mxu2 }
 0x735   : > { %v6483_v37 = vmax.f32 %v6435_v43, 0.0 }
 0x736   : > { %v6324_v63 = vpop.f32.mrf.mxu3 }
 0x737   : > { %v6527_v13 = vpack.c.bf16 %v6483_v37, %v6481_v1  ;;  %v6325_v10 = vadd.f32 %v6324_v63, %v6255_v3  ;;  %v6689_v63 = vpop.f32.mrf.mxu0 }
 0x739   : > { %6762 = vmatmul.bf16.gmra.mxu1 %v6527_v13  ;;  %v6383_v58 = vadd.f32 %v6325_v10, %v13957_v8 }
 0x73b   : > { %v6257_v30 = vpop.f32.mrf.mxu2  ;;  %v6437_v36 = vadd.f32 %v14130_v15, %v6383_v58 }
 0x73d   : > { %v6485_v16 = vmax.f32 %v6437_v36, 0.0 }
 0x73e   : > { %v6326_v52 = vpop.f32.mrf.mxu3 }
 0x73f   : > { %v6327_v14 = vadd.f32 %v6326_v52, %v6257_v30 }
 0x740   : > { %6299 = vmatmul.bf16.gmra.mxu2 %v13968_v57  ;;  %6743 = vmatmul.bf16.gmra.mxu0 %v6546_v61 }
 0x741   : > { %v6385_v53 = vadd.f32 %v6327_v14, %v13976_v11 }
 0x743   : > { %v6439_v39 = vadd.f32 %v14130_v15, %v6385_v53  ;;  %6368 = vmatmul.bf16.gmra.mxu3 %v13971_v38  ;;  %v6260_v7 = vpop.f32.mrf.mxu2  ;;  %v6691_v53 = vpop.f32.mrf.mxu0 }
 0x745   : > { %v6487_v27 = vmax.f32 %v6439_v39, 0.0 }
 0x746   : > { %v6329_v29 = vpop.f32.mrf.mxu3 }
 0x747   : > { %v6529_v24 = vpack.c.bf16 %v6487_v27, %v6485_v16  ;;  %v6330_v45 = vadd.f32 %v6329_v29, %v6260_v7 }
 0x749   : > { %6767 = vmatmul.bf16.gmra.mxu1 %v6529_v24  ;;  %v6387_v41 = vadd.f32 %v6330_v45, %v13984_v0 }
 0x74b   : > { %v6262_v8 = vpop.f32.mrf.mxu2  ;;  %v6441_v11 = vadd.f32 %v14130_v15, %v6387_v41  ;;  %v6694_v41 = vpop.f32.mrf.mxu0 }
 0x74d   : > { %v6489_v38 = vmax.f32 %v6441_v11, 0.0 }
 0x74e   : > { %v6331_v28 = vpop.f32.mrf.mxu3 }
 0x74f   : > { %v6332_v21 = vadd.f32 %v6331_v28, %v6262_v8 }
 0x751   : > { %v6389_v57 = vadd.f32 %v6332_v21, %v13992_v48 }
 0x753   : > { %v6443_v61 = vadd.f32 %v14130_v15, %v6389_v57  ;;  %v6265_v26 = vpop.f32.mrf.mxu2 }
 0x755   : > { %v6491_v40 = vmax.f32 %v6443_v61, 0.0 }
 0x756   : > { %v6334_v2 = vpop.f32.mrf.mxu3 }
 0x757   : > { %v6531_v62 = vpack.c.bf16 %v6491_v40, %v6489_v38  ;;  %v6335_v6 = vadd.f32 %v6334_v2, %v6265_v26  ;;  %v14167_v26 = vpop.f32.mrf.mxu0 }
 0x759   : > { %6772 = vmatmul.bf16.gmra.mxu1 %v6531_v62  ;;  %v6391_v46 = vadd.f32 %v6335_v6, %v14002_v32 }
 0x75b   : > { %v6267_v56 = vpop.f32.mrf.mxu2  ;;  %v6445_v50 = vadd.f32 %v14130_v15, %v6391_v46 }
 0x75d   : > { %v6493_v51 = vmax.f32 %v6445_v50, 0.0 }
 0x75e   : > { %v6336_v18 = vpop.f32.mrf.mxu3 }
 0x75f   : > { %v6337_v0 = vadd.f32 %v6336_v18, %v6267_v56 }
 0x761   : > { %v6393_v25 = vadd.f32 %v6337_v0, %v14010_v5 }
 0x763   : > { %v6447_v48 = vadd.f32 %v14130_v15, %v6393_v25  ;;  %v6270_v4 = vpop.f32.mrf.mxu2 }
 0x765   : > { %v6495_v19 = vmax.f32 %v6447_v48, 0.0  ;;  %v14180_v48 = vld [vmem:[%s14271_s4] ss:$0 sm:$0xff] }
 0x766   : > { %v6339_v60 = vpop.f32.mrf.mxu3 }
 0x767   : > { %v6533_v59 = vpack.c.bf16 %v6495_v19, %v6493_v51  ;;  %v6340_v17 = vadd.f32 %v6339_v60, %v6270_v4 }
 0x769   : > { %6777 = vmatmul.bf16.gmra.mxu1 %v6533_v59  ;;  %v6395_v44 = vadd.f32 %v6340_v17, %v14017_v54  ;;  %v6690_v59 = vadd.f32 %v14180_v48, %v6689_v63  ;;  %v6692_v63 = vadd.f32 %v14180_v48, %v6691_v53 }
 0x76b   : > { %v6272_v43 = vpop.f32.mrf.mxu2  ;;  %v6449_v1 = vadd.f32 %v14130_v15, %v6395_v44 }
 0x76d   : > { %v6497_v10 = vmax.f32 %v6449_v1, 0.0 }
 0x76e   : > { %v6341_v3 = vpop.f32.mrf.mxu3 }
 0x76f   : > { %v6342_v32 = vadd.f32 %v6341_v3, %v6272_v43 }
 0x771   : > { %v6397_v37 = vadd.f32 %v6342_v32, %v14028_v23 }
 0x773   : > { %v6451_v5 = vadd.f32 %v14130_v15, %v6397_v37  ;;  %v6275_v13 = vpop.f32.mrf.mxu2 }
 0x775   : > { %v6499_v30 = vmax.f32 %v6451_v5, 0.0 }
 0x776   : > { %v6344_v58 = vpop.f32.mrf.mxu3 }
 0x777   : > { %v6535_v52 = vpack.c.bf16 %v6499_v30, %v6497_v10  ;;  %v6345_v14 = vadd.f32 %v6344_v58, %v6275_v13 }
 0x779   : > { %6782 = vmatmul.bf16.gmra.mxu1 %v6535_v52  ;;  %v6399_v54 = vadd.f32 %v6345_v14, %v14035_v47 }
 0x77b   : > { %v6277_v36 = vpop.f32.mrf.mxu2  ;;  %v6453_v16 = vadd.f32 %v14130_v15, %v6399_v54 }
 0x77d   : > { %v6501_v24 = vmax.f32 %v6453_v16, 0.0 }
 0x77e   : > { %v6346_v39 = vpop.f32.mrf.mxu3 }
 0x77f   : > { %v6347_v7 = vadd.f32 %v6346_v39, %v6277_v36 }
 0x781   : > { %v6401_v23 = vadd.f32 %v6347_v7, %v14043_v33  ;;  %v6695_v7 = vadd.f32 %v14180_v48, %v6694_v41 }
 0x783   : > { %v6455_v27 = vadd.f32 %v14130_v15, %v6401_v23  ;;  %v6280_v29 = vpop.f32.mrf.mxu2 }
 0x785   : > { %v6503_v45 = vmax.f32 %v6455_v27, 0.0 }
 0x786   : > { %v6349_v8 = vpop.f32.mrf.mxu3 }
 0x787   : > { %v6537_v28 = vpack.c.bf16 %v6503_v45, %v6501_v24  ;;  %v6350_v21 = vadd.f32 %v6349_v8, %v6280_v29 }
 0x789   : > { %6787 = vmatmul.bf16.gmra.mxu1 %v6537_v28  ;;  %v6403_v47 = vadd.f32 %v6350_v21, %v14053_v35  ;;  %v14173_v35 = vpop.f32.mrf.mxu0 }
 0x78b   : > { %v6282_v11 = vpop.f32.mrf.mxu2  ;;  %v6457_v33 = vadd.f32 %v14130_v15, %v6403_v47 }
 0x78d   : > { %v6505_v62 = vmax.f32 %v6457_v33, 0.0 }
 0x78e   : > { %v6351_v57 = vpop.f32.mrf.mxu3 }
 0x78f   : > { %v6352_v61 = vadd.f32 %v6351_v57, %v6282_v11 }
 0x791   : > { %v6405_v38 = vadd.f32 %v6352_v61, %v14061_v49  ;;  %v6701_v17 = vpop.f32.mrf.mxu0 }
 0x793   : > { %v6459_v40 = vadd.f32 %v14130_v15, %v6405_v38  ;;  %v6285_v2 = vpop.f32.mrf.mxu2 }
 0x795   : > { %v6507_v6 = vmax.f32 %v6459_v40, 0.0 }
 0x796   : > { %v6354_v56 = vpop.f32.mrf.mxu3 }
 0x797   : > { %v6539_v46 = vpack.c.bf16 %v6507_v6, %v6505_v62  ;;  %v6355_v18 = vadd.f32 %v6354_v56, %v6285_v2  ;;  %v6700_v2 = vadd.f32 %v14180_v48, %v14173_v35 }
 0x799   : > { %6792 = vmatmul.bf16.gmra.mxu1 %v6539_v46  ;;  %v6407_v50 = vadd.f32 %v6355_v18, %v14068_v55  ;;  %v6704_v30 = vpop.f32.mrf.mxu0 }
 0x79b   : > { %v6287_v0 = vpop.f32.mrf.mxu2  ;;  %v6461_v4 = vadd.f32 %v14130_v15, %v6407_v50 }
 0x79d   : > { %v6509_v55 = vmax.f32 %v6461_v4, 0.0 }
 0x79e   : > { %v6356_v25 = vpop.f32.mrf.mxu3 }
 0x79f   : > { %v6357_v49 = vadd.f32 %v6356_v25, %v6287_v0 }
 0x7a1   : > { %v6409_v51 = vadd.f32 %v6357_v49, %v14079_v12  ;;  %v6706_v24 = vpop.f32.mrf.mxu0 }
 0x7a3   : > { %v6463_v19 = vadd.f32 %v14130_v15, %v6409_v51  ;;  %v6290_v60 = vpop.f32.mrf.mxu2 }
 0x7a5   : > { %v6511_v43 = vmax.f32 %v6463_v19, 0.0 }
 0x7a6   : > { %v6359_v44 = vpop.f32.mrf.mxu3  ;;  %v6758_v3 = vpop.f32.mrf.mxu1 }
 0x7a7   : > { %v6759_v32 = vadd.f32 %v6758_v3, %v6690_v59  ;;  %v6541_v12 = vpack.c.bf16 %v6511_v43, %v6509_v55  ;;  %v6360_v1 = vadd.f32 %v6359_v44, %v6290_v60  ;;  %v6705_v55 = vadd.f32 %v14180_v48, %v6704_v30 }
 0x7a9   : > { %6818 = vst [vmem:[%s14189_s27] sm:$0xff] %v6759_v32  ;;  %6797 = vmatmul.bf16.gmra.mxu1 %v6541_v12  ;;  %v6411_v5 = vadd.f32 %v6360_v1, %v14086_v31  ;;  %v6709_v33 = vpop.f32.mrf.mxu0  ;;  %v6707_v12 = vadd.f32 %v14180_v48, %v6706_v24 }
 0x7ab   : > { %v6292_v37 = vpop.f32.mrf.mxu2  ;;  %v6465_v14 = vadd.f32 %v14130_v15, %v6411_v5 }
 0x7ad   : > { %v6513_v16 = vmax.f32 %v6465_v14, 0.0 }
 0x7ae   : > { %v6361_v13 = vpop.f32.mrf.mxu3  ;;  %v6760_v10 = vpop.f32.mrf.mxu1 }
 0x7af   : > { %v6362_v58 = vadd.f32 %v6361_v13, %v6292_v37  ;;  %v6761_v52 = vadd.f32 %v6760_v10, %v6692_v63 }
 0x7b1   : > { %v6413_v36 = vadd.f32 %v6362_v58, %v14094_v20  ;;  %6819 = vst [vmem:[%s14189_s27 + $0x8] sm:$0xff] %v6761_v52  ;;  %v6697_v20 = vadd.f32 %v14180_v48, %v14167_v26  ;;  %v6711_v50 = vpop.f32.mrf.mxu0 }
 0x7b2   : > { %v6712_v10 = vadd.f32 %v14180_v48, %v6711_v50 }
 0x7b3   : > { %v6467_v54 = vadd.f32 %v14130_v15, %v6413_v36  ;;  %v6295_v39 = vpop.f32.mrf.mxu2 }
 0x7b5   : > { %v6515_v53 = vmax.f32 %v6467_v54, 0.0 }
 0x7b6   : > { %v6364_v23 = vpop.f32.mrf.mxu3  ;;  %v6763_v31 = vpop.f32.mrf.mxu1 }
 0x7b7   : > { %v6764_v27 = vadd.f32 %v6763_v31, %v6695_v7  ;;  %v6543_v29 = vpack.c.bf16 %v6515_v53, %v6513_v16  ;;  %v6365_v45 = vadd.f32 %v6364_v23, %v6295_v39 }
 0x7b9   : > { %6820 = vst [vmem:[%s14189_s27 + $0x10] sm:$0xff] %v6764_v27  ;;  %6802 = vmatmul.bf16.gmra.mxu1 %v6543_v29  ;;  %v6415_v28 = vadd.f32 %v6365_v45, %v14104_v42  ;;  %v6714_v32 = vpop.f32.mrf.mxu0 }
 0x7ba   : > { %v6715_v52 = vadd.f32 %v14180_v48, %v6714_v32 }
 0x7bb   : > { %v6297_v8 = vpop.f32.mrf.mxu2  ;;  %v6469_v57 = vadd.f32 %v14130_v15, %v6415_v28 }
 0x7bd   : > { %v6517_v26 = vmax.f32 %v6469_v57, 0.0 }
 0x7be   : > { %v6366_v21 = vpop.f32.mrf.mxu3  ;;  %v6765_v11 = vpop.f32.mrf.mxu1 }
 0x7bf   : > { %v6367_v41 = vadd.f32 %v6366_v21, %v6297_v8  ;;  %v6766_v47 = vadd.f32 %v6765_v11, %v6697_v20 }
 0x7c1   : > { %v6417_v61 = vadd.f32 %v6367_v41, %v14110_v22  ;;  %6821 = vst [vmem:[%s14189_s27 + $0x18] sm:$0xff] %v6766_v47  ;;  %v6702_v22 = vadd.f32 %v14180_v48, %v6701_v17 }
 0x7c3   : > { %v6471_v38 = vadd.f32 %v14130_v15, %v6417_v61  ;;  %v6300_v40 = vpop.f32.mrf.mxu2 }
 0x7c5   : > { %v6519_v62 = vmax.f32 %v6471_v38, 0.0 }
 0x7c6   : > { %v6369_v42 = vpop.f32.mrf.mxu3  ;;  %v6768_v6 = vpop.f32.mrf.mxu1 }
 0x7c7   : > { %v6769_v56 = vadd.f32 %v6768_v6, %v6700_v2  ;;  %v6545_v46 = vpack.c.bf16 %v6519_v62, %v6517_v26  ;;  %v6370_v18 = vadd.f32 %v6369_v42, %v6300_v40 }
 0x7c9   : > { %6822 = vst [vmem:[%s14189_s27 + $0x20] sm:$0xff] %v6769_v56  ;;  %6807 = vmatmul.bf16.gmra.mxu1 %v6545_v46  ;;  %v6419_v25 = vadd.f32 %v6370_v18, %v14117_v34 }
 0x7cb   : > { %v6302_v0 = vpop.f32.mrf.mxu2  ;;  %v6473_v19 = vadd.f32 %v14130_v15, %v6419_v25 }
 0x7cd   : > { %v6521_v43 = vmax.f32 %v6473_v19, 0.0 }
 0x7ce   : > { %v6371_v49 = vpop.f32.mrf.mxu3  ;;  %v6770_v4 = vpop.f32.mrf.mxu1 }
 0x7cf   : > { %v6372_v35 = vadd.f32 %v6371_v49, %v6302_v0  ;;  %v6771_v51 = vadd.f32 %v6770_v4, %v6702_v22 }
 0x7d1   : > { %v6421_v60 = vadd.f32 %v6372_v35, %v14123_v9  ;;  %6823 = vst [vmem:[%s14189_s27 + $0x28] sm:$0xff] %v6771_v51  ;;  %v6716_v9 = vpop.f32.mrf.mxu0 }
 0x7d2   : > { %v6717_v39 = vadd.f32 %v14180_v48, %v6716_v9 }
 0x7d3   : > { %v6475_v59 = vadd.f32 %v14130_v15, %v6421_v60  ;;  %v6710_v15 = vadd.f32 %v14180_v48, %v6709_v33 }
 0x7d5   : > { %v6523_v17 = vmax.f32 %v6475_v59, 0.0 }
 0x7d6   : > { %v6773_v44 = vpop.f32.mrf.mxu1 }
 0x7d7   : > { %v6774_v34 = vadd.f32 %v6773_v44, %v6705_v55  ;;  %v6547_v3 = vpack.c.bf16 %v6523_v17, %v6521_v43 }
 0x7d9   : > { %6824 = vst [vmem:[%s14189_s27 + $0x30] sm:$0xff] %v6774_v34  ;;  %6812 = vmatmul.bf16.gmra.mxu1 %v6547_v3  ;;  %v6719_v13 = vpop.f32.mrf.mxu0 }
 0x7da   : > { %v6720_v23 = vadd.f32 %v14180_v48, %v6719_v13 }
 0x7de   : > { %v6775_v1 = vpop.f32.mrf.mxu1 }
 0x7df   : > { %v6776_v37 = vadd.f32 %v6775_v1, %v6707_v12 }
 0x7e1   : > { %6825 = vst [vmem:[%s14189_s27 + $0x38] sm:$0xff] %v6776_v37  ;;  %v6721_v14 = vpop.f32.mrf.mxu0 }
 0x7e2   : > { %v6722_v24 = vadd.f32 %v14180_v48, %v6721_v14 }
 0x7e6   : > { %v6778_v63 = vpop.f32.mrf.mxu1 }
 0x7e7   : > { %v6779_v5 = vadd.f32 %v6778_v63, %v6710_v15 }
 0x7e9   : > { %6826 = vst [vmem:[%s14189_s27 + $0x40] sm:$0xff] %v6779_v5  ;;  %v6724_v53 = vpop.f32.mrf.mxu0 }
 0x7ea   : > { %v6725_v28 = vadd.f32 %v14180_v48, %v6724_v53 }
 0x7ee   : > { %v6780_v30 = vpop.f32.mrf.mxu1 }
 0x7ef   : > { %v6781_v58 = vadd.f32 %v6780_v30, %v6712_v10 }
 0x7f1   : > { %6827 = vst [vmem:[%s14189_s27 + $0x48] sm:$0xff] %v6781_v58  ;;  %v6726_v29 = vpop.f32.mrf.mxu0 }
 0x7f2   : > { %v6727_v41 = vadd.f32 %v14180_v48, %v6726_v29 }
 0x7f6   : > { %v6783_v36 = vpop.f32.mrf.mxu1 }
 0x7f7   : > { %v6784_v54 = vadd.f32 %v6783_v36, %v6715_v52 }
 0x7f9   : > { %6828 = vst [vmem:[%s14189_s27 + $0x50] sm:$0xff] %v6784_v54  ;;  %v6729_v20 = vpop.f32.mrf.mxu0 }
 0x7fa   : > { %v6730_v33 = vadd.f32 %v14180_v48, %v6729_v20 }
 0x7fe   : > { %v6785_v7 = vpop.f32.mrf.mxu1 }
 0x7ff   : > { %v6786_v16 = vadd.f32 %v6785_v7, %v6717_v39 }
 0x801   : > { %6829 = vst [vmem:[%s14189_s27 + $0x58] sm:$0xff] %v6786_v16  ;;  %v6731_v47 = vpop.f32.mrf.mxu0 }
 0x802   : > { %v6732_v26 = vadd.f32 %v14180_v48, %v6731_v47 }
 0x806   : > { %v6788_v31 = vpop.f32.mrf.mxu1 }
 0x807   : > { %v6789_v27 = vadd.f32 %v6788_v31, %v6720_v23 }
 0x809   : > { %6830 = vst [vmem:[%s14189_s27 + $0x60] sm:$0xff] %v6789_v27  ;;  %v6734_v2 = vpop.f32.mrf.mxu0 }
 0x80a   : > { %v6735_v56 = vadd.f32 %v14180_v48, %v6734_v2 }
 0x80e   : > { %v6790_v45 = vpop.f32.mrf.mxu1 }
 0x80f   : > { %v6791_v8 = vadd.f32 %v6790_v45, %v6722_v24 }
 0x811   : > { %6831 = vst [vmem:[%s14189_s27 + $0x68] sm:$0xff] %v6791_v8  ;;  %v6736_v6 = vpop.f32.mrf.mxu0 }
 0x812   : > { %v6737_v22 = vadd.f32 %v14180_v48, %v6736_v6 }
 0x816   : > { %v6793_v21 = vpop.f32.mrf.mxu1 }
 0x817   : > { %v6794_v11 = vadd.f32 %v6793_v21, %v6725_v28 }
 0x819   : > { %6832 = vst [vmem:[%s14189_s27 + $0x70] sm:$0xff] %v6794_v11  ;;  %v6739_v0 = vpop.f32.mrf.mxu0 }
 0x81a   : > { %v6740_v49 = vadd.f32 %v14180_v48, %v6739_v0 }
 0x81e   : > { %v6795_v57 = vpop.f32.mrf.mxu1 }
 0x81f   : > { %v6796_v61 = vadd.f32 %v6795_v57, %v6727_v41 }
 0x821   : > { %6833 = vst [vmem:[%s14189_s27 + $0x78] sm:$0xff] %v6796_v61  ;;  %v6741_v4 = vpop.f32.mrf.mxu0 }
 0x822   : > { %v6742_v19 = vadd.f32 %v14180_v48, %v6741_v4 }
 0x826   : > { %v6798_v38 = vpop.f32.mrf.mxu1 }
 0x827   : > { %v6799_v40 = vadd.f32 %v6798_v38, %v6730_v33 }
 0x829   : > { %6834 = vst [vmem:[%s14189_s27 + $0x80] sm:$0xff] %v6799_v40  ;;  %v6744_v55 = vpop.f32.mrf.mxu0 }
 0x82a   : > { %v6745_v43 = vadd.f32 %v14180_v48, %v6744_v55 }
 0x82e   : > { %v6800_v62 = vpop.f32.mrf.mxu1 }
 0x82f   : > { %v6801_v42 = vadd.f32 %v6800_v62, %v6732_v26 }
 0x831   : > { %6835 = vst [vmem:[%s14189_s27 + $0x88] sm:$0xff] %v6801_v42  ;;  %v6746_v34 = vpop.f32.mrf.mxu0 }
 0x832   : > { %v6747_v3 = vadd.f32 %v14180_v48, %v6746_v34 }
 0x836   : > { %v6803_v46 = vpop.f32.mrf.mxu1 }
 0x837   : > { %v6804_v18 = vadd.f32 %v6803_v46, %v6735_v56 }
 0x839   : > { %6836 = vst [vmem:[%s14189_s27 + $0x90] sm:$0xff] %v6804_v18 }
 0x83e   : > { %v6805_v50 = vpop.f32.mrf.mxu1 }
 0x83f   : > { %v6806_v25 = vadd.f32 %v6805_v50, %v6737_v22 }
 0x841   : > { %6837 = vst [vmem:[%s14189_s27 + $0x98] sm:$0xff] %v6806_v25 }
 0x846   : > { %v6808_v35 = vpop.f32.mrf.mxu1 }
 0x847   : > { %v6809_v51 = vadd.f32 %v6808_v35, %v6740_v49 }
 0x849   : > { %6838 = vst [vmem:[%s14189_s27 + $0xa0] sm:$0xff] %v6809_v51 }
 0x84e   : > { %v6810_v60 = vpop.f32.mrf.mxu1 }
 0x84f   : > { %v6811_v59 = vadd.f32 %v6810_v60, %v6742_v19 }
 0x851   : > { %6839 = vst [vmem:[%s14189_s27 + $0xa8] sm:$0xff] %v6811_v59 }
 0x856   : > { %v6813_v17 = vpop.f32.mrf.mxu1 }
 0x857   : > { %v6814_v44 = vadd.f32 %v6813_v17, %v6745_v43 }
 0x859   : > { %6840 = vst [vmem:[%s14189_s27 + $0xb0] sm:$0xff] %v6814_v44 }
 0x85e   : > { %v6815_v32 = vpop.f32.mrf.mxu1 }
 0x85f   : > { %v6816_v12 = vadd.f32 %v6815_v32, %v6747_v3 }
 0x861   : > { %6841 = vst [vmem:[%s14189_s27 + $0xb8] sm:$0xff] %v6816_v12 }
 0x862 PF: > { %s15_s22 = sadd.s32 1, %s9388_s22   ;;  %s14972_s18 = smov %s9380_s20 }
 0x863   : > { %p12_p8 = scmp.ge.s32.totalorder %s15_s22, 6   ;;  %s14973_s19 = smov %s9384_s21 }
 0x864   : > { %s14974_s20 = smov %s14977_s23  ;;  %s14975_s21 = smov %s14981_s24 }
 0x865   :  { %14 = sbr.rel (!%p12_p8) target bundleno = 3 (0x3), region = 78 }

</bundles_post_ra>
